<compile_context>
chip_gen: v5e
topology: v5e:2x2
jax: 0.10.0
libtpu: 0.0.40
codegen_flags: <defaults>
</compile_context>

<pallas_src>
import functools

import jax
import jax.numpy as jnp
from jax.experimental import pallas as pl
from jax.experimental.pallas import tpu as pltpu

C_PAD = 128  # lane-dense channel width used end-to-end


def _round_up(x, m):
    return (x + m - 1) // m * m


# ---------------------------------------------------------------------------
# Pallas kernels
# ---------------------------------------------------------------------------

def _conv_mm_kernel(x_ref, w_ref, s_ref, b_ref, *rest, do_relu, has_res):
    """Fused conv-as-matmul + folded-BN affine + optional residual + optional ReLU."""
    if has_res:
        r_ref, o_ref = rest
    else:
        (o_ref,) = rest
    acc = jnp.dot(x_ref[...], w_ref[...], preferred_element_type=jnp.float32)
    acc = acc * s_ref[...] + b_ref[...]            # per-channel scale/shift (folded BN / bias)
    if has_res:
        acc = acc + r_ref[...].astype(jnp.float32)
    if do_relu:
        acc = jnp.maximum(acc, 0.0)
    o_ref[...] = acc.astype(o_ref.dtype)


def _head_kernel(x_ref, w_ref, b_ref, o_ref):
    """Global average pool (in-kernel mean over H*W) + Linear."""
    pooled = jnp.mean(x_ref[...].astype(jnp.float32), axis=1)          # [N, C_PAD]
    o_ref[...] = (jnp.dot(pooled, w_ref[...], preferred_element_type=jnp.float32)
                  + b_ref[...])


_VMEM_SPEC = pl.BlockSpec(memory_space=pltpu.MemorySpace.VMEM)


# ---------------------------------------------------------------------------
# Conv wrapper: im2col (thin bf16 glue) + tiled Pallas matmul kernel
# ---------------------------------------------------------------------------

def conv_bn_act(x_nhwc, conv_p, *, residual=None, relu=False):
    """x_nhwc: [N, H, W, C] bf16. conv_p: prepared (padded, flattened) conv params."""
    kh, kw, stride = conv_p['kh'], conv_p['kw'], conv_p['stride']
    wmat = conv_p['w']        # [K_pad, C_PAD] bf16
    scale = conv_p['scale']   # [1, C_PAD] f32
    shift = conv_p['shift']   # [1, C_PAD] f32

    N, H, W, C = x_nhwc.shape
    pad = (kh - 1) // 2                     # horch Conv2d: 'same'-style padding
    Ho = (H + 2 * pad - kh) // stride + 1
    Wo = (W + 2 * pad - kw) // stride + 1
    M = N * Ho * Wo
    K_pad = wmat.shape[0]

    # im2col in bf16 (XLA glue fused under jit).
    xp = jnp.pad(x_nhwc, ((0, 0), (pad, pad), (pad, pad), (0, 0)))
    cols = []
    for i in range(kh):
        for j in range(kw):
            cols.append(xp[:, i:i + stride * Ho:stride, j:j + stride * Wo:stride, :])
    patches = jnp.concatenate(cols, axis=-1).reshape(M, kh * kw * C)
    if patches.shape[1] != K_pad:           # pad K to a multiple of 128 (stem only)
        patches = jnp.pad(patches, ((0, 0), (0, K_pad - patches.shape[1])))

    tile_m = min(256, _round_up(M, 8))
    M_pad = _round_up(M, tile_m)
    if M_pad != M:
        patches = jnp.pad(patches, ((0, M_pad - M), (0, 0)))
    patches = patches.astype(jnp.bfloat16)

    inputs = [patches, wmat, scale, shift]
    in_specs = [
        pl.BlockSpec((tile_m, K_pad), lambda i: (i, 0)),
        pl.BlockSpec((K_pad, C_PAD), lambda i: (0, 0)),
        pl.BlockSpec((1, C_PAD), lambda i: (0, 0)),
        pl.BlockSpec((1, C_PAD), lambda i: (0, 0)),
    ]
    if residual is not None:
        res = residual.reshape(M, C_PAD)
        if M_pad != M:
            res = jnp.pad(res, ((0, M_pad - M), (0, 0)))
        inputs.append(res.astype(jnp.bfloat16))
        in_specs.append(pl.BlockSpec((tile_m, C_PAD), lambda i: (i, 0)))

    kern = functools.partial(_conv_mm_kernel, do_relu=relu,
                             has_res=residual is not None)
    out = pl.pallas_call(
        kern,
        out_shape=jax.ShapeDtypeStruct((M_pad, C_PAD), jnp.bfloat16),
        grid=(M_pad // tile_m,),
        in_specs=in_specs,
        out_specs=pl.BlockSpec((tile_m, C_PAD), lambda i: (i, 0)),
        compiler_params=pltpu.CompilerParams(
            dimension_semantics=("parallel",)),
    )(*inputs)
    return out[:M].reshape(N, Ho, Wo, C_PAD)


# ---------------------------------------------------------------------------
# Parameter init (deterministic, synthetic) + padding / BN folding / bf16 prep
# ---------------------------------------------------------------------------

def init_resnet_params(key, depth=8, num_classes=10):
    """depth follows (depth - 2) % 6 == 0 for BasicBlock; depth=8 -> 1 block/stage."""
    stages = [16, 16, 32, 64]
    nblocks = (depth - 2) // 6
    keys = iter(jax.random.split(key, 512))
    eps = 1e-5

    def conv_w(kh, kw, cin, cout):
        return 0.1 * jax.random.normal(next(keys), (kh, kw, cin, cout), jnp.float32)

    def bn_fold(c):
        gamma = 1.0 + 0.1 * jax.random.normal(next(keys), (c,), jnp.float32)
        beta = 0.1 * jax.random.normal(next(keys), (c,), jnp.float32)
        mean = 0.1 * jax.random.normal(next(keys), (c,), jnp.float32)
        var = jnp.abs(jax.random.normal(next(keys), (c,), jnp.float32)) + 1.0
        scale = gamma / jnp.sqrt(var + eps)
        shift = beta - mean * scale
        return scale, shift

    def prep_conv(w_hwio, scale, shift, cin_used, stride):
        """Pad cin->cin_used, cout->C_PAD, flatten to [K_pad, C_PAD] bf16."""
        kh, kw, cin, cout = w_hwio.shape
        w = jnp.pad(w_hwio, ((0, 0), (0, 0), (0, cin_used - cin), (0, C_PAD - cout)))
        wmat = w.reshape(kh * kw * cin_used, C_PAD)
        k_pad = _round_up(wmat.shape[0], 128)
        wmat = jnp.pad(wmat, ((0, k_pad - wmat.shape[0]), (0, 0))).astype(jnp.bfloat16)
        s = jnp.pad(scale, (0, C_PAD - cout),
                    constant_values=1.0).reshape(1, C_PAD).astype(jnp.float32)
        b = jnp.pad(shift, (0, C_PAD - cout)).reshape(1, C_PAD).astype(jnp.float32)
        return {'w': wmat, 'scale': s, 'shift': b, 'kh': kh, 'kw': kw, 'stride': stride}

    params = {}
    # stem: Conv2d(3, 16, kernel_size=3) -> conv with bias (no norm / activation)
    stem_w = conv_w(3, 3, 3, stages[0])
    stem_bias = 0.1 * jax.random.normal(next(keys), (stages[0],), jnp.float32)
    params['stem'] = prep_conv(stem_w, jnp.ones((stages[0],), jnp.float32),
                               stem_bias, cin_used=3, stride=1)

    def make_block(in_c, out_c, stride):
        p = {'stride': stride}
        w1 = conv_w(3, 3, in_c, out_c); s1, b1 = bn_fold(out_c)
        p['conv1'] = prep_conv(w1, s1, b1, C_PAD, stride)
        w2 = conv_w(3, 3, out_c, out_c); s2, b2 = bn_fold(out_c)
        p['conv2'] = prep_conv(w2, s2, b2, C_PAD, 1)
        if stride != 1:
            wsc = conv_w(1, 1, in_c, out_c); ss, bs = bn_fold(out_c)
            p['shortcut'] = prep_conv(wsc, ss, bs, C_PAD, stride)
        return p

    def make_layer(in_c, out_c, blocks, stride):
        layer = [make_block(in_c, out_c, stride)]
        for _ in range(1, blocks):
            layer.append(make_block(out_c, out_c, 1))
        return layer

    params['layer1'] = make_layer(stages[0], stages[1], nblocks, 1)
    params['layer2'] = make_layer(stages[1], stages[2], nblocks, 2)
    params['layer3'] = make_layer(stages[2], stages[3], nblocks, 2)

    fc_w = 0.1 * jax.random.normal(next(keys), (stages[3], num_classes), jnp.float32)
    fc_b = 0.1 * jax.random.normal(next(keys), (num_classes,), jnp.float32)
    params['fc_w'] = jnp.pad(fc_w, ((0, C_PAD - stages[3]), (0, C_PAD - num_classes)))
    params['fc_b'] = jnp.pad(fc_b, (0, C_PAD - num_classes)).reshape(1, C_PAD)
    params['num_classes'] = num_classes
    return params


# ---------------------------------------------------------------------------
# Forward pass
# ---------------------------------------------------------------------------

def basic_block_forward(x, p):
    if p['stride'] != 1:
        identity = conv_bn_act(x, p['shortcut'])
    else:
        identity = x
    y = conv_bn_act(x, p['conv1'], relu=True)
    # conv2 (BN only) + residual add + final ReLU, fused in one kernel
    y = conv_bn_act(y, p['conv2'], residual=identity, relu=True)
    return y


def resnet_forward(x_nchw, params):
    x = jnp.transpose(x_nchw, (0, 2, 3, 1)).astype(jnp.bfloat16)   # NCHW -> NHWC
    x = conv_bn_act(x, params['stem'])
    for layer_name in ('layer1', 'layer2', 'layer3'):
        for blk in params[layer_name]:
            x = basic_block_forward(x, blk)

    # head: AdaptiveAvgPool2d(1) + flatten + Linear, as one Pallas kernel
    N, H, W, C = x.shape
    xf = x.reshape(N, H * W, C)
    out = pl.pallas_call(
        _head_kernel,
        out_shape=jax.ShapeDtypeStruct((N, C_PAD), jnp.float32),
        in_specs=[_VMEM_SPEC] * 3,
        out_specs=_VMEM_SPEC,
    )(xf, params['fc_w'], params['fc_b'])
    return out[:, :params['num_classes']]


# ---------------------------------------------------------------------------
# Main
# ---------------------------------------------------------------------------

if __name__ == "__main__":
    key = jax.random.PRNGKey(0)
    k_param, k_input = jax.random.split(key)

    # ResNet(depth=8, num_classes=10, block='basic') -> 1 BasicBlock per stage
    params = init_resnet_params(k_param, depth=8, num_classes=10)

    # PyTorch-convention NCHW input (small CIFAR-like image)
    x = jax.random.normal(k_input, (2, 3, 16, 16), jnp.float32)

    fwd = jax.jit(lambda inp: resnet_forward(inp, params))
    logits = jax.block_until_ready(fwd(x))
    assert logits.shape == (2, 10)
    print("KERNEL_OK")
</pallas_src>

<mosaic_0001>
module attributes {stable_mosaic.version = 11 : i64} {
  func.func @_conv_mm_kernel(%arg0: i32, %arg1: memref<256x128xbf16, #tpu.memory_space<vmem>>, %arg2: memref<128x128xbf16, #tpu.memory_space<vmem>>, %arg3: memref<1x128xf32, #tpu.memory_space<vmem>>, %arg4: memref<1x128xf32, #tpu.memory_space<vmem>>, %arg5: memref<256x128xbf16, #tpu.memory_space<vmem>>) attributes {dimension_semantics = [#tpu.dimension_semantics<parallel>], iteration_bounds = array<i64: 2>, scalar_prefetch = 0 : i64, scratch_operands = 0 : i64, tpu.core_type = #tpu.core_type<tc>, window_params = [{transform_indices = @transform_0, window_bounds = array<i64: 256, 128>}, {pipeline_mode = #tpu.pipeline_mode<synchronous>, transform_indices = @transform_1, window_bounds = array<i64: 128, 128>}, {pipeline_mode = #tpu.pipeline_mode<synchronous>, transform_indices = @transform_2, window_bounds = array<i64: 1, 128>}, {pipeline_mode = #tpu.pipeline_mode<synchronous>, transform_indices = @transform_3, window_bounds = array<i64: 1, 128>}, {transform_indices = @transform_4, window_bounds = array<i64: 256, 128>}]} {
    %c0 = arith.constant 0 : index
    %c0_0 = arith.constant 0 : index
    %0 = vector.load %arg1[%c0, %c0_0] : memref<256x128xbf16, #tpu.memory_space<vmem>>, vector<256x128xbf16>
    %c0_1 = arith.constant 0 : index
    %c0_2 = arith.constant 0 : index
    %1 = vector.load %arg2[%c0_1, %c0_2] : memref<128x128xbf16, #tpu.memory_space<vmem>>, vector<128x128xbf16>
    %cst = arith.constant dense<0.000000e+00> : vector<256x128xf32>
    %2 = tpu.matmul %0, %1, %cst {dimension_numbers = #tpu.dot_dimension_numbers<[1], [0], [0], [1], [0, 0, 1, 1], [], []>} : vector<256x128xbf16>, vector<128x128xbf16>, vector<256x128xf32> -> vector<256x128xf32>
    %c0_3 = arith.constant 0 : index
    %c0_4 = arith.constant 0 : index
    %3 = vector.load %arg3[%c0_3, %c0_4] : memref<1x128xf32, #tpu.memory_space<vmem>>, vector<1x128xf32>
    %4 = vector.broadcast %3 : vector<1x128xf32> to vector<256x128xf32>
    %5 = arith.mulf %2, %4 : vector<256x128xf32>
    %c0_5 = arith.constant 0 : index
    %c0_6 = arith.constant 0 : index
    %6 = vector.load %arg4[%c0_5, %c0_6] : memref<1x128xf32, #tpu.memory_space<vmem>>, vector<1x128xf32>
    %7 = vector.broadcast %6 : vector<1x128xf32> to vector<256x128xf32>
    %8 = arith.addf %5, %7 : vector<256x128xf32>
    %9 = arith.truncf %8 : vector<256x128xf32> to vector<256x128xbf16>
    %c0_7 = arith.constant 0 : index
    %c0_8 = arith.constant 0 : index
    %10 = vector.load %arg5[%c0_7, %c0_8] : memref<256x128xbf16, #tpu.memory_space<vmem>>, vector<256x128xbf16>
    tpu.vector_store %arg5[%c0_7, %c0_8], %9 {strides = array<i32>} : memref<256x128xbf16, #tpu.memory_space<vmem>>, vector<256x128xbf16>,
    return
  }
  func.func @transform_0(%arg0: i32) -> (i32, i32) {
    %c0_i32 = arith.constant 0 : i32
    %c0_i32_0 = arith.constant 0 : i32
    return %arg0, %c0_i32 : i32, i32
  }
  func.func @transform_1(%arg0: i32) -> (i32, i32) {
    %c0_i32 = arith.constant 0 : i32
    %c0_i32_0 = arith.constant 0 : i32
    %c0_i32_1 = arith.constant 0 : i32
    return %c0_i32, %c0_i32_0 : i32, i32
  }
  func.func @transform_2(%arg0: i32) -> (i32, i32) {
    %c0_i32 = arith.constant 0 : i32
    %c0_i32_0 = arith.constant 0 : i32
    %c0_i32_1 = arith.constant 0 : i32
    return %c0_i32, %c0_i32_0 : i32, i32
  }
  func.func @transform_3(%arg0: i32) -> (i32, i32) {
    %c0_i32 = arith.constant 0 : i32
    %c0_i32_0 = arith.constant 0 : i32
    %c0_i32_1 = arith.constant 0 : i32
    return %c0_i32, %c0_i32_0 : i32, i32
  }
  func.func @transform_4(%arg0: i32) -> (i32, i32) {
    %c0_i32 = arith.constant 0 : i32
    %c0_i32_0 = arith.constant 0 : i32
    return %arg0, %c0_i32 : i32, i32
  }
}

module attributes {stable_mosaic.version = 11 : i64} {
  func.func @_conv_mm_kernel(%arg0: i32, %arg1: memref<256x1152xbf16, #tpu.memory_space<vmem>>, %arg2: memref<1152x128xbf16, #tpu.memory_space<vmem>>, %arg3: memref<1x128xf32, #tpu.memory_space<vmem>>, %arg4: memref<1x128xf32, #tpu.memory_space<vmem>>, %arg5: memref<256x128xbf16, #tpu.memory_space<vmem>>) attributes {dimension_semantics = [#tpu.dimension_semantics<parallel>], iteration_bounds = array<i64: 2>, scalar_prefetch = 0 : i64, scratch_operands = 0 : i64, tpu.core_type = #tpu.core_type<tc>, window_params = [{transform_indices = @transform_0, window_bounds = array<i64: 256, 1152>}, {pipeline_mode = #tpu.pipeline_mode<synchronous>, transform_indices = @transform_1, window_bounds = array<i64: 1152, 128>}, {pipeline_mode = #tpu.pipeline_mode<synchronous>, transform_indices = @transform_2, window_bounds = array<i64: 1, 128>}, {pipeline_mode = #tpu.pipeline_mode<synchronous>, transform_indices = @transform_3, window_bounds = array<i64: 1, 128>}, {transform_indices = @transform_4, window_bounds = array<i64: 256, 128>}]} {
    %c0 = arith.constant 0 : index
    %c0_0 = arith.constant 0 : index
    %0 = vector.load %arg1[%c0, %c0_0] : memref<256x1152xbf16, #tpu.memory_space<vmem>>, vector<256x1152xbf16>
    %c0_1 = arith.constant 0 : index
    %c0_2 = arith.constant 0 : index
    %1 = vector.load %arg2[%c0_1, %c0_2] : memref<1152x128xbf16, #tpu.memory_space<vmem>>, vector<1152x128xbf16>
    %cst = arith.constant dense<0.000000e+00> : vector<256x128xf32>
    %2 = tpu.matmul %0, %1, %cst {dimension_numbers = #tpu.dot_dimension_numbers<[1], [0], [0], [1], [0, 0, 1, 1], [], []>} : vector<256x1152xbf16>, vector<1152x128xbf16>, vector<256x128xf32> -> vector<256x128xf32>
    %c0_3 = arith.constant 0 : index
    %c0_4 = arith.constant 0 : index
    %3 = vector.load %arg3[%c0_3, %c0_4] : memref<1x128xf32, #tpu.memory_space<vmem>>, vector<1x128xf32>
    %4 = vector.broadcast %3 : vector<1x128xf32> to vector<256x128xf32>
    %5 = arith.mulf %2, %4 : vector<256x128xf32>
    %c0_5 = arith.constant 0 : index
    %c0_6 = arith.constant 0 : index
    %6 = vector.load %arg4[%c0_5, %c0_6] : memref<1x128xf32, #tpu.memory_space<vmem>>, vector<1x128xf32>
    %7 = vector.broadcast %6 : vector<1x128xf32> to vector<256x128xf32>
    %8 = arith.addf %5, %7 : vector<256x128xf32>
    %cst_7 = arith.constant 0.000000e+00 : f32
    %9 = vector.broadcast %cst_7 : f32 to vector<256x128xf32>
    %10 = arith.maximumf %8, %9 : vector<256x128xf32>
    %11 = arith.truncf %10 : vector<256x128xf32> to vector<256x128xbf16>
    %c0_8 = arith.constant 0 : index
    %c0_9 = arith.constant 0 : index
    %12 = vector.load %arg5[%c0_8, %c0_9] : memref<256x128xbf16, #tpu.memory_space<vmem>>, vector<256x128xbf16>
    tpu.vector_store %arg5[%c0_8, %c0_9], %11 {strides = array<i32>} : memref<256x128xbf16, #tpu.memory_space<vmem>>, vector<256x128xbf16>,
    return
  }
  func.func @transform_0(%arg0: i32) -> (i32, i32) {
    %c0_i32 = arith.constant 0 : i32
    %c0_i32_0 = arith.constant 0 : i32
    return %arg0, %c0_i32 : i32, i32
  }
  func.func @transform_1(%arg0: i32) -> (i32, i32) {
    %c0_i32 = arith.constant 0 : i32
    %c0_i32_0 = arith.constant 0 : i32
    %c0_i32_1 = arith.constant 0 : i32
    return %c0_i32, %c0_i32_0 : i32, i32
  }
  func.func @transform_2(%arg0: i32) -> (i32, i32) {
    %c0_i32 = arith.constant 0 : i32
    %c0_i32_0 = arith.constant 0 : i32
    %c0_i32_1 = arith.constant 0 : i32
    return %c0_i32, %c0_i32_0 : i32, i32
  }
  func.func @transform_3(%arg0: i32) -> (i32, i32) {
    %c0_i32 = arith.constant 0 : i32
    %c0_i32_0 = arith.constant 0 : i32
    %c0_i32_1 = arith.constant 0 : i32
    return %c0_i32, %c0_i32_0 : i32, i32
  }
  func.func @transform_4(%arg0: i32) -> (i32, i32) {
    %c0_i32 = arith.constant 0 : i32
    %c0_i32_0 = arith.constant 0 : i32
    return %arg0, %c0_i32 : i32, i32
  }
}

module attributes {stable_mosaic.version = 11 : i64} {
  func.func @_conv_mm_kernel(%arg0: i32, %arg1: memref<128x128xbf16, #tpu.memory_space<vmem>>, %arg2: memref<128x128xbf16, #tpu.memory_space<vmem>>, %arg3: memref<1x128xf32, #tpu.memory_space<vmem>>, %arg4: memref<1x128xf32, #tpu.memory_space<vmem>>, %arg5: memref<128x128xbf16, #tpu.memory_space<vmem>>) attributes {dimension_semantics = [#tpu.dimension_semantics<parallel>], iteration_bounds = array<i64: 1>, scalar_prefetch = 0 : i64, scratch_operands = 0 : i64, tpu.core_type = #tpu.core_type<tc>, window_params = [{transform_indices = @transform_0, window_bounds = array<i64: 128, 128>}, {pipeline_mode = #tpu.pipeline_mode<synchronous>, transform_indices = @transform_1, window_bounds = array<i64: 128, 128>}, {pipeline_mode = #tpu.pipeline_mode<synchronous>, transform_indices = @transform_2, window_bounds = array<i64: 1, 128>}, {pipeline_mode = #tpu.pipeline_mode<synchronous>, transform_indices = @transform_3, window_bounds = array<i64: 1, 128>}, {transform_indices = @transform_4, window_bounds = array<i64: 128, 128>}]} {
    %c0 = arith.constant 0 : index
    %c0_0 = arith.constant 0 : index
    %0 = vector.load %arg1[%c0, %c0_0] : memref<128x128xbf16, #tpu.memory_space<vmem>>, vector<128x128xbf16>
    %c0_1 = arith.constant 0 : index
    %c0_2 = arith.constant 0 : index
    %1 = vector.load %arg2[%c0_1, %c0_2] : memref<128x128xbf16, #tpu.memory_space<vmem>>, vector<128x128xbf16>
    %cst = arith.constant dense<0.000000e+00> : vector<128x128xf32>
    %2 = tpu.matmul %0, %1, %cst {dimension_numbers = #tpu.dot_dimension_numbers<[1], [0], [0], [1], [0, 0, 1, 1], [], []>} : vector<128x128xbf16>, vector<128x128xbf16>, vector<128x128xf32> -> vector<128x128xf32>
    %c0_3 = arith.constant 0 : index
    %c0_4 = arith.constant 0 : index
    %3 = vector.load %arg3[%c0_3, %c0_4] : memref<1x128xf32, #tpu.memory_space<vmem>>, vector<1x128xf32>
    %4 = vector.broadcast %3 : vector<1x128xf32> to vector<128x128xf32>
    %5 = arith.mulf %2, %4 : vector<128x128xf32>
    %c0_5 = arith.constant 0 : index
    %c0_6 = arith.constant 0 : index
    %6 = vector.load %arg4[%c0_5, %c0_6] : memref<1x128xf32, #tpu.memory_space<vmem>>, vector<1x128xf32>
    %7 = vector.broadcast %6 : vector<1x128xf32> to vector<128x128xf32>
    %8 = arith.addf %5, %7 : vector<128x128xf32>
    %9 = arith.truncf %8 : vector<128x128xf32> to vector<128x128xbf16>
    %c0_7 = arith.constant 0 : index
    %c0_8 = arith.constant 0 : index
    %10 = vector.load %arg5[%c0_7, %c0_8] : memref<128x128xbf16, #tpu.memory_space<vmem>>, vector<128x128xbf16>
    tpu.vector_store %arg5[%c0_7, %c0_8], %9 {strides = array<i32>} : memref<128x128xbf16, #tpu.memory_space<vmem>>, vector<128x128xbf16>,
    return
  }
  func.func @transform_0(%arg0: i32) -> (i32, i32) {
    %c0_i32 = arith.constant 0 : i32
    %c0_i32_0 = arith.constant 0 : i32
    return %arg0, %c0_i32 : i32, i32
  }
  func.func @transform_1(%arg0: i32) -> (i32, i32) {
    %c0_i32 = arith.constant 0 : i32
    %c0_i32_0 = arith.constant 0 : i32
    %c0_i32_1 = arith.constant 0 : i32
    return %c0_i32, %c0_i32_0 : i32, i32
  }
  func.func @transform_2(%arg0: i32) -> (i32, i32) {
    %c0_i32 = arith.constant 0 : i32
    %c0_i32_0 = arith.constant 0 : i32
    %c0_i32_1 = arith.constant 0 : i32
    return %c0_i32, %c0_i32_0 : i32, i32
  }
  func.func @transform_3(%arg0: i32) -> (i32, i32) {
    %c0_i32 = arith.constant 0 : i32
    %c0_i32_0 = arith.constant 0 : i32
    %c0_i32_1 = arith.constant 0 : i32
    return %c0_i32, %c0_i32_0 : i32, i32
  }
  func.func @transform_4(%arg0: i32) -> (i32, i32) {
    %c0_i32 = arith.constant 0 : i32
    %c0_i32_0 = arith.constant 0 : i32
    return %arg0, %c0_i32 : i32, i32
  }
}

module attributes {stable_mosaic.version = 11 : i64} {
  func.func @_conv_mm_kernel(%arg0: i32, %arg1: memref<256x1152xbf16, #tpu.memory_space<vmem>>, %arg2: memref<1152x128xbf16, #tpu.memory_space<vmem>>, %arg3: memref<1x128xf32, #tpu.memory_space<vmem>>, %arg4: memref<1x128xf32, #tpu.memory_space<vmem>>, %arg5: memref<256x128xbf16, #tpu.memory_space<vmem>>, %arg6: memref<256x128xbf16, #tpu.memory_space<vmem>>) attributes {dimension_semantics = [#tpu.dimension_semantics<parallel>], iteration_bounds = array<i64: 2>, scalar_prefetch = 0 : i64, scratch_operands = 0 : i64, tpu.core_type = #tpu.core_type<tc>, window_params = [{transform_indices = @transform_0, window_bounds = array<i64: 256, 1152>}, {pipeline_mode = #tpu.pipeline_mode<synchronous>, transform_indices = @transform_1, window_bounds = array<i64: 1152, 128>}, {pipeline_mode = #tpu.pipeline_mode<synchronous>, transform_indices = @transform_2, window_bounds = array<i64: 1, 128>}, {pipeline_mode = #tpu.pipeline_mode<synchronous>, transform_indices = @transform_3, window_bounds = array<i64: 1, 128>}, {transform_indices = @transform_4, window_bounds = array<i64: 256, 128>}, {transform_indices = @transform_5, window_bounds = array<i64: 256, 128>}]} {
    %c0 = arith.constant 0 : index
    %c0_0 = arith.constant 0 : index
    %0 = vector.load %arg1[%c0, %c0_0] : memref<256x1152xbf16, #tpu.memory_space<vmem>>, vector<256x1152xbf16>
    %c0_1 = arith.constant 0 : index
    %c0_2 = arith.constant 0 : index
    %1 = vector.load %arg2[%c0_1, %c0_2] : memref<1152x128xbf16, #tpu.memory_space<vmem>>, vector<1152x128xbf16>
    %cst = arith.constant dense<0.000000e+00> : vector<256x128xf32>
    %2 = tpu.matmul %0, %1, %cst {dimension_numbers = #tpu.dot_dimension_numbers<[1], [0], [0], [1], [0, 0, 1, 1], [], []>} : vector<256x1152xbf16>, vector<1152x128xbf16>, vector<256x128xf32> -> vector<256x128xf32>
    %c0_3 = arith.constant 0 : index
    %c0_4 = arith.constant 0 : index
    %3 = vector.load %arg3[%c0_3, %c0_4] : memref<1x128xf32, #tpu.memory_space<vmem>>, vector<1x128xf32>
    %4 = vector.broadcast %3 : vector<1x128xf32> to vector<256x128xf32>
    %5 = arith.mulf %2, %4 : vector<256x128xf32>
    %c0_5 = arith.constant 0 : index
    %c0_6 = arith.constant 0 : index
    %6 = vector.load %arg4[%c0_5, %c0_6] : memref<1x128xf32, #tpu.memory_space<vmem>>, vector<1x128xf32>
    %7 = vector.broadcast %6 : vector<1x128xf32> to vector<256x128xf32>
    %8 = arith.addf %5, %7 : vector<256x128xf32>
    %c0_7 = arith.constant 0 : index
    %c0_8 = arith.constant 0 : index
    %9 = vector.load %arg5[%c0_7, %c0_8] : memref<256x128xbf16, #tpu.memory_space<vmem>>, vector<256x128xbf16>
    %10 = arith.extf %9 : vector<256x128xbf16> to vector<256x128xf32>
    %11 = arith.addf %8, %10 : vector<256x128xf32>
    %cst_9 = arith.constant 0.000000e+00 : f32
    %12 = vector.broadcast %cst_9 : f32 to vector<256x128xf32>
    %13 = arith.maximumf %11, %12 : vector<256x128xf32>
    %14 = arith.truncf %13 : vector<256x128xf32> to vector<256x128xbf16>
    %c0_10 = arith.constant 0 : index
    %c0_11 = arith.constant 0 : index
    %15 = vector.load %arg6[%c0_10, %c0_11] : memref<256x128xbf16, #tpu.memory_space<vmem>>, vector<256x128xbf16>
    tpu.vector_store %arg6[%c0_10, %c0_11], %14 {strides = array<i32>} : memref<256x128xbf16, #tpu.memory_space<vmem>>, vector<256x128xbf16>,
    return
  }
  func.func @transform_0(%arg0: i32) -> (i32, i32) {
    %c0_i32 = arith.constant 0 : i32
    %c0_i32_0 = arith.constant 0 : i32
    return %arg0, %c0_i32 : i32, i32
  }
  func.func @transform_1(%arg0: i32) -> (i32, i32) {
    %c0_i32 = arith.constant 0 : i32
    %c0_i32_0 = arith.constant 0 : i32
    %c0_i32_1 = arith.constant 0 : i32
    return %c0_i32, %c0_i32_0 : i32, i32
  }
  func.func @transform_2(%arg0: i32) -> (i32, i32) {
    %c0_i32 = arith.constant 0 : i32
    %c0_i32_0 = arith.constant 0 : i32
    %c0_i32_1 = arith.constant 0 : i32
    return %c0_i32, %c0_i32_0 : i32, i32
  }
  func.func @transform_3(%arg0: i32) -> (i32, i32) {
    %c0_i32 = arith.constant 0 : i32
    %c0_i32_0 = arith.constant 0 : i32
    %c0_i32_1 = arith.constant 0 : i32
    return %c0_i32, %c0_i32_0 : i32, i32
  }
  func.func @transform_4(%arg0: i32) -> (i32, i32) {
    %c0_i32 = arith.constant 0 : i32
    %c0_i32_0 = arith.constant 0 : i32
    return %arg0, %c0_i32 : i32, i32
  }
  func.func @transform_5(%arg0: i32) -> (i32, i32) {
    %c0_i32 = arith.constant 0 : i32
    %c0_i32_0 = arith.constant 0 : i32
    return %arg0, %c0_i32 : i32, i32
  }
}

module attributes {stable_mosaic.version = 11 : i64} {
  func.func @_conv_mm_kernel(%arg0: i32, %arg1: memref<128x1152xbf16, #tpu.memory_space<vmem>>, %arg2: memref<1152x128xbf16, #tpu.memory_space<vmem>>, %arg3: memref<1x128xf32, #tpu.memory_space<vmem>>, %arg4: memref<1x128xf32, #tpu.memory_space<vmem>>, %arg5: memref<128x128xbf16, #tpu.memory_space<vmem>>) attributes {dimension_semantics = [#tpu.dimension_semantics<parallel>], iteration_bounds = array<i64: 1>, scalar_prefetch = 0 : i64, scratch_operands = 0 : i64, tpu.core_type = #tpu.core_type<tc>, window_params = [{transform_indices = @transform_0, window_bounds = array<i64: 128, 1152>}, {pipeline_mode = #tpu.pipeline_mode<synchronous>, transform_indices = @transform_1, window_bounds = array<i64: 1152, 128>}, {pipeline_mode = #tpu.pipeline_mode<synchronous>, transform_indices = @transform_2, window_bounds = array<i64: 1, 128>}, {pipeline_mode = #tpu.pipeline_mode<synchronous>, transform_indices = @transform_3, window_bounds = array<i64: 1, 128>}, {transform_indices = @transform_4, window_bounds = array<i64: 128, 128>}]} {
    %c0 = arith.constant 0 : index
    %c0_0 = arith.constant 0 : index
    %0 = vector.load %arg1[%c0, %c0_0] : memref<128x1152xbf16, #tpu.memory_space<vmem>>, vector<128x1152xbf16>
    %c0_1 = arith.constant 0 : index
    %c0_2 = arith.constant 0 : index
    %1 = vector.load %arg2[%c0_1, %c0_2] : memref<1152x128xbf16, #tpu.memory_space<vmem>>, vector<1152x128xbf16>
    %cst = arith.constant dense<0.000000e+00> : vector<128x128xf32>
    %2 = tpu.matmul %0, %1, %cst {dimension_numbers = #tpu.dot_dimension_numbers<[1], [0], [0], [1], [0, 0, 1, 1], [], []>} : vector<128x1152xbf16>, vector<1152x128xbf16>, vector<128x128xf32> -> vector<128x128xf32>
    %c0_3 = arith.constant 0 : index
    %c0_4 = arith.constant 0 : index
    %3 = vector.load %arg3[%c0_3, %c0_4] : memref<1x128xf32, #tpu.memory_space<vmem>>, vector<1x128xf32>
    %4 = vector.broadcast %3 : vector<1x128xf32> to vector<128x128xf32>
    %5 = arith.mulf %2, %4 : vector<128x128xf32>
    %c0_5 = arith.constant 0 : index
    %c0_6 = arith.constant 0 : index
    %6 = vector.load %arg4[%c0_5, %c0_6] : memref<1x128xf32, #tpu.memory_space<vmem>>, vector<1x128xf32>
    %7 = vector.broadcast %6 : vector<1x128xf32> to vector<128x128xf32>
    %8 = arith.addf %5, %7 : vector<128x128xf32>
    %cst_7 = arith.constant 0.000000e+00 : f32
    %9 = vector.broadcast %cst_7 : f32 to vector<128x128xf32>
    %10 = arith.maximumf %8, %9 : vector<128x128xf32>
    %11 = arith.truncf %10 : vector<128x128xf32> to vector<128x128xbf16>
    %c0_8 = arith.constant 0 : index
    %c0_9 = arith.constant 0 : index
    %12 = vector.load %arg5[%c0_8, %c0_9] : memref<128x128xbf16, #tpu.memory_space<vmem>>, vector<128x128xbf16>
    tpu.vector_store %arg5[%c0_8, %c0_9], %11 {strides = array<i32>} : memref<128x128xbf16, #tpu.memory_space<vmem>>, vector<128x128xbf16>,
    return
  }
  func.func @transform_0(%arg0: i32) -> (i32, i32) {
    %c0_i32 = arith.constant 0 : i32
    %c0_i32_0 = arith.constant 0 : i32
    return %arg0, %c0_i32 : i32, i32
  }
  func.func @transform_1(%arg0: i32) -> (i32, i32) {
    %c0_i32 = arith.constant 0 : i32
    %c0_i32_0 = arith.constant 0 : i32
    %c0_i32_1 = arith.constant 0 : i32
    return %c0_i32, %c0_i32_0 : i32, i32
  }
  func.func @transform_2(%arg0: i32) -> (i32, i32) {
    %c0_i32 = arith.constant 0 : i32
    %c0_i32_0 = arith.constant 0 : i32
    %c0_i32_1 = arith.constant 0 : i32
    return %c0_i32, %c0_i32_0 : i32, i32
  }
  func.func @transform_3(%arg0: i32) -> (i32, i32) {
    %c0_i32 = arith.constant 0 : i32
    %c0_i32_0 = arith.constant 0 : i32
    %c0_i32_1 = arith.constant 0 : i32
    return %c0_i32, %c0_i32_0 : i32, i32
  }
  func.func @transform_4(%arg0: i32) -> (i32, i32) {
    %c0_i32 = arith.constant 0 : i32
    %c0_i32_0 = arith.constant 0 : i32
    return %arg0, %c0_i32 : i32, i32
  }
}

module attributes {stable_mosaic.version = 11 : i64} {
  func.func @_conv_mm_kernel(%arg0: i32, %arg1: memref<128x1152xbf16, #tpu.memory_space<vmem>>, %arg2: memref<1152x128xbf16, #tpu.memory_space<vmem>>, %arg3: memref<1x128xf32, #tpu.memory_space<vmem>>, %arg4: memref<1x128xf32, #tpu.memory_space<vmem>>, %arg5: memref<128x128xbf16, #tpu.memory_space<vmem>>, %arg6: memref<128x128xbf16, #tpu.memory_space<vmem>>) attributes {dimension_semantics = [#tpu.dimension_semantics<parallel>], iteration_bounds = array<i64: 1>, scalar_prefetch = 0 : i64, scratch_operands = 0 : i64, tpu.core_type = #tpu.core_type<tc>, window_params = [{transform_indices = @transform_0, window_bounds = array<i64: 128, 1152>}, {pipeline_mode = #tpu.pipeline_mode<synchronous>, transform_indices = @transform_1, window_bounds = array<i64: 1152, 128>}, {pipeline_mode = #tpu.pipeline_mode<synchronous>, transform_indices = @transform_2, window_bounds = array<i64: 1, 128>}, {pipeline_mode = #tpu.pipeline_mode<synchronous>, transform_indices = @transform_3, window_bounds = array<i64: 1, 128>}, {transform_indices = @transform_4, window_bounds = array<i64: 128, 128>}, {transform_indices = @transform_5, window_bounds = array<i64: 128, 128>}]} {
    %c0 = arith.constant 0 : index
    %c0_0 = arith.constant 0 : index
    %0 = vector.load %arg1[%c0, %c0_0] : memref<128x1152xbf16, #tpu.memory_space<vmem>>, vector<128x1152xbf16>
    %c0_1 = arith.constant 0 : index
    %c0_2 = arith.constant 0 : index
    %1 = vector.load %arg2[%c0_1, %c0_2] : memref<1152x128xbf16, #tpu.memory_space<vmem>>, vector<1152x128xbf16>
    %cst = arith.constant dense<0.000000e+00> : vector<128x128xf32>
    %2 = tpu.matmul %0, %1, %cst {dimension_numbers = #tpu.dot_dimension_numbers<[1], [0], [0], [1], [0, 0, 1, 1], [], []>} : vector<128x1152xbf16>, vector<1152x128xbf16>, vector<128x128xf32> -> vector<128x128xf32>
    %c0_3 = arith.constant 0 : index
    %c0_4 = arith.constant 0 : index
    %3 = vector.load %arg3[%c0_3, %c0_4] : memref<1x128xf32, #tpu.memory_space<vmem>>, vector<1x128xf32>
    %4 = vector.broadcast %3 : vector<1x128xf32> to vector<128x128xf32>
    %5 = arith.mulf %2, %4 : vector<128x128xf32>
    %c0_5 = arith.constant 0 : index
    %c0_6 = arith.constant 0 : index
    %6 = vector.load %arg4[%c0_5, %c0_6] : memref<1x128xf32, #tpu.memory_space<vmem>>, vector<1x128xf32>
    %7 = vector.broadcast %6 : vector<1x128xf32> to vector<128x128xf32>
    %8 = arith.addf %5, %7 : vector<128x128xf32>
    %c0_7 = arith.constant 0 : index
    %c0_8 = arith.constant 0 : index
    %9 = vector.load %arg5[%c0_7, %c0_8] : memref<128x128xbf16, #tpu.memory_space<vmem>>, vector<128x128xbf16>
    %10 = arith.extf %9 : vector<128x128xbf16> to vector<128x128xf32>
    %11 = arith.addf %8, %10 : vector<128x128xf32>
    %cst_9 = arith.constant 0.000000e+00 : f32
    %12 = vector.broadcast %cst_9 : f32 to vector<128x128xf32>
    %13 = arith.maximumf %11, %12 : vector<128x128xf32>
    %14 = arith.truncf %13 : vector<128x128xf32> to vector<128x128xbf16>
    %c0_10 = arith.constant 0 : index
    %c0_11 = arith.constant 0 : index
    %15 = vector.load %arg6[%c0_10, %c0_11] : memref<128x128xbf16, #tpu.memory_space<vmem>>, vector<128x128xbf16>
    tpu.vector_store %arg6[%c0_10, %c0_11], %14 {strides = array<i32>} : memref<128x128xbf16, #tpu.memory_space<vmem>>, vector<128x128xbf16>,
    return
  }
  func.func @transform_0(%arg0: i32) -> (i32, i32) {
    %c0_i32 = arith.constant 0 : i32
    %c0_i32_0 = arith.constant 0 : i32
    return %arg0, %c0_i32 : i32, i32
  }
  func.func @transform_1(%arg0: i32) -> (i32, i32) {
    %c0_i32 = arith.constant 0 : i32
    %c0_i32_0 = arith.constant 0 : i32
    %c0_i32_1 = arith.constant 0 : i32
    return %c0_i32, %c0_i32_0 : i32, i32
  }
  func.func @transform_2(%arg0: i32) -> (i32, i32) {
    %c0_i32 = arith.constant 0 : i32
    %c0_i32_0 = arith.constant 0 : i32
    %c0_i32_1 = arith.constant 0 : i32
    return %c0_i32, %c0_i32_0 : i32, i32
  }
  func.func @transform_3(%arg0: i32) -> (i32, i32) {
    %c0_i32 = arith.constant 0 : i32
    %c0_i32_0 = arith.constant 0 : i32
    %c0_i32_1 = arith.constant 0 : i32
    return %c0_i32, %c0_i32_0 : i32, i32
  }
  func.func @transform_4(%arg0: i32) -> (i32, i32) {
    %c0_i32 = arith.constant 0 : i32
    %c0_i32_0 = arith.constant 0 : i32
    return %arg0, %c0_i32 : i32, i32
  }
  func.func @transform_5(%arg0: i32) -> (i32, i32) {
    %c0_i32 = arith.constant 0 : i32
    %c0_i32_0 = arith.constant 0 : i32
    return %arg0, %c0_i32 : i32, i32
  }
}

module attributes {stable_mosaic.version = 11 : i64} {
  func.func @_conv_mm_kernel(%arg0: i32, %arg1: memref<32x128xbf16, #tpu.memory_space<vmem>>, %arg2: memref<128x128xbf16, #tpu.memory_space<vmem>>, %arg3: memref<1x128xf32, #tpu.memory_space<vmem>>, %arg4: memref<1x128xf32, #tpu.memory_space<vmem>>, %arg5: memref<32x128xbf16, #tpu.memory_space<vmem>>) attributes {dimension_semantics = [#tpu.dimension_semantics<parallel>], iteration_bounds = array<i64: 1>, scalar_prefetch = 0 : i64, scratch_operands = 0 : i64, tpu.core_type = #tpu.core_type<tc>, window_params = [{transform_indices = @transform_0, window_bounds = array<i64: 32, 128>}, {pipeline_mode = #tpu.pipeline_mode<synchronous>, transform_indices = @transform_1, window_bounds = array<i64: 128, 128>}, {pipeline_mode = #tpu.pipeline_mode<synchronous>, transform_indices = @transform_2, window_bounds = array<i64: 1, 128>}, {pipeline_mode = #tpu.pipeline_mode<synchronous>, transform_indices = @transform_3, window_bounds = array<i64: 1, 128>}, {transform_indices = @transform_4, window_bounds = array<i64: 32, 128>}]} {
    %c0 = arith.constant 0 : index
    %c0_0 = arith.constant 0 : index
    %0 = vector.load %arg1[%c0, %c0_0] : memref<32x128xbf16, #tpu.memory_space<vmem>>, vector<32x128xbf16>
    %c0_1 = arith.constant 0 : index
    %c0_2 = arith.constant 0 : index
    %1 = vector.load %arg2[%c0_1, %c0_2] : memref<128x128xbf16, #tpu.memory_space<vmem>>, vector<128x128xbf16>
    %cst = arith.constant dense<0.000000e+00> : vector<32x128xf32>
    %2 = tpu.matmul %0, %1, %cst {dimension_numbers = #tpu.dot_dimension_numbers<[1], [0], [0], [1], [0, 0, 1, 1], [], []>} : vector<32x128xbf16>, vector<128x128xbf16>, vector<32x128xf32> -> vector<32x128xf32>
    %c0_3 = arith.constant 0 : index
    %c0_4 = arith.constant 0 : index
    %3 = vector.load %arg3[%c0_3, %c0_4] : memref<1x128xf32, #tpu.memory_space<vmem>>, vector<1x128xf32>
    %4 = vector.broadcast %3 : vector<1x128xf32> to vector<32x128xf32>
    %5 = arith.mulf %2, %4 : vector<32x128xf32>
    %c0_5 = arith.constant 0 : index
    %c0_6 = arith.constant 0 : index
    %6 = vector.load %arg4[%c0_5, %c0_6] : memref<1x128xf32, #tpu.memory_space<vmem>>, vector<1x128xf32>
    %7 = vector.broadcast %6 : vector<1x128xf32> to vector<32x128xf32>
    %8 = arith.addf %5, %7 : vector<32x128xf32>
    %9 = arith.truncf %8 : vector<32x128xf32> to vector<32x128xbf16>
    %c0_7 = arith.constant 0 : index
    %c0_8 = arith.constant 0 : index
    %10 = vector.load %arg5[%c0_7, %c0_8] : memref<32x128xbf16, #tpu.memory_space<vmem>>, vector<32x128xbf16>
    tpu.vector_store %arg5[%c0_7, %c0_8], %9 {strides = array<i32>} : memref<32x128xbf16, #tpu.memory_space<vmem>>, vector<32x128xbf16>,
    return
  }
  func.func @transform_0(%arg0: i32) -> (i32, i32) {
    %c0_i32 = arith.constant 0 : i32
    %c0_i32_0 = arith.constant 0 : i32
    return %arg0, %c0_i32 : i32, i32
  }
  func.func @transform_1(%arg0: i32) -> (i32, i32) {
    %c0_i32 = arith.constant 0 : i32
    %c0_i32_0 = arith.constant 0 : i32
    %c0_i32_1 = arith.constant 0 : i32
    return %c0_i32, %c0_i32_0 : i32, i32
  }
  func.func @transform_2(%arg0: i32) -> (i32, i32) {
    %c0_i32 = arith.constant 0 : i32
    %c0_i32_0 = arith.constant 0 : i32
    %c0_i32_1 = arith.constant 0 : i32
    return %c0_i32, %c0_i32_0 : i32, i32
  }
  func.func @transform_3(%arg0: i32) -> (i32, i32) {
    %c0_i32 = arith.constant 0 : i32
    %c0_i32_0 = arith.constant 0 : i32
    %c0_i32_1 = arith.constant 0 : i32
    return %c0_i32, %c0_i32_0 : i32, i32
  }
  func.func @transform_4(%arg0: i32) -> (i32, i32) {
    %c0_i32 = arith.constant 0 : i32
    %c0_i32_0 = arith.constant 0 : i32
    return %arg0, %c0_i32 : i32, i32
  }
}

module attributes {stable_mosaic.version = 11 : i64} {
  func.func @_conv_mm_kernel(%arg0: i32, %arg1: memref<32x1152xbf16, #tpu.memory_space<vmem>>, %arg2: memref<1152x128xbf16, #tpu.memory_space<vmem>>, %arg3: memref<1x128xf32, #tpu.memory_space<vmem>>, %arg4: memref<1x128xf32, #tpu.memory_space<vmem>>, %arg5: memref<32x128xbf16, #tpu.memory_space<vmem>>) attributes {dimension_semantics = [#tpu.dimension_semantics<parallel>], iteration_bounds = array<i64: 1>, scalar_prefetch = 0 : i64, scratch_operands = 0 : i64, tpu.core_type = #tpu.core_type<tc>, window_params = [{transform_indices = @transform_0, window_bounds = array<i64: 32, 1152>}, {pipeline_mode = #tpu.pipeline_mode<synchronous>, transform_indices = @transform_1, window_bounds = array<i64: 1152, 128>}, {pipeline_mode = #tpu.pipeline_mode<synchronous>, transform_indices = @transform_2, window_bounds = array<i64: 1, 128>}, {pipeline_mode = #tpu.pipeline_mode<synchronous>, transform_indices = @transform_3, window_bounds = array<i64: 1, 128>}, {transform_indices = @transform_4, window_bounds = array<i64: 32, 128>}]} {
    %c0 = arith.constant 0 : index
    %c0_0 = arith.constant 0 : index
    %0 = vector.load %arg1[%c0, %c0_0] : memref<32x1152xbf16, #tpu.memory_space<vmem>>, vector<32x1152xbf16>
    %c0_1 = arith.constant 0 : index
    %c0_2 = arith.constant 0 : index
    %1 = vector.load %arg2[%c0_1, %c0_2] : memref<1152x128xbf16, #tpu.memory_space<vmem>>, vector<1152x128xbf16>
    %cst = arith.constant dense<0.000000e+00> : vector<32x128xf32>
    %2 = tpu.matmul %0, %1, %cst {dimension_numbers = #tpu.dot_dimension_numbers<[1], [0], [0], [1], [0, 0, 1, 1], [], []>} : vector<32x1152xbf16>, vector<1152x128xbf16>, vector<32x128xf32> -> vector<32x128xf32>
    %c0_3 = arith.constant 0 : index
    %c0_4 = arith.constant 0 : index
    %3 = vector.load %arg3[%c0_3, %c0_4] : memref<1x128xf32, #tpu.memory_space<vmem>>, vector<1x128xf32>
    %4 = vector.broadcast %3 : vector<1x128xf32> to vector<32x128xf32>
    %5 = arith.mulf %2, %4 : vector<32x128xf32>
    %c0_5 = arith.constant 0 : index
    %c0_6 = arith.constant 0 : index
    %6 = vector.load %arg4[%c0_5, %c0_6] : memref<1x128xf32, #tpu.memory_space<vmem>>, vector<1x128xf32>
    %7 = vector.broadcast %6 : vector<1x128xf32> to vector<32x128xf32>
    %8 = arith.addf %5, %7 : vector<32x128xf32>
    %cst_7 = arith.constant 0.000000e+00 : f32
    %9 = vector.broadcast %cst_7 : f32 to vector<32x128xf32>
    %10 = arith.maximumf %8, %9 : vector<32x128xf32>
    %11 = arith.truncf %10 : vector<32x128xf32> to vector<32x128xbf16>
    %c0_8 = arith.constant 0 : index
    %c0_9 = arith.constant 0 : index
    %12 = vector.load %arg5[%c0_8, %c0_9] : memref<32x128xbf16, #tpu.memory_space<vmem>>, vector<32x128xbf16>
    tpu.vector_store %arg5[%c0_8, %c0_9], %11 {strides = array<i32>} : memref<32x128xbf16, #tpu.memory_space<vmem>>, vector<32x128xbf16>,
    return
  }
  func.func @transform_0(%arg0: i32) -> (i32, i32) {
    %c0_i32 = arith.constant 0 : i32
    %c0_i32_0 = arith.constant 0 : i32
    return %arg0, %c0_i32 : i32, i32
  }
  func.func @transform_1(%arg0: i32) -> (i32, i32) {
    %c0_i32 = arith.constant 0 : i32
    %c0_i32_0 = arith.constant 0 : i32
    %c0_i32_1 = arith.constant 0 : i32
    return %c0_i32, %c0_i32_0 : i32, i32
  }
  func.func @transform_2(%arg0: i32) -> (i32, i32) {
    %c0_i32 = arith.constant 0 : i32
    %c0_i32_0 = arith.constant 0 : i32
    %c0_i32_1 = arith.constant 0 : i32
    return %c0_i32, %c0_i32_0 : i32, i32
  }
  func.func @transform_3(%arg0: i32) -> (i32, i32) {
    %c0_i32 = arith.constant 0 : i32
    %c0_i32_0 = arith.constant 0 : i32
    %c0_i32_1 = arith.constant 0 : i32
    return %c0_i32, %c0_i32_0 : i32, i32
  }
  func.func @transform_4(%arg0: i32) -> (i32, i32) {
    %c0_i32 = arith.constant 0 : i32
    %c0_i32_0 = arith.constant 0 : i32
    return %arg0, %c0_i32 : i32, i32
  }
}

module attributes {stable_mosaic.version = 11 : i64} {
  func.func @_head_kernel(%arg0: memref<2x16x128xbf16, #tpu.memory_space<vmem>>, %arg1: memref<128x128xf32, #tpu.memory_space<vmem>>, %arg2: memref<1x128xf32, #tpu.memory_space<vmem>>, %arg3: memref<2x128xf32, #tpu.memory_space<vmem>>) attributes {dimension_semantics = [], scalar_prefetch = 0 : i64, scratch_operands = 0 : i64, tpu.core_type = #tpu.core_type<tc>} {
    %c0 = arith.constant 0 : index
    %c0_0 = arith.constant 0 : index
    %c0_1 = arith.constant 0 : index
    %0 = vector.load %arg0[%c0, %c0_0, %c0_1] : memref<2x16x128xbf16, #tpu.memory_space<vmem>>, vector<2x16x128xbf16>
    %1 = arith.extf %0 : vector<2x16x128xbf16> to vector<2x16x128xf32>
    %cst = arith.constant dense<0.000000e+00> : vector<2x128xf32>
    %2 = vector.multi_reduction <add>, %1, %cst [1] : vector<2x16x128xf32> to vector<2x128xf32>
    %cst_2 = arith.constant 1.600000e+01 : f32
    %3 = vector.broadcast %cst_2 : f32 to vector<2x128xf32>
    %4 = arith.divf %2, %3 : vector<2x128xf32>
    %c0_3 = arith.constant 0 : index
    %c0_4 = arith.constant 0 : index
    %5 = vector.load %arg1[%c0_3, %c0_4] : memref<128x128xf32, #tpu.memory_space<vmem>>, vector<128x128xf32>
    %cst_5 = arith.constant dense<0.000000e+00> : vector<2x128xf32>
    %6 = tpu.matmul %4, %5, %cst_5 {dimension_numbers = #tpu.dot_dimension_numbers<[1], [0], [0], [1], [0, 0, 1, 1], [], []>} : vector<2x128xf32>, vector<128x128xf32>, vector<2x128xf32> -> vector<2x128xf32>
    %c0_6 = arith.constant 0 : index
    %c0_7 = arith.constant 0 : index
    %7 = vector.load %arg2[%c0_6, %c0_7] : memref<1x128xf32, #tpu.memory_space<vmem>>, vector<1x128xf32>
    %8 = vector.broadcast %7 : vector<1x128xf32> to vector<2x128xf32>
    %9 = arith.addf %6, %8 : vector<2x128xf32>
    %c0_8 = arith.constant 0 : index
    %c0_9 = arith.constant 0 : index
    %10 = vector.load %arg3[%c0_8, %c0_9] : memref<2x128xf32, #tpu.memory_space<vmem>>, vector<2x128xf32>
    tpu.vector_store %arg3[%c0_8, %c0_9], %9 {strides = array<i32>} : memref<2x128xf32, #tpu.memory_space<vmem>>, vector<2x128xf32>,
    return
  }
}

module attributes {stable_mosaic.version = 11 : i64} {
  func.func @_conv_mm_kernel(%arg0: i32, %arg1: memref<32x1152xbf16, #tpu.memory_space<vmem>>, %arg2: memref<1152x128xbf16, #tpu.memory_space<vmem>>, %arg3: memref<1x128xf32, #tpu.memory_space<vmem>>, %arg4: memref<1x128xf32, #tpu.memory_space<vmem>>, %arg5: memref<32x128xbf16, #tpu.memory_space<vmem>>, %arg6: memref<32x128xbf16, #tpu.memory_space<vmem>>) attributes {dimension_semantics = [#tpu.dimension_semantics<parallel>], iteration_bounds = array<i64: 1>, scalar_prefetch = 0 : i64, scratch_operands = 0 : i64, tpu.core_type = #tpu.core_type<tc>, window_params = [{transform_indices = @transform_0, window_bounds = array<i64: 32, 1152>}, {pipeline_mode = #tpu.pipeline_mode<synchronous>, transform_indices = @transform_1, window_bounds = array<i64: 1152, 128>}, {pipeline_mode = #tpu.pipeline_mode<synchronous>, transform_indices = @transform_2, window_bounds = array<i64: 1, 128>}, {pipeline_mode = #tpu.pipeline_mode<synchronous>, transform_indices = @transform_3, window_bounds = array<i64: 1, 128>}, {transform_indices = @transform_4, window_bounds = array<i64: 32, 128>}, {transform_indices = @transform_5, window_bounds = array<i64: 32, 128>}]} {
    %c0 = arith.constant 0 : index
    %c0_0 = arith.constant 0 : index
    %0 = vector.load %arg1[%c0, %c0_0] : memref<32x1152xbf16, #tpu.memory_space<vmem>>, vector<32x1152xbf16>
    %c0_1 = arith.constant 0 : index
    %c0_2 = arith.constant 0 : index
    %1 = vector.load %arg2[%c0_1, %c0_2] : memref<1152x128xbf16, #tpu.memory_space<vmem>>, vector<1152x128xbf16>
    %cst = arith.constant dense<0.000000e+00> : vector<32x128xf32>
    %2 = tpu.matmul %0, %1, %cst {dimension_numbers = #tpu.dot_dimension_numbers<[1], [0], [0], [1], [0, 0, 1, 1], [], []>} : vector<32x1152xbf16>, vector<1152x128xbf16>, vector<32x128xf32> -> vector<32x128xf32>
    %c0_3 = arith.constant 0 : index
    %c0_4 = arith.constant 0 : index
    %3 = vector.load %arg3[%c0_3, %c0_4] : memref<1x128xf32, #tpu.memory_space<vmem>>, vector<1x128xf32>
    %4 = vector.broadcast %3 : vector<1x128xf32> to vector<32x128xf32>
    %5 = arith.mulf %2, %4 : vector<32x128xf32>
    %c0_5 = arith.constant 0 : index
    %c0_6 = arith.constant 0 : index
    %6 = vector.load %arg4[%c0_5, %c0_6] : memref<1x128xf32, #tpu.memory_space<vmem>>, vector<1x128xf32>
    %7 = vector.broadcast %6 : vector<1x128xf32> to vector<32x128xf32>
    %8 = arith.addf %5, %7 : vector<32x128xf32>
    %c0_7 = arith.constant 0 : index
    %c0_8 = arith.constant 0 : index
    %9 = vector.load %arg5[%c0_7, %c0_8] : memref<32x128xbf16, #tpu.memory_space<vmem>>, vector<32x128xbf16>
    %10 = arith.extf %9 : vector<32x128xbf16> to vector<32x128xf32>
    %11 = arith.addf %8, %10 : vector<32x128xf32>
    %cst_9 = arith.constant 0.000000e+00 : f32
    %12 = vector.broadcast %cst_9 : f32 to vector<32x128xf32>
    %13 = arith.maximumf %11, %12 : vector<32x128xf32>
    %14 = arith.truncf %13 : vector<32x128xf32> to vector<32x128xbf16>
    %c0_10 = arith.constant 0 : index
    %c0_11 = arith.constant 0 : index
    %15 = vector.load %arg6[%c0_10, %c0_11] : memref<32x128xbf16, #tpu.memory_space<vmem>>, vector<32x128xbf16>
    tpu.vector_store %arg6[%c0_10, %c0_11], %14 {strides = array<i32>} : memref<32x128xbf16, #tpu.memory_space<vmem>>, vector<32x128xbf16>,
    return
  }
  func.func @transform_0(%arg0: i32) -> (i32, i32) {
    %c0_i32 = arith.constant 0 : i32
    %c0_i32_0 = arith.constant 0 : i32
    return %arg0, %c0_i32 : i32, i32
  }
  func.func @transform_1(%arg0: i32) -> (i32, i32) {
    %c0_i32 = arith.constant 0 : i32
    %c0_i32_0 = arith.constant 0 : i32
    %c0_i32_1 = arith.constant 0 : i32
    return %c0_i32, %c0_i32_0 : i32, i32
  }
  func.func @transform_2(%arg0: i32) -> (i32, i32) {
    %c0_i32 = arith.constant 0 : i32
    %c0_i32_0 = arith.constant 0 : i32
    %c0_i32_1 = arith.constant 0 : i32
    return %c0_i32, %c0_i32_0 : i32, i32
  }
  func.func @transform_3(%arg0: i32) -> (i32, i32) {
    %c0_i32 = arith.constant 0 : i32
    %c0_i32_0 = arith.constant 0 : i32
    %c0_i32_1 = arith.constant 0 : i32
    return %c0_i32, %c0_i32_0 : i32, i32
  }
  func.func @transform_4(%arg0: i32) -> (i32, i32) {
    %c0_i32 = arith.constant 0 : i32
    %c0_i32_0 = arith.constant 0 : i32
    return %arg0, %c0_i32 : i32, i32
  }
  func.func @transform_5(%arg0: i32) -> (i32, i32) {
    %c0_i32 = arith.constant 0 : i32
    %c0_i32_0 = arith.constant 0 : i32
    return %arg0, %c0_i32 : i32, i32
  }
}

</mosaic_0001>

<bundles_post_ra>
// kernel: _lambda_.10
= control target key start
LH: loop header
LB: loop body
LE: loop exit
PB: predicated region body
PF: predicated region fallthrough
CT: control target
= control target key end

     0   :  { %9 = vsyncpa [#allocation3], 0  ;;  %s1283_s0 = inlined_call_operand.vmem [shape: bf16[512,128], index: 0, kind: input, shape index: {}]   ;;  %s1284_s1 = inlined_call_operand.hbm [shape: bf16[128,128], index: 1, kind: input, shape index: {}]   ;;  %s1285_s2 = inlined_call_operand.vmem [shape: f32[1,128], index: 2, kind: input, shape index: {}]   ;;  %s1286_s3 = inlined_call_operand.hbm [shape: f32[1,128], index: 3, kind: input, shape index: {}]   ;;  %s1287_s4 = inlined_call_operand.vmem [shape: bf16[512,128], index: 4, kind: output, shape index: {}]  }
   0x1   :  { %10 = vsyncpa [#allocation5], 0  ;;  %s1120_s15 = smov 0  }
   0x2 LB: > { %s147_s18 = sshll.u32 %s1284_s1, 4  ;;  %s728_s19 = sadd.s32 4294967295, %s1089_s15   ;;  %s1089_s15 = sphi %s1120_s15, %s16_s15   ;;  %s148_s18 = int_to_ptr.hbm [resolvable:$true] %s147_s18 }
   0x3   : > { %p730_p0 = scmp.ge.s32.totalorder %s1089_s15, 1  ;;  %p136_p1 = scmp.lt.s32.totalorder %s1089_s15, 3 }
   0x4   : > { %p1133_p2 = scmp.eq.s32.totalorder %s728_s19, 0  ;;  %s1091_s22 = smov [#allocation2]  }
   0x5   : > { %p1137_p3 = pnand %p730_p0, %p136_p1  ;;  %s149_s23 = sshll.u32 %s1091_s22, 4  ;;  %s150_s23 = int_to_ptr.vmem [resolvable:$true] %s149_s23 }
   0x6   : > { %s165_s26 = sshll.u32 %s1286_s3, 4  ;;  %s1092_s27 = smov [#allocation4]   ;;  %s166_s26 = int_to_ptr.hbm [resolvable:$true] %s165_s26 }
   0x7   : > { %p990_p4 = pneg %p1137_p3  ;;  %s167_s28 = sshll.u32 %s1092_s27, 4  ;;  %s168_s28 = int_to_ptr.vmem [resolvable:$true] %s167_s28 }
   0x8   : > { %s1093_s29 = smov 64   ;;  %s1094_s30 = smov 4  }
   0x9   : > { %p991_p5 = pnand %p1133_p2, %p990_p4  ;;  %189 = sbr.rel (%p1137_p3) target bundleno = 246 (0xf6), region = 36 }
   0xb   : > { %993 = dma.hbm_to_vmem [thread:$0]  (!%p991_p5), %s148_s18, 1024, %s150_s23, [#allocation3], %s1093_s29, %s1093_s29, %s1094_s30  }
   0xc   : > { %996 = dma.hbm_to_vmem [thread:$0]  (!%p991_p5), %s166_s26, 16, %s168_s28, [#allocation5]  }
   0xe   : > { %1080 = dma.done.wait (%p1133_p2), [#allocation3], 1024  }
   0xf   : > { %1082 = vsyncadd (%p1133_p2), [#allocation3], 4294966272 }
  0x10   : > { %1084 = dma.done.wait (%p1133_p2), [#allocation5], 16  }
  0x11   : > { %1086 = vsyncadd (%p1133_p2), [#allocation5], 4294967280  ;;  %v862_v0 = vld [vmem:[#allocation2 + $0x38] sm:$0xff]  ;;  %v861_v1 = vld [vmem:[#allocation2 + $0x30] sm:$0xff]  ;;  %s737_s5 = sshll.u32 %s728_s19, 5 }
  0x12   : > { %425 = vmatpush.bf16.msra.mxu0 %v862_v0  ;;  %958 = vmatpush.bf16.msra.mxu1 %v862_v0  ;;  %v860_v2 = vld [vmem:[#allocation2 + $0x28] sm:$0xff]  ;;  %v859_v3 = vld [vmem:[#allocation2 + $0x20] sm:$0xff]  ;;  %v858_v4 = vld [vmem:[#allocation2 + $0x18] sm:$0xff]  ;;  %p222_p6 = scmp.lt.s32.totalorder %s737_s5, 63 }
  0x13   : > { %959 = vmatpush.bf16.msra.mxu2 %v862_v0  ;;  %960 = vmatpush.bf16.msra.mxu3 %v862_v0  ;;  %v857_v5 = vld [vmem:[#allocation2 + $0x10] sm:$0xff]  ;;  %v856_v6 = vld [vmem:[#allocation2 + $0x8] sm:$0xff]  ;;  %v855_v7 = vld [vmem:[#allocation2] sm:$0xff] }
  0x14   : > { %s1291_s5 = smov (!%p222_p6, %s737_s5), 63  ;;  %v1189_v26 = vld [vmem:[%s1285_s2] ss:$0 sm:$0xff] }
  0x15   : > { %s738_s6 = sshll.u32 %s1291_s5, 2  ;;  %v1192_v28 = vld [vmem:[#allocation4] ss:$0 sm:$0xff] }
  0x16   : > { %426 = vmatpush.bf16.msra.mxu0 %v861_v1  ;;  %961 = vmatpush.bf16.msra.mxu1 %v861_v1  ;;  %s1168_s9 = scalar_lea.vmem %s1283_s0, %s738_s6  ;;  %s1206_s14 = scalar_lea.vmem %s1287_s4, %s738_s6 }
  0x17   : > { %962 = vmatpush.bf16.msra.mxu2 %v861_v1  ;;  %963 = vmatpush.bf16.msra.mxu3 %v861_v1  ;;  %v839_v8 = vld [vmem:[%s1168_s9] sm:$0xff]  ;;  %v840_v12 = vld [vmem:[%s1168_s9 + $0x8] sm:$0xff]  ;;  %v841_v16 = vld [vmem:[%s1168_s9 + $0x10] sm:$0xff] }
  0x18   : > { %v843_v9 = vld [vmem:[%s1168_s9 + $0x20] sm:$0xff]  ;;  %v844_v13 = vld [vmem:[%s1168_s9 + $0x28] sm:$0xff]  ;;  %v845_v17 = vld [vmem:[%s1168_s9 + $0x30] sm:$0xff] }
  0x19   : > { %v847_v10 = vld [vmem:[%s1168_s9 + $0x40] sm:$0xff]  ;;  %v848_v14 = vld [vmem:[%s1168_s9 + $0x48] sm:$0xff]  ;;  %v849_v18 = vld [vmem:[%s1168_s9 + $0x50] sm:$0xff] }
  0x1a   : > { %427 = vmatpush.bf16.msra.mxu0 %v860_v2  ;;  %964 = vmatpush.bf16.msra.mxu1 %v860_v2  ;;  %v851_v11 = vld [vmem:[%s1168_s9 + $0x60] sm:$0xff]  ;;  %v852_v15 = vld [vmem:[%s1168_s9 + $0x68] sm:$0xff]  ;;  %v853_v19 = vld [vmem:[%s1168_s9 + $0x70] sm:$0xff] }
  0x1b   : > { %965 = vmatpush.bf16.msra.mxu2 %v860_v2  ;;  %966 = vmatpush.bf16.msra.mxu3 %v860_v2  ;;  %v842_v20 = vld [vmem:[%s1168_s9 + $0x18] sm:$0xff] }
  0x1c   : > { %v846_v21 = vld [vmem:[%s1168_s9 + $0x38] sm:$0xff] }
  0x1d   : > { %v850_v22 = vld [vmem:[%s1168_s9 + $0x58] sm:$0xff] }
  0x1e   : > { %428 = vmatpush.bf16.msra.mxu0 %v859_v3  ;;  %967 = vmatpush.bf16.msra.mxu1 %v859_v3  ;;  %v854_v23 = vld [vmem:[%s1168_s9 + $0x78] sm:$0xff] }
  0x1f   : > { %968 = vmatpush.bf16.msra.mxu2 %v859_v3  ;;  %969 = vmatpush.bf16.msra.mxu3 %v859_v3 }
  0x22   : > { %429 = vmatpush.bf16.msra.mxu0 %v858_v4  ;;  %970 = vmatpush.bf16.msra.mxu1 %v858_v4 }
  0x23   : > { %971 = vmatpush.bf16.msra.mxu2 %v858_v4  ;;  %972 = vmatpush.bf16.msra.mxu3 %v858_v4 }
  0x26   : > { %430 = vmatpush.bf16.msra.mxu0 %v857_v5  ;;  %973 = vmatpush.bf16.msra.mxu1 %v857_v5 }
  0x27   : > { %974 = vmatpush.bf16.msra.mxu2 %v857_v5  ;;  %975 = vmatpush.bf16.msra.mxu3 %v857_v5 }
  0x2a   : > { %431 = vmatpush.bf16.msra.mxu0 %v856_v6  ;;  %976 = vmatpush.bf16.msra.mxu1 %v856_v6 }
  0x2b   : > { %977 = vmatpush.bf16.msra.mxu2 %v856_v6  ;;  %978 = vmatpush.bf16.msra.mxu3 %v856_v6 }
  0x2e   : > { %432 = vmatpush.bf16.msra.mxu0 %v855_v7  ;;  %979 = vmatpush.bf16.msra.mxu1 %v855_v7 }
  0x2f   : > { %980 = vmatpush.bf16.msra.mxu2 %v855_v7  ;;  %981 = vmatpush.bf16.msra.mxu3 %v855_v7 }
  0x31   : > { %433 = vmatmul.bf16.vlgmr.msra.gmra.mxu0 %v839_v8  ;;  %453 = vmatmul.bf16.vlgmr.msra.gmra.mxu1 %v843_v9 }
  0x32   : > { %473 = vmatmul.bf16.vlgmr.msra.gmra.mxu2 %v847_v10  ;;  %493 = vmatmul.bf16.vlgmr.msra.gmra.mxu3 %v851_v11 }
  0x41   : > { %438 = vmatmul.bf16.gmra.mxu0 %v840_v12  ;;  %458 = vmatmul.bf16.gmra.mxu1 %v844_v13 }
  0x42   : > { %478 = vmatmul.bf16.gmra.mxu2 %v848_v14  ;;  %498 = vmatmul.bf16.gmra.mxu3 %v852_v15 }
  0x51   : > { %443 = vmatmul.bf16.gmra.mxu0 %v841_v16  ;;  %463 = vmatmul.bf16.gmra.mxu1 %v845_v17 }
  0x52   : > { %483 = vmatmul.bf16.gmra.mxu2 %v849_v18  ;;  %503 = vmatmul.bf16.gmra.mxu3 %v853_v19 }
  0x61   : > { %448 = vmatmul.bf16.gmra.mxu0 %v842_v20  ;;  %468 = vmatmul.bf16.gmra.mxu1 %v846_v21 }
  0x62   : > { %488 = vmatmul.bf16.gmra.mxu2 %v850_v22  ;;  %508 = vmatmul.bf16.gmra.mxu3 %v854_v23 }
  0xae   : > { %v434_v24 = vpop.f32.mrf.mxu0  ;;  %v454_v25 = vpop.f32.mrf.mxu1 }
  0xaf   : > { %v518_v27 = vmul.f32 %v1189_v26, %v434_v24  ;;  %v526_v29 = vmul.f32 %v1189_v26, %v454_v25 }
  0xb1   : > { %v554_v36 = vadd.f32 %v1192_v28, %v518_v27  ;;  %v562_v37 = vadd.f32 %v1192_v28, %v526_v29 }
  0xb5   : > { %v474_v30 = vpop.f32.mrf.mxu2  ;;  %v494_v31 = vpop.f32.mrf.mxu3 }
  0xb6   : > { %v436_v32 = vpop.f32.mrf.mxu0  ;;  %v456_v33 = vpop.f32.mrf.mxu1  ;;  %v534_v42 = vmul.f32 %v1189_v26, %v474_v30  ;;  %v542_v43 = vmul.f32 %v1189_v26, %v494_v31 }
  0xb7   : > { %v519_v34 = vmul.f32 %v1189_v26, %v436_v32  ;;  %v527_v35 = vmul.f32 %v1189_v26, %v456_v33 }
  0xb8   : > { %v570_v50 = vadd.f32 %v1192_v28, %v534_v42  ;;  %v578_v51 = vadd.f32 %v1192_v28, %v542_v43 }
  0xb9   : > { %v555_v38 = vadd.f32 %v1192_v28, %v519_v34  ;;  %v563_v39 = vadd.f32 %v1192_v28, %v527_v35 }
  0xbb   : > { %v866_v40 = vpack.c.bf16 %v555_v38, %v554_v36  ;;  %v886_v41 = vpack.c.bf16 %v563_v39, %v562_v37 }
  0xbd   : > { %867 = vst [vmem:[%s1206_s14] sm:$0xff] %v866_v40   ;;  %v476_v44 = vpop.f32.mrf.mxu2  ;;  %v496_v45 = vpop.f32.mrf.mxu3 }
  0xbe   : > { %946 = vst [vmem:[%s1206_s14 + $0x20] sm:$0xff] %v886_v41   ;;  %v535_v46 = vmul.f32 %v1189_v26, %v476_v44  ;;  %v543_v47 = vmul.f32 %v1189_v26, %v496_v45  ;;  %v439_v48 = vpop.f32.mrf.mxu0  ;;  %v459_v49 = vpop.f32.mrf.mxu1 }
  0xbf   : > { %v520_v56 = vmul.f32 %v1189_v26, %v439_v48  ;;  %v528_v57 = vmul.f32 %v1189_v26, %v459_v49 }
  0xc0   : > { %v571_v52 = vadd.f32 %v1192_v28, %v535_v46  ;;  %v579_v53 = vadd.f32 %v1192_v28, %v543_v47 }
  0xc1   : > { %v556_v0 = vadd.f32 %v1192_v28, %v520_v56  ;;  %v564_v1 = vadd.f32 %v1192_v28, %v528_v57 }
  0xc2   : > { %v906_v54 = vpack.c.bf16 %v571_v52, %v570_v50  ;;  %v926_v55 = vpack.c.bf16 %v579_v53, %v578_v51 }
  0xc4   : > { %950 = vst [vmem:[%s1206_s14 + $0x40] sm:$0xff] %v906_v54  }
  0xc5   : > { %954 = vst [vmem:[%s1206_s14 + $0x60] sm:$0xff] %v926_v55   ;;  %v479_v58 = vpop.f32.mrf.mxu2  ;;  %v499_v59 = vpop.f32.mrf.mxu3 }
  0xc6   : > { %v441_v60 = vpop.f32.mrf.mxu0  ;;  %v461_v61 = vpop.f32.mrf.mxu1  ;;  %v536_v6 = vmul.f32 %v1189_v26, %v479_v58  ;;  %v544_v7 = vmul.f32 %v1189_v26, %v499_v59 }
  0xc7   : > { %v521_v62 = vmul.f32 %v1189_v26, %v441_v60  ;;  %v529_v63 = vmul.f32 %v1189_v26, %v461_v61 }
  0xc8   : > { %v572_v14 = vadd.f32 %v1192_v28, %v536_v6  ;;  %v580_v15 = vadd.f32 %v1192_v28, %v544_v7 }
  0xc9   : > { %v557_v2 = vadd.f32 %v1192_v28, %v521_v62  ;;  %v565_v3 = vadd.f32 %v1192_v28, %v529_v63 }
  0xcb   : > { %v871_v4 = vpack.c.bf16 %v557_v2, %v556_v0  ;;  %v891_v5 = vpack.c.bf16 %v565_v3, %v564_v1 }
  0xcd   : > { %943 = vst [vmem:[%s1206_s14 + $0x8] sm:$0xff] %v871_v4   ;;  %v481_v8 = vpop.f32.mrf.mxu2  ;;  %v501_v9 = vpop.f32.mrf.mxu3 }
  0xce   : > { %947 = vst [vmem:[%s1206_s14 + $0x28] sm:$0xff] %v891_v5   ;;  %v537_v10 = vmul.f32 %v1189_v26, %v481_v8  ;;  %v545_v11 = vmul.f32 %v1189_v26, %v501_v9  ;;  %v444_v12 = vpop.f32.mrf.mxu0  ;;  %v464_v13 = vpop.f32.mrf.mxu1 }
  0xcf   : > { %v522_v20 = vmul.f32 %v1189_v26, %v444_v12  ;;  %v530_v21 = vmul.f32 %v1189_v26, %v464_v13 }
  0xd0   : > { %v573_v16 = vadd.f32 %v1192_v28, %v537_v10  ;;  %v581_v17 = vadd.f32 %v1192_v28, %v545_v11 }
  0xd1   : > { %v558_v30 = vadd.f32 %v1192_v28, %v522_v20  ;;  %v566_v31 = vadd.f32 %v1192_v28, %v530_v21 }
  0xd2   : > { %v911_v18 = vpack.c.bf16 %v573_v16, %v572_v14  ;;  %v931_v19 = vpack.c.bf16 %v581_v17, %v580_v15 }
  0xd4   : > { %951 = vst [vmem:[%s1206_s14 + $0x48] sm:$0xff] %v911_v18  }
  0xd5   : > { %955 = vst [vmem:[%s1206_s14 + $0x68] sm:$0xff] %v931_v19   ;;  %v484_v22 = vpop.f32.mrf.mxu2  ;;  %v504_v23 = vpop.f32.mrf.mxu3 }
  0xd6   : > { %v446_v24 = vpop.f32.mrf.mxu0  ;;  %v466_v25 = vpop.f32.mrf.mxu1  ;;  %v538_v36 = vmul.f32 %v1189_v26, %v484_v22  ;;  %v546_v37 = vmul.f32 %v1189_v26, %v504_v23 }
  0xd7   : > { %v523_v27 = vmul.f32 %v1189_v26, %v446_v24  ;;  %v531_v29 = vmul.f32 %v1189_v26, %v466_v25 }
  0xd8   : > { %v574_v44 = vadd.f32 %v1192_v28, %v538_v36  ;;  %v582_v45 = vadd.f32 %v1192_v28, %v546_v37 }
  0xd9   : > { %v559_v32 = vadd.f32 %v1192_v28, %v523_v27  ;;  %v567_v33 = vadd.f32 %v1192_v28, %v531_v29 }
  0xdb   : > { %v876_v34 = vpack.c.bf16 %v559_v32, %v558_v30  ;;  %v896_v35 = vpack.c.bf16 %v567_v33, %v566_v31 }
  0xdd   : > { %944 = vst [vmem:[%s1206_s14 + $0x10] sm:$0xff] %v876_v34   ;;  %v486_v38 = vpop.f32.mrf.mxu2  ;;  %v506_v39 = vpop.f32.mrf.mxu3 }
  0xde   : > { %948 = vst [vmem:[%s1206_s14 + $0x30] sm:$0xff] %v896_v35   ;;  %v539_v40 = vmul.f32 %v1189_v26, %v486_v38  ;;  %v547_v41 = vmul.f32 %v1189_v26, %v506_v39  ;;  %v449_v42 = vpop.f32.mrf.mxu0  ;;  %v469_v43 = vpop.f32.mrf.mxu1 }
  0xdf   : > { %v524_v50 = vmul.f32 %v1189_v26, %v449_v42  ;;  %v532_v51 = vmul.f32 %v1189_v26, %v469_v43 }
  0xe0   : > { %v575_v46 = vadd.f32 %v1192_v28, %v539_v40  ;;  %v583_v47 = vadd.f32 %v1192_v28, %v547_v41 }
  0xe1   : > { %v560_v58 = vadd.f32 %v1192_v28, %v524_v50  ;;  %v568_v59 = vadd.f32 %v1192_v28, %v532_v51 }
  0xe2   : > { %v916_v48 = vpack.c.bf16 %v575_v46, %v574_v44  ;;  %v936_v49 = vpack.c.bf16 %v583_v47, %v582_v45 }
  0xe4   : > { %952 = vst [vmem:[%s1206_s14 + $0x50] sm:$0xff] %v916_v48  }
  0xe5   : > { %956 = vst [vmem:[%s1206_s14 + $0x70] sm:$0xff] %v936_v49   ;;  %v489_v52 = vpop.f32.mrf.mxu2  ;;  %v509_v53 = vpop.f32.mrf.mxu3 }
  0xe6   : > { %v451_v54 = vpop.f32.mrf.mxu0  ;;  %v471_v55 = vpop.f32.mrf.mxu1  ;;  %v540_v0 = vmul.f32 %v1189_v26, %v489_v52  ;;  %v548_v1 = vmul.f32 %v1189_v26, %v509_v53 }
  0xe7   : > { %v525_v56 = vmul.f32 %v1189_v26, %v451_v54  ;;  %v533_v57 = vmul.f32 %v1189_v26, %v471_v55 }
  0xe8   : > { %v576_v6 = vadd.f32 %v1192_v28, %v540_v0  ;;  %v584_v7 = vadd.f32 %v1192_v28, %v548_v1 }
  0xe9   : > { %v561_v60 = vadd.f32 %v1192_v28, %v525_v56  ;;  %v569_v61 = vadd.f32 %v1192_v28, %v533_v57 }
  0xeb   : > { %v881_v62 = vpack.c.bf16 %v561_v60, %v560_v58  ;;  %v901_v63 = vpack.c.bf16 %v569_v61, %v568_v59 }
  0xed   : > { %945 = vst [vmem:[%s1206_s14 + $0x18] sm:$0xff] %v881_v62   ;;  %v491_v2 = vpop.f32.mrf.mxu2  ;;  %v511_v3 = vpop.f32.mrf.mxu3 }
  0xee   : > { %949 = vst [vmem:[%s1206_s14 + $0x38] sm:$0xff] %v901_v63   ;;  %v541_v4 = vmul.f32 %v1189_v26, %v491_v2  ;;  %v549_v5 = vmul.f32 %v1189_v26, %v511_v3 }
  0xf0   : > { %v577_v8 = vadd.f32 %v1192_v28, %v541_v4  ;;  %v585_v9 = vadd.f32 %v1192_v28, %v549_v5 }
  0xf2   : > { %v921_v10 = vpack.c.bf16 %v577_v8, %v576_v6  ;;  %v941_v11 = vpack.c.bf16 %v585_v9, %v584_v7 }
  0xf4   : > { %953 = vst [vmem:[%s1206_s14 + $0x58] sm:$0xff] %v921_v10  }
  0xf5   : > { %957 = vst [vmem:[%s1206_s14 + $0x78] sm:$0xff] %v941_v11  }
  0xf6 PF: > { %s16_s15 = sadd.s32 1, %s1089_s15  }
  0xf7   : > { %p13_p7 = scmp.ge.s32.totalorder %s16_s15, 4  }
  0xf9   :  { %15 = sbr.rel (!%p13_p7) target bundleno = 2 (0x2), region = 75 }
  0xfe   :  { %672 = vsyncpa [#allocation3], 1 }
  0xff   :  { %674 = vsyncpa [#allocation3 + $0x1], 1 }
 0x100   :  { %675 = vsyncpa [#allocation5], 1 }

// kernel: _lambda_.13
= control target key start
LH: loop header
LB: loop body
LE: loop exit
PB: predicated region body
PF: predicated region fallthrough
CT: control target
= control target key end

     0   :  { %s526_s1 = inlined_call_operand.vmem [shape: bf16[128,128], index: 1, kind: input, shape index: {}]   ;;  %s527_s2 = inlined_call_operand.vmem [shape: f32[1,128], index: 2, kind: input, shape index: {}]   ;;  %s528_s3 = inlined_call_operand.vmem [shape: f32[1,128], index: 3, kind: input, shape index: {}]   ;;  %s529_s0 = inlined_call_operand.vmem [shape: bf16[128,128], index: 0, kind: input, shape index: {}]   ;;  %s530_s4 = inlined_call_operand.vmem [shape: bf16[128,128], index: 4, kind: output, shape index: {}]  }
   0x1   :  { %v349_v0 = vld [vmem:[%s526_s1 + $0x38] sm:$0xff]  ;;  %v348_v1 = vld [vmem:[%s526_s1 + $0x30] sm:$0xff]  ;;  %v347_v2 = vld [vmem:[%s526_s1 + $0x28] sm:$0xff] }
   0x2   :  { %145 = vmatpush.bf16.msra.mxu0 %v349_v0  ;;  %397 = vmatpush.bf16.msra.mxu1 %v349_v0  ;;  %v346_v3 = vld [vmem:[%s526_s1 + $0x20] sm:$0xff]  ;;  %v345_v4 = vld [vmem:[%s526_s1 + $0x18] sm:$0xff]  ;;  %v344_v5 = vld [vmem:[%s526_s1 + $0x10] sm:$0xff] }
   0x3   :  { %398 = vmatpush.bf16.msra.mxu2 %v349_v0  ;;  %399 = vmatpush.bf16.msra.mxu3 %v349_v0  ;;  %v343_v6 = vld [vmem:[%s526_s1 + $0x8] sm:$0xff]  ;;  %v342_v7 = vld [vmem:[%s526_s1] sm:$0xff]  ;;  %v336_v9 = vld [vmem:[%s529_s0 + $0x10] sm:$0xff] }
   0x4   :  { %v334_v8 = vld [vmem:[%s529_s0] sm:$0xff]  ;;  %v340_v11 = vld [vmem:[%s529_s0 + $0x30] sm:$0xff]  ;;  %v335_v12 = vld [vmem:[%s529_s0 + $0x8] sm:$0xff] }
   0x5   :  { %v338_v10 = vld [vmem:[%s529_s0 + $0x20] sm:$0xff]  ;;  %v337_v13 = vld [vmem:[%s529_s0 + $0x18] sm:$0xff]  ;;  %v339_v14 = vld [vmem:[%s529_s0 + $0x28] sm:$0xff] }
   0x6   :  { %146 = vmatpush.bf16.msra.mxu0 %v348_v1  ;;  %400 = vmatpush.bf16.msra.mxu1 %v348_v1  ;;  %v341_v15 = vld [vmem:[%s529_s0 + $0x38] sm:$0xff]  ;;  %v421_v18 = vld [vmem:[%s527_s2] ss:$0 sm:$0xff] }
   0x7   :  { %401 = vmatpush.bf16.msra.mxu2 %v348_v1  ;;  %402 = vmatpush.bf16.msra.mxu3 %v348_v1  ;;  %v422_v20 = vld [vmem:[%s528_s3] ss:$0 sm:$0xff] }
   0xa   :  { %147 = vmatpush.bf16.msra.mxu0 %v347_v2  ;;  %403 = vmatpush.bf16.msra.mxu1 %v347_v2 }
   0xb   :  { %404 = vmatpush.bf16.msra.mxu2 %v347_v2  ;;  %405 = vmatpush.bf16.msra.mxu3 %v347_v2 }
   0xe   :  { %148 = vmatpush.bf16.msra.mxu0 %v346_v3  ;;  %406 = vmatpush.bf16.msra.mxu1 %v346_v3 }
   0xf   :  { %407 = vmatpush.bf16.msra.mxu2 %v346_v3  ;;  %408 = vmatpush.bf16.msra.mxu3 %v346_v3 }
  0x12   :  { %149 = vmatpush.bf16.msra.mxu0 %v345_v4  ;;  %409 = vmatpush.bf16.msra.mxu1 %v345_v4 }
  0x13   :  { %410 = vmatpush.bf16.msra.mxu2 %v345_v4  ;;  %411 = vmatpush.bf16.msra.mxu3 %v345_v4 }
  0x16   :  { %150 = vmatpush.bf16.msra.mxu0 %v344_v5  ;;  %412 = vmatpush.bf16.msra.mxu1 %v344_v5 }
  0x17   :  { %413 = vmatpush.bf16.msra.mxu2 %v344_v5  ;;  %414 = vmatpush.bf16.msra.mxu3 %v344_v5 }
  0x1a   :  { %151 = vmatpush.bf16.msra.mxu0 %v343_v6  ;;  %415 = vmatpush.bf16.msra.mxu1 %v343_v6 }
  0x1b   :  { %416 = vmatpush.bf16.msra.mxu2 %v343_v6  ;;  %417 = vmatpush.bf16.msra.mxu3 %v343_v6 }
  0x1e   :  { %152 = vmatpush.bf16.msra.mxu0 %v342_v7  ;;  %418 = vmatpush.bf16.msra.mxu1 %v342_v7 }
  0x1f   :  { %419 = vmatpush.bf16.msra.mxu2 %v342_v7  ;;  %420 = vmatpush.bf16.msra.mxu3 %v342_v7 }
  0x21   :  { %153 = vmatmul.bf16.vlgmr.msra.gmra.mxu0 %v334_v8  ;;  %163 = vmatmul.bf16.vlgmr.msra.gmra.mxu1 %v336_v9 }
  0x22   :  { %173 = vmatmul.bf16.vlgmr.msra.gmra.mxu2 %v338_v10  ;;  %183 = vmatmul.bf16.vlgmr.msra.gmra.mxu3 %v340_v11 }
  0x31   :  { %158 = vmatmul.bf16.gmra.mxu0 %v335_v12  ;;  %168 = vmatmul.bf16.gmra.mxu1 %v337_v13 }
  0x32   :  { %178 = vmatmul.bf16.gmra.mxu2 %v339_v14  ;;  %188 = vmatmul.bf16.gmra.mxu3 %v341_v15 }
  0x9e   :  { %v154_v16 = vpop.f32.mrf.mxu0  ;;  %v164_v17 = vpop.f32.mrf.mxu1 }
  0x9f   :  { %v198_v19 = vmul.f32 %v421_v18, %v154_v16  ;;  %v202_v21 = vmul.f32 %v421_v18, %v164_v17 }
  0xa1   :  { %v218_v28 = vadd.f32 %v422_v20, %v198_v19  ;;  %v222_v29 = vadd.f32 %v422_v20, %v202_v21 }
  0xa5   :  { %v174_v22 = vpop.f32.mrf.mxu2  ;;  %v184_v23 = vpop.f32.mrf.mxu3 }
  0xa6   :  { %v156_v24 = vpop.f32.mrf.mxu0  ;;  %v166_v25 = vpop.f32.mrf.mxu1  ;;  %v206_v34 = vmul.f32 %v421_v18, %v174_v22  ;;  %v210_v35 = vmul.f32 %v421_v18, %v184_v23 }
  0xa7   :  { %v199_v26 = vmul.f32 %v421_v18, %v156_v24  ;;  %v203_v27 = vmul.f32 %v421_v18, %v166_v25 }
  0xa8   :  { %v226_v42 = vadd.f32 %v422_v20, %v206_v34  ;;  %v230_v43 = vadd.f32 %v422_v20, %v210_v35 }
  0xa9   :  { %v219_v30 = vadd.f32 %v422_v20, %v199_v26  ;;  %v223_v31 = vadd.f32 %v422_v20, %v203_v27 }
  0xab   :  { %v353_v32 = vpack.c.bf16 %v219_v30, %v218_v28  ;;  %v363_v33 = vpack.c.bf16 %v223_v31, %v222_v29 }
  0xad   :  { %354 = vst [vmem:[%s530_s4] sm:$0xff] %v353_v32   ;;  %v176_v36 = vpop.f32.mrf.mxu2  ;;  %v186_v37 = vpop.f32.mrf.mxu3 }
  0xae   :  { %391 = vst [vmem:[%s530_s4 + $0x10] sm:$0xff] %v363_v33   ;;  %v207_v38 = vmul.f32 %v421_v18, %v176_v36  ;;  %v211_v39 = vmul.f32 %v421_v18, %v186_v37  ;;  %v159_v40 = vpop.f32.mrf.mxu0  ;;  %v169_v41 = vpop.f32.mrf.mxu1 }
  0xaf   :  { %v200_v48 = vmul.f32 %v421_v18, %v159_v40  ;;  %v204_v49 = vmul.f32 %v421_v18, %v169_v41 }
  0xb0   :  { %v227_v44 = vadd.f32 %v422_v20, %v207_v38  ;;  %v231_v45 = vadd.f32 %v422_v20, %v211_v39 }
  0xb1   :  { %v220_v56 = vadd.f32 %v422_v20, %v200_v48  ;;  %v224_v57 = vadd.f32 %v422_v20, %v204_v49 }
  0xb2   :  { %v373_v46 = vpack.c.bf16 %v227_v44, %v226_v42  ;;  %v383_v47 = vpack.c.bf16 %v231_v45, %v230_v43 }
  0xb4   :  { %393 = vst [vmem:[%s530_s4 + $0x20] sm:$0xff] %v373_v46  }
  0xb5   :  { %395 = vst [vmem:[%s530_s4 + $0x30] sm:$0xff] %v383_v47   ;;  %v179_v50 = vpop.f32.mrf.mxu2  ;;  %v189_v51 = vpop.f32.mrf.mxu3 }
  0xb6   :  { %v161_v52 = vpop.f32.mrf.mxu0  ;;  %v171_v53 = vpop.f32.mrf.mxu1  ;;  %v208_v62 = vmul.f32 %v421_v18, %v179_v50  ;;  %v212_v63 = vmul.f32 %v421_v18, %v189_v51 }
  0xb7   :  { %v201_v54 = vmul.f32 %v421_v18, %v161_v52  ;;  %v205_v55 = vmul.f32 %v421_v18, %v171_v53 }
  0xb8   :  { %v228_v4 = vadd.f32 %v422_v20, %v208_v62  ;;  %v232_v5 = vadd.f32 %v422_v20, %v212_v63 }
  0xb9   :  { %v221_v58 = vadd.f32 %v422_v20, %v201_v54  ;;  %v225_v59 = vadd.f32 %v422_v20, %v205_v55 }
  0xbb   :  { %v358_v60 = vpack.c.bf16 %v221_v58, %v220_v56  ;;  %v368_v61 = vpack.c.bf16 %v225_v59, %v224_v57 }
  0xbd   :  { %390 = vst [vmem:[%s530_s4 + $0x8] sm:$0xff] %v358_v60   ;;  %v181_v0 = vpop.f32.mrf.mxu2  ;;  %v191_v1 = vpop.f32.mrf.mxu3 }
  0xbe   :  { %392 = vst [vmem:[%s530_s4 + $0x18] sm:$0xff] %v368_v61   ;;  %v209_v2 = vmul.f32 %v421_v18, %v181_v0  ;;  %v213_v3 = vmul.f32 %v421_v18, %v191_v1 }
  0xc0   :  { %v229_v6 = vadd.f32 %v422_v20, %v209_v2  ;;  %v233_v7 = vadd.f32 %v422_v20, %v213_v3 }
  0xc2   :  { %v378_v8 = vpack.c.bf16 %v229_v6, %v228_v4  ;;  %v388_v9 = vpack.c.bf16 %v233_v7, %v232_v5 }
  0xc4   :  { %394 = vst [vmem:[%s530_s4 + $0x28] sm:$0xff] %v378_v8  }
  0xc5   :  { %396 = vst [vmem:[%s530_s4 + $0x38] sm:$0xff] %v388_v9  }

// kernel: _lambda_.11
= control target key start
LH: loop header
LB: loop body
LE: loop exit
PB: predicated region body
PF: predicated region fallthrough
CT: control target
= control target key end

     0   :  { %s3955_s15 = smov 0   ;;  %s4766_s0 = inlined_call_operand.vmem [shape: bf16[512,1152], index: 0, kind: input, shape index: {}]   ;;  %s4767_s1 = inlined_call_operand.vmem [shape: bf16[1152,128], index: 1, kind: input, shape index: {}]   ;;  %s4768_s2 = inlined_call_operand.vmem [shape: f32[1,128], index: 2, kind: input, shape index: {}]   ;;  %s4769_s3 = inlined_call_operand.vmem [shape: f32[1,128], index: 3, kind: input, shape index: {}]   ;;  %s4770_s4 = inlined_call_operand.vmem [shape: bf16[512,128], index: 4, kind: output, shape index: {}]  }
   0x1 LB: > { %s2701_s16 = sadd.s32 4294967295, %s3928_s15   ;;  %p2705_p0 = scmp.ge.s32.totalorder %s3928_s15, 1  ;;  %s3928_s15 = sphi %s3955_s15, %s14_s15  }
   0x2   : > { %p164_p1 = scmp.lt.s32.totalorder %s3928_s15, 3 }
   0x4   : > { %p165_p2 = pnand %p2705_p0, %p164_p1 }
   0x5   : > { %s2706_s23 = sshll.u32 (!%p165_p2), %s2701_s16, 5 }
   0x6   : > { %168 = sbr.rel (%p165_p2) target bundleno = 758 (0x2f6), region = 36  ;;  %p192_p3 = scmp.lt.s32.totalorder (!%p165_p2), %s2706_s23, 63 }
   0xb   : > { %v3727_v0 = vld [vmem:[%s4767_s1 + $0x38] sm:$0xff]  ;;  %v3726_v1 = vld [vmem:[%s4767_s1 + $0x30] sm:$0xff]  ;;  %v3725_v2 = vld [vmem:[%s4767_s1 + $0x28] sm:$0xff]  ;;  %s4772_s23 = smov (!%p192_p3, %s2706_s23), 63 }
   0xc   : > { %3887 = vmatpush.bf16.msra.mxu1 %v3727_v0  ;;  %3888 = vmatpush.bf16.msra.mxu2 %v3727_v0  ;;  %v3724_v3 = vld [vmem:[%s4767_s1 + $0x20] sm:$0xff]  ;;  %v3723_v4 = vld [vmem:[%s4767_s1 + $0x18] sm:$0xff]  ;;  %v3722_v5 = vld [vmem:[%s4767_s1 + $0x10] sm:$0xff]  ;;  %s3911_s30 = smul.u32 36, %s4772_s23  ;;  %s2709_s5 = sshll.u32 %s4772_s23, 2 }
   0xd   : > { %3889 = vmatpush.bf16.msra.mxu3 %v3727_v0  ;;  %1676 = vmatpush.bf16.msra.mxu0 %v3727_v0  ;;  %v3721_v6 = vld [vmem:[%s4767_s1 + $0x8] sm:$0xff]  ;;  %v3720_v7 = vld [vmem:[%s4767_s1] sm:$0xff]  ;;  %v3743_v16 = vld [vmem:[%s4767_s1 + $0xb8] sm:$0xff]  ;;  %s4608_s8 = scalar_lea.vmem %s4770_s4, %s2709_s5 }
   0xe   : > { %s3990_s9 = scalar_lea.vmem %s4766_s0, %s3911_s30  ;;  %v3751_v17 = vld [vmem:[%s4767_s1 + $0xf8] sm:$0xff]  ;;  %v3742_v24 = vld [vmem:[%s4767_s1 + $0xb0] sm:$0xff]  ;;  %v3741_v28 = vld [vmem:[%s4767_s1 + $0xa8] sm:$0xff] }
   0xf   : > { %v2856_v8 = vld [vmem:[%s3990_s9 + $0x120] sm:$0xf]  ;;  %v3616_v9 = vld [vmem:[%s3990_s9 + $0x140] sm:$0xf0]  ;;  %v3735_v22 = vld [vmem:[%s4767_s1 + $0x78] sm:$0xff] }
  0x10   : > { %3890 = vmatpush.bf16.msra.mxu1 %v3726_v1  ;;  %3891 = vmatpush.bf16.msra.mxu2 %v3726_v1  ;;  %v3000_v10 = vld [vmem:[%s3990_s9 + $0x240] sm:$0xf]  ;;  %v3652_v11 = vld [vmem:[%s3990_s9 + $0x260] sm:$0xf0]  ;;  %v2857_v18 = vor.u32 %v3616_v9, %v2856_v8  ;;  %v3759_v23 = vld [vmem:[%s4767_s1 + $0x138] sm:$0xff] }
  0x11   : > { %3892 = vmatpush.bf16.msra.mxu3 %v3726_v1  ;;  %1677 = vmatpush.bf16.msra.mxu0 %v3726_v1  ;;  %v3144_v12 = vld [vmem:[%s3990_s9 + $0x360] sm:$0xf]  ;;  %v3688_v13 = vld [vmem:[%s3990_s9 + $0x380] sm:$0xf0]  ;;  %v3001_v19 = vor.u32 %v3652_v11, %v3000_v10  ;;  %v3750_v25 = vld [vmem:[%s4767_s1 + $0xf0] sm:$0xff] }
  0x12   : > { %v2712_v14 = vld [vmem:[%s3990_s9] sm:$0xf]  ;;  %v3580_v15 = vld [vmem:[%s3990_s9 + $0x20] sm:$0xf0]  ;;  %v3145_v20 = vor.u32 %v3688_v13, %v3144_v12  ;;  %v3734_v26 = vld [vmem:[%s4767_s1 + $0x70] sm:$0xff] }
  0x13   : > { %v2713_v21 = vor.u32 %v3580_v15, %v2712_v14  ;;  %v3758_v27 = vld [vmem:[%s4767_s1 + $0x130] sm:$0xff]  ;;  %v3749_v29 = vld [vmem:[%s4767_s1 + $0xe8] sm:$0xff]  ;;  %v3740_v33 = vld [vmem:[%s4767_s1 + $0xa0] sm:$0xff] }
  0x14   : > { %3893 = vmatpush.bf16.msra.mxu1 %v3725_v2  ;;  %3894 = vmatpush.bf16.msra.mxu2 %v3725_v2  ;;  %v3733_v30 = vld [vmem:[%s4767_s1 + $0x68] sm:$0xff]  ;;  %v3748_v34 = vld [vmem:[%s4767_s1 + $0xe0] sm:$0xff]  ;;  %v3739_v44 = vld [vmem:[%s4767_s1 + $0x98] sm:$0xff] }
  0x15   : > { %3895 = vmatpush.bf16.msra.mxu3 %v3725_v2  ;;  %1678 = vmatpush.bf16.msra.mxu0 %v3725_v2  ;;  %v3757_v31 = vld [vmem:[%s4767_s1 + $0x128] sm:$0xff]  ;;  %v3732_v42 = vld [vmem:[%s4767_s1 + $0x60] sm:$0xff]  ;;  %v3747_v45 = vld [vmem:[%s4767_s1 + $0xd8] sm:$0xff] }
  0x16   : > { %v2892_v32 = vld [vmem:[%s3990_s9 + $0x168] sm:$0xf]  ;;  %v3625_v35 = vld [vmem:[%s3990_s9 + $0x188] sm:$0xf0]  ;;  %v3756_v43 = vld [vmem:[%s4767_s1 + $0x120] sm:$0xff] }
  0x17   : > { %v3036_v36 = vld [vmem:[%s3990_s9 + $0x288] sm:$0xf]  ;;  %v3661_v37 = vld [vmem:[%s3990_s9 + $0x2a8] sm:$0xf0]  ;;  %v2893_v46 = vor.u32 %v3625_v35, %v2892_v32  ;;  %v3731_v50 = vld [vmem:[%s4767_s1 + $0x58] sm:$0xff] }
  0x18   : > { %3896 = vmatpush.bf16.msra.mxu1 %v3724_v3  ;;  %3897 = vmatpush.bf16.msra.mxu2 %v3724_v3  ;;  %v3180_v38 = vld [vmem:[%s3990_s9 + $0x3a8] sm:$0xf]  ;;  %v3697_v39 = vld [vmem:[%s3990_s9 + $0x3c8] sm:$0xf0]  ;;  %v3037_v47 = vor.u32 %v3661_v37, %v3036_v36  ;;  %v3755_v51 = vld [vmem:[%s4767_s1 + $0x118] sm:$0xff] }
  0x19   : > { %3898 = vmatpush.bf16.msra.mxu3 %v3724_v3  ;;  %1679 = vmatpush.bf16.msra.mxu0 %v3724_v3  ;;  %v2748_v40 = vld [vmem:[%s3990_s9 + $0x48] sm:$0xf]  ;;  %v3589_v41 = vld [vmem:[%s3990_s9 + $0x68] sm:$0xf0]  ;;  %v3181_v48 = vor.u32 %v3697_v39, %v3180_v38  ;;  %v3738_v52 = vld [vmem:[%s4767_s1 + $0x90] sm:$0xff] }
  0x1a   : > { %v2749_v49 = vor.u32 %v3589_v41, %v2748_v40  ;;  %v3746_v53 = vld [vmem:[%s4767_s1 + $0xd0] sm:$0xff]  ;;  %v3737_v56 = vld [vmem:[%s4767_s1 + $0x88] sm:$0xff]  ;;  %v3736_v61 = vld [vmem:[%s4767_s1 + $0x80] sm:$0xff] }
  0x1b   : > { %v3730_v54 = vld [vmem:[%s4767_s1 + $0x50] sm:$0xff]  ;;  %v3745_v57 = vld [vmem:[%s4767_s1 + $0xc8] sm:$0xff]  ;;  %v3744_v62 = vld [vmem:[%s4767_s1 + $0xc0] sm:$0xff] }
  0x1c   : > { %3899 = vmatpush.bf16.msra.mxu1 %v3723_v4  ;;  %3900 = vmatpush.bf16.msra.mxu2 %v3723_v4  ;;  %v3754_v55 = vld [vmem:[%s4767_s1 + $0x110] sm:$0xff]  ;;  %v3729_v58 = vld [vmem:[%s4767_s1 + $0x48] sm:$0xff]  ;;  %v3775_v12 = vld [vmem:[%s4767_s1 + $0x1b8] sm:$0xff] }
  0x1d   : > { %3901 = vmatpush.bf16.msra.mxu3 %v3723_v4  ;;  %1680 = vmatpush.bf16.msra.mxu0 %v3723_v4  ;;  %v3753_v59 = vld [vmem:[%s4767_s1 + $0x108] sm:$0xff]  ;;  %v2928_v60 = vld [vmem:[%s3990_s9 + $0x1b0] sm:$0xf]  ;;  %v3634_v63 = vld [vmem:[%s3990_s9 + $0x1d0] sm:$0xf0] }
  0x1e   : > { %v3072_v0 = vld [vmem:[%s3990_s9 + $0x2d0] sm:$0xf]  ;;  %v3670_v1 = vld [vmem:[%s3990_s9 + $0x2f0] sm:$0xf0]  ;;  %v2929_v8 = vor.u32 %v3634_v63, %v2928_v60  ;;  %v3783_v13 = vld [vmem:[%s4767_s1 + $0x1f8] sm:$0xff] }
  0x1f   : > { %v3216_v2 = vld [vmem:[%s3990_s9 + $0x3f0] sm:$0xf]  ;;  %v3706_v3 = vld [vmem:[%s3990_s9 + $0x410] sm:$0xf0]  ;;  %v3073_v9 = vor.u32 %v3670_v1, %v3072_v0  ;;  %v3767_v14 = vld [vmem:[%s4767_s1 + $0x178] sm:$0xff] }
  0x20   : > { %3902 = vmatpush.bf16.msra.mxu1 %v3722_v5  ;;  %3903 = vmatpush.bf16.msra.mxu2 %v3722_v5  ;;  %v2784_v4 = vld [vmem:[%s3990_s9 + $0x90] sm:$0xf]  ;;  %v3217_v10 = vor.u32 %v3706_v3, %v3216_v2  ;;  %v3791_v15 = vld [vmem:[%s4767_s1 + $0x238] sm:$0xff]  ;;  %v3577_v32 = vld [vmem:[%s3990_s9 + $0xc] sm:$0xf] }
  0x21   : > { %3904 = vmatpush.bf16.msra.mxu3 %v3722_v5  ;;  %1681 = vmatpush.bf16.msra.mxu0 %v3722_v5  ;;  %v3598_v5 = vld [vmem:[%s3990_s9 + $0xb0] sm:$0xf0]  ;;  %v3595_v60 = vld [vmem:[%s3990_s9 + $0x9c] sm:$0xf]  ;;  %v3600_v63 = vld [vmem:[%s3990_s9 + $0xc0] sm:$0xf0] }
  0x22   : > { %v2785_v11 = vor.u32 %v3598_v5, %v2784_v4  ;;  %v3582_v35 = vld [vmem:[%s3990_s9 + $0x30] sm:$0xf0]  ;;  %v3773_v4 = vld [vmem:[%s4767_s1 + $0x1a8] sm:$0xff] }
  0x23   : > { %v3774_v40 = vld [vmem:[%s4767_s1 + $0x1b0] sm:$0xff]  ;;  %v3781_v5 = vld [vmem:[%s4767_s1 + $0x1e8] sm:$0xff] }
  0x24   : > { %3905 = vmatpush.bf16.msra.mxu1 %v3721_v6  ;;  %3906 = vmatpush.bf16.msra.mxu2 %v3721_v6  ;;  %v3782_v41 = vld [vmem:[%s4767_s1 + $0x1f0] sm:$0xff] }
  0x25   : > { %3907 = vmatpush.bf16.msra.mxu3 %v3721_v6  ;;  %1682 = vmatpush.bf16.msra.mxu0 %v3721_v6  ;;  %v3728_v6 = vld [vmem:[%s4767_s1 + $0x40] sm:$0xff] }
  0x28   : > { %3908 = vmatpush.bf16.msra.mxu1 %v3720_v7  ;;  %3909 = vmatpush.bf16.msra.mxu2 %v3720_v7 }
  0x29   : > { %3910 = vmatpush.bf16.msra.mxu3 %v3720_v7  ;;  %1683 = vmatpush.bf16.msra.mxu0 %v3720_v7  ;;  %v3752_v7 = vld [vmem:[%s4767_s1 + $0x100] sm:$0xff] }
  0x2b   : > { %1704 = vmatmul.bf16.vlgmr.msra.gmra.mxu1 %v2857_v18  ;;  %1724 = vmatmul.bf16.vlgmr.msra.gmra.mxu2 %v3001_v19  ;;  %v3108_v18 = vld [vmem:[%s3990_s9 + $0x318] sm:$0xf]  ;;  %v3679_v19 = vld [vmem:[%s3990_s9 + $0x338] sm:$0xf0] }
  0x2c   : > { %1854 = vmatpush.bf16.msrb.mxu2 %v3743_v16  ;;  %1744 = vmatmul.bf16.vlgmr.msra.gmra.mxu3 %v3145_v20  ;;  %v2964_v16 = vld [vmem:[%s3990_s9 + $0x1f8] sm:$0xf] }
  0x2d   : > { %1943 = vmatpush.bf16.msrb.mxu3 %v3751_v17  ;;  %1684 = vmatmul.bf16.vlgmr.msra.gmra.mxu0 %v2713_v21  ;;  %v3643_v17 = vld [vmem:[%s3990_s9 + $0x218] sm:$0xf0]  ;;  %v3252_v20 = vld [vmem:[%s3990_s9 + $0x438] sm:$0xf] }
  0x2e   : > { %1765 = vmatpush.bf16.msrb.mxu1 %v3735_v22  ;;  %2032 = vmatpush.bf16.msrb.mxu0 %v3759_v23  ;;  %v3715_v21 = vld [vmem:[%s3990_s9 + $0x458] sm:$0xf0]  ;;  %v2820_v22 = vld [vmem:[%s3990_s9 + $0xd8] sm:$0xf] }
  0x2f   : > { %v3607_v23 = vld [vmem:[%s3990_s9 + $0xf8] sm:$0xf0] }
  0x30   : > { %1855 = vmatpush.bf16.msrb.mxu2 %v3742_v24  ;;  %v2965_v24 = vor.u32 %v3643_v17, %v2964_v16 }
  0x31   : > { %1944 = vmatpush.bf16.msrb.mxu3 %v3750_v25  ;;  %v3109_v25 = vor.u32 %v3679_v19, %v3108_v18 }
  0x32   : > { %1766 = vmatpush.bf16.msrb.mxu1 %v3734_v26  ;;  %2033 = vmatpush.bf16.msrb.mxu0 %v3758_v27  ;;  %v3253_v26 = vor.u32 %v3715_v21, %v3252_v20  ;;  %v2821_v27 = vor.u32 %v3607_v23, %v2820_v22  ;;  %v3612_v20 = vld [vmem:[%s3990_s9 + $0x124] sm:$0xf]  ;;  %v2858_v21 = vld [vmem:[%s3990_s9 + $0x144] sm:$0xf0]  ;;  %v3617_v23 = vld [vmem:[%s3990_s9 + $0x148] sm:$0xf0] }
  0x33   : > { %v2864_v22 = vld [vmem:[%s3990_s9 + $0x128] sm:$0xf] }
  0x34   : > { %1856 = vmatpush.bf16.msrb.mxu2 %v3741_v28  ;;  %v3576_v28 = vld [vmem:[%s3990_s9 + $0x4] sm:$0xf] }
  0x35   : > { %1945 = vmatpush.bf16.msrb.mxu3 %v3749_v29  ;;  %v2714_v29 = vld [vmem:[%s3990_s9 + $0x24] sm:$0xf0] }
  0x36   : > { %1767 = vmatpush.bf16.msrb.mxu1 %v3733_v30  ;;  %2034 = vmatpush.bf16.msrb.mxu0 %v3757_v31  ;;  %v2720_v30 = vld [vmem:[%s3990_s9 + $0x8] sm:$0xf]  ;;  %v3581_v31 = vld [vmem:[%s3990_s9 + $0x28] sm:$0xf0]  ;;  %v2717_v36 = vor.u32 %v3576_v28, %v2714_v29  ;;  %v2861_v28 = vor.u32 %v3612_v20, %v2858_v21  ;;  %v2865_v29 = vor.u32 %v3617_v23, %v2864_v22  ;;  %v3763_v20 = vld [vmem:[%s4767_s1 + $0x158] sm:$0xff] }
  0x37   : > { %v2721_v37 = vor.u32 %v3581_v31, %v2720_v30  ;;  %v3787_v21 = vld [vmem:[%s4767_s1 + $0x218] sm:$0xff]  ;;  %v2966_v23 = vld [vmem:[%s3990_s9 + $0x21c] sm:$0xf0] }
  0x38   : > { %1857 = vmatpush.bf16.msrb.mxu2 %v3740_v33  ;;  %v2722_v33 = vld [vmem:[%s3990_s9 + $0x2c] sm:$0xf0]  ;;  %v3639_v22 = vld [vmem:[%s3990_s9 + $0x1fc] sm:$0xf] }
  0x39   : > { %1946 = vmatpush.bf16.msrb.mxu3 %v3748_v34  ;;  %v2728_v34 = vld [vmem:[%s3990_s9 + $0x10] sm:$0xf]  ;;  %v2725_v38 = vor.u32 %v3577_v32, %v2722_v33 }
  0x3a   : > { %1768 = vmatpush.bf16.msrb.mxu1 %v3732_v42  ;;  %2035 = vmatpush.bf16.msrb.mxu0 %v3756_v43  ;;  %v2729_v39 = vor.u32 %v3582_v35, %v2728_v34  ;;  %v3766_v42 = vld [vmem:[%s4767_s1 + $0x170] sm:$0xff]  ;;  %v3772_v34 = vld [vmem:[%s4767_s1 + $0x1a0] sm:$0xff] }
  0x3b   : > { %1709 = vmatmul.bf16.gmra.mxu1 %v2893_v46  ;;  %1729 = vmatmul.bf16.gmra.mxu2 %v3037_v47  ;;  %v3790_v43 = vld [vmem:[%s4767_s1 + $0x230] sm:$0xff]  ;;  %v3780_v35 = vld [vmem:[%s4767_s1 + $0x1e0] sm:$0xff] }
  0x3c   : > { %1858 = vmatpush.bf16.msrb.mxu2 %v3739_v44  ;;  %1749 = vmatmul.bf16.gmra.mxu3 %v3181_v48  ;;  %v3585_v44 = vld [vmem:[%s3990_s9 + $0x4c] sm:$0xf]  ;;  %v2756_v46 = vld [vmem:[%s3990_s9 + $0x50] sm:$0xf]  ;;  %v3590_v47 = vld [vmem:[%s3990_s9 + $0x70] sm:$0xf0] }
  0x3d   : > { %1947 = vmatpush.bf16.msrb.mxu3 %v3747_v45  ;;  %1689 = vmatmul.bf16.gmra.mxu0 %v2749_v49  ;;  %v2750_v45 = vld [vmem:[%s3990_s9 + $0x6c] sm:$0xf0]  ;;  %v3586_v48 = vld [vmem:[%s3990_s9 + $0x54] sm:$0xf]  ;;  %v2758_v49 = vld [vmem:[%s3990_s9 + $0x74] sm:$0xf0] }
  0x3e   : > { %1769 = vmatpush.bf16.msrb.mxu1 %v3731_v50  ;;  %2036 = vmatpush.bf16.msrb.mxu0 %v3755_v51  ;;  %v2764_v50 = vld [vmem:[%s3990_s9 + $0x58] sm:$0xf]  ;;  %v3591_v51 = vld [vmem:[%s3990_s9 + $0x78] sm:$0xf0] }
  0x40   : > { %1859 = vmatpush.bf16.msrb.mxu2 %v3738_v52  ;;  %v2753_v52 = vor.u32 %v3585_v44, %v2750_v45  ;;  %v2900_v44 = vld [vmem:[%s3990_s9 + $0x170] sm:$0xf]  ;;  %v3626_v45 = vld [vmem:[%s3990_s9 + $0x190] sm:$0xf0] }
  0x41   : > { %1948 = vmatpush.bf16.msrb.mxu3 %v3746_v53  ;;  %v2757_v53 = vor.u32 %v3590_v47, %v2756_v46  ;;  %v3622_v46 = vld [vmem:[%s3990_s9 + $0x174] sm:$0xf]  ;;  %v2902_v47 = vld [vmem:[%s3990_s9 + $0x194] sm:$0xf0] }
  0x42   : > { %1770 = vmatpush.bf16.msrb.mxu1 %v3730_v54  ;;  %2037 = vmatpush.bf16.msrb.mxu0 %v3754_v55  ;;  %v2761_v54 = vor.u32 %v3586_v48, %v2758_v49  ;;  %v2765_v55 = vor.u32 %v3591_v51, %v2764_v50  ;;  %v2908_v48 = vld [vmem:[%s3990_s9 + $0x178] sm:$0xf]  ;;  %v3627_v49 = vld [vmem:[%s3990_s9 + $0x198] sm:$0xf0] }
  0x44   : > { %1860 = vmatpush.bf16.msrb.mxu2 %v3737_v56  ;;  %v3594_v56 = vld [vmem:[%s3990_s9 + $0x94] sm:$0xf] }
  0x45   : > { %1949 = vmatpush.bf16.msrb.mxu3 %v3745_v57  ;;  %v2786_v57 = vld [vmem:[%s3990_s9 + $0xb4] sm:$0xf0] }
  0x46   : > { %1771 = vmatpush.bf16.msrb.mxu1 %v3729_v58  ;;  %2038 = vmatpush.bf16.msrb.mxu0 %v3753_v59  ;;  %v2792_v58 = vld [vmem:[%s3990_s9 + $0x98] sm:$0xf]  ;;  %v3599_v59 = vld [vmem:[%s3990_s9 + $0xb8] sm:$0xf0]  ;;  %v2789_v0 = vor.u32 %v3594_v56, %v2786_v57  ;;  %v2909_v56 = vor.u32 %v3627_v49, %v2908_v48  ;;  %v3648_v48 = vld [vmem:[%s3990_s9 + $0x244] sm:$0xf] }
  0x47   : > { %v2793_v1 = vor.u32 %v3599_v59, %v2792_v58  ;;  %v3002_v49 = vld [vmem:[%s3990_s9 + $0x264] sm:$0xf0] }
  0x48   : > { %1861 = vmatpush.bf16.msrb.mxu2 %v3736_v61  ;;  %v2794_v61 = vld [vmem:[%s3990_s9 + $0xbc] sm:$0xf0] }
  0x49   : > { %1950 = vmatpush.bf16.msrb.mxu3 %v3744_v62  ;;  %v2800_v62 = vld [vmem:[%s3990_s9 + $0xa0] sm:$0xf]  ;;  %v2797_v2 = vor.u32 %v3595_v60, %v2794_v61 }
  0x4a   : > { %1772 = vmatpush.bf16.msrb.mxu1 %v3728_v6  ;;  %2039 = vmatpush.bf16.msrb.mxu0 %v3752_v7  ;;  %v2801_v3 = vor.u32 %v3600_v63, %v2800_v62  ;;  %v3765_v6 = vld [vmem:[%s4767_s1 + $0x168] sm:$0xff]  ;;  %v3630_v62 = vld [vmem:[%s3990_s9 + $0x1b4] sm:$0xf]  ;;  %v2930_v63 = vld [vmem:[%s3990_s9 + $0x1d4] sm:$0xf0] }
  0x4b   : > { %1714 = vmatmul.bf16.gmra.mxu1 %v2929_v8  ;;  %1734 = vmatmul.bf16.gmra.mxu2 %v3073_v9  ;;  %v3789_v7 = vld [vmem:[%s4767_s1 + $0x228] sm:$0xff]  ;;  %v3603_v8 = vld [vmem:[%s3990_s9 + $0xdc] sm:$0xf]  ;;  %v2822_v9 = vld [vmem:[%s3990_s9 + $0xfc] sm:$0xf0] }
  0x4c   : > { %1754 = vmatmul.bf16.gmra.mxu3 %v3217_v10  ;;  %2210 = vmatpush.bf16.msra.mxu2 %v3775_v12  ;;  %v2828_v10 = vld [vmem:[%s3990_s9 + $0xe0] sm:$0xf]  ;;  %v3604_v12 = vld [vmem:[%s3990_s9 + $0xe4] sm:$0xf]  ;;  %v2825_v16 = vor.u32 %v3603_v8, %v2822_v9  ;;  %v2933_v8 = vor.u32 %v3630_v62, %v2930_v63  ;;  %v3016_v62 = vld [vmem:[%s3990_s9 + $0x250] sm:$0xf] }
  0x4d   : > { %1694 = vmatmul.bf16.gmra.mxu0 %v2785_v11  ;;  %2299 = vmatpush.bf16.msra.mxu3 %v3783_v13  ;;  %v3608_v11 = vld [vmem:[%s3990_s9 + $0x100] sm:$0xf0]  ;;  %v2830_v13 = vld [vmem:[%s3990_s9 + $0x104] sm:$0xf0]  ;;  %v3654_v63 = vld [vmem:[%s3990_s9 + $0x270] sm:$0xf0] }
  0x4e   : > { %2121 = vmatpush.bf16.msra.mxu1 %v3767_v14  ;;  %2388 = vmatpush.bf16.msra.mxu0 %v3791_v15  ;;  %v2836_v14 = vld [vmem:[%s3990_s9 + $0xe8] sm:$0xf]  ;;  %v3609_v15 = vld [vmem:[%s3990_s9 + $0x108] sm:$0xf0]  ;;  %v2829_v17 = vor.u32 %v3608_v11, %v2828_v10  ;;  %v2833_v18 = vor.u32 %v3604_v12, %v2830_v13 }
  0x4f   : > { %v2837_v19 = vor.u32 %v3609_v15, %v2836_v14  ;;  %v3771_v14 = vld [vmem:[%s4767_s1 + $0x198] sm:$0xff] }
  0x50   : > { %2211 = vmatpush.bf16.msra.mxu2 %v3774_v40  ;;  %v3779_v15 = vld [vmem:[%s4767_s1 + $0x1d8] sm:$0xff] }
  0x51   : > { %2300 = vmatpush.bf16.msra.mxu3 %v3782_v41  ;;  %v3788_v41 = vld [vmem:[%s4767_s1 + $0x220] sm:$0xff] }
  0x52   : > { %2122 = vmatpush.bf16.msra.mxu1 %v3766_v42  ;;  %2389 = vmatpush.bf16.msra.mxu0 %v3790_v43  ;;  %v3621_v42 = vld [vmem:[%s3990_s9 + $0x16c] sm:$0xf]  ;;  %v2894_v43 = vld [vmem:[%s3990_s9 + $0x18c] sm:$0xf0] }
  0x54   : > { %2212 = vmatpush.bf16.msra.mxu2 %v3773_v4  ;;  %v2944_v4 = vld [vmem:[%s3990_s9 + $0x1c0] sm:$0xf] }
  0x55   : > { %2301 = vmatpush.bf16.msra.mxu3 %v3781_v5  ;;  %v3636_v5 = vld [vmem:[%s3990_s9 + $0x1e0] sm:$0xf0] }
  0x56   : > { %2123 = vmatpush.bf16.msra.mxu1 %v3765_v6  ;;  %2390 = vmatpush.bf16.msra.mxu0 %v3789_v7  ;;  %v2945_v12 = vor.u32 %v3636_v5, %v2944_v4 }
  0x58   : > { %2213 = vmatpush.bf16.msra.mxu2 %v3772_v34  ;;  %v2969_v34 = vor.u32 %v3639_v22, %v2966_v23 }
  0x59   : > { %2302 = vmatpush.bf16.msra.mxu3 %v3780_v35 }
  0x5a   : > { %2391 = vmatpush.bf16.msra.mxu0 %v3788_v41 }
  0x5b   : > { %1719 = vmatmul.bf16.gmra.mxu1 %v2965_v24  ;;  %1739 = vmatmul.bf16.gmra.mxu2 %v3109_v25  ;;  %v3613_v24 = vld [vmem:[%s3990_s9 + $0x12c] sm:$0xf]  ;;  %v2866_v25 = vld [vmem:[%s3990_s9 + $0x14c] sm:$0xf0] }
  0x5c   : > { %1759 = vmatmul.bf16.gmra.mxu3 %v3253_v26  ;;  %v2872_v26 = vld [vmem:[%s3990_s9 + $0x130] sm:$0xf]  ;;  %v2869_v31 = vor.u32 %v3613_v24, %v2866_v25  ;;  %2214 = vmatpush.bf16.msra.mxu2 %v3771_v14  ;;  %v2972_v24 = vld [vmem:[%s3990_s9 + $0x200] sm:$0xf]  ;;  %v3644_v25 = vld [vmem:[%s3990_s9 + $0x220] sm:$0xf0] }
  0x5d   : > { %1699 = vmatmul.bf16.gmra.mxu0 %v2821_v27  ;;  %v3618_v27 = vld [vmem:[%s3990_s9 + $0x150] sm:$0xf0]  ;;  %2303 = vmatpush.bf16.msra.mxu3 %v3779_v15  ;;  %v2973_v35 = vor.u32 %v3644_v25, %v2972_v24 }
  0x5e   : > { %v2873_v32 = vor.u32 %v3618_v27, %v2872_v26  ;;  %2392 = vmatpush.bf16.msra.mxu0 %v3787_v21  ;;  %v3640_v26 = vld [vmem:[%s3990_s9 + $0x204] sm:$0xf]  ;;  %v2974_v27 = vld [vmem:[%s3990_s9 + $0x224] sm:$0xf0]  ;;  %v3778_v14 = vld [vmem:[%s4767_s1 + $0x1d0] sm:$0xff] }
  0x5f   : > { %v2977_v41 = vor.u32 %v3640_v26, %v2974_v27  ;;  %v3762_v25 = vld [vmem:[%s4767_s1 + $0x150] sm:$0xff]  ;;  %v3657_v27 = vld [vmem:[%s3990_s9 + $0x28c] sm:$0xf] }
  0x60   : > { %v3786_v26 = vld [vmem:[%s4767_s1 + $0x210] sm:$0xff] }
  0x61   : > { %2304 = vmatpush.bf16.msra.mxu3 %v3778_v14 }
  0x62   : > { %2393 = vmatpush.bf16.msra.mxu0 %v3786_v26  ;;  %v3082_v26 = vld [vmem:[%s3990_s9 + $0x2fc] sm:$0xf0] }
  0x6b   : > { %1773 = vmatmul.bf16.vlgmr.msrb.gmra.mxu1 %v2717_v36  ;;  %1862 = vmatmul.bf16.vlgmr.msrb.gmra.mxu2 %v2721_v37 }
  0x6c   : > { %1951 = vmatmul.bf16.vlgmr.msrb.gmra.mxu3 %v2725_v38  ;;  %v3764_v38 = vld [vmem:[%s4767_s1 + $0x160] sm:$0xff] }
  0x6d   : > { %2040 = vmatmul.bf16.vlgmr.msrb.gmra.mxu0 %v2729_v39  ;;  %2124 = vmatpush.bf16.msra.mxu1 %v3764_v38 }
  0x71   : > { %2125 = vmatpush.bf16.msra.mxu1 %v3763_v20 }
  0x75   : > { %2126 = vmatpush.bf16.msra.mxu1 %v3762_v25  ;;  %v3667_v25 = vld [vmem:[%s3990_s9 + $0x2dc] sm:$0xf] }
  0x7b   : > { %1778 = vmatmul.bf16.gmra.mxu1 %v2753_v52  ;;  %1867 = vmatmul.bf16.gmra.mxu2 %v2757_v53  ;;  %v2897_v52 = vor.u32 %v3621_v42, %v2894_v43  ;;  %v2901_v53 = vor.u32 %v3626_v45, %v2900_v44 }
  0x7c   : > { %1956 = vmatmul.bf16.gmra.mxu3 %v2761_v54 }
  0x7d   : > { %2045 = vmatmul.bf16.gmra.mxu0 %v2765_v55  ;;  %v2905_v55 = vor.u32 %v3622_v46, %v2902_v47 }
  0x8b   : > { %1783 = vmatmul.bf16.gmra.mxu1 %v2789_v0  ;;  %1872 = vmatmul.bf16.gmra.mxu2 %v2793_v1  ;;  %v2936_v0 = vld [vmem:[%s3990_s9 + $0x1b8] sm:$0xf]  ;;  %v3635_v1 = vld [vmem:[%s3990_s9 + $0x1d8] sm:$0xf0] }
  0x8c   : > { %1961 = vmatmul.bf16.gmra.mxu3 %v2797_v2  ;;  %v3631_v2 = vld [vmem:[%s3990_s9 + $0x1bc] sm:$0xf]  ;;  %v2937_v9 = vor.u32 %v3635_v1, %v2936_v0 }
  0x8d   : > { %2050 = vmatmul.bf16.gmra.mxu0 %v2801_v3  ;;  %v2938_v3 = vld [vmem:[%s3990_s9 + $0x1dc] sm:$0xf0] }
  0x8e   : > { %v2941_v11 = vor.u32 %v3631_v2, %v2938_v3  ;;  %v3005_v2 = vor.u32 %v3648_v48, %v3002_v49  ;;  %v3663_v48 = vld [vmem:[%s3990_s9 + $0x2b8] sm:$0xf0] }
  0x9b   : > { %1788 = vmatmul.bf16.gmra.mxu1 %v2825_v16  ;;  %1877 = vmatmul.bf16.gmra.mxu2 %v2829_v17 }
  0x9c   : > { %1966 = vmatmul.bf16.gmra.mxu3 %v2833_v18 }
  0x9d   : > { %2055 = vmatmul.bf16.gmra.mxu0 %v2837_v19 }
  0xa8   : > { %v4199_v30 = vpop.f32.mrf.mxu1 }
  0xaa   : > { %v4201_v33 = vpop.f32.mrf.mxu0 }
  0xab   : > { %1793 = vmatmul.bf16.gmra.mxu1 %v2861_v28  ;;  %1882 = vmatmul.bf16.gmra.mxu2 %v2865_v29  ;;  %v2980_v28 = vld [vmem:[%s3990_s9 + $0x208] sm:$0xf]  ;;  %v3645_v29 = vld [vmem:[%s3990_s9 + $0x228] sm:$0xf0] }
  0xac   : > { %1971 = vmatmul.bf16.gmra.mxu3 %v2869_v31  ;;  %v2981_v42 = vor.u32 %v3645_v29, %v2980_v28  ;;  %v3038_v28 = vld [vmem:[%s3990_s9 + $0x2ac] sm:$0xf0] }
  0xad   : > { %2060 = vmatmul.bf16.gmra.mxu0 %v2873_v32 }
  0xae   : > { %v4209_v36 = vpop.f32.mrf.mxu2 }
  0xaf   : > { %v4211_v37 = vpop.f32.mrf.mxu3 }
  0xb0   : > { %v4216_v39 = vpop.f32.mrf.mxu1 }
  0xb2   : > { %v4218_v40 = vpop.f32.mrf.mxu0 }
  0xb6   : > { %v4231_v50 = vpop.f32.mrf.mxu2 }
  0xb7   : > { %v4233_v51 = vpop.f32.mrf.mxu3 }
  0xb8   : > { %v4235_v54 = vpop.f32.mrf.mxu1 }
  0xba   : > { %v4237_v57 = vpop.f32.mrf.mxu0 }
  0xbb   : > { %1798 = vmatmul.bf16.gmra.mxu1 %v2897_v52  ;;  %1887 = vmatmul.bf16.gmra.mxu2 %v2901_v53  ;;  %v3008_v52 = vld [vmem:[%s3990_s9 + $0x248] sm:$0xf]  ;;  %v3653_v53 = vld [vmem:[%s3990_s9 + $0x268] sm:$0xf0] }
  0xbc   : > { %1976 = vmatmul.bf16.gmra.mxu3 %v2905_v55  ;;  %v3649_v55 = vld [vmem:[%s3990_s9 + $0x24c] sm:$0xf]  ;;  %v3009_v3 = vor.u32 %v3653_v53, %v3008_v52 }
  0xbd   : > { %2065 = vmatmul.bf16.gmra.mxu0 %v2909_v56  ;;  %v3010_v56 = vld [vmem:[%s3990_s9 + $0x26c] sm:$0xf0] }
  0xbe   : > { %v4239_v58 = vpop.f32.mrf.mxu2  ;;  %v3013_v5 = vor.u32 %v3649_v55, %v3010_v56  ;;  %v3041_v55 = vor.u32 %v3657_v27, %v3038_v28  ;;  %v3088_v27 = vld [vmem:[%s3990_s9 + $0x2e0] sm:$0xf]  ;;  %v3672_v28 = vld [vmem:[%s3990_s9 + $0x300] sm:$0xf0] }
  0xbf   : > { %v4241_v59 = vpop.f32.mrf.mxu3 }
  0xc0   : > { %v4243_v60 = vpop.f32.mrf.mxu1 }
  0xc2   : > { %v4245_v61 = vpop.f32.mrf.mxu0 }
  0xc6   : > { %v4255_v6 = vpop.f32.mrf.mxu2 }
  0xc7   : > { %v4257_v7 = vpop.f32.mrf.mxu3 }
  0xc8   : > { %v4259_v10 = vpop.f32.mrf.mxu1 }
  0xca   : > { %v4261_v13 = vpop.f32.mrf.mxu0 }
  0xcb   : > { %1803 = vmatmul.bf16.gmra.mxu1 %v2933_v8  ;;  %1892 = vmatmul.bf16.gmra.mxu2 %v2937_v9  ;;  %v3017_v8 = vor.u32 %v3654_v63, %v3016_v62 }
  0xcc   : > { %1981 = vmatmul.bf16.gmra.mxu3 %v2941_v11 }
  0xcd   : > { %2070 = vmatmul.bf16.gmra.mxu0 %v2945_v12  ;;  %v3770_v12 = vld [vmem:[%s4767_s1 + $0x190] sm:$0xff] }
  0xce   : > { %v4269_v16 = vpop.f32.mrf.mxu2  ;;  %2215 = vmatpush.bf16.msra.mxu2 %v3770_v12 }
  0xcf   : > { %v4271_v17 = vpop.f32.mrf.mxu3 }
  0xd0   : > { %v4273_v18 = vpop.f32.mrf.mxu1 }
  0xd2   : > { %v4275_v19 = vpop.f32.mrf.mxu0 }
  0xd6   : > { %v4291_v31 = vpop.f32.mrf.mxu2 }
  0xd7   : > { %v4293_v32 = vpop.f32.mrf.mxu3 }
  0xd8   : > { %v4295_v38 = vpop.f32.mrf.mxu1 }
  0xda   : > { %v4297_v43 = vpop.f32.mrf.mxu0 }
  0xdb   : > { %1808 = vmatmul.bf16.gmra.mxu1 %v2969_v34  ;;  %1897 = vmatmul.bf16.gmra.mxu2 %v2973_v35  ;;  %v3044_v34 = vld [vmem:[%s3990_s9 + $0x290] sm:$0xf]  ;;  %v3662_v35 = vld [vmem:[%s3990_s9 + $0x2b0] sm:$0xf0] }
  0xdc   : > { %1986 = vmatmul.bf16.gmra.mxu3 %v2977_v41  ;;  %v3658_v41 = vld [vmem:[%s3990_s9 + $0x294] sm:$0xf]  ;;  %v3045_v56 = vor.u32 %v3662_v35, %v3044_v34 }
  0xdd   : > { %2075 = vmatmul.bf16.gmra.mxu0 %v2981_v42  ;;  %v3046_v42 = vld [vmem:[%s3990_s9 + $0x2b4] sm:$0xf0] }
  0xde   : > { %v4299_v44 = vpop.f32.mrf.mxu2  ;;  %v3049_v63 = vor.u32 %v3658_v41, %v3046_v42 }
  0xdf   : > { %v4301_v45 = vpop.f32.mrf.mxu3 }
  0xe0   : > { %v4303_v46 = vpop.f32.mrf.mxu1 }
  0xe2   : > { %v4305_v47 = vpop.f32.mrf.mxu0 }
  0xe6   : > { %v4315_v0 = vpop.f32.mrf.mxu2 }
  0xe7   : > { %v4317_v1 = vpop.f32.mrf.mxu3 }
  0xe8   : > { %v1774_v4 = vpop.f32.mrf.mxu1 }
  0xe9   : > { %v1775_v9 = vadd.f32 %v1774_v4, %v4201_v33 }
  0xea   : > { %v2041_v11 = vpop.f32.mrf.mxu0 }
  0xeb   : > { %1813 = vmatmul.bf16.gmra.mxu1 %v3005_v2  ;;  %1902 = vmatmul.bf16.gmra.mxu2 %v3009_v3 }
  0xec   : > { %1991 = vmatmul.bf16.gmra.mxu3 %v3013_v5 }
  0xed   : > { %2080 = vmatmul.bf16.gmra.mxu0 %v3017_v8 }
  0xee   : > { %v1863_v15 = vpop.f32.mrf.mxu2 }
  0xef   : > { %v1864_v33 = vadd.f32 %v1863_v15, %v1775_v9  ;;  %v1952_v20 = vpop.f32.mrf.mxu3 }
  0xf0   : > { %v1776_v21 = vpop.f32.mrf.mxu1 }
  0xf1   : > { %v1953_v22 = vadd.f32 %v1952_v20, %v1864_v33  ;;  %v1777_v23 = vadd.f32 %v1776_v21, %v4218_v40  ;;  %v3052_v40 = vld [vmem:[%s3990_s9 + $0x298] sm:$0xf]  ;;  %v3666_v20 = vld [vmem:[%s3990_s9 + $0x2d4] sm:$0xf] }
  0xf2   : > { %v2043_v24 = vpop.f32.mrf.mxu0  ;;  %v3053_v2 = vor.u32 %v3663_v48, %v3052_v40  ;;  %v3074_v21 = vld [vmem:[%s3990_s9 + $0x2f4] sm:$0xf0] }
  0xf3   : > { %v4335_v29 = vadd.f32 %v2041_v11, %v1953_v22  ;;  %v3077_v42 = vor.u32 %v3666_v20, %v3074_v21  ;;  %v3116_v20 = vld [vmem:[%s3990_s9 + $0x320] sm:$0xf]  ;;  %v3680_v21 = vld [vmem:[%s3990_s9 + $0x340] sm:$0xf0] }
  0xf6   : > { %v1865_v49 = vpop.f32.mrf.mxu2 }
  0xf7   : > { %v1866_v52 = vadd.f32 %v1865_v49, %v1777_v23  ;;  %v1954_v53 = vpop.f32.mrf.mxu3  ;;  %v3080_v23 = vld [vmem:[%s3990_s9 + $0x2d8] sm:$0xf]  ;;  %v3085_v49 = vor.u32 %v3667_v25, %v3082_v26  ;;  %v3681_v25 = vld [vmem:[%s3990_s9 + $0x348] sm:$0xf0] }
  0xf8   : > { %v1779_v62 = vpop.f32.mrf.mxu1 }
  0xf9   : > { %v1955_v3 = vadd.f32 %v1954_v53, %v1866_v52  ;;  %v1780_v4 = vadd.f32 %v1779_v62, %v4237_v57  ;;  %v3089_v52 = vor.u32 %v3672_v28, %v3088_v27  ;;  %v3769_v62 = vld [vmem:[%s4767_s1 + $0x188] sm:$0xff] }
  0xfa   : > { %v2046_v5 = vpop.f32.mrf.mxu0  ;;  %2216 = vmatpush.bf16.msra.mxu2 %v3769_v62 }
  0xfb   : > { %1818 = vmatmul.bf16.gmra.mxu1 %v3041_v55  ;;  %1907 = vmatmul.bf16.gmra.mxu2 %v3045_v56  ;;  %v4344_v8 = vadd.f32 %v2043_v24, %v1955_v3  ;;  %v3671_v24 = vld [vmem:[%s3990_s9 + $0x2f8] sm:$0xf0] }
  0xfc   : > { %1996 = vmatmul.bf16.gmra.mxu3 %v3049_v63  ;;  %v3081_v40 = vor.u32 %v3671_v24, %v3080_v23  ;;  %v3777_v63 = vld [vmem:[%s4767_s1 + $0x1c8] sm:$0xff]  ;;  %v3676_v23 = vld [vmem:[%s3990_s9 + $0x324] sm:$0xf] }
  0xfd   : > { %2085 = vmatmul.bf16.gmra.mxu0 %v3053_v2  ;;  %2305 = vmatpush.bf16.msra.mxu3 %v3777_v63  ;;  %v3118_v24 = vld [vmem:[%s3990_s9 + $0x344] sm:$0xf0] }
  0xfe   : > { %v1868_v9 = vpop.f32.mrf.mxu2 }
  0xff   : > { %v1869_v11 = vadd.f32 %v1868_v9, %v1780_v4  ;;  %v1957_v12 = vpop.f32.mrf.mxu3 }
 0x100   : > { %v1781_v14 = vpop.f32.mrf.mxu1 }
 0x101   : > { %v1958_v15 = vadd.f32 %v1957_v12, %v1869_v11  ;;  %v1782_v57 = vadd.f32 %v1781_v14, %v4245_v61  ;;  %v3761_v12 = vld [vmem:[%s4767_s1 + $0x148] sm:$0xff] }
 0x102   : > { %v2048_v33 = vpop.f32.mrf.mxu0  ;;  %v3785_v14 = vld [vmem:[%s4767_s1 + $0x208] sm:$0xff]  ;;  %2127 = vmatpush.bf16.msra.mxu1 %v3761_v12 }
 0x103   : > { %v4349_v22 = vadd.f32 %v2046_v5, %v1958_v15  ;;  %v3675_v15 = vld [vmem:[%s3990_s9 + $0x31c] sm:$0xf]  ;;  %2394 = vmatpush.bf16.msra.mxu0 %v3785_v14  ;;  %v3685_v12 = vld [vmem:[%s3990_s9 + $0x36c] sm:$0xf]  ;;  %v3154_v14 = vld [vmem:[%s3990_s9 + $0x38c] sm:$0xf0] }
 0x106   : > { %v1870_v34 = vpop.f32.mrf.mxu2 }
 0x107   : > { %v1871_v35 = vadd.f32 %v1870_v34, %v1782_v57  ;;  %v1959_v41 = vpop.f32.mrf.mxu3  ;;  %v3110_v57 = vld [vmem:[%s3990_s9 + $0x33c] sm:$0xf0] }
 0x108   : > { %v1784_v48 = vpop.f32.mrf.mxu1  ;;  %v3113_v34 = vor.u32 %v3675_v15, %v3110_v57  ;;  %v3160_v15 = vld [vmem:[%s3990_s9 + $0x370] sm:$0xf]  ;;  %v3690_v57 = vld [vmem:[%s3990_s9 + $0x390] sm:$0xf0] }
 0x109   : > { %v1960_v61 = vadd.f32 %v1959_v41, %v1871_v35  ;;  %v1785_v53 = vadd.f32 %v1784_v48, %v4261_v13  ;;  %v3117_v35 = vor.u32 %v3680_v21, %v3116_v20 }
 0x10a   : > { %v2051_v55 = vpop.f32.mrf.mxu0 }
 0x10b   : > { %1823 = vmatmul.bf16.gmra.mxu1 %v3077_v42  ;;  %1912 = vmatmul.bf16.gmra.mxu2 %v3081_v40  ;;  %v4358_v56 = vadd.f32 %v2048_v33, %v1960_v61  ;;  %v3121_v42 = vor.u32 %v3676_v23, %v3118_v24 }
 0x10c   : > { %2001 = vmatmul.bf16.gmra.mxu3 %v3085_v49 }
 0x10d   : > { %2090 = vmatmul.bf16.gmra.mxu0 %v3089_v52 }
 0x10e   : > { %v1873_v2 = vpop.f32.mrf.mxu2 }
 0x10f   : > { %v1874_v13 = vadd.f32 %v1873_v2, %v1785_v53  ;;  %v1962_v3 = vpop.f32.mrf.mxu3 }
 0x110   : > { %v1786_v4 = vpop.f32.mrf.mxu1 }
 0x111   : > { %v1963_v5 = vadd.f32 %v1962_v3, %v1874_v13  ;;  %v1787_v9 = vadd.f32 %v1786_v4, %v4275_v19  ;;  %v3124_v19 = vld [vmem:[%s3990_s9 + $0x328] sm:$0xf]  ;;  %v3684_v3 = vld [vmem:[%s3990_s9 + $0x364] sm:$0xf] }
 0x112   : > { %v2053_v11 = vpop.f32.mrf.mxu0  ;;  %v3125_v40 = vor.u32 %v3681_v25, %v3124_v19  ;;  %v3146_v4 = vld [vmem:[%s3990_s9 + $0x384] sm:$0xf0] }
 0x113   : > { %v4375_v33 = vadd.f32 %v2051_v55, %v1963_v5  ;;  %v3149_v24 = vor.u32 %v3684_v3, %v3146_v4  ;;  %v3698_v3 = vld [vmem:[%s3990_s9 + $0x3d0] sm:$0xf0] }
 0x114   : > { %v3694_v4 = vld [vmem:[%s3990_s9 + $0x3b4] sm:$0xf] }
 0x116   : > { %v1875_v26 = vpop.f32.mrf.mxu2 }
 0x117   : > { %v1876_v27 = vadd.f32 %v1875_v26, %v1787_v9  ;;  %v1964_v28 = vpop.f32.mrf.mxu3  ;;  %v3152_v9 = vld [vmem:[%s3990_s9 + $0x368] sm:$0xf]  ;;  %v3157_v26 = vor.u32 %v3685_v12, %v3154_v14  ;;  %v3196_v12 = vld [vmem:[%s3990_s9 + $0x3b8] sm:$0xf]  ;;  %v3699_v14 = vld [vmem:[%s3990_s9 + $0x3d8] sm:$0xf0] }
 0x118   : > { %v1789_v41 = vpop.f32.mrf.mxu1 }
 0x119   : > { %v1965_v48 = vadd.f32 %v1964_v28, %v1876_v27  ;;  %v1790_v49 = vadd.f32 %v1789_v41, %v4297_v43  ;;  %v3161_v27 = vor.u32 %v3690_v57, %v3160_v15  ;;  %v3776_v41 = vld [vmem:[%s4767_s1 + $0x1c0] sm:$0xff] }
 0x11a   : > { %v2056_v52 = vpop.f32.mrf.mxu0  ;;  %2306 = vmatpush.bf16.msra.mxu3 %v3776_v41 }
 0x11b   : > { %1828 = vmatmul.bf16.gmra.mxu1 %v3113_v34  ;;  %1917 = vmatmul.bf16.gmra.mxu2 %v3117_v35  ;;  %v4384_v61 = vadd.f32 %v2053_v11, %v1965_v48  ;;  %v3689_v11 = vld [vmem:[%s3990_s9 + $0x388] sm:$0xf0]  ;;  %v3768_v35 = vld [vmem:[%s4767_s1 + $0x180] sm:$0xff] }
 0x11c   : > { %2006 = vmatmul.bf16.gmra.mxu3 %v3121_v42  ;;  %v3153_v19 = vor.u32 %v3689_v11, %v3152_v9  ;;  %2217 = vmatpush.bf16.msra.mxu2 %v3768_v35  ;;  %v3190_v11 = vld [vmem:[%s3990_s9 + $0x3d4] sm:$0xf0] }
 0x11d   : > { %2095 = vmatmul.bf16.gmra.mxu0 %v3125_v40 }
 0x11e   : > { %v1878_v53 = vpop.f32.mrf.mxu2 }
 0x11f   : > { %v1879_v55 = vadd.f32 %v1878_v53, %v1790_v49  ;;  %v1967_v62 = vpop.f32.mrf.mxu3 }
 0x120   : > { %v1791_v63 = vpop.f32.mrf.mxu1 }
 0x121   : > { %v1968_v2 = vadd.f32 %v1967_v62, %v1879_v55  ;;  %v1792_v43 = vadd.f32 %v1791_v63, %v4305_v47  ;;  %v3760_v62 = vld [vmem:[%s4767_s1 + $0x140] sm:$0xff]  ;;  %v3693_v63 = vld [vmem:[%s3990_s9 + $0x3ac] sm:$0xf] }
 0x122   : > { %v2058_v13 = vpop.f32.mrf.mxu0  ;;  %2128 = vmatpush.bf16.msra.mxu1 %v3760_v62  ;;  %v3224_v62 = vld [vmem:[%s3990_s9 + $0x3f8] sm:$0xf] }
 0x123   : > { %v4389_v5 = vadd.f32 %v2056_v52, %v1968_v2  ;;  %v3182_v2 = vld [vmem:[%s3990_s9 + $0x3cc] sm:$0xf0] }
 0x126   : > { %v1880_v20 = vpop.f32.mrf.mxu2 }
 0x127   : > { %v1881_v21 = vadd.f32 %v1880_v20, %v1792_v43  ;;  %v1969_v23 = vpop.f32.mrf.mxu3 }
 0x128   : > { %v1794_v25 = vpop.f32.mrf.mxu1 }
 0x129   : > { %v1970_v47 = vadd.f32 %v1969_v23, %v1881_v21  ;;  %v1795_v42 = vadd.f32 %v1794_v25, %v4199_v30  ;;  %v3784_v30 = vld [vmem:[%s4767_s1 + $0x200] sm:$0xff]  ;;  %v3185_v21 = vor.u32 %v3693_v63, %v3182_v2  ;;  %v3197_v25 = vor.u32 %v3699_v14, %v3196_v12 }
 0x12a   : > { %v2061_v28 = vpop.f32.mrf.mxu0  ;;  %2395 = vmatpush.bf16.msra.mxu0 %v3784_v30  ;;  %v3703_v30 = vld [vmem:[%s3990_s9 + $0x3fc] sm:$0xf]  ;;  %v3226_v2 = vld [vmem:[%s3990_s9 + $0x41c] sm:$0xf0] }
 0x12b   : > { %1833 = vmatmul.bf16.gmra.mxu1 %v3149_v24  ;;  %1922 = vmatmul.bf16.gmra.mxu2 %v3153_v19  ;;  %v4397_v34 = vadd.f32 %v2058_v13, %v1970_v47  ;;  %v3188_v13 = vld [vmem:[%s3990_s9 + $0x3b0] sm:$0xf]  ;;  %v3193_v19 = vor.u32 %v3694_v4, %v3190_v11 }
 0x12c   : > { %2011 = vmatmul.bf16.gmra.mxu3 %v3157_v26  ;;  %v3189_v23 = vor.u32 %v3698_v3, %v3188_v13  ;;  %v3232_v13 = vld [vmem:[%s3990_s9 + $0x400] sm:$0xf]  ;;  %v3708_v3 = vld [vmem:[%s3990_s9 + $0x420] sm:$0xf0] }
 0x12d   : > { %2100 = vmatmul.bf16.gmra.mxu0 %v3161_v27 }
 0x12e   : > { %v1883_v40 = vpop.f32.mrf.mxu2 }
 0x12f   : > { %v1884_v48 = vadd.f32 %v1883_v40, %v1795_v42  ;;  %v1972_v49 = vpop.f32.mrf.mxu3 }
 0x130   : > { %v1796_v52 = vpop.f32.mrf.mxu1 }
 0x131   : > { %v1973_v53 = vadd.f32 %v1972_v49, %v1884_v48  ;;  %v1797_v9 = vadd.f32 %v1796_v52, %v4216_v39  ;;  %v3702_v49 = vld [vmem:[%s3990_s9 + $0x3f4] sm:$0xf]  ;;  %v3218_v52 = vld [vmem:[%s3990_s9 + $0x414] sm:$0xf0] }
 0x132   : > { %v2063_v55 = vpop.f32.mrf.mxu0  ;;  %v3221_v11 = vor.u32 %v3702_v49, %v3218_v52  ;;  %v3262_v52 = vld [vmem:[%s3990_s9 + $0x464] sm:$0xf0] }
 0x133   : > { %v4414_v43 = vadd.f32 %v2061_v28, %v1973_v53 }
 0x136   : > { %v1885_v15 = vpop.f32.mrf.mxu2 }
 0x137   : > { %v1886_v57 = vadd.f32 %v1885_v15, %v1797_v9  ;;  %v1974_v20 = vpop.f32.mrf.mxu3  ;;  %v3229_v15 = vor.u32 %v3703_v30, %v3226_v2 }
 0x138   : > { %v1799_v24 = vpop.f32.mrf.mxu1 }
 0x139   : > { %v1975_v26 = vadd.f32 %v1974_v20, %v1886_v57  ;;  %v1800_v47 = vadd.f32 %v1799_v24, %v4235_v54  ;;  %v3233_v57 = vor.u32 %v3708_v3, %v3232_v13 }
 0x13a   : > { %v2066_v27 = vpop.f32.mrf.mxu0 }
 0x13b   : > { %1838 = vmatmul.bf16.gmra.mxu1 %v3185_v21  ;;  %1927 = vmatmul.bf16.gmra.mxu2 %v3189_v23  ;;  %v4423_v39 = vadd.f32 %v2063_v55, %v1975_v26  ;;  %v3707_v55 = vld [vmem:[%s3990_s9 + $0x418] sm:$0xf0] }
 0x13c   : > { %2016 = vmatmul.bf16.gmra.mxu3 %v3193_v19  ;;  %v3225_v12 = vor.u32 %v3707_v55, %v3224_v62  ;;  %v3268_v62 = vld [vmem:[%s3990_s9 + $0x448] sm:$0xf]  ;;  %v3717_v55 = vld [vmem:[%s3990_s9 + $0x468] sm:$0xf0] }
 0x13d   : > { %2105 = vmatmul.bf16.gmra.mxu0 %v3197_v25 }
 0x13e   : > { %v1888_v28 = vpop.f32.mrf.mxu2 }
 0x13f   : > { %v1889_v35 = vadd.f32 %v1888_v28, %v1800_v47  ;;  %v1977_v41 = vpop.f32.mrf.mxu3  ;;  %v3711_v28 = vld [vmem:[%s3990_s9 + $0x43c] sm:$0xf] }
 0x140   : > { %v1801_v42 = vpop.f32.mrf.mxu1 }
 0x141   : > { %v1978_v40 = vadd.f32 %v1977_v41, %v1889_v35  ;;  %v1802_v63 = vadd.f32 %v1801_v42, %v4243_v60  ;;  %v3254_v35 = vld [vmem:[%s3990_s9 + $0x45c] sm:$0xf0] }
 0x142   : > { %v2068_v48 = vpop.f32.mrf.mxu0  ;;  %v3260_v42 = vld [vmem:[%s3990_s9 + $0x440] sm:$0xf]  ;;  %v3257_v2 = vor.u32 %v3711_v28, %v3254_v35 }
 0x143   : > { %v4428_v53 = vadd.f32 %v2066_v27, %v1978_v40  ;;  %v3716_v40 = vld [vmem:[%s3990_s9 + $0x460] sm:$0xf0]  ;;  %v2738_v35 = vld [vmem:[%s3990_s9 + $0x3c] sm:$0xf0] }
 0x144   : > { %v3261_v13 = vor.u32 %v3716_v40, %v3260_v42  ;;  %v2744_v42 = vld [vmem:[%s3990_s9 + $0x20] sm:$0xf]  ;;  %v3584_v40 = vld [vmem:[%s3990_s9 + $0x40] sm:$0xf0] }
 0x146   : > { %v1890_v54 = vpop.f32.mrf.mxu2 }
 0x147   : > { %v1891_v4 = vadd.f32 %v1890_v54, %v1802_v63  ;;  %v1979_v9 = vpop.f32.mrf.mxu3 }
 0x148   : > { %v1804_v14 = vpop.f32.mrf.mxu1 }
 0x149   : > { %v1980_v20 = vadd.f32 %v1979_v9, %v1891_v4  ;;  %v1805_v23 = vadd.f32 %v1804_v14, %v4259_v10  ;;  %v3269_v4 = vor.u32 %v3717_v55, %v3268_v62 }
 0x14a   : > { %v2071_v21 = vpop.f32.mrf.mxu0 }
 0x14b   : > { %1843 = vmatmul.bf16.gmra.mxu1 %v3221_v11  ;;  %1932 = vmatmul.bf16.gmra.mxu2 %v3225_v12  ;;  %v4437_v60 = vadd.f32 %v2068_v48, %v1980_v20  ;;  %v3712_v48 = vld [vmem:[%s3990_s9 + $0x444] sm:$0xf] }
 0x14c   : > { %2021 = vmatmul.bf16.gmra.mxu3 %v3229_v15  ;;  %v3265_v54 = vor.u32 %v3712_v48, %v3262_v52 }
 0x14d   : > { %2110 = vmatmul.bf16.gmra.mxu0 %v3233_v57 }
 0x14e   : > { %v1893_v24 = vpop.f32.mrf.mxu2 }
 0x14f   : > { %v1894_v19 = vadd.f32 %v1893_v24, %v1805_v23  ;;  %v1982_v25 = vpop.f32.mrf.mxu3  ;;  %v3578_v24 = vld [vmem:[%s3990_s9 + $0x14] sm:$0xf] }
 0x150   : > { %v1806_v26 = vpop.f32.mrf.mxu1 }
 0x151   : > { %v1983_v27 = vadd.f32 %v1982_v25, %v1894_v19  ;;  %v1807_v49 = vadd.f32 %v1806_v26, %v4273_v18  ;;  %v2730_v19 = vld [vmem:[%s3990_s9 + $0x34] sm:$0xf0] }
 0x152   : > { %v2073_v47 = vpop.f32.mrf.mxu0  ;;  %v2736_v26 = vld [vmem:[%s3990_s9 + $0x18] sm:$0xf]  ;;  %v2733_v52 = vor.u32 %v3578_v24, %v2730_v19  ;;  %v2774_v19 = vld [vmem:[%s3990_s9 + $0x84] sm:$0xf0] }
 0x153   : > { %v4442_v41 = vadd.f32 %v2071_v21, %v1983_v27  ;;  %v3583_v27 = vld [vmem:[%s3990_s9 + $0x38] sm:$0xf0] }
 0x154   : > { %v2737_v62 = vor.u32 %v3583_v27, %v2736_v26  ;;  %v2780_v26 = vld [vmem:[%s3990_s9 + $0x68] sm:$0xf]  ;;  %v3593_v27 = vld [vmem:[%s3990_s9 + $0x88] sm:$0xf0] }
 0x156   : > { %v1895_v10 = vpop.f32.mrf.mxu2 }
 0x157   : > { %v1896_v30 = vadd.f32 %v1895_v10, %v1807_v49  ;;  %v1984_v63 = vpop.f32.mrf.mxu3 }
 0x158   : > { %v1809_v3 = vpop.f32.mrf.mxu1 }
 0x159   : > { %v1985_v9 = vadd.f32 %v1984_v63, %v1896_v30  ;;  %v1810_v12 = vadd.f32 %v1809_v3, %v4295_v38  ;;  %v2745_v30 = vor.u32 %v3584_v40, %v2744_v42 }
 0x15a   : > { %v2076_v11 = vpop.f32.mrf.mxu0 }
 0x15b   : > { %1848 = vmatmul.bf16.gmra.mxu1 %v3257_v2  ;;  %1937 = vmatmul.bf16.gmra.mxu2 %v3261_v13  ;;  %v4451_v18 = vadd.f32 %v2073_v47, %v1985_v9  ;;  %v3579_v47 = vld [vmem:[%s3990_s9 + $0x1c] sm:$0xf] }
 0x15c   : > { %2026 = vmatmul.bf16.gmra.mxu3 %v3265_v54  ;;  %v2741_v10 = vor.u32 %v3579_v47, %v2738_v35 }
 0x15d   : > { %2115 = vmatmul.bf16.gmra.mxu0 %v3269_v4 }
 0x15e   : > { %v1898_v14 = vpop.f32.mrf.mxu2 }
 0x15f   : > { %v1899_v15 = vadd.f32 %v1898_v14, %v1810_v12  ;;  %v1987_v57 = vpop.f32.mrf.mxu3  ;;  %v3587_v14 = vld [vmem:[%s3990_s9 + $0x5c] sm:$0xf] }
 0x160   : > { %v1811_v20 = vpop.f32.mrf.mxu1 }
 0x161   : > { %v1988_v21 = vadd.f32 %v1987_v57, %v1899_v15  ;;  %v1812_v28 = vadd.f32 %v1811_v20, %v4303_v46  ;;  %v2766_v15 = vld [vmem:[%s3990_s9 + $0x7c] sm:$0xf0] }
 0x162   : > { %v2078_v23 = vpop.f32.mrf.mxu0  ;;  %v2772_v20 = vld [vmem:[%s3990_s9 + $0x60] sm:$0xf]  ;;  %v2769_v35 = vor.u32 %v3587_v14, %v2766_v15  ;;  %v2810_v15 = vld [vmem:[%s3990_s9 + $0xcc] sm:$0xf0] }
 0x163   : > { %v4456_v25 = vadd.f32 %v2076_v11, %v1988_v21  ;;  %v3592_v21 = vld [vmem:[%s3990_s9 + $0x80] sm:$0xf0] }
 0x164   : > { %v2773_v42 = vor.u32 %v3592_v21, %v2772_v20  ;;  %v2816_v20 = vld [vmem:[%s3990_s9 + $0xb0] sm:$0xf]  ;;  %v3602_v21 = vld [vmem:[%s3990_s9 + $0xd0] sm:$0xf0] }
 0x166   : > { %v1900_v38 = vpop.f32.mrf.mxu2 }
 0x167   : > { %v1901_v48 = vadd.f32 %v1900_v38, %v1812_v28  ;;  %v1989_v49 = vpop.f32.mrf.mxu3 }
 0x168   : > { %v1814_v55 = vpop.f32.mrf.mxu1 }
 0x169   : > { %v1990_v63 = vadd.f32 %v1989_v49, %v1901_v48  ;;  %v1815_v13 = vadd.f32 %v1814_v55, %v4209_v36  ;;  %v2781_v48 = vor.u32 %v3593_v27, %v2780_v26 }
 0x16a   : > { %v2081_v2 = vpop.f32.mrf.mxu0 }
 0x16b   : > { %2129 = vmatmul.bf16.vlgmr.msra.gmra.mxu1 %v2733_v52  ;;  %2218 = vmatmul.bf16.vlgmr.msra.gmra.mxu2 %v2737_v62  ;;  %v4465_v46 = vadd.f32 %v2078_v23, %v1990_v63  ;;  %v3588_v23 = vld [vmem:[%s3990_s9 + $0x64] sm:$0xf] }
 0x16c   : > { %2307 = vmatmul.bf16.vlgmr.msra.gmra.mxu3 %v2741_v10  ;;  %v2777_v38 = vor.u32 %v3588_v23, %v2774_v19 }
 0x16d   : > { %2396 = vmatmul.bf16.vlgmr.msra.gmra.mxu0 %v2745_v30 }
 0x16e   : > { %v1903_v3 = vpop.f32.mrf.mxu2 }
 0x16f   : > { %v1904_v54 = vadd.f32 %v1903_v3, %v1815_v13  ;;  %v1992_v4 = vpop.f32.mrf.mxu3  ;;  %v3596_v3 = vld [vmem:[%s3990_s9 + $0xa4] sm:$0xf] }
 0x170   : > { %v1816_v9 = vpop.f32.mrf.mxu1 }
 0x171   : > { %v1993_v11 = vadd.f32 %v1992_v4, %v1904_v54  ;;  %v1817_v24 = vadd.f32 %v1816_v9, %v4231_v50  ;;  %v2802_v54 = vld [vmem:[%s3990_s9 + $0xc4] sm:$0xf0] }
 0x172   : > { %v2083_v12 = vpop.f32.mrf.mxu0  ;;  %v2808_v9 = vld [vmem:[%s3990_s9 + $0xa8] sm:$0xf]  ;;  %v2805_v19 = vor.u32 %v3596_v3, %v2802_v54  ;;  %v2846_v54 = vld [vmem:[%s3990_s9 + $0x114] sm:$0xf0] }
 0x173   : > { %v4470_v57 = vadd.f32 %v2081_v2, %v1993_v11  ;;  %v3601_v11 = vld [vmem:[%s3990_s9 + $0xc8] sm:$0xf0] }
 0x174   : > { %v2809_v26 = vor.u32 %v3601_v11, %v2808_v9  ;;  %v2852_v9 = vld [vmem:[%s3990_s9 + $0xf8] sm:$0xf]  ;;  %v3611_v11 = vld [vmem:[%s3990_s9 + $0x118] sm:$0xf0] }
 0x176   : > { %v1905_v36 = vpop.f32.mrf.mxu2 }
 0x177   : > { %v1906_v47 = vadd.f32 %v1905_v36, %v1817_v24  ;;  %v1994_v28 = vpop.f32.mrf.mxu3 }
 0x178   : > { %v1819_v40 = vpop.f32.mrf.mxu1 }
 0x179   : > { %v1995_v49 = vadd.f32 %v1994_v28, %v1906_v47  ;;  %v1820_v62 = vadd.f32 %v1819_v40, %v4239_v58  ;;  %v2817_v47 = vor.u32 %v3602_v21, %v2816_v20 }
 0x17a   : > { %v2086_v52 = vpop.f32.mrf.mxu0 }
 0x17b   : > { %2134 = vmatmul.bf16.gmra.mxu1 %v2769_v35  ;;  %2223 = vmatmul.bf16.gmra.mxu2 %v2773_v42  ;;  %v4479_v50 = vadd.f32 %v2083_v12, %v1995_v49  ;;  %v3597_v12 = vld [vmem:[%s3990_s9 + $0xac] sm:$0xf] }
 0x17c   : > { %2312 = vmatmul.bf16.gmra.mxu3 %v2777_v38  ;;  %v2813_v36 = vor.u32 %v3597_v12, %v2810_v15 }
 0x17d   : > { %2401 = vmatmul.bf16.gmra.mxu0 %v2781_v48 }
 0x17e   : > { %v1908_v55 = vpop.f32.mrf.mxu2 }
 0x17f   : > { %v1909_v10 = vadd.f32 %v1908_v55, %v1820_v62  ;;  %v1997_v30 = vpop.f32.mrf.mxu3  ;;  %v3605_v55 = vld [vmem:[%s3990_s9 + $0xec] sm:$0xf] }
 0x180   : > { %v1821_v63 = vpop.f32.mrf.mxu1 }
 0x181   : > { %v1998_v2 = vadd.f32 %v1997_v30, %v1909_v10  ;;  %v1822_v14 = vadd.f32 %v1821_v63, %v4255_v6  ;;  %v2838_v10 = vld [vmem:[%s3990_s9 + $0x10c] sm:$0xf0] }
 0x182   : > { %v2088_v13 = vpop.f32.mrf.mxu0  ;;  %v2844_v63 = vld [vmem:[%s3990_s9 + $0xf0] sm:$0xf]  ;;  %v2841_v15 = vor.u32 %v3605_v55, %v2838_v10  ;;  %v2882_v10 = vld [vmem:[%s3990_s9 + $0x15c] sm:$0xf0] }
 0x183   : > { %v4484_v4 = vadd.f32 %v2086_v52, %v1998_v2  ;;  %v3610_v2 = vld [vmem:[%s3990_s9 + $0x110] sm:$0xf0] }
 0x184   : > { %v2845_v20 = vor.u32 %v3610_v2, %v2844_v63  ;;  %v2888_v63 = vld [vmem:[%s3990_s9 + $0x140] sm:$0xf]  ;;  %v3620_v2 = vld [vmem:[%s3990_s9 + $0x160] sm:$0xf0] }
 0x186   : > { %v1910_v58 = vpop.f32.mrf.mxu2 }
 0x187   : > { %v1911_v23 = vadd.f32 %v1910_v58, %v1822_v14  ;;  %v1999_v24 = vpop.f32.mrf.mxu3 }
 0x188   : > { %v1824_v27 = vpop.f32.mrf.mxu1 }
 0x189   : > { %v2000_v28 = vadd.f32 %v1999_v24, %v1911_v23  ;;  %v1825_v42 = vadd.f32 %v1824_v27, %v4269_v16  ;;  %v2853_v23 = vor.u32 %v3611_v11, %v2852_v9 }
 0x18a   : > { %v2091_v35 = vpop.f32.mrf.mxu0 }
 0x18b   : > { %2139 = vmatmul.bf16.gmra.mxu1 %v2805_v19  ;;  %2228 = vmatmul.bf16.gmra.mxu2 %v2809_v26  ;;  %v4493_v6 = vadd.f32 %v2088_v13, %v2000_v28  ;;  %v3606_v13 = vld [vmem:[%s3990_s9 + $0xf4] sm:$0xf] }
 0x18c   : > { %2317 = vmatmul.bf16.gmra.mxu3 %v2813_v36  ;;  %v2849_v58 = vor.u32 %v3606_v13, %v2846_v54 }
 0x18d   : > { %2406 = vmatmul.bf16.gmra.mxu0 %v2817_v47 }
 0x18e   : > { %v1913_v40 = vpop.f32.mrf.mxu2 }
 0x18f   : > { %v1914_v38 = vadd.f32 %v1913_v40, %v1825_v42  ;;  %v2002_v48 = vpop.f32.mrf.mxu3  ;;  %v3614_v40 = vld [vmem:[%s3990_s9 + $0x134] sm:$0xf] }
 0x190   : > { %v1826_v49 = vpop.f32.mrf.mxu1 }
 0x191   : > { %v2003_v52 = vadd.f32 %v2002_v48, %v1914_v38  ;;  %v1827_v3 = vadd.f32 %v1826_v49, %v4291_v31  ;;  %v2874_v38 = vld [vmem:[%s3990_s9 + $0x154] sm:$0xf0] }
 0x192   : > { %v2093_v62 = vpop.f32.mrf.mxu0  ;;  %v2880_v49 = vld [vmem:[%s3990_s9 + $0x138] sm:$0xf]  ;;  %v2877_v54 = vor.u32 %v3614_v40, %v2874_v38  ;;  %v2918_v38 = vld [vmem:[%s3990_s9 + $0x1a4] sm:$0xf0] }
 0x193   : > { %v4498_v30 = vadd.f32 %v2091_v35, %v2003_v52  ;;  %v3619_v52 = vld [vmem:[%s3990_s9 + $0x158] sm:$0xf0] }
 0x194   : > { %v2881_v9 = vor.u32 %v3619_v52, %v2880_v49  ;;  %v2924_v49 = vld [vmem:[%s3990_s9 + $0x188] sm:$0xf]  ;;  %v3629_v52 = vld [vmem:[%s3990_s9 + $0x1a8] sm:$0xf0] }
 0x196   : > { %v1915_v16 = vpop.f32.mrf.mxu2 }
 0x197   : > { %v1916_v12 = vadd.f32 %v1915_v16, %v1827_v3  ;;  %v2004_v14 = vpop.f32.mrf.mxu3 }
 0x198   : > { %v1829_v21 = vpop.f32.mrf.mxu1 }
 0x199   : > { %v2005_v24 = vadd.f32 %v2004_v14, %v1916_v12  ;;  %v1830_v26 = vadd.f32 %v1829_v21, %v4299_v44  ;;  %v2889_v12 = vor.u32 %v3620_v2, %v2888_v63 }
 0x19a   : > { %v2096_v19 = vpop.f32.mrf.mxu0 }
 0x19b   : > { %2144 = vmatmul.bf16.gmra.mxu1 %v2841_v15  ;;  %2233 = vmatmul.bf16.gmra.mxu2 %v2845_v20  ;;  %v4507_v31 = vadd.f32 %v2093_v62, %v2005_v24  ;;  %v3615_v62 = vld [vmem:[%s3990_s9 + $0x13c] sm:$0xf] }
 0x19c   : > { %2322 = vmatmul.bf16.gmra.mxu3 %v2849_v58  ;;  %v2885_v16 = vor.u32 %v3615_v62, %v2882_v10 }
 0x19d   : > { %2411 = vmatmul.bf16.gmra.mxu0 %v2853_v23 }
 0x19e   : > { %v1918_v27 = vpop.f32.mrf.mxu2 }
 0x19f   : > { %v1919_v36 = vadd.f32 %v1918_v27, %v1830_v26  ;;  %v2007_v47 = vpop.f32.mrf.mxu3  ;;  %v3623_v27 = vld [vmem:[%s3990_s9 + $0x17c] sm:$0xf] }
 0x1a0   : > { %v1831_v28 = vpop.f32.mrf.mxu1 }
 0x1a1   : > { %v2008_v35 = vadd.f32 %v2007_v47, %v1919_v36  ;;  %v1832_v55 = vadd.f32 %v1831_v28, %v4315_v0  ;;  %v2910_v36 = vld [vmem:[%s3990_s9 + $0x19c] sm:$0xf0] }
 0x1a2   : > { %v2098_v42 = vpop.f32.mrf.mxu0  ;;  %v2916_v28 = vld [vmem:[%s3990_s9 + $0x180] sm:$0xf]  ;;  %v2913_v10 = vor.u32 %v3623_v27, %v2910_v36  ;;  %v2954_v36 = vld [vmem:[%s3990_s9 + $0x1ec] sm:$0xf0] }
 0x1a3   : > { %v4512_v48 = vadd.f32 %v2096_v19, %v2008_v35  ;;  %v3628_v35 = vld [vmem:[%s3990_s9 + $0x1a0] sm:$0xf0] }
 0x1a4   : > { %v2917_v63 = vor.u32 %v3628_v35, %v2916_v28  ;;  %v2960_v28 = vld [vmem:[%s3990_s9 + $0x1d0] sm:$0xf]  ;;  %v3638_v35 = vld [vmem:[%s3990_s9 + $0x1f0] sm:$0xf0] }
 0x1a6   : > { %v1920_v44 = vpop.f32.mrf.mxu2 }
 0x1a7   : > { %v1921_v13 = vadd.f32 %v1920_v44, %v1832_v55  ;;  %v2009_v3 = vpop.f32.mrf.mxu3 }
 0x1a8   : > { %v1834_v11 = vpop.f32.mrf.mxu1 }
 0x1a9   : > { %v2010_v14 = vadd.f32 %v2009_v3, %v1921_v13  ;;  %v1835_v20 = vadd.f32 %v1834_v11, %v4211_v37  ;;  %v2925_v13 = vor.u32 %v3629_v52, %v2924_v49 }
 0x1aa   : > { %v2101_v15 = vpop.f32.mrf.mxu0 }
 0x1ab   : > { %2149 = vmatmul.bf16.gmra.mxu1 %v2877_v54  ;;  %2238 = vmatmul.bf16.gmra.mxu2 %v2881_v9  ;;  %v4521_v0 = vadd.f32 %v2098_v42, %v2010_v14  ;;  %v3624_v42 = vld [vmem:[%s3990_s9 + $0x184] sm:$0xf] }
 0x1ac   : > { %2327 = vmatmul.bf16.gmra.mxu3 %v2885_v16  ;;  %v2921_v44 = vor.u32 %v3624_v42, %v2918_v38 }
 0x1ad   : > { %2416 = vmatmul.bf16.gmra.mxu0 %v2889_v12 }
 0x1ae   : > { %v1923_v21 = vpop.f32.mrf.mxu2 }
 0x1af   : > { %v1924_v58 = vadd.f32 %v1923_v21, %v1835_v20  ;;  %v2012_v23 = vpop.f32.mrf.mxu3  ;;  %v3632_v21 = vld [vmem:[%s3990_s9 + $0x1c4] sm:$0xf] }
 0x1b0   : > { %v1836_v24 = vpop.f32.mrf.mxu1 }
 0x1b1   : > { %v2013_v19 = vadd.f32 %v2012_v23, %v1924_v58  ;;  %v1837_v40 = vadd.f32 %v1836_v24, %v4233_v51  ;;  %v2946_v58 = vld [vmem:[%s3990_s9 + $0x1e4] sm:$0xf0] }
 0x1b2   : > { %v2103_v26 = vpop.f32.mrf.mxu0  ;;  %v2952_v24 = vld [vmem:[%s3990_s9 + $0x1c8] sm:$0xf]  ;;  %v2949_v38 = vor.u32 %v3632_v21, %v2946_v58  ;;  %v2990_v58 = vld [vmem:[%s3990_s9 + $0x234] sm:$0xf0] }
 0x1b3   : > { %v4526_v47 = vadd.f32 %v2101_v15, %v2013_v19  ;;  %v3637_v19 = vld [vmem:[%s3990_s9 + $0x1e8] sm:$0xf0] }
 0x1b4   : > { %v2953_v49 = vor.u32 %v3637_v19, %v2952_v24  ;;  %v2996_v24 = vld [vmem:[%s3990_s9 + $0x218] sm:$0xf]  ;;  %v3647_v19 = vld [vmem:[%s3990_s9 + $0x238] sm:$0xf0] }
 0x1b6   : > { %v1925_v37 = vpop.f32.mrf.mxu2 }
 0x1b7   : > { %v1926_v62 = vadd.f32 %v1925_v37, %v1837_v40  ;;  %v2014_v55 = vpop.f32.mrf.mxu3 }
 0x1b8   : > { %v1839_v2 = vpop.f32.mrf.mxu1 }
 0x1b9   : > { %v2015_v3 = vadd.f32 %v2014_v55, %v1926_v62  ;;  %v1840_v9 = vadd.f32 %v1839_v2, %v4241_v59  ;;  %v2961_v62 = vor.u32 %v3638_v35, %v2960_v28 }
 0x1ba   : > { %v2106_v54 = vpop.f32.mrf.mxu0 }
 0x1bb   : > { %2154 = vmatmul.bf16.gmra.mxu1 %v2913_v10  ;;  %2243 = vmatmul.bf16.gmra.mxu2 %v2917_v63  ;;  %v4535_v51 = vadd.f32 %v2103_v26, %v2015_v3  ;;  %v3633_v26 = vld [vmem:[%s3990_s9 + $0x1cc] sm:$0xf] }
 0x1bc   : > { %2332 = vmatmul.bf16.gmra.mxu3 %v2921_v44  ;;  %v2957_v37 = vor.u32 %v3633_v26, %v2954_v36 }
 0x1bd   : > { %2421 = vmatmul.bf16.gmra.mxu0 %v2925_v13 }
 0x1be   : > { %v1928_v11 = vpop.f32.mrf.mxu2 }
 0x1bf   : > { %v1929_v16 = vadd.f32 %v1928_v11, %v1840_v9  ;;  %v2017_v12 = vpop.f32.mrf.mxu3  ;;  %v3641_v11 = vld [vmem:[%s3990_s9 + $0x20c] sm:$0xf] }
 0x1c0   : > { %v1841_v14 = vpop.f32.mrf.mxu1 }
 0x1c1   : > { %v2018_v15 = vadd.f32 %v2017_v12, %v1929_v16  ;;  %v1842_v27 = vadd.f32 %v1841_v14, %v4257_v7  ;;  %v2982_v16 = vld [vmem:[%s3990_s9 + $0x22c] sm:$0xf0] }
 0x1c2   : > { %v2108_v20 = vpop.f32.mrf.mxu0  ;;  %v2988_v14 = vld [vmem:[%s3990_s9 + $0x210] sm:$0xf]  ;;  %v2985_v36 = vor.u32 %v3641_v11, %v2982_v16  ;;  %v3026_v16 = vld [vmem:[%s3990_s9 + $0x27c] sm:$0xf0] }
 0x1c3   : > { %v4540_v23 = vadd.f32 %v2106_v54, %v2018_v15  ;;  %v3646_v15 = vld [vmem:[%s3990_s9 + $0x230] sm:$0xf0] }
 0x1c4   : > { %v2989_v28 = vor.u32 %v3646_v15, %v2988_v14  ;;  %v3032_v14 = vld [vmem:[%s3990_s9 + $0x260] sm:$0xf]  ;;  %v3656_v15 = vld [vmem:[%s3990_s9 + $0x280] sm:$0xf0] }
 0x1c6   : > { %v1930_v59 = vpop.f32.mrf.mxu2 }
 0x1c7   : > { %v1931_v42 = vadd.f32 %v1930_v59, %v1842_v27  ;;  %v2019_v40 = vpop.f32.mrf.mxu3 }
 0x1c8   : > { %v1844_v52 = vpop.f32.mrf.mxu1 }
 0x1c9   : > { %v2020_v55 = vadd.f32 %v2019_v40, %v1931_v42  ;;  %v1845_v63 = vadd.f32 %v1844_v52, %v4271_v17  ;;  %v2997_v42 = vor.u32 %v3647_v19, %v2996_v24 }
 0x1ca   : > { %v2111_v10 = vpop.f32.mrf.mxu0 }
 0x1cb   : > { %2159 = vmatmul.bf16.gmra.mxu1 %v2949_v38  ;;  %2248 = vmatmul.bf16.gmra.mxu2 %v2953_v49  ;;  %v4549_v7 = vadd.f32 %v2108_v20, %v2020_v55  ;;  %v3642_v20 = vld [vmem:[%s3990_s9 + $0x214] sm:$0xf] }
 0x1cc   : > { %2337 = vmatmul.bf16.gmra.mxu3 %v2957_v37  ;;  %v2993_v59 = vor.u32 %v3642_v20, %v2990_v58 }
 0x1cd   : > { %2426 = vmatmul.bf16.gmra.mxu0 %v2961_v62 }
 0x1ce   : > { %v1933_v2 = vpop.f32.mrf.mxu2 }
 0x1cf   : > { %v1934_v44 = vadd.f32 %v1933_v2, %v1845_v63  ;;  %v2022_v13 = vpop.f32.mrf.mxu3  ;;  %v3650_v2 = vld [vmem:[%s3990_s9 + $0x254] sm:$0xf] }
 0x1d0   : > { %v1846_v3 = vpop.f32.mrf.mxu1 }
 0x1d1   : > { %v2023_v54 = vadd.f32 %v2022_v13, %v1934_v44  ;;  %v1847_v21 = vadd.f32 %v1846_v3, %v4293_v32  ;;  %v3018_v44 = vld [vmem:[%s3990_s9 + $0x274] sm:$0xf0] }
 0x1d2   : > { %v2113_v9 = vpop.f32.mrf.mxu0  ;;  %v3024_v3 = vld [vmem:[%s3990_s9 + $0x258] sm:$0xf]  ;;  %v3021_v58 = vor.u32 %v3650_v2, %v3018_v44  ;;  %v3062_v44 = vld [vmem:[%s3990_s9 + $0x2c4] sm:$0xf0] }
 0x1d3   : > { %v4554_v12 = vadd.f32 %v2111_v10, %v2023_v54  ;;  %v3655_v54 = vld [vmem:[%s3990_s9 + $0x278] sm:$0xf0] }
 0x1d4   : > { %v3025_v24 = vor.u32 %v3655_v54, %v3024_v3  ;;  %v3068_v3 = vld [vmem:[%s3990_s9 + $0x2a8] sm:$0xf]  ;;  %v3665_v54 = vld [vmem:[%s3990_s9 + $0x2c8] sm:$0xf0] }
 0x1d6   : > { %v1935_v17 = vpop.f32.mrf.mxu2 }
 0x1d7   : > { %v1936_v26 = vadd.f32 %v1935_v17, %v1847_v21  ;;  %v2024_v27 = vpop.f32.mrf.mxu3 }
 0x1d8   : > { %v1849_v35 = vpop.f32.mrf.mxu1 }
 0x1d9   : > { %v2025_v40 = vadd.f32 %v2024_v27, %v1936_v26  ;;  %v1850_v49 = vadd.f32 %v1849_v35, %v4301_v45  ;;  %v3033_v26 = vor.u32 %v3656_v15, %v3032_v14 }
 0x1da   : > { %v2116_v38 = vpop.f32.mrf.mxu0 }
 0x1db   : > { %2164 = vmatmul.bf16.gmra.mxu1 %v2985_v36  ;;  %2253 = vmatmul.bf16.gmra.mxu2 %v2989_v28  ;;  %v4563_v32 = vadd.f32 %v2113_v9, %v2025_v40  ;;  %v3651_v9 = vld [vmem:[%s3990_s9 + $0x25c] sm:$0xf] }
 0x1dc   : > { %2342 = vmatmul.bf16.gmra.mxu3 %v2993_v59  ;;  %v3029_v17 = vor.u32 %v3651_v9, %v3026_v16 }
 0x1dd   : > { %2431 = vmatmul.bf16.gmra.mxu0 %v2997_v42 }
 0x1de   : > { %v1938_v52 = vpop.f32.mrf.mxu2 }
 0x1df   : > { %v1939_v37 = vadd.f32 %v1938_v52, %v1850_v49  ;;  %v2027_v62 = vpop.f32.mrf.mxu3  ;;  %v4583_v52 = vld [vmem:[%s4768_s2] ss:$0 sm:$0xff] }
 0x1e0   : > { %v1851_v55 = vpop.f32.mrf.mxu1 }
 0x1e1   : > { %v2028_v10 = vadd.f32 %v2027_v62, %v1939_v37  ;;  %v1852_v11 = vadd.f32 %v1851_v55, %v4317_v1  ;;  %v3659_v37 = vld [vmem:[%s3990_s9 + $0x29c] sm:$0xf]  ;;  %v3054_v62 = vld [vmem:[%s3990_s9 + $0x2bc] sm:$0xf0] }
 0x1e2   : > { %v2118_v63 = vpop.f32.mrf.mxu0  ;;  %v3060_v55 = vld [vmem:[%s3990_s9 + $0x2a0] sm:$0xf]  ;;  %v3057_v14 = vor.u32 %v3659_v37, %v3054_v62 }
 0x1e3   : > { %v4568_v13 = vadd.f32 %v2116_v38, %v2028_v10  ;;  %v3664_v10 = vld [vmem:[%s3990_s9 + $0x2c0] sm:$0xf0] }
 0x1e4   : > { %v3061_v15 = vor.u32 %v3664_v10, %v3060_v55  ;;  %v3668_v55 = vld [vmem:[%s3990_s9 + $0x2e4] sm:$0xf]  ;;  %v3090_v10 = vld [vmem:[%s3990_s9 + $0x304] sm:$0xf0] }
 0x1e6   : > { %v1940_v45 = vpop.f32.mrf.mxu2 }
 0x1e7   : > { %v1941_v20 = vadd.f32 %v1940_v45, %v1852_v11  ;;  %v2029_v21 = vpop.f32.mrf.mxu3 }
 0x1e8   : > { %v2130_v19 = vpop.f32.mrf.mxu1 }
 0x1e9   : > { %v2030_v27 = vadd.f32 %v2029_v21, %v1941_v20  ;;  %v2131_v28 = vadd.f32 %v2130_v19, %v4335_v29  ;;  %v3069_v21 = vor.u32 %v3665_v54, %v3068_v3  ;;  %v3098_v54 = vld [vmem:[%s3990_s9 + $0x30c] sm:$0xf0] }
 0x1ea   : > { %v2397_v36 = vpop.f32.mrf.mxu0 }
 0x1eb   : > { %2169 = vmatmul.bf16.gmra.mxu1 %v3021_v58  ;;  %2258 = vmatmul.bf16.gmra.mxu2 %v3025_v24  ;;  %v4577_v1 = vadd.f32 %v2118_v63, %v2030_v27  ;;  %v3660_v63 = vld [vmem:[%s3990_s9 + $0x2a4] sm:$0xf]  ;;  %v4598_v24 = vld [vmem:[%s4769_s3] ss:$0 sm:$0xff] }
 0x1ec   : > { %2347 = vmatmul.bf16.gmra.mxu3 %v3029_v17  ;;  %v3065_v20 = vor.u32 %v3660_v63, %v3062_v44  ;;  %v3096_v63 = vld [vmem:[%s3990_s9 + $0x2e8] sm:$0xf] }
 0x1ed   : > { %2436 = vmatmul.bf16.gmra.mxu0 %v3033_v26 }
 0x1ee   : > { %v2219_v35 = vpop.f32.mrf.mxu2 }
 0x1ef   : > { %v2220_v59 = vadd.f32 %v2219_v35, %v2131_v28  ;;  %v2308_v42 = vpop.f32.mrf.mxu3 }
 0x1f0   : > { %v2132_v40 = vpop.f32.mrf.mxu1 }
 0x1f1   : > { %v2309_v38 = vadd.f32 %v2308_v42, %v2220_v59  ;;  %v2133_v29 = vadd.f32 %v2132_v40, %v4344_v8 }
 0x1f2   : > { %v2399_v49 = vpop.f32.mrf.mxu0 }
 0x1f3   : > { %v2398_v2 = vadd.f32 %v2397_v36, %v2309_v38 }
 0x1f5   : > { %v2481_v58 = vmul.f32 %v4583_v52, %v2398_v2  ;;  %v3673_v2 = vld [vmem:[%s3990_s9 + $0x308] sm:$0xf0] }
 0x1f6   : > { %v2221_v9 = vpop.f32.mrf.mxu2 }
 0x1f7   : > { %v2222_v11 = vadd.f32 %v2221_v9, %v2133_v29  ;;  %v2310_v16 = vpop.f32.mrf.mxu3  ;;  %v2517_v26 = vadd.f32 %v4598_v24, %v2481_v58  ;;  %v3669_v29 = vld [vmem:[%s3990_s9 + $0x2ec] sm:$0xf]  ;;  %v3104_v9 = vld [vmem:[%s3990_s9 + $0x2f0] sm:$0xf] }
 0x1f8   : > { %v2135_v45 = vpop.f32.mrf.mxu1  ;;  %v3101_v58 = vor.u32 %v3669_v29, %v3098_v54  ;;  %v3682_v29 = vld [vmem:[%s3990_s9 + $0x350] sm:$0xf0] }
 0x1f9   : > { %v2311_v8 = vadd.f32 %v2310_v16, %v2222_v11  ;;  %v2136_v36 = vadd.f32 %v2135_v45, %v4349_v22  ;;  %v2549_v38 = vmax.f32 %v2517_v26, 0.0  ;;  %v3674_v11 = vld [vmem:[%s3990_s9 + $0x310] sm:$0xf0]  ;;  %v3093_v45 = vor.u32 %v3668_v55, %v3090_v10  ;;  %v3677_v10 = vld [vmem:[%s3990_s9 + $0x32c] sm:$0xf] }
 0x1fa   : > { %v2402_v19 = vpop.f32.mrf.mxu0 }
 0x1fb   : > { %v2400_v17 = vadd.f32 %v2399_v49, %v2311_v8  ;;  %2174 = vmatmul.bf16.gmra.mxu1 %v3057_v14  ;;  %2263 = vmatmul.bf16.gmra.mxu2 %v3061_v15  ;;  %v3105_v8 = vor.u32 %v3674_v11, %v3104_v9  ;;  %v3140_v9 = vld [vmem:[%s3990_s9 + $0x338] sm:$0xf]  ;;  %v3683_v11 = vld [vmem:[%s3990_s9 + $0x358] sm:$0xf0] }
 0x1fc   : > { %2352 = vmatmul.bf16.gmra.mxu3 %v3065_v20  ;;  %v3097_v20 = vor.u32 %v3673_v2, %v3096_v63  ;;  %v3126_v63 = vld [vmem:[%s3990_s9 + $0x34c] sm:$0xf0] }
 0x1fd   : > { %2441 = vmatmul.bf16.gmra.mxu0 %v3069_v21  ;;  %v2482_v27 = vmul.f32 %v4583_v52, %v2400_v17  ;;  %v3132_v2 = vld [vmem:[%s3990_s9 + $0x330] sm:$0xf] }
 0x1fe   : > { %v2224_v28 = vpop.f32.mrf.mxu2 }
 0x1ff   : > { %v2518_v35 = vadd.f32 %v4598_v24, %v2482_v27  ;;  %v2225_v59 = vadd.f32 %v2224_v28, %v2136_v36  ;;  %v2313_v42 = vpop.f32.mrf.mxu3 }
 0x200   : > { %v2137_v40 = vpop.f32.mrf.mxu1 }
 0x201   : > { %v2550_v49 = vmax.f32 %v2518_v35, 0.0  ;;  %v2314_v37 = vadd.f32 %v2313_v42, %v2225_v59  ;;  %v2138_v3 = vadd.f32 %v2137_v40, %v4358_v56 }
 0x202   : > { %v2404_v62 = vpop.f32.mrf.mxu0 }
 0x203   : > { %v3795_v22 = vpack.c.bf16 %v2550_v49, %v2549_v38  ;;  %v2403_v44 = vadd.f32 %v2402_v19, %v2314_v37 }
 0x205   : > { %3796 = vst [vmem:[%s4608_s8] sm:$0xff] %v3795_v22   ;;  %v2483_v17 = vmul.f32 %v4583_v52, %v2403_v44  ;;  %v3134_v44 = vld [vmem:[%s3990_s9 + $0x354] sm:$0xf0] }
 0x206   : > { %v2226_v16 = vpop.f32.mrf.mxu2 }
 0x207   : > { %v2227_v14 = vadd.f32 %v2226_v16, %v2138_v3  ;;  %v2315_v15 = vpop.f32.mrf.mxu3  ;;  %v2519_v56 = vadd.f32 %v4598_v24, %v2483_v17 }
 0x208   : > { %v2140_v21 = vpop.f32.mrf.mxu1 }
 0x209   : > { %v2316_v26 = vadd.f32 %v2315_v15, %v2227_v14  ;;  %v2141_v28 = vadd.f32 %v2140_v21, %v4375_v33  ;;  %v2551_v49 = vmax.f32 %v2519_v56, 0.0  ;;  %v3678_v33 = vld [vmem:[%s3990_s9 + $0x334] sm:$0xf] }
 0x20a   : > { %v2407_v27 = vpop.f32.mrf.mxu0 }
 0x20b   : > { %v2405_v36 = vadd.f32 %v2404_v62, %v2316_v26  ;;  %2179 = vmatmul.bf16.gmra.mxu1 %v3093_v45  ;;  %2268 = vmatmul.bf16.gmra.mxu2 %v3097_v20  ;;  %v3129_v45 = vor.u32 %v3677_v10, %v3126_v63  ;;  %v3133_v20 = vor.u32 %v3682_v29, %v3132_v2  ;;  %v3162_v10 = vld [vmem:[%s3990_s9 + $0x394] sm:$0xf0]  ;;  %v3691_v2 = vld [vmem:[%s3990_s9 + $0x398] sm:$0xf0]  ;;  %v3170_v29 = vld [vmem:[%s3990_s9 + $0x39c] sm:$0xf0] }
 0x20c   : > { %2357 = vmatmul.bf16.gmra.mxu3 %v3101_v58  ;;  %v3137_v58 = vor.u32 %v3678_v33, %v3134_v44  ;;  %v3168_v63 = vld [vmem:[%s3990_s9 + $0x378] sm:$0xf] }
 0x20d   : > { %2446 = vmatmul.bf16.gmra.mxu0 %v3105_v8  ;;  %v2484_v19 = vmul.f32 %v4583_v52, %v2405_v36  ;;  %v3141_v8 = vor.u32 %v3683_v11, %v3140_v9 }
 0x20e   : > { %v2229_v35 = vpop.f32.mrf.mxu2 }
 0x20f   : > { %v2520_v59 = vadd.f32 %v4598_v24, %v2484_v19  ;;  %v2230_v42 = vadd.f32 %v2229_v35, %v2141_v28  ;;  %v2318_v40 = vpop.f32.mrf.mxu3 }
 0x210   : > { %v2142_v38 = vpop.f32.mrf.mxu1 }
 0x211   : > { %v2552_v37 = vmax.f32 %v2520_v59, 0.0  ;;  %v2319_v62 = vadd.f32 %v2318_v40, %v2230_v42  ;;  %v2143_v54 = vadd.f32 %v2142_v38, %v4384_v61 }
 0x212   : > { %v2409_v22 = vpop.f32.mrf.mxu0 }
 0x213   : > { %v3800_v55 = vpack.c.bf16 %v2552_v37, %v2551_v49  ;;  %v2408_v3 = vadd.f32 %v2407_v27, %v2319_v62 }
 0x215   : > { %3872 = vst [vmem:[%s4608_s8 + $0x8] sm:$0xff] %v3800_v55   ;;  %v2485_v17 = vmul.f32 %v4583_v52, %v2408_v3  ;;  %v3686_v55 = vld [vmem:[%s3990_s9 + $0x374] sm:$0xf]  ;;  %v3176_v3 = vld [vmem:[%s3990_s9 + $0x380] sm:$0xf] }
 0x216   : > { %v2231_v16 = vpop.f32.mrf.mxu2 }
 0x217   : > { %v2232_v14 = vadd.f32 %v2231_v16, %v2143_v54  ;;  %v2320_v15 = vpop.f32.mrf.mxu3  ;;  %v2521_v61 = vadd.f32 %v4598_v24, %v2485_v17  ;;  %v3692_v54 = vld [vmem:[%s3990_s9 + $0x3a0] sm:$0xf0] }
 0x218   : > { %v2145_v21 = vpop.f32.mrf.mxu1 }
 0x219   : > { %v2321_v26 = vadd.f32 %v2320_v15, %v2232_v14  ;;  %v2146_v19 = vadd.f32 %v2145_v21, %v4389_v5  ;;  %v2553_v38 = vmax.f32 %v2521_v61, 0.0  ;;  %v3687_v5 = vld [vmem:[%s3990_s9 + $0x37c] sm:$0xf]  ;;  %v3165_v14 = vor.u32 %v3686_v55, %v3162_v10  ;;  %v3700_v55 = vld [vmem:[%s3990_s9 + $0x3e0] sm:$0xf0] }
 0x21a   : > { %v2412_v36 = vpop.f32.mrf.mxu0  ;;  %v3169_v15 = vor.u32 %v3691_v2, %v3168_v63  ;;  %v3177_v21 = vor.u32 %v3692_v54, %v3176_v3  ;;  %v3206_v10 = vld [vmem:[%s3990_s9 + $0x3e4] sm:$0xf0] }
 0x21b   : > { %v2410_v56 = vadd.f32 %v2409_v22, %v2321_v26  ;;  %2184 = vmatmul.bf16.gmra.mxu1 %v3129_v45  ;;  %2273 = vmatmul.bf16.gmra.mxu2 %v3133_v20  ;;  %v3173_v20 = vor.u32 %v3687_v5, %v3170_v29  ;;  %v3212_v5 = vld [vmem:[%s3990_s9 + $0x3c8] sm:$0xf]  ;;  %v3701_v29 = vld [vmem:[%s3990_s9 + $0x3e8] sm:$0xf0] }
 0x21c   : > { %2362 = vmatmul.bf16.gmra.mxu3 %v3137_v58 }
 0x21d   : > { %2451 = vmatmul.bf16.gmra.mxu0 %v3141_v8  ;;  %v2486_v27 = vmul.f32 %v4583_v52, %v2410_v56 }
 0x21e   : > { %v2234_v28 = vpop.f32.mrf.mxu2 }
 0x21f   : > { %v2522_v35 = vadd.f32 %v4598_v24, %v2486_v27  ;;  %v2235_v59 = vadd.f32 %v2234_v28, %v2146_v19  ;;  %v2323_v42 = vpop.f32.mrf.mxu3 }
 0x220   : > { %v2147_v40 = vpop.f32.mrf.mxu1 }
 0x221   : > { %v2554_v49 = vmax.f32 %v2522_v35, 0.0  ;;  %v2324_v37 = vadd.f32 %v2323_v42, %v2235_v59  ;;  %v2148_v44 = vadd.f32 %v2147_v40, %v4397_v34 }
 0x222   : > { %v2414_v62 = vpop.f32.mrf.mxu0 }
 0x223   : > { %v3805_v22 = vpack.c.bf16 %v2554_v49, %v2553_v38  ;;  %v2413_v33 = vadd.f32 %v2412_v36, %v2324_v37  ;;  %v3695_v37 = vld [vmem:[%s3990_s9 + $0x3bc] sm:$0xf] }
 0x225   : > { %3873 = vst [vmem:[%s4608_s8 + $0x10] sm:$0xff] %v3805_v22   ;;  %v2487_v58 = vmul.f32 %v4583_v52, %v2413_v33  ;;  %v3204_v22 = vld [vmem:[%s3990_s9 + $0x3c0] sm:$0xf] }
 0x226   : > { %v2236_v9 = vpop.f32.mrf.mxu2 }
 0x227   : > { %v2237_v11 = vadd.f32 %v2236_v9, %v2148_v44  ;;  %v2325_v16 = vpop.f32.mrf.mxu3  ;;  %v2523_v34 = vadd.f32 %v4598_v24, %v2487_v58  ;;  %v3205_v9 = vor.u32 %v3700_v55, %v3204_v22  ;;  %v3248_v22 = vld [vmem:[%s3990_s9 + $0x410] sm:$0xf]  ;;  %v3710_v55 = vld [vmem:[%s3990_s9 + $0x430] sm:$0xf0] }
 0x228   : > { %v2150_v45 = vpop.f32.mrf.mxu1 }
 0x229   : > { %v2326_v8 = vadd.f32 %v2325_v16, %v2237_v11  ;;  %v2151_v56 = vadd.f32 %v2150_v45, %v4414_v43  ;;  %v2555_v59 = vmax.f32 %v2523_v34, 0.0  ;;  %v3696_v43 = vld [vmem:[%s3990_s9 + $0x3c4] sm:$0xf] }
 0x22a   : > { %v2417_v17 = vpop.f32.mrf.mxu0  ;;  %v3209_v16 = vor.u32 %v3696_v43, %v3206_v10 }
 0x22b   : > { %v2415_v26 = vadd.f32 %v2414_v62, %v2326_v8  ;;  %2189 = vmatmul.bf16.gmra.mxu1 %v3165_v14  ;;  %2278 = vmatmul.bf16.gmra.mxu2 %v3169_v15  ;;  %v3198_v62 = vld [vmem:[%s3990_s9 + $0x3dc] sm:$0xf0]  ;;  %v3213_v14 = vor.u32 %v3701_v29, %v3212_v5 }
 0x22c   : > { %2367 = vmatmul.bf16.gmra.mxu3 %v3173_v20  ;;  %v3201_v54 = vor.u32 %v3695_v37, %v3198_v62 }
 0x22d   : > { %2456 = vmatmul.bf16.gmra.mxu0 %v3177_v21  ;;  %v2488_v36 = vmul.f32 %v4583_v52, %v2415_v26 }
 0x22e   : > { %v2239_v61 = vpop.f32.mrf.mxu2 }
 0x22f   : > { %v2524_v27 = vadd.f32 %v4598_v24, %v2488_v36  ;;  %v2240_v19 = vadd.f32 %v2239_v61, %v2151_v56  ;;  %v2328_v28 = vpop.f32.mrf.mxu3 }
 0x230   : > { %v2152_v35 = vpop.f32.mrf.mxu1 }
 0x231   : > { %v2556_v42 = vmax.f32 %v2524_v27, 0.0  ;;  %v2329_v40 = vadd.f32 %v2328_v28, %v2240_v19  ;;  %v2153_v2 = vadd.f32 %v2152_v35, %v4423_v39 }
 0x232   : > { %v2419_v38 = vpop.f32.mrf.mxu0 }
 0x233   : > { %v3810_v49 = vpack.c.bf16 %v2556_v42, %v2555_v59  ;;  %v2418_v63 = vadd.f32 %v2417_v17, %v2329_v40  ;;  %v3704_v59 = vld [vmem:[%s3990_s9 + $0x404] sm:$0xf]  ;;  %v3234_v42 = vld [vmem:[%s3990_s9 + $0x424] sm:$0xf0] }
 0x234   : > { %v3240_v40 = vld [vmem:[%s3990_s9 + $0x408] sm:$0xf] }
 0x235   : > { %3874 = vst [vmem:[%s4608_s8 + $0x18] sm:$0xff] %v3810_v49   ;;  %v2489_v15 = vmul.f32 %v4583_v52, %v2418_v63  ;;  %v3242_v49 = vld [vmem:[%s3990_s9 + $0x42c] sm:$0xf0] }
 0x236   : > { %v2241_v33 = vpop.f32.mrf.mxu2 }
 0x237   : > { %v2242_v44 = vadd.f32 %v2241_v33, %v2153_v2  ;;  %v2330_v3 = vpop.f32.mrf.mxu3  ;;  %v2525_v39 = vadd.f32 %v4598_v24, %v2489_v15  ;;  %v3237_v2 = vor.u32 %v3704_v59, %v3234_v42  ;;  %v3284_v59 = vld [vmem:[%s3990_s9 + $0x458] sm:$0xf]  ;;  %v3719_v42 = vld [vmem:[%s3990_s9 + $0x478] sm:$0xf0] }
 0x238   : > { %v2155_v11 = vpop.f32.mrf.mxu1 }
 0x239   : > { %v2331_v45 = vadd.f32 %v2330_v3, %v2242_v44  ;;  %v2156_v8 = vadd.f32 %v2155_v11, %v4428_v53  ;;  %v2557_v61 = vmax.f32 %v2525_v39, 0.0  ;;  %v3705_v53 = vld [vmem:[%s3990_s9 + $0x40c] sm:$0xf]  ;;  %v3249_v44 = vor.u32 %v3710_v55, %v3248_v22 }
 0x23a   : > { %v2422_v20 = vpop.f32.mrf.mxu0  ;;  %v3245_v33 = vor.u32 %v3705_v53, %v3242_v49  ;;  %v3285_v55 = vor.u32 %v3719_v42, %v3284_v59 }
 0x23b   : > { %v2420_v21 = vadd.f32 %v2419_v38, %v2331_v45  ;;  %2194 = vmatmul.bf16.gmra.mxu1 %v3201_v54  ;;  %2283 = vmatmul.bf16.gmra.mxu2 %v3205_v9  ;;  %v3709_v38 = vld [vmem:[%s3990_s9 + $0x428] sm:$0xf0] }
 0x23c   : > { %2372 = vmatmul.bf16.gmra.mxu3 %v3209_v16  ;;  %v3241_v5 = vor.u32 %v3709_v38, %v3240_v40 }
 0x23d   : > { %2461 = vmatmul.bf16.gmra.mxu0 %v3213_v14  ;;  %v2490_v58 = vmul.f32 %v4583_v52, %v2420_v21 }
 0x23e   : > { %v2244_v17 = vpop.f32.mrf.mxu2 }
 0x23f   : > { %v2526_v26 = vadd.f32 %v4598_v24, %v2490_v58  ;;  %v2245_v34 = vadd.f32 %v2244_v17, %v2156_v8  ;;  %v2333_v36 = vpop.f32.mrf.mxu3 }
 0x240   : > { %v2157_v56 = vpop.f32.mrf.mxu1 }
 0x241   : > { %v2558_v27 = vmax.f32 %v2526_v26, 0.0  ;;  %v2334_v19 = vadd.f32 %v2333_v36, %v2245_v34  ;;  %v2158_v62 = vadd.f32 %v2157_v56, %v4437_v60  ;;  %v3713_v36 = vld [vmem:[%s3990_s9 + $0x44c] sm:$0xf]  ;;  %v3270_v56 = vld [vmem:[%s3990_s9 + $0x46c] sm:$0xf0] }
 0x242   : > { %v2424_v28 = vpop.f32.mrf.mxu0  ;;  %v3273_v49 = vor.u32 %v3713_v36, %v3270_v56 }
 0x243   : > { %v3815_v35 = vpack.c.bf16 %v2558_v27, %v2557_v61  ;;  %v2423_v37 = vadd.f32 %v2422_v20, %v2334_v19  ;;  %v3276_v61 = vld [vmem:[%s3990_s9 + $0x450] sm:$0xf]  ;;  %v3718_v27 = vld [vmem:[%s3990_s9 + $0x470] sm:$0xf0]  ;;  %v3278_v19 = vld [vmem:[%s3990_s9 + $0x474] sm:$0xf0] }
 0x245   : > { %3875 = vst [vmem:[%s4608_s8 + $0x20] sm:$0xff] %v3815_v35   ;;  %v2491_v3 = vmul.f32 %v4583_v52, %v2423_v37  ;;  %v3277_v37 = vor.u32 %v3718_v27, %v3276_v61 }
 0x246   : > { %v2246_v43 = vpop.f32.mrf.mxu2 }
 0x247   : > { %v2247_v10 = vadd.f32 %v2246_v43, %v2158_v62  ;;  %v2335_v63 = vpop.f32.mrf.mxu3  ;;  %v2527_v60 = vadd.f32 %v4598_v24, %v2491_v3 }
 0x248   : > { %v2160_v29 = vpop.f32.mrf.mxu1 }
 0x249   : > { %v2336_v54 = vadd.f32 %v2335_v63, %v2247_v10  ;;  %v2161_v14 = vadd.f32 %v2160_v29, %v4442_v41  ;;  %v2559_v58 = vmax.f32 %v2527_v60, 0.0  ;;  %v3714_v41 = vld [vmem:[%s3990_s9 + $0x454] sm:$0xf] }
 0x24a   : > { %v2427_v9 = vpop.f32.mrf.mxu0  ;;  %v3281_v22 = vor.u32 %v3714_v41, %v3278_v19 }
 0x24b   : > { %v2425_v11 = vadd.f32 %v2424_v28, %v2336_v54  ;;  %2199 = vmatmul.bf16.gmra.mxu1 %v3237_v2  ;;  %2288 = vmatmul.bf16.gmra.mxu2 %v3241_v5 }
 0x24c   : > { %2377 = vmatmul.bf16.gmra.mxu3 %v3245_v33 }
 0x24d   : > { %2466 = vmatmul.bf16.gmra.mxu0 %v3249_v44  ;;  %v2492_v16 = vmul.f32 %v4583_v52, %v2425_v11 }
 0x24e   : > { %v2249_v15 = vpop.f32.mrf.mxu2 }
 0x24f   : > { %v2528_v45 = vadd.f32 %v4598_v24, %v2492_v16  ;;  %v2250_v20 = vadd.f32 %v2249_v15, %v2161_v14  ;;  %v2338_v21 = vpop.f32.mrf.mxu3 }
 0x250   : > { %v2162_v39 = vpop.f32.mrf.mxu1 }
 0x251   : > { %v2560_v8 = vmax.f32 %v2528_v45, 0.0  ;;  %v2339_v17 = vadd.f32 %v2338_v21, %v2250_v20  ;;  %v2163_v35 = vadd.f32 %v2162_v39, %v4451_v18 }
 0x252   : > { %v2429_v26 = vpop.f32.mrf.mxu0 }
 0x253   : > { %v3820_v34 = vpack.c.bf16 %v2560_v8, %v2559_v58  ;;  %v2428_v28 = vadd.f32 %v2427_v9, %v2339_v17 }
 0x255   : > { %3876 = vst [vmem:[%s4608_s8 + $0x28] sm:$0xff] %v3820_v34   ;;  %v2493_v43 = vmul.f32 %v4583_v52, %v2428_v28 }
 0x256   : > { %v2251_v40 = vpop.f32.mrf.mxu2 }
 0x257   : > { %v2252_v38 = vadd.f32 %v2251_v40, %v2163_v35  ;;  %v2340_v53 = vpop.f32.mrf.mxu3  ;;  %v2529_v18 = vadd.f32 %v4598_v24, %v2493_v43 }
 0x258   : > { %v2165_v62 = vpop.f32.mrf.mxu1 }
 0x259   : > { %v2341_v10 = vadd.f32 %v2340_v53, %v2252_v38  ;;  %v2166_v29 = vadd.f32 %v2165_v62, %v4456_v25  ;;  %v2561_v11 = vmax.f32 %v2529_v18, 0.0 }
 0x25a   : > { %v2432_v63 = vpop.f32.mrf.mxu0 }
 0x25b   : > { %v2430_v2 = vadd.f32 %v2429_v26, %v2341_v10  ;;  %2204 = vmatmul.bf16.gmra.mxu1 %v3273_v49  ;;  %2293 = vmatmul.bf16.gmra.mxu2 %v3277_v37 }
 0x25c   : > { %2382 = vmatmul.bf16.gmra.mxu3 %v3281_v22 }
 0x25d   : > { %2471 = vmatmul.bf16.gmra.mxu0 %v3285_v55  ;;  %v2494_v5 = vmul.f32 %v4583_v52, %v2430_v2 }
 0x25e   : > { %v2254_v33 = vpop.f32.mrf.mxu2 }
 0x25f   : > { %v2530_v44 = vadd.f32 %v4598_v24, %v2494_v5  ;;  %v2255_v3 = vadd.f32 %v2254_v33, %v2166_v29  ;;  %v2343_v54 = vpop.f32.mrf.mxu3 }
 0x260   : > { %v2167_v9 = vpop.f32.mrf.mxu1 }
 0x261   : > { %v2562_v60 = vmax.f32 %v2530_v44, 0.0  ;;  %v2344_v16 = vadd.f32 %v2343_v54, %v2255_v3  ;;  %v2168_v20 = vadd.f32 %v2167_v9, %v4465_v46 }
 0x262   : > { %v2434_v14 = vpop.f32.mrf.mxu0 }
 0x263   : > { %v3825_v15 = vpack.c.bf16 %v2562_v60, %v2561_v11  ;;  %v2433_v45 = vadd.f32 %v2432_v63, %v2344_v16 }
 0x265   : > { %3877 = vst [vmem:[%s4608_s8 + $0x30] sm:$0xff] %v3825_v15   ;;  %v2495_v25 = vmul.f32 %v4583_v52, %v2433_v45 }
 0x266   : > { %v2256_v21 = vpop.f32.mrf.mxu2 }
 0x267   : > { %v2257_v39 = vadd.f32 %v2256_v21, %v2168_v20  ;;  %v2345_v58 = vpop.f32.mrf.mxu3  ;;  %v2531_v36 = vadd.f32 %v4598_v24, %v2495_v25 }
 0x268   : > { %v2170_v8 = vpop.f32.mrf.mxu1 }
 0x269   : > { %v2346_v17 = vadd.f32 %v2345_v58, %v2257_v39  ;;  %v2171_v61 = vadd.f32 %v2170_v8, %v4470_v57  ;;  %v2563_v35 = vmax.f32 %v2531_v36, 0.0 }
 0x26a   : > { %v2437_v26 = vpop.f32.mrf.mxu0 }
 0x26b   : > { %v2435_v34 = vadd.f32 %v2434_v14, %v2346_v17 }
 0x26d   : > { %v2496_v56 = vmul.f32 %v4583_v52, %v2435_v34 }
 0x26e   : > { %v2259_v27 = vpop.f32.mrf.mxu2 }
 0x26f   : > { %v2532_v41 = vadd.f32 %v4598_v24, %v2496_v56  ;;  %v2260_v46 = vadd.f32 %v2259_v27, %v2171_v61  ;;  %v2348_v19 = vpop.f32.mrf.mxu3 }
 0x270   : > { %v2172_v28 = vpop.f32.mrf.mxu1 }
 0x271   : > { %v2564_v59 = vmax.f32 %v2532_v41, 0.0  ;;  %v2349_v42 = vadd.f32 %v2348_v19, %v2260_v46  ;;  %v2173_v49 = vadd.f32 %v2172_v28, %v4479_v50 }
 0x272   : > { %v2439_v40 = vpop.f32.mrf.mxu0 }
 0x273   : > { %v3830_v38 = vpack.c.bf16 %v2564_v59, %v2563_v35  ;;  %v2438_v53 = vadd.f32 %v2437_v26, %v2349_v42 }
 0x275   : > { %3878 = vst [vmem:[%s4608_s8 + $0x38] sm:$0xff] %v3830_v38   ;;  %v2497_v57 = vmul.f32 %v4583_v52, %v2438_v53 }
 0x276   : > { %v2261_v37 = vpop.f32.mrf.mxu2 }
 0x277   : > { %v2262_v62 = vadd.f32 %v2261_v37, %v2173_v49  ;;  %v2350_v22 = vpop.f32.mrf.mxu3  ;;  %v2533_v2 = vadd.f32 %v4598_v24, %v2497_v57 }
 0x278   : > { %v2175_v55 = vpop.f32.mrf.mxu1 }
 0x279   : > { %v2351_v43 = vadd.f32 %v2350_v22, %v2262_v62  ;;  %v2176_v5 = vadd.f32 %v2175_v55, %v4484_v4  ;;  %v2565_v54 = vmax.f32 %v2533_v2, 0.0 }
 0x27a   : > { %v2442_v10 = vpop.f32.mrf.mxu0 }
 0x27b   : > { %v2440_v63 = vadd.f32 %v2439_v40, %v2351_v43 }
 0x27d   : > { %v2498_v18 = vmul.f32 %v4583_v52, %v2440_v63 }
 0x27e   : > { %v2264_v29 = vpop.f32.mrf.mxu2 }
 0x27f   : > { %v2534_v33 = vadd.f32 %v4598_v24, %v2498_v18  ;;  %v2265_v50 = vadd.f32 %v2264_v29, %v2176_v5  ;;  %v2353_v44 = vpop.f32.mrf.mxu3 }
 0x280   : > { %v2177_v3 = vpop.f32.mrf.mxu1 }
 0x281   : > { %v2566_v9 = vmax.f32 %v2534_v33, 0.0  ;;  %v2354_v11 = vadd.f32 %v2353_v44, %v2265_v50  ;;  %v2178_v15 = vadd.f32 %v2177_v3, %v4493_v6 }
 0x282   : > { %v2444_v60 = vpop.f32.mrf.mxu0 }
 0x283   : > { %v3835_v16 = vpack.c.bf16 %v2566_v9, %v2565_v54  ;;  %v2443_v14 = vadd.f32 %v2442_v10, %v2354_v11 }
 0x285   : > { %3879 = vst [vmem:[%s4608_s8 + $0x40] sm:$0xff] %v3835_v16   ;;  %v2499_v4 = vmul.f32 %v4583_v52, %v2443_v14 }
 0x286   : > { %v2266_v45 = vpop.f32.mrf.mxu2 }
 0x287   : > { %v2267_v20 = vadd.f32 %v2266_v45, %v2178_v15  ;;  %v2355_v21 = vpop.f32.mrf.mxu3  ;;  %v2535_v17 = vadd.f32 %v4598_v24, %v2499_v4 }
 0x288   : > { %v2180_v39 = vpop.f32.mrf.mxu1 }
 0x289   : > { %v2356_v58 = vadd.f32 %v2355_v21, %v2267_v20  ;;  %v2181_v34 = vadd.f32 %v2180_v39, %v4498_v30  ;;  %v2567_v41 = vmax.f32 %v2535_v17, 0.0 }
 0x28a   : > { %v2447_v8 = vpop.f32.mrf.mxu0 }
 0x28b   : > { %v2445_v25 = vadd.f32 %v2444_v60, %v2356_v58 }
 0x28d   : > { %v2500_v26 = vmul.f32 %v4583_v52, %v2445_v25 }
 0x28e   : > { %v2269_v36 = vpop.f32.mrf.mxu2 }
 0x28f   : > { %v2536_v56 = vadd.f32 %v4598_v24, %v2500_v26  ;;  %v2270_v6 = vadd.f32 %v2269_v36, %v2181_v34  ;;  %v2358_v61 = vpop.f32.mrf.mxu3 }
 0x290   : > { %v2182_v27 = vpop.f32.mrf.mxu1 }
 0x291   : > { %v2568_v46 = vmax.f32 %v2536_v56, 0.0  ;;  %v2359_v19 = vadd.f32 %v2358_v61, %v2270_v6  ;;  %v2183_v42 = vadd.f32 %v2182_v27, %v4507_v31 }
 0x292   : > { %v2449_v28 = vpop.f32.mrf.mxu0 }
 0x293   : > { %v3840_v35 = vpack.c.bf16 %v2568_v46, %v2567_v41  ;;  %v2448_v59 = vadd.f32 %v2447_v8, %v2359_v19 }
 0x295   : > { %3880 = vst [vmem:[%s4608_s8 + $0x48] sm:$0xff] %v3840_v35   ;;  %v2501_v30 = vmul.f32 %v4583_v52, %v2448_v59 }
 0x296   : > { %v2271_v40 = vpop.f32.mrf.mxu2 }
 0x297   : > { %v2272_v38 = vadd.f32 %v2271_v40, %v2183_v42  ;;  %v2360_v53 = vpop.f32.mrf.mxu3  ;;  %v2537_v55 = vadd.f32 %v4598_v24, %v2501_v30 }
 0x298   : > { %v2185_v49 = vpop.f32.mrf.mxu1 }
 0x299   : > { %v2361_v37 = vadd.f32 %v2360_v53, %v2272_v38  ;;  %v2186_v43 = vadd.f32 %v2185_v49, %v4512_v48  ;;  %v2569_v5 = vmax.f32 %v2537_v55, 0.0 }
 0x29a   : > { %v2452_v62 = vpop.f32.mrf.mxu0 }
 0x29b   : > { %v2450_v22 = vadd.f32 %v2449_v28, %v2361_v37 }
 0x29d   : > { %v2502_v57 = vmul.f32 %v4583_v52, %v2450_v22 }
 0x29e   : > { %v2274_v10 = vpop.f32.mrf.mxu2 }
 0x29f   : > { %v2538_v63 = vadd.f32 %v4598_v24, %v2502_v57  ;;  %v2275_v31 = vadd.f32 %v2274_v10, %v2186_v43  ;;  %v2363_v2 = vpop.f32.mrf.mxu3 }
 0x2a0   : > { %v2187_v18 = vpop.f32.mrf.mxu1 }
 0x2a1   : > { %v2570_v29 = vmax.f32 %v2538_v63, 0.0  ;;  %v2364_v33 = vadd.f32 %v2363_v2, %v2275_v31  ;;  %v2188_v54 = vadd.f32 %v2187_v18, %v4521_v0 }
 0x2a2   : > { %v2454_v50 = vpop.f32.mrf.mxu0 }
 0x2a3   : > { %v3845_v44 = vpack.c.bf16 %v2570_v29, %v2569_v5  ;;  %v2453_v3 = vadd.f32 %v2452_v62, %v2364_v33 }
 0x2a5   : > { %3881 = vst [vmem:[%s4608_s8 + $0x50] sm:$0xff] %v3845_v44   ;;  %v2503_v48 = vmul.f32 %v4583_v52, %v2453_v3 }
 0x2a6   : > { %v2276_v9 = vpop.f32.mrf.mxu2 }
 0x2a7   : > { %v2277_v11 = vadd.f32 %v2276_v9, %v2188_v54  ;;  %v2365_v60 = vpop.f32.mrf.mxu3  ;;  %v2539_v20 = vadd.f32 %v4598_v24, %v2503_v48 }
 0x2a8   : > { %v2190_v16 = vpop.f32.mrf.mxu1 }
 0x2a9   : > { %v2366_v14 = vadd.f32 %v2365_v60, %v2277_v11  ;;  %v2191_v39 = vadd.f32 %v2190_v16, %v4526_v47  ;;  %v2571_v17 = vmax.f32 %v2539_v20, 0.0 }
 0x2aa   : > { %v2457_v15 = vpop.f32.mrf.mxu0 }
 0x2ab   : > { %v2455_v45 = vadd.f32 %v2454_v50, %v2366_v14 }
 0x2ad   : > { %v2504_v21 = vmul.f32 %v4583_v52, %v2455_v45 }
 0x2ae   : > { %v2279_v4 = vpop.f32.mrf.mxu2 }
 0x2af   : > { %v2540_v58 = vadd.f32 %v4598_v24, %v2504_v21  ;;  %v2280_v0 = vadd.f32 %v2279_v4, %v2191_v39  ;;  %v2368_v8 = vpop.f32.mrf.mxu3 }
 0x2b0   : > { %v2192_v25 = vpop.f32.mrf.mxu1 }
 0x2b1   : > { %v2572_v26 = vmax.f32 %v2540_v58, 0.0  ;;  %v2369_v34 = vadd.f32 %v2368_v8, %v2280_v0  ;;  %v2193_v61 = vadd.f32 %v2192_v25, %v4535_v51 }
 0x2b2   : > { %v2459_v36 = vpop.f32.mrf.mxu0 }
 0x2b3   : > { %v3850_v56 = vpack.c.bf16 %v2572_v26, %v2571_v17  ;;  %v2458_v6 = vadd.f32 %v2457_v15, %v2369_v34 }
 0x2b5   : > { %3882 = vst [vmem:[%s4608_s8 + $0x58] sm:$0xff] %v3850_v56   ;;  %v2505_v47 = vmul.f32 %v4583_v52, %v2458_v6 }
 0x2b6   : > { %v2281_v27 = vpop.f32.mrf.mxu2 }
 0x2b7   : > { %v2282_v41 = vadd.f32 %v2281_v27, %v2193_v61  ;;  %v2370_v46 = vpop.f32.mrf.mxu3  ;;  %v2541_v42 = vadd.f32 %v4598_v24, %v2505_v47 }
 0x2b8   : > { %v2195_v19 = vpop.f32.mrf.mxu1 }
 0x2b9   : > { %v2371_v28 = vadd.f32 %v2370_v46, %v2282_v41  ;;  %v2196_v38 = vadd.f32 %v2195_v19, %v4540_v23  ;;  %v2573_v62 = vmax.f32 %v2541_v42, 0.0 }
 0x2ba   : > { %v2462_v35 = vpop.f32.mrf.mxu0 }
 0x2bb   : > { %v2460_v59 = vadd.f32 %v2459_v36, %v2371_v28 }
 0x2bd   : > { %v2506_v40 = vmul.f32 %v4583_v52, %v2460_v59 }
 0x2be   : > { %v2284_v53 = vpop.f32.mrf.mxu2 }
 0x2bf   : > { %v2542_v49 = vadd.f32 %v4598_v24, %v2506_v40  ;;  %v2285_v51 = vadd.f32 %v2284_v53, %v2196_v38  ;;  %v2373_v30 = vpop.f32.mrf.mxu3 }
 0x2c0   : > { %v2197_v37 = vpop.f32.mrf.mxu1 }
 0x2c1   : > { %v2574_v22 = vmax.f32 %v2542_v49, 0.0  ;;  %v2374_v55 = vadd.f32 %v2373_v30, %v2285_v51  ;;  %v2198_v63 = vadd.f32 %v2197_v37, %v4549_v7 }
 0x2c2   : > { %v2464_v57 = vpop.f32.mrf.mxu0 }
 0x2c3   : > { %v3855_v43 = vpack.c.bf16 %v2574_v22, %v2573_v62  ;;  %v2463_v10 = vadd.f32 %v2462_v35, %v2374_v55 }
 0x2c5   : > { %3883 = vst [vmem:[%s4608_s8 + $0x60] sm:$0xff] %v3855_v43   ;;  %v2507_v23 = vmul.f32 %v4583_v52, %v2463_v10 }
 0x2c6   : > { %v2286_v31 = vpop.f32.mrf.mxu2 }
 0x2c7   : > { %v2287_v2 = vadd.f32 %v2286_v31, %v2198_v63  ;;  %v2375_v18 = vpop.f32.mrf.mxu3  ;;  %v2543_v44 = vadd.f32 %v4598_v24, %v2507_v23 }
 0x2c8   : > { %v2200_v5 = vpop.f32.mrf.mxu1 }
 0x2c9   : > { %v2376_v29 = vadd.f32 %v2375_v18, %v2287_v2  ;;  %v2201_v54 = vadd.f32 %v2200_v5, %v4554_v12  ;;  %v2575_v48 = vmax.f32 %v2543_v44, 0.0 }
 0x2ca   : > { %v2467_v50 = vpop.f32.mrf.mxu0 }
 0x2cb   : > { %v2465_v33 = vadd.f32 %v2464_v57, %v2376_v29 }
 0x2cd   : > { %v2508_v3 = vmul.f32 %v4583_v52, %v2465_v33 }
 0x2ce   : > { %v2289_v9 = vpop.f32.mrf.mxu2 }
 0x2cf   : > { %v2544_v11 = vadd.f32 %v4598_v24, %v2508_v3  ;;  %v2290_v7 = vadd.f32 %v2289_v9, %v2201_v54  ;;  %v2378_v60 = vpop.f32.mrf.mxu3 }
 0x2d0   : > { %v2202_v16 = vpop.f32.mrf.mxu1 }
 0x2d1   : > { %v2576_v14 = vmax.f32 %v2544_v11, 0.0  ;;  %v2379_v15 = vadd.f32 %v2378_v60, %v2290_v7  ;;  %v2203_v21 = vadd.f32 %v2202_v16, %v4563_v32 }
 0x2d2   : > { %v2469_v39 = vpop.f32.mrf.mxu0 }
 0x2d3   : > { %v3860_v45 = vpack.c.bf16 %v2576_v14, %v2575_v48  ;;  %v2468_v20 = vadd.f32 %v2467_v50, %v2379_v15 }
 0x2d5   : > { %3884 = vst [vmem:[%s4608_s8 + $0x68] sm:$0xff] %v3860_v45   ;;  %v2509_v12 = vmul.f32 %v4583_v52, %v2468_v20 }
 0x2d6   : > { %v2291_v4 = vpop.f32.mrf.mxu2 }
 0x2d7   : > { %v2292_v58 = vadd.f32 %v2291_v4, %v2203_v21  ;;  %v2380_v0 = vpop.f32.mrf.mxu3  ;;  %v2545_v26 = vadd.f32 %v4598_v24, %v2509_v12 }
 0x2d8   : > { %v2205_v8 = vpop.f32.mrf.mxu1 }
 0x2d9   : > { %v2381_v25 = vadd.f32 %v2380_v0, %v2292_v58  ;;  %v2206_v36 = vadd.f32 %v2205_v8, %v4568_v13  ;;  %v2577_v41 = vmax.f32 %v2545_v26, 0.0 }
 0x2da   : > { %v2472_v27 = vpop.f32.mrf.mxu0 }
 0x2db   : > { %v2470_v17 = vadd.f32 %v2469_v39, %v2381_v25 }
 0x2dd   : > { %v2510_v34 = vmul.f32 %v4583_v52, %v2470_v17 }
 0x2de   : > { %v2294_v56 = vpop.f32.mrf.mxu2 }
 0x2df   : > { %v2546_v6 = vadd.f32 %v4598_v24, %v2510_v34  ;;  %v2295_v32 = vadd.f32 %v2294_v56, %v2206_v36  ;;  %v2383_v61 = vpop.f32.mrf.mxu3 }
 0x2e0   : > { %v2207_v47 = vpop.f32.mrf.mxu1 }
 0x2e1   : > { %v2578_v46 = vmax.f32 %v2546_v6, 0.0  ;;  %v2384_v19 = vadd.f32 %v2383_v61, %v2295_v32  ;;  %v2208_v59 = vadd.f32 %v2207_v47, %v4577_v1 }
 0x2e2   : > { %v2474_v49 = vpop.f32.mrf.mxu0 }
 0x2e3   : > { %v3865_v28 = vpack.c.bf16 %v2578_v46, %v2577_v41  ;;  %v2473_v35 = vadd.f32 %v2472_v27, %v2384_v19 }
 0x2e5   : > { %3885 = vst [vmem:[%s4608_s8 + $0x70] sm:$0xff] %v3865_v28   ;;  %v2511_v13 = vmul.f32 %v4583_v52, %v2473_v35 }
 0x2e6   : > { %v2296_v42 = vpop.f32.mrf.mxu2 }
 0x2e7   : > { %v2297_v40 = vadd.f32 %v2296_v42, %v2208_v59  ;;  %v2385_v38 = vpop.f32.mrf.mxu3  ;;  %v2547_v30 = vadd.f32 %v4598_v24, %v2511_v13 }
 0x2e9   : > { %v2386_v53 = vadd.f32 %v2385_v38, %v2297_v40  ;;  %v2579_v22 = vmax.f32 %v2547_v30, 0.0 }
 0x2eb   : > { %v2475_v51 = vadd.f32 %v2474_v49, %v2386_v53 }
 0x2ed   : > { %v2512_v37 = vmul.f32 %v4583_v52, %v2475_v51 }
 0x2ef   : > { %v2548_v62 = vadd.f32 %v4598_v24, %v2512_v37 }
 0x2f1   : > { %v2580_v55 = vmax.f32 %v2548_v62, 0.0 }
 0x2f3   : > { %v3870_v57 = vpack.c.bf16 %v2580_v55, %v2579_v22 }
 0x2f5   : > { %3886 = vst [vmem:[%s4608_s8 + $0x78] sm:$0xff] %v3870_v57  }
 0x2f6 PF: > { %s14_s15 = sadd.s32 1, %s3928_s15  }
 0x2f7   : > { %p11_p4 = scmp.ge.s32.totalorder %s14_s15, 4  }
 0x2f9   :  { %13 = sbr.rel (!%p11_p4) target bundleno = 1 (0x1), region = 66 }

// kernel: _lambda_.12
= control target key start
LH: loop header
LB: loop body
LE: loop exit
PB: predicated region body
PF: predicated region fallthrough
CT: control target
= control target key end

     0   :  { %s4200_s18 = smov 0   ;;  %s5034_s0 = inlined_call_operand.vmem [shape: bf16[512,1152], index: 0, kind: input, shape index: {}]   ;;  %s5035_s1 = inlined_call_operand.vmem [shape: bf16[1152,128], index: 1, kind: input, shape index: {}]   ;;  %s5036_s2 = inlined_call_operand.vmem [shape: f32[1,128], index: 2, kind: input, shape index: {}]   ;;  %s5037_s3 = inlined_call_operand.vmem [shape: f32[1,128], index: 3, kind: input, shape index: {}]   ;;  %s5038_s4 = inlined_call_operand.vmem [shape: bf16[512,128], index: 4, kind: input, shape index: {}]   ;;  %s5039_s5 = inlined_call_operand.vmem [shape: bf16[512,128], index: 5, kind: output, shape index: {}]  }
   0x1 LB: > { %s2858_s19 = sadd.s32 4294967295, %s4168_s18   ;;  %p2862_p0 = scmp.ge.s32.totalorder %s4168_s18, 1  ;;  %s4168_s18 = sphi %s4200_s18, %s15_s18  }
   0x2   : > { %p200_p1 = scmp.lt.s32.totalorder %s4168_s18, 3 }
   0x4   : > { %p201_p2 = pnand %p2862_p0, %p200_p1 }
   0x5   : > { %s2863_s26 = sshll.u32 (!%p201_p2), %s2858_s19, 5 }
   0x6   : > { %204 = sbr.rel (%p201_p2) target bundleno = 760 (0x2f8), region = 40  ;;  %p235_p3 = scmp.lt.s32.totalorder (!%p201_p2), %s2863_s26, 63 }
   0xb   : > { %v3886_v0 = vld [vmem:[%s5035_s1 + $0x38] sm:$0xff]  ;;  %v3885_v1 = vld [vmem:[%s5035_s1 + $0x30] sm:$0xff]  ;;  %v3884_v2 = vld [vmem:[%s5035_s1 + $0x28] sm:$0xff]  ;;  %s5041_s26 = smov (!%p235_p3, %s2863_s26), 63 }
   0xc   : > { %4125 = vmatpush.bf16.msra.mxu1 %v3886_v0  ;;  %4126 = vmatpush.bf16.msra.mxu2 %v3886_v0  ;;  %v3883_v3 = vld [vmem:[%s5035_s1 + $0x20] sm:$0xff]  ;;  %v3882_v4 = vld [vmem:[%s5035_s1 + $0x18] sm:$0xff]  ;;  %v3881_v5 = vld [vmem:[%s5035_s1 + $0x10] sm:$0xff]  ;;  %s4149_s8 = smul.u32 36, %s5041_s26  ;;  %s2866_s11 = sshll.u32 %s5041_s26, 2 }
   0xd   : > { %4127 = vmatpush.bf16.msra.mxu3 %v3886_v0  ;;  %1725 = vmatpush.bf16.msra.mxu0 %v3886_v0  ;;  %v3880_v6 = vld [vmem:[%s5035_s1 + $0x8] sm:$0xff]  ;;  %v3879_v7 = vld [vmem:[%s5035_s1] sm:$0xff]  ;;  %v3902_v16 = vld [vmem:[%s5035_s1 + $0xb8] sm:$0xff]  ;;  %s4841_s17 = scalar_lea.vmem %s5038_s4, %s2866_s11  ;;  %s4865_s23 = scalar_lea.vmem %s5039_s5, %s2866_s11 }
   0xe   : > { %s4235_s13 = scalar_lea.vmem %s5034_s0, %s4149_s8  ;;  %v3910_v17 = vld [vmem:[%s5035_s1 + $0xf8] sm:$0xff]  ;;  %v3901_v24 = vld [vmem:[%s5035_s1 + $0xb0] sm:$0xff]  ;;  %v3900_v28 = vld [vmem:[%s5035_s1 + $0xa8] sm:$0xff] }
   0xf   : > { %v3015_v8 = vld [vmem:[%s4235_s13 + $0x120] sm:$0xf]  ;;  %v3775_v9 = vld [vmem:[%s4235_s13 + $0x140] sm:$0xf0]  ;;  %v3894_v22 = vld [vmem:[%s5035_s1 + $0x78] sm:$0xff] }
  0x10   : > { %4128 = vmatpush.bf16.msra.mxu1 %v3885_v1  ;;  %4129 = vmatpush.bf16.msra.mxu2 %v3885_v1  ;;  %v3159_v10 = vld [vmem:[%s4235_s13 + $0x240] sm:$0xf]  ;;  %v3811_v11 = vld [vmem:[%s4235_s13 + $0x260] sm:$0xf0]  ;;  %v3016_v18 = vor.u32 %v3775_v9, %v3015_v8  ;;  %v3918_v23 = vld [vmem:[%s5035_s1 + $0x138] sm:$0xff] }
  0x11   : > { %4130 = vmatpush.bf16.msra.mxu3 %v3885_v1  ;;  %1726 = vmatpush.bf16.msra.mxu0 %v3885_v1  ;;  %v3303_v12 = vld [vmem:[%s4235_s13 + $0x360] sm:$0xf]  ;;  %v3847_v13 = vld [vmem:[%s4235_s13 + $0x380] sm:$0xf0]  ;;  %v3160_v19 = vor.u32 %v3811_v11, %v3159_v10  ;;  %v3909_v25 = vld [vmem:[%s5035_s1 + $0xf0] sm:$0xff] }
  0x12   : > { %v2871_v14 = vld [vmem:[%s4235_s13] sm:$0xf]  ;;  %v3739_v15 = vld [vmem:[%s4235_s13 + $0x20] sm:$0xf0]  ;;  %v3304_v20 = vor.u32 %v3847_v13, %v3303_v12  ;;  %v3893_v26 = vld [vmem:[%s5035_s1 + $0x70] sm:$0xff] }
  0x13   : > { %v2872_v21 = vor.u32 %v3739_v15, %v2871_v14  ;;  %v3917_v27 = vld [vmem:[%s5035_s1 + $0x130] sm:$0xff]  ;;  %v3908_v29 = vld [vmem:[%s5035_s1 + $0xe8] sm:$0xff]  ;;  %v3899_v33 = vld [vmem:[%s5035_s1 + $0xa0] sm:$0xff] }
  0x14   : > { %4131 = vmatpush.bf16.msra.mxu1 %v3884_v2  ;;  %4132 = vmatpush.bf16.msra.mxu2 %v3884_v2  ;;  %v3892_v30 = vld [vmem:[%s5035_s1 + $0x68] sm:$0xff]  ;;  %v3907_v34 = vld [vmem:[%s5035_s1 + $0xe0] sm:$0xff]  ;;  %v3898_v44 = vld [vmem:[%s5035_s1 + $0x98] sm:$0xff] }
  0x15   : > { %4133 = vmatpush.bf16.msra.mxu3 %v3884_v2  ;;  %1727 = vmatpush.bf16.msra.mxu0 %v3884_v2  ;;  %v3916_v31 = vld [vmem:[%s5035_s1 + $0x128] sm:$0xff]  ;;  %v3891_v42 = vld [vmem:[%s5035_s1 + $0x60] sm:$0xff]  ;;  %v3906_v45 = vld [vmem:[%s5035_s1 + $0xd8] sm:$0xff] }
  0x16   : > { %v3051_v32 = vld [vmem:[%s4235_s13 + $0x168] sm:$0xf]  ;;  %v3784_v35 = vld [vmem:[%s4235_s13 + $0x188] sm:$0xf0]  ;;  %v3915_v43 = vld [vmem:[%s5035_s1 + $0x120] sm:$0xff] }
  0x17   : > { %v3195_v36 = vld [vmem:[%s4235_s13 + $0x288] sm:$0xf]  ;;  %v3820_v37 = vld [vmem:[%s4235_s13 + $0x2a8] sm:$0xf0]  ;;  %v3052_v46 = vor.u32 %v3784_v35, %v3051_v32  ;;  %v3890_v50 = vld [vmem:[%s5035_s1 + $0x58] sm:$0xff] }
  0x18   : > { %4134 = vmatpush.bf16.msra.mxu1 %v3883_v3  ;;  %4135 = vmatpush.bf16.msra.mxu2 %v3883_v3  ;;  %v3339_v38 = vld [vmem:[%s4235_s13 + $0x3a8] sm:$0xf]  ;;  %v3856_v39 = vld [vmem:[%s4235_s13 + $0x3c8] sm:$0xf0]  ;;  %v3196_v47 = vor.u32 %v3820_v37, %v3195_v36  ;;  %v3914_v51 = vld [vmem:[%s5035_s1 + $0x118] sm:$0xff] }
  0x19   : > { %4136 = vmatpush.bf16.msra.mxu3 %v3883_v3  ;;  %1728 = vmatpush.bf16.msra.mxu0 %v3883_v3  ;;  %v2907_v40 = vld [vmem:[%s4235_s13 + $0x48] sm:$0xf]  ;;  %v3748_v41 = vld [vmem:[%s4235_s13 + $0x68] sm:$0xf0]  ;;  %v3340_v48 = vor.u32 %v3856_v39, %v3339_v38  ;;  %v3897_v52 = vld [vmem:[%s5035_s1 + $0x90] sm:$0xff] }
  0x1a   : > { %v2908_v49 = vor.u32 %v3748_v41, %v2907_v40  ;;  %v3905_v53 = vld [vmem:[%s5035_s1 + $0xd0] sm:$0xff]  ;;  %v3896_v56 = vld [vmem:[%s5035_s1 + $0x88] sm:$0xff]  ;;  %v3895_v61 = vld [vmem:[%s5035_s1 + $0x80] sm:$0xff] }
  0x1b   : > { %v3889_v54 = vld [vmem:[%s5035_s1 + $0x50] sm:$0xff]  ;;  %v3904_v57 = vld [vmem:[%s5035_s1 + $0xc8] sm:$0xff]  ;;  %v3903_v62 = vld [vmem:[%s5035_s1 + $0xc0] sm:$0xff] }
  0x1c   : > { %4137 = vmatpush.bf16.msra.mxu1 %v3882_v4  ;;  %4138 = vmatpush.bf16.msra.mxu2 %v3882_v4  ;;  %v3913_v55 = vld [vmem:[%s5035_s1 + $0x110] sm:$0xff]  ;;  %v3888_v58 = vld [vmem:[%s5035_s1 + $0x48] sm:$0xff]  ;;  %v3934_v12 = vld [vmem:[%s5035_s1 + $0x1b8] sm:$0xff] }
  0x1d   : > { %4139 = vmatpush.bf16.msra.mxu3 %v3882_v4  ;;  %1729 = vmatpush.bf16.msra.mxu0 %v3882_v4  ;;  %v3912_v59 = vld [vmem:[%s5035_s1 + $0x108] sm:$0xff]  ;;  %v3087_v60 = vld [vmem:[%s4235_s13 + $0x1b0] sm:$0xf]  ;;  %v3793_v63 = vld [vmem:[%s4235_s13 + $0x1d0] sm:$0xf0] }
  0x1e   : > { %v3231_v0 = vld [vmem:[%s4235_s13 + $0x2d0] sm:$0xf]  ;;  %v3829_v1 = vld [vmem:[%s4235_s13 + $0x2f0] sm:$0xf0]  ;;  %v3088_v8 = vor.u32 %v3793_v63, %v3087_v60  ;;  %v3942_v13 = vld [vmem:[%s5035_s1 + $0x1f8] sm:$0xff] }
  0x1f   : > { %v3375_v2 = vld [vmem:[%s4235_s13 + $0x3f0] sm:$0xf]  ;;  %v3865_v3 = vld [vmem:[%s4235_s13 + $0x410] sm:$0xf0]  ;;  %v3232_v9 = vor.u32 %v3829_v1, %v3231_v0  ;;  %v3926_v14 = vld [vmem:[%s5035_s1 + $0x178] sm:$0xff] }
  0x20   : > { %4140 = vmatpush.bf16.msra.mxu1 %v3881_v5  ;;  %4141 = vmatpush.bf16.msra.mxu2 %v3881_v5  ;;  %v2943_v4 = vld [vmem:[%s4235_s13 + $0x90] sm:$0xf]  ;;  %v3376_v10 = vor.u32 %v3865_v3, %v3375_v2  ;;  %v3950_v15 = vld [vmem:[%s5035_s1 + $0x238] sm:$0xff]  ;;  %v3736_v32 = vld [vmem:[%s4235_s13 + $0xc] sm:$0xf] }
  0x21   : > { %4142 = vmatpush.bf16.msra.mxu3 %v3881_v5  ;;  %1730 = vmatpush.bf16.msra.mxu0 %v3881_v5  ;;  %v3757_v5 = vld [vmem:[%s4235_s13 + $0xb0] sm:$0xf0]  ;;  %v3754_v60 = vld [vmem:[%s4235_s13 + $0x9c] sm:$0xf]  ;;  %v3759_v63 = vld [vmem:[%s4235_s13 + $0xc0] sm:$0xf0] }
  0x22   : > { %v2944_v11 = vor.u32 %v3757_v5, %v2943_v4  ;;  %v3741_v35 = vld [vmem:[%s4235_s13 + $0x30] sm:$0xf0]  ;;  %v3932_v4 = vld [vmem:[%s5035_s1 + $0x1a8] sm:$0xff] }
  0x23   : > { %v3933_v40 = vld [vmem:[%s5035_s1 + $0x1b0] sm:$0xff]  ;;  %v3940_v5 = vld [vmem:[%s5035_s1 + $0x1e8] sm:$0xff] }
  0x24   : > { %4143 = vmatpush.bf16.msra.mxu1 %v3880_v6  ;;  %4144 = vmatpush.bf16.msra.mxu2 %v3880_v6  ;;  %v3941_v41 = vld [vmem:[%s5035_s1 + $0x1f0] sm:$0xff] }
  0x25   : > { %4145 = vmatpush.bf16.msra.mxu3 %v3880_v6  ;;  %1731 = vmatpush.bf16.msra.mxu0 %v3880_v6  ;;  %v3887_v6 = vld [vmem:[%s5035_s1 + $0x40] sm:$0xff] }
  0x28   : > { %4146 = vmatpush.bf16.msra.mxu1 %v3879_v7  ;;  %4147 = vmatpush.bf16.msra.mxu2 %v3879_v7 }
  0x29   : > { %4148 = vmatpush.bf16.msra.mxu3 %v3879_v7  ;;  %1732 = vmatpush.bf16.msra.mxu0 %v3879_v7  ;;  %v3911_v7 = vld [vmem:[%s5035_s1 + $0x100] sm:$0xff] }
  0x2b   : > { %1753 = vmatmul.bf16.vlgmr.msra.gmra.mxu1 %v3016_v18  ;;  %1773 = vmatmul.bf16.vlgmr.msra.gmra.mxu2 %v3160_v19  ;;  %v3267_v18 = vld [vmem:[%s4235_s13 + $0x318] sm:$0xf]  ;;  %v3838_v19 = vld [vmem:[%s4235_s13 + $0x338] sm:$0xf0] }
  0x2c   : > { %1903 = vmatpush.bf16.msrb.mxu2 %v3902_v16  ;;  %1793 = vmatmul.bf16.vlgmr.msra.gmra.mxu3 %v3304_v20  ;;  %v3123_v16 = vld [vmem:[%s4235_s13 + $0x1f8] sm:$0xf] }
  0x2d   : > { %1992 = vmatpush.bf16.msrb.mxu3 %v3910_v17  ;;  %1733 = vmatmul.bf16.vlgmr.msra.gmra.mxu0 %v2872_v21  ;;  %v3802_v17 = vld [vmem:[%s4235_s13 + $0x218] sm:$0xf0]  ;;  %v3411_v20 = vld [vmem:[%s4235_s13 + $0x438] sm:$0xf] }
  0x2e   : > { %1814 = vmatpush.bf16.msrb.mxu1 %v3894_v22  ;;  %2081 = vmatpush.bf16.msrb.mxu0 %v3918_v23  ;;  %v3874_v21 = vld [vmem:[%s4235_s13 + $0x458] sm:$0xf0]  ;;  %v2979_v22 = vld [vmem:[%s4235_s13 + $0xd8] sm:$0xf] }
  0x2f   : > { %v3766_v23 = vld [vmem:[%s4235_s13 + $0xf8] sm:$0xf0] }
  0x30   : > { %1904 = vmatpush.bf16.msrb.mxu2 %v3901_v24  ;;  %v3124_v24 = vor.u32 %v3802_v17, %v3123_v16 }
  0x31   : > { %1993 = vmatpush.bf16.msrb.mxu3 %v3909_v25  ;;  %v3268_v25 = vor.u32 %v3838_v19, %v3267_v18 }
  0x32   : > { %1815 = vmatpush.bf16.msrb.mxu1 %v3893_v26  ;;  %2082 = vmatpush.bf16.msrb.mxu0 %v3917_v27  ;;  %v3412_v26 = vor.u32 %v3874_v21, %v3411_v20  ;;  %v2980_v27 = vor.u32 %v3766_v23, %v2979_v22  ;;  %v3771_v20 = vld [vmem:[%s4235_s13 + $0x124] sm:$0xf]  ;;  %v3017_v21 = vld [vmem:[%s4235_s13 + $0x144] sm:$0xf0]  ;;  %v3776_v23 = vld [vmem:[%s4235_s13 + $0x148] sm:$0xf0] }
  0x33   : > { %v3023_v22 = vld [vmem:[%s4235_s13 + $0x128] sm:$0xf] }
  0x34   : > { %1905 = vmatpush.bf16.msrb.mxu2 %v3900_v28  ;;  %v3735_v28 = vld [vmem:[%s4235_s13 + $0x4] sm:$0xf] }
  0x35   : > { %1994 = vmatpush.bf16.msrb.mxu3 %v3908_v29  ;;  %v2873_v29 = vld [vmem:[%s4235_s13 + $0x24] sm:$0xf0] }
  0x36   : > { %1816 = vmatpush.bf16.msrb.mxu1 %v3892_v30  ;;  %2083 = vmatpush.bf16.msrb.mxu0 %v3916_v31  ;;  %v2879_v30 = vld [vmem:[%s4235_s13 + $0x8] sm:$0xf]  ;;  %v3740_v31 = vld [vmem:[%s4235_s13 + $0x28] sm:$0xf0]  ;;  %v2876_v36 = vor.u32 %v3735_v28, %v2873_v29  ;;  %v3020_v28 = vor.u32 %v3771_v20, %v3017_v21  ;;  %v3024_v29 = vor.u32 %v3776_v23, %v3023_v22  ;;  %v3922_v20 = vld [vmem:[%s5035_s1 + $0x158] sm:$0xff] }
  0x37   : > { %v2880_v37 = vor.u32 %v3740_v31, %v2879_v30  ;;  %v3946_v21 = vld [vmem:[%s5035_s1 + $0x218] sm:$0xff]  ;;  %v3125_v23 = vld [vmem:[%s4235_s13 + $0x21c] sm:$0xf0] }
  0x38   : > { %1906 = vmatpush.bf16.msrb.mxu2 %v3899_v33  ;;  %v2881_v33 = vld [vmem:[%s4235_s13 + $0x2c] sm:$0xf0]  ;;  %v3798_v22 = vld [vmem:[%s4235_s13 + $0x1fc] sm:$0xf] }
  0x39   : > { %1995 = vmatpush.bf16.msrb.mxu3 %v3907_v34  ;;  %v2887_v34 = vld [vmem:[%s4235_s13 + $0x10] sm:$0xf]  ;;  %v2884_v38 = vor.u32 %v3736_v32, %v2881_v33 }
  0x3a   : > { %1817 = vmatpush.bf16.msrb.mxu1 %v3891_v42  ;;  %2084 = vmatpush.bf16.msrb.mxu0 %v3915_v43  ;;  %v2888_v39 = vor.u32 %v3741_v35, %v2887_v34  ;;  %v3925_v42 = vld [vmem:[%s5035_s1 + $0x170] sm:$0xff]  ;;  %v3931_v34 = vld [vmem:[%s5035_s1 + $0x1a0] sm:$0xff] }
  0x3b   : > { %1758 = vmatmul.bf16.gmra.mxu1 %v3052_v46  ;;  %1778 = vmatmul.bf16.gmra.mxu2 %v3196_v47  ;;  %v3949_v43 = vld [vmem:[%s5035_s1 + $0x230] sm:$0xff]  ;;  %v3939_v35 = vld [vmem:[%s5035_s1 + $0x1e0] sm:$0xff] }
  0x3c   : > { %1907 = vmatpush.bf16.msrb.mxu2 %v3898_v44  ;;  %1798 = vmatmul.bf16.gmra.mxu3 %v3340_v48  ;;  %v3744_v44 = vld [vmem:[%s4235_s13 + $0x4c] sm:$0xf]  ;;  %v2915_v46 = vld [vmem:[%s4235_s13 + $0x50] sm:$0xf]  ;;  %v3749_v47 = vld [vmem:[%s4235_s13 + $0x70] sm:$0xf0] }
  0x3d   : > { %1996 = vmatpush.bf16.msrb.mxu3 %v3906_v45  ;;  %1738 = vmatmul.bf16.gmra.mxu0 %v2908_v49  ;;  %v2909_v45 = vld [vmem:[%s4235_s13 + $0x6c] sm:$0xf0]  ;;  %v3745_v48 = vld [vmem:[%s4235_s13 + $0x54] sm:$0xf]  ;;  %v2917_v49 = vld [vmem:[%s4235_s13 + $0x74] sm:$0xf0] }
  0x3e   : > { %1818 = vmatpush.bf16.msrb.mxu1 %v3890_v50  ;;  %2085 = vmatpush.bf16.msrb.mxu0 %v3914_v51  ;;  %v2923_v50 = vld [vmem:[%s4235_s13 + $0x58] sm:$0xf]  ;;  %v3750_v51 = vld [vmem:[%s4235_s13 + $0x78] sm:$0xf0] }
  0x40   : > { %1908 = vmatpush.bf16.msrb.mxu2 %v3897_v52  ;;  %v2912_v52 = vor.u32 %v3744_v44, %v2909_v45  ;;  %v3059_v44 = vld [vmem:[%s4235_s13 + $0x170] sm:$0xf]  ;;  %v3785_v45 = vld [vmem:[%s4235_s13 + $0x190] sm:$0xf0] }
  0x41   : > { %1997 = vmatpush.bf16.msrb.mxu3 %v3905_v53  ;;  %v2916_v53 = vor.u32 %v3749_v47, %v2915_v46  ;;  %v3781_v46 = vld [vmem:[%s4235_s13 + $0x174] sm:$0xf]  ;;  %v3061_v47 = vld [vmem:[%s4235_s13 + $0x194] sm:$0xf0] }
  0x42   : > { %1819 = vmatpush.bf16.msrb.mxu1 %v3889_v54  ;;  %2086 = vmatpush.bf16.msrb.mxu0 %v3913_v55  ;;  %v2920_v54 = vor.u32 %v3745_v48, %v2917_v49  ;;  %v2924_v55 = vor.u32 %v3750_v51, %v2923_v50  ;;  %v3067_v48 = vld [vmem:[%s4235_s13 + $0x178] sm:$0xf]  ;;  %v3786_v49 = vld [vmem:[%s4235_s13 + $0x198] sm:$0xf0] }
  0x44   : > { %1909 = vmatpush.bf16.msrb.mxu2 %v3896_v56  ;;  %v3753_v56 = vld [vmem:[%s4235_s13 + $0x94] sm:$0xf] }
  0x45   : > { %1998 = vmatpush.bf16.msrb.mxu3 %v3904_v57  ;;  %v2945_v57 = vld [vmem:[%s4235_s13 + $0xb4] sm:$0xf0] }
  0x46   : > { %1820 = vmatpush.bf16.msrb.mxu1 %v3888_v58  ;;  %2087 = vmatpush.bf16.msrb.mxu0 %v3912_v59  ;;  %v2951_v58 = vld [vmem:[%s4235_s13 + $0x98] sm:$0xf]  ;;  %v3758_v59 = vld [vmem:[%s4235_s13 + $0xb8] sm:$0xf0]  ;;  %v2948_v0 = vor.u32 %v3753_v56, %v2945_v57  ;;  %v3068_v56 = vor.u32 %v3786_v49, %v3067_v48  ;;  %v3807_v48 = vld [vmem:[%s4235_s13 + $0x244] sm:$0xf] }
  0x47   : > { %v2952_v1 = vor.u32 %v3758_v59, %v2951_v58  ;;  %v3161_v49 = vld [vmem:[%s4235_s13 + $0x264] sm:$0xf0] }
  0x48   : > { %1910 = vmatpush.bf16.msrb.mxu2 %v3895_v61  ;;  %v2953_v61 = vld [vmem:[%s4235_s13 + $0xbc] sm:$0xf0] }
  0x49   : > { %1999 = vmatpush.bf16.msrb.mxu3 %v3903_v62  ;;  %v2959_v62 = vld [vmem:[%s4235_s13 + $0xa0] sm:$0xf]  ;;  %v2956_v2 = vor.u32 %v3754_v60, %v2953_v61 }
  0x4a   : > { %1821 = vmatpush.bf16.msrb.mxu1 %v3887_v6  ;;  %2088 = vmatpush.bf16.msrb.mxu0 %v3911_v7  ;;  %v2960_v3 = vor.u32 %v3759_v63, %v2959_v62  ;;  %v3924_v6 = vld [vmem:[%s5035_s1 + $0x168] sm:$0xff]  ;;  %v3789_v62 = vld [vmem:[%s4235_s13 + $0x1b4] sm:$0xf]  ;;  %v3089_v63 = vld [vmem:[%s4235_s13 + $0x1d4] sm:$0xf0] }
  0x4b   : > { %1763 = vmatmul.bf16.gmra.mxu1 %v3088_v8  ;;  %1783 = vmatmul.bf16.gmra.mxu2 %v3232_v9  ;;  %v3948_v7 = vld [vmem:[%s5035_s1 + $0x228] sm:$0xff]  ;;  %v3762_v8 = vld [vmem:[%s4235_s13 + $0xdc] sm:$0xf]  ;;  %v2981_v9 = vld [vmem:[%s4235_s13 + $0xfc] sm:$0xf0] }
  0x4c   : > { %1803 = vmatmul.bf16.gmra.mxu3 %v3376_v10  ;;  %2259 = vmatpush.bf16.msra.mxu2 %v3934_v12  ;;  %v2987_v10 = vld [vmem:[%s4235_s13 + $0xe0] sm:$0xf]  ;;  %v3763_v12 = vld [vmem:[%s4235_s13 + $0xe4] sm:$0xf]  ;;  %v2984_v16 = vor.u32 %v3762_v8, %v2981_v9  ;;  %v3092_v8 = vor.u32 %v3789_v62, %v3089_v63  ;;  %v3175_v62 = vld [vmem:[%s4235_s13 + $0x250] sm:$0xf] }
  0x4d   : > { %1743 = vmatmul.bf16.gmra.mxu0 %v2944_v11  ;;  %2348 = vmatpush.bf16.msra.mxu3 %v3942_v13  ;;  %v3767_v11 = vld [vmem:[%s4235_s13 + $0x100] sm:$0xf0]  ;;  %v2989_v13 = vld [vmem:[%s4235_s13 + $0x104] sm:$0xf0]  ;;  %v3813_v63 = vld [vmem:[%s4235_s13 + $0x270] sm:$0xf0] }
  0x4e   : > { %2170 = vmatpush.bf16.msra.mxu1 %v3926_v14  ;;  %2437 = vmatpush.bf16.msra.mxu0 %v3950_v15  ;;  %v2995_v14 = vld [vmem:[%s4235_s13 + $0xe8] sm:$0xf]  ;;  %v3768_v15 = vld [vmem:[%s4235_s13 + $0x108] sm:$0xf0]  ;;  %v2988_v17 = vor.u32 %v3767_v11, %v2987_v10  ;;  %v2992_v18 = vor.u32 %v3763_v12, %v2989_v13 }
  0x4f   : > { %v2996_v19 = vor.u32 %v3768_v15, %v2995_v14  ;;  %v3930_v14 = vld [vmem:[%s5035_s1 + $0x198] sm:$0xff] }
  0x50   : > { %2260 = vmatpush.bf16.msra.mxu2 %v3933_v40  ;;  %v3938_v15 = vld [vmem:[%s5035_s1 + $0x1d8] sm:$0xff] }
  0x51   : > { %2349 = vmatpush.bf16.msra.mxu3 %v3941_v41  ;;  %v3947_v41 = vld [vmem:[%s5035_s1 + $0x220] sm:$0xff] }
  0x52   : > { %2171 = vmatpush.bf16.msra.mxu1 %v3925_v42  ;;  %2438 = vmatpush.bf16.msra.mxu0 %v3949_v43  ;;  %v3780_v42 = vld [vmem:[%s4235_s13 + $0x16c] sm:$0xf]  ;;  %v3053_v43 = vld [vmem:[%s4235_s13 + $0x18c] sm:$0xf0] }
  0x54   : > { %2261 = vmatpush.bf16.msra.mxu2 %v3932_v4  ;;  %v3103_v4 = vld [vmem:[%s4235_s13 + $0x1c0] sm:$0xf] }
  0x55   : > { %2350 = vmatpush.bf16.msra.mxu3 %v3940_v5  ;;  %v3795_v5 = vld [vmem:[%s4235_s13 + $0x1e0] sm:$0xf0] }
  0x56   : > { %2172 = vmatpush.bf16.msra.mxu1 %v3924_v6  ;;  %2439 = vmatpush.bf16.msra.mxu0 %v3948_v7  ;;  %v3104_v12 = vor.u32 %v3795_v5, %v3103_v4 }
  0x58   : > { %2262 = vmatpush.bf16.msra.mxu2 %v3931_v34  ;;  %v3128_v34 = vor.u32 %v3798_v22, %v3125_v23 }
  0x59   : > { %2351 = vmatpush.bf16.msra.mxu3 %v3939_v35 }
  0x5a   : > { %2440 = vmatpush.bf16.msra.mxu0 %v3947_v41 }
  0x5b   : > { %1768 = vmatmul.bf16.gmra.mxu1 %v3124_v24  ;;  %1788 = vmatmul.bf16.gmra.mxu2 %v3268_v25  ;;  %v3772_v24 = vld [vmem:[%s4235_s13 + $0x12c] sm:$0xf]  ;;  %v3025_v25 = vld [vmem:[%s4235_s13 + $0x14c] sm:$0xf0] }
  0x5c   : > { %1808 = vmatmul.bf16.gmra.mxu3 %v3412_v26  ;;  %v3031_v26 = vld [vmem:[%s4235_s13 + $0x130] sm:$0xf]  ;;  %v3028_v31 = vor.u32 %v3772_v24, %v3025_v25  ;;  %2263 = vmatpush.bf16.msra.mxu2 %v3930_v14  ;;  %v3131_v24 = vld [vmem:[%s4235_s13 + $0x200] sm:$0xf]  ;;  %v3803_v25 = vld [vmem:[%s4235_s13 + $0x220] sm:$0xf0] }
  0x5d   : > { %1748 = vmatmul.bf16.gmra.mxu0 %v2980_v27  ;;  %v3777_v27 = vld [vmem:[%s4235_s13 + $0x150] sm:$0xf0]  ;;  %2352 = vmatpush.bf16.msra.mxu3 %v3938_v15  ;;  %v3132_v35 = vor.u32 %v3803_v25, %v3131_v24 }
  0x5e   : > { %v3032_v32 = vor.u32 %v3777_v27, %v3031_v26  ;;  %2441 = vmatpush.bf16.msra.mxu0 %v3946_v21  ;;  %v3799_v26 = vld [vmem:[%s4235_s13 + $0x204] sm:$0xf]  ;;  %v3133_v27 = vld [vmem:[%s4235_s13 + $0x224] sm:$0xf0]  ;;  %v3937_v14 = vld [vmem:[%s5035_s1 + $0x1d0] sm:$0xff] }
  0x5f   : > { %v3136_v41 = vor.u32 %v3799_v26, %v3133_v27  ;;  %v3921_v25 = vld [vmem:[%s5035_s1 + $0x150] sm:$0xff]  ;;  %v3816_v27 = vld [vmem:[%s4235_s13 + $0x28c] sm:$0xf] }
  0x60   : > { %v3945_v26 = vld [vmem:[%s5035_s1 + $0x210] sm:$0xff] }
  0x61   : > { %2353 = vmatpush.bf16.msra.mxu3 %v3937_v14 }
  0x62   : > { %2442 = vmatpush.bf16.msra.mxu0 %v3945_v26  ;;  %v3241_v26 = vld [vmem:[%s4235_s13 + $0x2fc] sm:$0xf0] }
  0x6b   : > { %1822 = vmatmul.bf16.vlgmr.msrb.gmra.mxu1 %v2876_v36  ;;  %1911 = vmatmul.bf16.vlgmr.msrb.gmra.mxu2 %v2880_v37 }
  0x6c   : > { %2000 = vmatmul.bf16.vlgmr.msrb.gmra.mxu3 %v2884_v38  ;;  %v3923_v38 = vld [vmem:[%s5035_s1 + $0x160] sm:$0xff] }
  0x6d   : > { %2089 = vmatmul.bf16.vlgmr.msrb.gmra.mxu0 %v2888_v39  ;;  %2173 = vmatpush.bf16.msra.mxu1 %v3923_v38 }
  0x71   : > { %2174 = vmatpush.bf16.msra.mxu1 %v3922_v20 }
  0x75   : > { %2175 = vmatpush.bf16.msra.mxu1 %v3921_v25  ;;  %v3826_v25 = vld [vmem:[%s4235_s13 + $0x2dc] sm:$0xf] }
  0x7b   : > { %1827 = vmatmul.bf16.gmra.mxu1 %v2912_v52  ;;  %1916 = vmatmul.bf16.gmra.mxu2 %v2916_v53  ;;  %v3056_v52 = vor.u32 %v3780_v42, %v3053_v43  ;;  %v3060_v53 = vor.u32 %v3785_v45, %v3059_v44 }
  0x7c   : > { %2005 = vmatmul.bf16.gmra.mxu3 %v2920_v54 }
  0x7d   : > { %2094 = vmatmul.bf16.gmra.mxu0 %v2924_v55  ;;  %v3064_v55 = vor.u32 %v3781_v46, %v3061_v47 }
  0x8b   : > { %1832 = vmatmul.bf16.gmra.mxu1 %v2948_v0  ;;  %1921 = vmatmul.bf16.gmra.mxu2 %v2952_v1  ;;  %v3095_v0 = vld [vmem:[%s4235_s13 + $0x1b8] sm:$0xf]  ;;  %v3794_v1 = vld [vmem:[%s4235_s13 + $0x1d8] sm:$0xf0] }
  0x8c   : > { %2010 = vmatmul.bf16.gmra.mxu3 %v2956_v2  ;;  %v3790_v2 = vld [vmem:[%s4235_s13 + $0x1bc] sm:$0xf]  ;;  %v3096_v9 = vor.u32 %v3794_v1, %v3095_v0 }
  0x8d   : > { %2099 = vmatmul.bf16.gmra.mxu0 %v2960_v3  ;;  %v3097_v3 = vld [vmem:[%s4235_s13 + $0x1dc] sm:$0xf0] }
  0x8e   : > { %v3100_v11 = vor.u32 %v3790_v2, %v3097_v3  ;;  %v3164_v2 = vor.u32 %v3807_v48, %v3161_v49  ;;  %v3822_v48 = vld [vmem:[%s4235_s13 + $0x2b8] sm:$0xf0] }
  0x9b   : > { %1837 = vmatmul.bf16.gmra.mxu1 %v2984_v16  ;;  %1926 = vmatmul.bf16.gmra.mxu2 %v2988_v17 }
  0x9c   : > { %2015 = vmatmul.bf16.gmra.mxu3 %v2992_v18 }
  0x9d   : > { %2104 = vmatmul.bf16.gmra.mxu0 %v2996_v19 }
  0xa8   : > { %v4444_v30 = vpop.f32.mrf.mxu1 }
  0xaa   : > { %v4446_v33 = vpop.f32.mrf.mxu0 }
  0xab   : > { %1842 = vmatmul.bf16.gmra.mxu1 %v3020_v28  ;;  %1931 = vmatmul.bf16.gmra.mxu2 %v3024_v29  ;;  %v3139_v28 = vld [vmem:[%s4235_s13 + $0x208] sm:$0xf]  ;;  %v3804_v29 = vld [vmem:[%s4235_s13 + $0x228] sm:$0xf0] }
  0xac   : > { %2020 = vmatmul.bf16.gmra.mxu3 %v3028_v31  ;;  %v3140_v42 = vor.u32 %v3804_v29, %v3139_v28  ;;  %v3197_v28 = vld [vmem:[%s4235_s13 + $0x2ac] sm:$0xf0] }
  0xad   : > { %2109 = vmatmul.bf16.gmra.mxu0 %v3032_v32 }
  0xae   : > { %v4454_v36 = vpop.f32.mrf.mxu2 }
  0xaf   : > { %v4456_v37 = vpop.f32.mrf.mxu3 }
  0xb0   : > { %v4461_v39 = vpop.f32.mrf.mxu1 }
  0xb2   : > { %v4463_v40 = vpop.f32.mrf.mxu0 }
  0xb6   : > { %v4476_v50 = vpop.f32.mrf.mxu2 }
  0xb7   : > { %v4478_v51 = vpop.f32.mrf.mxu3 }
  0xb8   : > { %v4480_v54 = vpop.f32.mrf.mxu1 }
  0xba   : > { %v4482_v57 = vpop.f32.mrf.mxu0 }
  0xbb   : > { %1847 = vmatmul.bf16.gmra.mxu1 %v3056_v52  ;;  %1936 = vmatmul.bf16.gmra.mxu2 %v3060_v53  ;;  %v3167_v52 = vld [vmem:[%s4235_s13 + $0x248] sm:$0xf]  ;;  %v3812_v53 = vld [vmem:[%s4235_s13 + $0x268] sm:$0xf0] }
  0xbc   : > { %2025 = vmatmul.bf16.gmra.mxu3 %v3064_v55  ;;  %v3808_v55 = vld [vmem:[%s4235_s13 + $0x24c] sm:$0xf]  ;;  %v3168_v3 = vor.u32 %v3812_v53, %v3167_v52 }
  0xbd   : > { %2114 = vmatmul.bf16.gmra.mxu0 %v3068_v56  ;;  %v3169_v56 = vld [vmem:[%s4235_s13 + $0x26c] sm:$0xf0] }
  0xbe   : > { %v4484_v58 = vpop.f32.mrf.mxu2  ;;  %v3172_v5 = vor.u32 %v3808_v55, %v3169_v56  ;;  %v3200_v55 = vor.u32 %v3816_v27, %v3197_v28  ;;  %v3247_v27 = vld [vmem:[%s4235_s13 + $0x2e0] sm:$0xf]  ;;  %v3831_v28 = vld [vmem:[%s4235_s13 + $0x300] sm:$0xf0] }
  0xbf   : > { %v4486_v59 = vpop.f32.mrf.mxu3 }
  0xc0   : > { %v4488_v60 = vpop.f32.mrf.mxu1 }
  0xc2   : > { %v4490_v61 = vpop.f32.mrf.mxu0 }
  0xc6   : > { %v4500_v6 = vpop.f32.mrf.mxu2 }
  0xc7   : > { %v4502_v7 = vpop.f32.mrf.mxu3 }
  0xc8   : > { %v4504_v10 = vpop.f32.mrf.mxu1 }
  0xca   : > { %v4506_v13 = vpop.f32.mrf.mxu0 }
  0xcb   : > { %1852 = vmatmul.bf16.gmra.mxu1 %v3092_v8  ;;  %1941 = vmatmul.bf16.gmra.mxu2 %v3096_v9  ;;  %v3176_v8 = vor.u32 %v3813_v63, %v3175_v62 }
  0xcc   : > { %2030 = vmatmul.bf16.gmra.mxu3 %v3100_v11 }
  0xcd   : > { %2119 = vmatmul.bf16.gmra.mxu0 %v3104_v12  ;;  %v3929_v12 = vld [vmem:[%s5035_s1 + $0x190] sm:$0xff] }
  0xce   : > { %v4514_v16 = vpop.f32.mrf.mxu2  ;;  %2264 = vmatpush.bf16.msra.mxu2 %v3929_v12 }
  0xcf   : > { %v4516_v17 = vpop.f32.mrf.mxu3 }
  0xd0   : > { %v4518_v18 = vpop.f32.mrf.mxu1 }
  0xd2   : > { %v4520_v19 = vpop.f32.mrf.mxu0 }
  0xd6   : > { %v4536_v31 = vpop.f32.mrf.mxu2 }
  0xd7   : > { %v4538_v32 = vpop.f32.mrf.mxu3 }
  0xd8   : > { %v4540_v38 = vpop.f32.mrf.mxu1 }
  0xda   : > { %v4542_v43 = vpop.f32.mrf.mxu0 }
  0xdb   : > { %1857 = vmatmul.bf16.gmra.mxu1 %v3128_v34  ;;  %1946 = vmatmul.bf16.gmra.mxu2 %v3132_v35  ;;  %v3203_v34 = vld [vmem:[%s4235_s13 + $0x290] sm:$0xf]  ;;  %v3821_v35 = vld [vmem:[%s4235_s13 + $0x2b0] sm:$0xf0] }
  0xdc   : > { %2035 = vmatmul.bf16.gmra.mxu3 %v3136_v41  ;;  %v3817_v41 = vld [vmem:[%s4235_s13 + $0x294] sm:$0xf]  ;;  %v3204_v56 = vor.u32 %v3821_v35, %v3203_v34 }
  0xdd   : > { %2124 = vmatmul.bf16.gmra.mxu0 %v3140_v42  ;;  %v3205_v42 = vld [vmem:[%s4235_s13 + $0x2b4] sm:$0xf0] }
  0xde   : > { %v4544_v44 = vpop.f32.mrf.mxu2  ;;  %v3208_v63 = vor.u32 %v3817_v41, %v3205_v42 }
  0xdf   : > { %v4546_v45 = vpop.f32.mrf.mxu3 }
  0xe0   : > { %v4548_v46 = vpop.f32.mrf.mxu1 }
  0xe2   : > { %v4550_v47 = vpop.f32.mrf.mxu0 }
  0xe6   : > { %v4560_v0 = vpop.f32.mrf.mxu2 }
  0xe7   : > { %v4562_v1 = vpop.f32.mrf.mxu3 }
  0xe8   : > { %v1823_v4 = vpop.f32.mrf.mxu1 }
  0xe9   : > { %v1824_v9 = vadd.f32 %v1823_v4, %v4446_v33 }
  0xea   : > { %v2090_v11 = vpop.f32.mrf.mxu0 }
  0xeb   : > { %1862 = vmatmul.bf16.gmra.mxu1 %v3164_v2  ;;  %1951 = vmatmul.bf16.gmra.mxu2 %v3168_v3 }
  0xec   : > { %2040 = vmatmul.bf16.gmra.mxu3 %v3172_v5 }
  0xed   : > { %2129 = vmatmul.bf16.gmra.mxu0 %v3176_v8 }
  0xee   : > { %v1912_v15 = vpop.f32.mrf.mxu2 }
  0xef   : > { %v1913_v33 = vadd.f32 %v1912_v15, %v1824_v9  ;;  %v2001_v20 = vpop.f32.mrf.mxu3 }
  0xf0   : > { %v1825_v21 = vpop.f32.mrf.mxu1 }
  0xf1   : > { %v2002_v22 = vadd.f32 %v2001_v20, %v1913_v33  ;;  %v1826_v23 = vadd.f32 %v1825_v21, %v4463_v40  ;;  %v3211_v40 = vld [vmem:[%s4235_s13 + $0x298] sm:$0xf]  ;;  %v3825_v20 = vld [vmem:[%s4235_s13 + $0x2d4] sm:$0xf] }
  0xf2   : > { %v2092_v24 = vpop.f32.mrf.mxu0  ;;  %v3212_v2 = vor.u32 %v3822_v48, %v3211_v40  ;;  %v3233_v21 = vld [vmem:[%s4235_s13 + $0x2f4] sm:$0xf0] }
  0xf3   : > { %v4580_v29 = vadd.f32 %v2090_v11, %v2002_v22  ;;  %v3236_v42 = vor.u32 %v3825_v20, %v3233_v21  ;;  %v3275_v20 = vld [vmem:[%s4235_s13 + $0x320] sm:$0xf]  ;;  %v3839_v21 = vld [vmem:[%s4235_s13 + $0x340] sm:$0xf0] }
  0xf6   : > { %v1914_v49 = vpop.f32.mrf.mxu2 }
  0xf7   : > { %v1915_v52 = vadd.f32 %v1914_v49, %v1826_v23  ;;  %v2003_v53 = vpop.f32.mrf.mxu3  ;;  %v3239_v23 = vld [vmem:[%s4235_s13 + $0x2d8] sm:$0xf]  ;;  %v3244_v49 = vor.u32 %v3826_v25, %v3241_v26  ;;  %v3840_v25 = vld [vmem:[%s4235_s13 + $0x348] sm:$0xf0] }
  0xf8   : > { %v1828_v62 = vpop.f32.mrf.mxu1 }
  0xf9   : > { %v2004_v3 = vadd.f32 %v2003_v53, %v1915_v52  ;;  %v1829_v4 = vadd.f32 %v1828_v62, %v4482_v57  ;;  %v3248_v52 = vor.u32 %v3831_v28, %v3247_v27  ;;  %v3928_v62 = vld [vmem:[%s5035_s1 + $0x188] sm:$0xff] }
  0xfa   : > { %v2095_v5 = vpop.f32.mrf.mxu0  ;;  %2265 = vmatpush.bf16.msra.mxu2 %v3928_v62 }
  0xfb   : > { %1867 = vmatmul.bf16.gmra.mxu1 %v3200_v55  ;;  %1956 = vmatmul.bf16.gmra.mxu2 %v3204_v56  ;;  %v4589_v8 = vadd.f32 %v2092_v24, %v2004_v3  ;;  %v3830_v24 = vld [vmem:[%s4235_s13 + $0x2f8] sm:$0xf0] }
  0xfc   : > { %2045 = vmatmul.bf16.gmra.mxu3 %v3208_v63  ;;  %v3240_v40 = vor.u32 %v3830_v24, %v3239_v23  ;;  %v3936_v63 = vld [vmem:[%s5035_s1 + $0x1c8] sm:$0xff]  ;;  %v3835_v23 = vld [vmem:[%s4235_s13 + $0x324] sm:$0xf] }
  0xfd   : > { %2134 = vmatmul.bf16.gmra.mxu0 %v3212_v2  ;;  %2354 = vmatpush.bf16.msra.mxu3 %v3936_v63  ;;  %v3277_v24 = vld [vmem:[%s4235_s13 + $0x344] sm:$0xf0] }
  0xfe   : > { %v1917_v9 = vpop.f32.mrf.mxu2 }
  0xff   : > { %v1918_v11 = vadd.f32 %v1917_v9, %v1829_v4  ;;  %v2006_v12 = vpop.f32.mrf.mxu3 }
 0x100   : > { %v1830_v14 = vpop.f32.mrf.mxu1 }
 0x101   : > { %v2007_v15 = vadd.f32 %v2006_v12, %v1918_v11  ;;  %v1831_v57 = vadd.f32 %v1830_v14, %v4490_v61  ;;  %v3920_v12 = vld [vmem:[%s5035_s1 + $0x148] sm:$0xff] }
 0x102   : > { %v2097_v33 = vpop.f32.mrf.mxu0  ;;  %v3944_v14 = vld [vmem:[%s5035_s1 + $0x208] sm:$0xff]  ;;  %2176 = vmatpush.bf16.msra.mxu1 %v3920_v12 }
 0x103   : > { %v4594_v22 = vadd.f32 %v2095_v5, %v2007_v15  ;;  %v3834_v15 = vld [vmem:[%s4235_s13 + $0x31c] sm:$0xf]  ;;  %2443 = vmatpush.bf16.msra.mxu0 %v3944_v14  ;;  %v3844_v12 = vld [vmem:[%s4235_s13 + $0x36c] sm:$0xf]  ;;  %v3313_v14 = vld [vmem:[%s4235_s13 + $0x38c] sm:$0xf0] }
 0x106   : > { %v1919_v34 = vpop.f32.mrf.mxu2 }
 0x107   : > { %v1920_v35 = vadd.f32 %v1919_v34, %v1831_v57  ;;  %v2008_v41 = vpop.f32.mrf.mxu3  ;;  %v3269_v57 = vld [vmem:[%s4235_s13 + $0x33c] sm:$0xf0] }
 0x108   : > { %v1833_v48 = vpop.f32.mrf.mxu1  ;;  %v3272_v34 = vor.u32 %v3834_v15, %v3269_v57  ;;  %v3319_v15 = vld [vmem:[%s4235_s13 + $0x370] sm:$0xf]  ;;  %v3849_v57 = vld [vmem:[%s4235_s13 + $0x390] sm:$0xf0] }
 0x109   : > { %v2009_v61 = vadd.f32 %v2008_v41, %v1920_v35  ;;  %v1834_v53 = vadd.f32 %v1833_v48, %v4506_v13  ;;  %v3276_v35 = vor.u32 %v3839_v21, %v3275_v20 }
 0x10a   : > { %v2100_v55 = vpop.f32.mrf.mxu0 }
 0x10b   : > { %1872 = vmatmul.bf16.gmra.mxu1 %v3236_v42  ;;  %1961 = vmatmul.bf16.gmra.mxu2 %v3240_v40  ;;  %v4603_v56 = vadd.f32 %v2097_v33, %v2009_v61  ;;  %v3280_v42 = vor.u32 %v3835_v23, %v3277_v24 }
 0x10c   : > { %2050 = vmatmul.bf16.gmra.mxu3 %v3244_v49 }
 0x10d   : > { %2139 = vmatmul.bf16.gmra.mxu0 %v3248_v52 }
 0x10e   : > { %v1922_v2 = vpop.f32.mrf.mxu2 }
 0x10f   : > { %v1923_v13 = vadd.f32 %v1922_v2, %v1834_v53  ;;  %v2011_v3 = vpop.f32.mrf.mxu3 }
 0x110   : > { %v1835_v4 = vpop.f32.mrf.mxu1 }
 0x111   : > { %v2012_v5 = vadd.f32 %v2011_v3, %v1923_v13  ;;  %v1836_v9 = vadd.f32 %v1835_v4, %v4520_v19  ;;  %v3283_v19 = vld [vmem:[%s4235_s13 + $0x328] sm:$0xf]  ;;  %v3843_v3 = vld [vmem:[%s4235_s13 + $0x364] sm:$0xf] }
 0x112   : > { %v2102_v11 = vpop.f32.mrf.mxu0  ;;  %v3284_v40 = vor.u32 %v3840_v25, %v3283_v19  ;;  %v3305_v4 = vld [vmem:[%s4235_s13 + $0x384] sm:$0xf0] }
 0x113   : > { %v4620_v33 = vadd.f32 %v2100_v55, %v2012_v5  ;;  %v3308_v24 = vor.u32 %v3843_v3, %v3305_v4  ;;  %v3857_v3 = vld [vmem:[%s4235_s13 + $0x3d0] sm:$0xf0] }
 0x114   : > { %v3853_v4 = vld [vmem:[%s4235_s13 + $0x3b4] sm:$0xf] }
 0x116   : > { %v1924_v26 = vpop.f32.mrf.mxu2 }
 0x117   : > { %v1925_v27 = vadd.f32 %v1924_v26, %v1836_v9  ;;  %v2013_v28 = vpop.f32.mrf.mxu3  ;;  %v3311_v9 = vld [vmem:[%s4235_s13 + $0x368] sm:$0xf]  ;;  %v3316_v26 = vor.u32 %v3844_v12, %v3313_v14  ;;  %v3355_v12 = vld [vmem:[%s4235_s13 + $0x3b8] sm:$0xf]  ;;  %v3858_v14 = vld [vmem:[%s4235_s13 + $0x3d8] sm:$0xf0] }
 0x118   : > { %v1838_v41 = vpop.f32.mrf.mxu1 }
 0x119   : > { %v2014_v48 = vadd.f32 %v2013_v28, %v1925_v27  ;;  %v1839_v49 = vadd.f32 %v1838_v41, %v4542_v43  ;;  %v3320_v27 = vor.u32 %v3849_v57, %v3319_v15  ;;  %v3935_v41 = vld [vmem:[%s5035_s1 + $0x1c0] sm:$0xff] }
 0x11a   : > { %v2105_v52 = vpop.f32.mrf.mxu0  ;;  %2355 = vmatpush.bf16.msra.mxu3 %v3935_v41 }
 0x11b   : > { %1877 = vmatmul.bf16.gmra.mxu1 %v3272_v34  ;;  %1966 = vmatmul.bf16.gmra.mxu2 %v3276_v35  ;;  %v4629_v61 = vadd.f32 %v2102_v11, %v2014_v48  ;;  %v3848_v11 = vld [vmem:[%s4235_s13 + $0x388] sm:$0xf0]  ;;  %v3927_v35 = vld [vmem:[%s5035_s1 + $0x180] sm:$0xff] }
 0x11c   : > { %2055 = vmatmul.bf16.gmra.mxu3 %v3280_v42  ;;  %v3312_v19 = vor.u32 %v3848_v11, %v3311_v9  ;;  %2266 = vmatpush.bf16.msra.mxu2 %v3927_v35  ;;  %v3349_v11 = vld [vmem:[%s4235_s13 + $0x3d4] sm:$0xf0] }
 0x11d   : > { %2144 = vmatmul.bf16.gmra.mxu0 %v3284_v40 }
 0x11e   : > { %v1927_v53 = vpop.f32.mrf.mxu2 }
 0x11f   : > { %v1928_v55 = vadd.f32 %v1927_v53, %v1839_v49  ;;  %v2016_v62 = vpop.f32.mrf.mxu3 }
 0x120   : > { %v1840_v63 = vpop.f32.mrf.mxu1 }
 0x121   : > { %v2017_v2 = vadd.f32 %v2016_v62, %v1928_v55  ;;  %v1841_v43 = vadd.f32 %v1840_v63, %v4550_v47  ;;  %v3919_v62 = vld [vmem:[%s5035_s1 + $0x140] sm:$0xff]  ;;  %v3852_v63 = vld [vmem:[%s4235_s13 + $0x3ac] sm:$0xf] }
 0x122   : > { %v2107_v13 = vpop.f32.mrf.mxu0  ;;  %2177 = vmatpush.bf16.msra.mxu1 %v3919_v62  ;;  %v3383_v62 = vld [vmem:[%s4235_s13 + $0x3f8] sm:$0xf] }
 0x123   : > { %v4634_v5 = vadd.f32 %v2105_v52, %v2017_v2  ;;  %v3341_v2 = vld [vmem:[%s4235_s13 + $0x3cc] sm:$0xf0] }
 0x126   : > { %v1929_v20 = vpop.f32.mrf.mxu2 }
 0x127   : > { %v1930_v21 = vadd.f32 %v1929_v20, %v1841_v43  ;;  %v2018_v23 = vpop.f32.mrf.mxu3 }
 0x128   : > { %v1843_v25 = vpop.f32.mrf.mxu1 }
 0x129   : > { %v2019_v47 = vadd.f32 %v2018_v23, %v1930_v21  ;;  %v1844_v42 = vadd.f32 %v1843_v25, %v4444_v30  ;;  %v3943_v30 = vld [vmem:[%s5035_s1 + $0x200] sm:$0xff]  ;;  %v3344_v21 = vor.u32 %v3852_v63, %v3341_v2  ;;  %v3356_v25 = vor.u32 %v3858_v14, %v3355_v12 }
 0x12a   : > { %v2110_v28 = vpop.f32.mrf.mxu0  ;;  %2444 = vmatpush.bf16.msra.mxu0 %v3943_v30  ;;  %v3862_v30 = vld [vmem:[%s4235_s13 + $0x3fc] sm:$0xf]  ;;  %v3385_v2 = vld [vmem:[%s4235_s13 + $0x41c] sm:$0xf0] }
 0x12b   : > { %1882 = vmatmul.bf16.gmra.mxu1 %v3308_v24  ;;  %1971 = vmatmul.bf16.gmra.mxu2 %v3312_v19  ;;  %v4642_v34 = vadd.f32 %v2107_v13, %v2019_v47  ;;  %v3347_v13 = vld [vmem:[%s4235_s13 + $0x3b0] sm:$0xf]  ;;  %v3352_v19 = vor.u32 %v3853_v4, %v3349_v11 }
 0x12c   : > { %2060 = vmatmul.bf16.gmra.mxu3 %v3316_v26  ;;  %v3348_v23 = vor.u32 %v3857_v3, %v3347_v13  ;;  %v3391_v13 = vld [vmem:[%s4235_s13 + $0x400] sm:$0xf]  ;;  %v3867_v3 = vld [vmem:[%s4235_s13 + $0x420] sm:$0xf0] }
 0x12d   : > { %2149 = vmatmul.bf16.gmra.mxu0 %v3320_v27 }
 0x12e   : > { %v1932_v40 = vpop.f32.mrf.mxu2 }
 0x12f   : > { %v1933_v48 = vadd.f32 %v1932_v40, %v1844_v42  ;;  %v2021_v49 = vpop.f32.mrf.mxu3 }
 0x130   : > { %v1845_v52 = vpop.f32.mrf.mxu1 }
 0x131   : > { %v2022_v53 = vadd.f32 %v2021_v49, %v1933_v48  ;;  %v1846_v9 = vadd.f32 %v1845_v52, %v4461_v39  ;;  %v3861_v49 = vld [vmem:[%s4235_s13 + $0x3f4] sm:$0xf]  ;;  %v3377_v52 = vld [vmem:[%s4235_s13 + $0x414] sm:$0xf0] }
 0x132   : > { %v2112_v55 = vpop.f32.mrf.mxu0  ;;  %v3380_v11 = vor.u32 %v3861_v49, %v3377_v52  ;;  %v3421_v52 = vld [vmem:[%s4235_s13 + $0x464] sm:$0xf0] }
 0x133   : > { %v4659_v43 = vadd.f32 %v2110_v28, %v2022_v53 }
 0x136   : > { %v1934_v15 = vpop.f32.mrf.mxu2 }
 0x137   : > { %v1935_v57 = vadd.f32 %v1934_v15, %v1846_v9  ;;  %v2023_v20 = vpop.f32.mrf.mxu3  ;;  %v3388_v15 = vor.u32 %v3862_v30, %v3385_v2 }
 0x138   : > { %v1848_v24 = vpop.f32.mrf.mxu1 }
 0x139   : > { %v2024_v26 = vadd.f32 %v2023_v20, %v1935_v57  ;;  %v1849_v47 = vadd.f32 %v1848_v24, %v4480_v54  ;;  %v3392_v57 = vor.u32 %v3867_v3, %v3391_v13 }
 0x13a   : > { %v2115_v27 = vpop.f32.mrf.mxu0 }
 0x13b   : > { %1887 = vmatmul.bf16.gmra.mxu1 %v3344_v21  ;;  %1976 = vmatmul.bf16.gmra.mxu2 %v3348_v23  ;;  %v4668_v39 = vadd.f32 %v2112_v55, %v2024_v26  ;;  %v3866_v55 = vld [vmem:[%s4235_s13 + $0x418] sm:$0xf0] }
 0x13c   : > { %2065 = vmatmul.bf16.gmra.mxu3 %v3352_v19  ;;  %v3384_v12 = vor.u32 %v3866_v55, %v3383_v62  ;;  %v3427_v62 = vld [vmem:[%s4235_s13 + $0x448] sm:$0xf]  ;;  %v3876_v55 = vld [vmem:[%s4235_s13 + $0x468] sm:$0xf0] }
 0x13d   : > { %2154 = vmatmul.bf16.gmra.mxu0 %v3356_v25 }
 0x13e   : > { %v1937_v28 = vpop.f32.mrf.mxu2 }
 0x13f   : > { %v1938_v35 = vadd.f32 %v1937_v28, %v1849_v47  ;;  %v2026_v41 = vpop.f32.mrf.mxu3  ;;  %v3870_v28 = vld [vmem:[%s4235_s13 + $0x43c] sm:$0xf] }
 0x140   : > { %v1850_v42 = vpop.f32.mrf.mxu1 }
 0x141   : > { %v2027_v40 = vadd.f32 %v2026_v41, %v1938_v35  ;;  %v1851_v63 = vadd.f32 %v1850_v42, %v4488_v60  ;;  %v3413_v35 = vld [vmem:[%s4235_s13 + $0x45c] sm:$0xf0] }
 0x142   : > { %v2117_v48 = vpop.f32.mrf.mxu0  ;;  %v3419_v42 = vld [vmem:[%s4235_s13 + $0x440] sm:$0xf]  ;;  %v3416_v2 = vor.u32 %v3870_v28, %v3413_v35 }
 0x143   : > { %v4673_v53 = vadd.f32 %v2115_v27, %v2027_v40  ;;  %v3875_v40 = vld [vmem:[%s4235_s13 + $0x460] sm:$0xf0]  ;;  %v2897_v35 = vld [vmem:[%s4235_s13 + $0x3c] sm:$0xf0] }
 0x144   : > { %v3420_v13 = vor.u32 %v3875_v40, %v3419_v42  ;;  %v2903_v42 = vld [vmem:[%s4235_s13 + $0x20] sm:$0xf]  ;;  %v3743_v40 = vld [vmem:[%s4235_s13 + $0x40] sm:$0xf0] }
 0x146   : > { %v1939_v54 = vpop.f32.mrf.mxu2 }
 0x147   : > { %v1940_v4 = vadd.f32 %v1939_v54, %v1851_v63  ;;  %v2028_v9 = vpop.f32.mrf.mxu3 }
 0x148   : > { %v1853_v14 = vpop.f32.mrf.mxu1 }
 0x149   : > { %v2029_v20 = vadd.f32 %v2028_v9, %v1940_v4  ;;  %v1854_v23 = vadd.f32 %v1853_v14, %v4504_v10  ;;  %v3428_v4 = vor.u32 %v3876_v55, %v3427_v62 }
 0x14a   : > { %v2120_v21 = vpop.f32.mrf.mxu0 }
 0x14b   : > { %1892 = vmatmul.bf16.gmra.mxu1 %v3380_v11  ;;  %1981 = vmatmul.bf16.gmra.mxu2 %v3384_v12  ;;  %v4682_v60 = vadd.f32 %v2117_v48, %v2029_v20  ;;  %v3871_v48 = vld [vmem:[%s4235_s13 + $0x444] sm:$0xf] }
 0x14c   : > { %2070 = vmatmul.bf16.gmra.mxu3 %v3388_v15  ;;  %v3424_v54 = vor.u32 %v3871_v48, %v3421_v52 }
 0x14d   : > { %2159 = vmatmul.bf16.gmra.mxu0 %v3392_v57 }
 0x14e   : > { %v1942_v24 = vpop.f32.mrf.mxu2 }
 0x14f   : > { %v1943_v19 = vadd.f32 %v1942_v24, %v1854_v23  ;;  %v2031_v25 = vpop.f32.mrf.mxu3  ;;  %v3737_v24 = vld [vmem:[%s4235_s13 + $0x14] sm:$0xf] }
 0x150   : > { %v1855_v26 = vpop.f32.mrf.mxu1 }
 0x151   : > { %v2032_v27 = vadd.f32 %v2031_v25, %v1943_v19  ;;  %v1856_v49 = vadd.f32 %v1855_v26, %v4518_v18  ;;  %v2889_v19 = vld [vmem:[%s4235_s13 + $0x34] sm:$0xf0] }
 0x152   : > { %v2122_v47 = vpop.f32.mrf.mxu0  ;;  %v2895_v26 = vld [vmem:[%s4235_s13 + $0x18] sm:$0xf]  ;;  %v2892_v52 = vor.u32 %v3737_v24, %v2889_v19  ;;  %v2933_v19 = vld [vmem:[%s4235_s13 + $0x84] sm:$0xf0] }
 0x153   : > { %v4687_v41 = vadd.f32 %v2120_v21, %v2032_v27  ;;  %v3742_v27 = vld [vmem:[%s4235_s13 + $0x38] sm:$0xf0] }
 0x154   : > { %v2896_v62 = vor.u32 %v3742_v27, %v2895_v26  ;;  %v2939_v26 = vld [vmem:[%s4235_s13 + $0x68] sm:$0xf]  ;;  %v3752_v27 = vld [vmem:[%s4235_s13 + $0x88] sm:$0xf0] }
 0x156   : > { %v1944_v10 = vpop.f32.mrf.mxu2 }
 0x157   : > { %v1945_v30 = vadd.f32 %v1944_v10, %v1856_v49  ;;  %v2033_v63 = vpop.f32.mrf.mxu3 }
 0x158   : > { %v1858_v3 = vpop.f32.mrf.mxu1 }
 0x159   : > { %v2034_v9 = vadd.f32 %v2033_v63, %v1945_v30  ;;  %v1859_v12 = vadd.f32 %v1858_v3, %v4540_v38  ;;  %v2904_v30 = vor.u32 %v3743_v40, %v2903_v42 }
 0x15a   : > { %v2125_v11 = vpop.f32.mrf.mxu0 }
 0x15b   : > { %1897 = vmatmul.bf16.gmra.mxu1 %v3416_v2  ;;  %1986 = vmatmul.bf16.gmra.mxu2 %v3420_v13  ;;  %v4696_v18 = vadd.f32 %v2122_v47, %v2034_v9  ;;  %v3738_v47 = vld [vmem:[%s4235_s13 + $0x1c] sm:$0xf] }
 0x15c   : > { %2075 = vmatmul.bf16.gmra.mxu3 %v3424_v54  ;;  %v2900_v10 = vor.u32 %v3738_v47, %v2897_v35 }
 0x15d   : > { %2164 = vmatmul.bf16.gmra.mxu0 %v3428_v4 }
 0x15e   : > { %v1947_v14 = vpop.f32.mrf.mxu2 }
 0x15f   : > { %v1948_v15 = vadd.f32 %v1947_v14, %v1859_v12  ;;  %v2036_v57 = vpop.f32.mrf.mxu3  ;;  %v3746_v14 = vld [vmem:[%s4235_s13 + $0x5c] sm:$0xf] }
 0x160   : > { %v1860_v20 = vpop.f32.mrf.mxu1 }
 0x161   : > { %v2037_v21 = vadd.f32 %v2036_v57, %v1948_v15  ;;  %v1861_v28 = vadd.f32 %v1860_v20, %v4548_v46  ;;  %v2925_v15 = vld [vmem:[%s4235_s13 + $0x7c] sm:$0xf0] }
 0x162   : > { %v2127_v23 = vpop.f32.mrf.mxu0  ;;  %v2931_v20 = vld [vmem:[%s4235_s13 + $0x60] sm:$0xf]  ;;  %v2928_v35 = vor.u32 %v3746_v14, %v2925_v15  ;;  %v2969_v15 = vld [vmem:[%s4235_s13 + $0xcc] sm:$0xf0] }
 0x163   : > { %v4701_v25 = vadd.f32 %v2125_v11, %v2037_v21  ;;  %v3751_v21 = vld [vmem:[%s4235_s13 + $0x80] sm:$0xf0] }
 0x164   : > { %v2932_v42 = vor.u32 %v3751_v21, %v2931_v20  ;;  %v2975_v20 = vld [vmem:[%s4235_s13 + $0xb0] sm:$0xf]  ;;  %v3761_v21 = vld [vmem:[%s4235_s13 + $0xd0] sm:$0xf0] }
 0x166   : > { %v1949_v38 = vpop.f32.mrf.mxu2 }
 0x167   : > { %v1950_v48 = vadd.f32 %v1949_v38, %v1861_v28  ;;  %v2038_v49 = vpop.f32.mrf.mxu3 }
 0x168   : > { %v1863_v55 = vpop.f32.mrf.mxu1 }
 0x169   : > { %v2039_v63 = vadd.f32 %v2038_v49, %v1950_v48  ;;  %v1864_v13 = vadd.f32 %v1863_v55, %v4454_v36  ;;  %v2940_v48 = vor.u32 %v3752_v27, %v2939_v26 }
 0x16a   : > { %v2130_v2 = vpop.f32.mrf.mxu0 }
 0x16b   : > { %2178 = vmatmul.bf16.vlgmr.msra.gmra.mxu1 %v2892_v52  ;;  %2267 = vmatmul.bf16.vlgmr.msra.gmra.mxu2 %v2896_v62  ;;  %v4710_v46 = vadd.f32 %v2127_v23, %v2039_v63  ;;  %v3747_v23 = vld [vmem:[%s4235_s13 + $0x64] sm:$0xf] }
 0x16c   : > { %2356 = vmatmul.bf16.vlgmr.msra.gmra.mxu3 %v2900_v10  ;;  %v2936_v38 = vor.u32 %v3747_v23, %v2933_v19 }
 0x16d   : > { %2445 = vmatmul.bf16.vlgmr.msra.gmra.mxu0 %v2904_v30 }
 0x16e   : > { %v1952_v3 = vpop.f32.mrf.mxu2 }
 0x16f   : > { %v1953_v54 = vadd.f32 %v1952_v3, %v1864_v13  ;;  %v2041_v4 = vpop.f32.mrf.mxu3  ;;  %v3755_v3 = vld [vmem:[%s4235_s13 + $0xa4] sm:$0xf] }
 0x170   : > { %v1865_v9 = vpop.f32.mrf.mxu1 }
 0x171   : > { %v2042_v11 = vadd.f32 %v2041_v4, %v1953_v54  ;;  %v1866_v24 = vadd.f32 %v1865_v9, %v4476_v50  ;;  %v2961_v54 = vld [vmem:[%s4235_s13 + $0xc4] sm:$0xf0] }
 0x172   : > { %v2132_v12 = vpop.f32.mrf.mxu0  ;;  %v2967_v9 = vld [vmem:[%s4235_s13 + $0xa8] sm:$0xf]  ;;  %v2964_v19 = vor.u32 %v3755_v3, %v2961_v54  ;;  %v3005_v54 = vld [vmem:[%s4235_s13 + $0x114] sm:$0xf0] }
 0x173   : > { %v4715_v57 = vadd.f32 %v2130_v2, %v2042_v11  ;;  %v3760_v11 = vld [vmem:[%s4235_s13 + $0xc8] sm:$0xf0] }
 0x174   : > { %v2968_v26 = vor.u32 %v3760_v11, %v2967_v9  ;;  %v3011_v9 = vld [vmem:[%s4235_s13 + $0xf8] sm:$0xf]  ;;  %v3770_v11 = vld [vmem:[%s4235_s13 + $0x118] sm:$0xf0] }
 0x176   : > { %v1954_v36 = vpop.f32.mrf.mxu2 }
 0x177   : > { %v1955_v47 = vadd.f32 %v1954_v36, %v1866_v24  ;;  %v2043_v28 = vpop.f32.mrf.mxu3 }
 0x178   : > { %v1868_v40 = vpop.f32.mrf.mxu1 }
 0x179   : > { %v2044_v49 = vadd.f32 %v2043_v28, %v1955_v47  ;;  %v1869_v62 = vadd.f32 %v1868_v40, %v4484_v58  ;;  %v2976_v47 = vor.u32 %v3761_v21, %v2975_v20 }
 0x17a   : > { %v2135_v52 = vpop.f32.mrf.mxu0 }
 0x17b   : > { %2183 = vmatmul.bf16.gmra.mxu1 %v2928_v35  ;;  %2272 = vmatmul.bf16.gmra.mxu2 %v2932_v42  ;;  %v4724_v50 = vadd.f32 %v2132_v12, %v2044_v49  ;;  %v3756_v12 = vld [vmem:[%s4235_s13 + $0xac] sm:$0xf] }
 0x17c   : > { %2361 = vmatmul.bf16.gmra.mxu3 %v2936_v38  ;;  %v2972_v36 = vor.u32 %v3756_v12, %v2969_v15 }
 0x17d   : > { %2450 = vmatmul.bf16.gmra.mxu0 %v2940_v48 }
 0x17e   : > { %v1957_v55 = vpop.f32.mrf.mxu2 }
 0x17f   : > { %v1958_v10 = vadd.f32 %v1957_v55, %v1869_v62  ;;  %v2046_v30 = vpop.f32.mrf.mxu3  ;;  %v3764_v55 = vld [vmem:[%s4235_s13 + $0xec] sm:$0xf] }
 0x180   : > { %v1870_v63 = vpop.f32.mrf.mxu1 }
 0x181   : > { %v2047_v2 = vadd.f32 %v2046_v30, %v1958_v10  ;;  %v1871_v14 = vadd.f32 %v1870_v63, %v4500_v6  ;;  %v2997_v10 = vld [vmem:[%s4235_s13 + $0x10c] sm:$0xf0] }
 0x182   : > { %v2137_v13 = vpop.f32.mrf.mxu0  ;;  %v3003_v63 = vld [vmem:[%s4235_s13 + $0xf0] sm:$0xf]  ;;  %v3000_v15 = vor.u32 %v3764_v55, %v2997_v10  ;;  %v3041_v10 = vld [vmem:[%s4235_s13 + $0x15c] sm:$0xf0] }
 0x183   : > { %v4729_v4 = vadd.f32 %v2135_v52, %v2047_v2  ;;  %v3769_v2 = vld [vmem:[%s4235_s13 + $0x110] sm:$0xf0] }
 0x184   : > { %v3004_v20 = vor.u32 %v3769_v2, %v3003_v63  ;;  %v3047_v63 = vld [vmem:[%s4235_s13 + $0x140] sm:$0xf]  ;;  %v3779_v2 = vld [vmem:[%s4235_s13 + $0x160] sm:$0xf0] }
 0x186   : > { %v1959_v58 = vpop.f32.mrf.mxu2 }
 0x187   : > { %v1960_v23 = vadd.f32 %v1959_v58, %v1871_v14  ;;  %v2048_v24 = vpop.f32.mrf.mxu3 }
 0x188   : > { %v1873_v27 = vpop.f32.mrf.mxu1 }
 0x189   : > { %v2049_v28 = vadd.f32 %v2048_v24, %v1960_v23  ;;  %v1874_v42 = vadd.f32 %v1873_v27, %v4514_v16  ;;  %v3012_v23 = vor.u32 %v3770_v11, %v3011_v9 }
 0x18a   : > { %v2140_v35 = vpop.f32.mrf.mxu0 }
 0x18b   : > { %2188 = vmatmul.bf16.gmra.mxu1 %v2964_v19  ;;  %2277 = vmatmul.bf16.gmra.mxu2 %v2968_v26  ;;  %v4738_v6 = vadd.f32 %v2137_v13, %v2049_v28  ;;  %v3765_v13 = vld [vmem:[%s4235_s13 + $0xf4] sm:$0xf] }
 0x18c   : > { %2366 = vmatmul.bf16.gmra.mxu3 %v2972_v36  ;;  %v3008_v58 = vor.u32 %v3765_v13, %v3005_v54 }
 0x18d   : > { %2455 = vmatmul.bf16.gmra.mxu0 %v2976_v47 }
 0x18e   : > { %v1962_v40 = vpop.f32.mrf.mxu2 }
 0x18f   : > { %v1963_v38 = vadd.f32 %v1962_v40, %v1874_v42  ;;  %v2051_v48 = vpop.f32.mrf.mxu3  ;;  %v3773_v40 = vld [vmem:[%s4235_s13 + $0x134] sm:$0xf] }
 0x190   : > { %v1875_v49 = vpop.f32.mrf.mxu1 }
 0x191   : > { %v2052_v52 = vadd.f32 %v2051_v48, %v1963_v38  ;;  %v1876_v3 = vadd.f32 %v1875_v49, %v4536_v31  ;;  %v3033_v38 = vld [vmem:[%s4235_s13 + $0x154] sm:$0xf0] }
 0x192   : > { %v2142_v62 = vpop.f32.mrf.mxu0  ;;  %v3039_v49 = vld [vmem:[%s4235_s13 + $0x138] sm:$0xf]  ;;  %v3036_v54 = vor.u32 %v3773_v40, %v3033_v38  ;;  %v3077_v38 = vld [vmem:[%s4235_s13 + $0x1a4] sm:$0xf0] }
 0x193   : > { %v4743_v30 = vadd.f32 %v2140_v35, %v2052_v52  ;;  %v3778_v52 = vld [vmem:[%s4235_s13 + $0x158] sm:$0xf0] }
 0x194   : > { %v3040_v9 = vor.u32 %v3778_v52, %v3039_v49  ;;  %v3083_v49 = vld [vmem:[%s4235_s13 + $0x188] sm:$0xf]  ;;  %v3788_v52 = vld [vmem:[%s4235_s13 + $0x1a8] sm:$0xf0] }
 0x196   : > { %v1964_v16 = vpop.f32.mrf.mxu2 }
 0x197   : > { %v1965_v12 = vadd.f32 %v1964_v16, %v1876_v3  ;;  %v2053_v14 = vpop.f32.mrf.mxu3 }
 0x198   : > { %v1878_v21 = vpop.f32.mrf.mxu1 }
 0x199   : > { %v2054_v24 = vadd.f32 %v2053_v14, %v1965_v12  ;;  %v1879_v26 = vadd.f32 %v1878_v21, %v4544_v44  ;;  %v3048_v12 = vor.u32 %v3779_v2, %v3047_v63 }
 0x19a   : > { %v2145_v19 = vpop.f32.mrf.mxu0 }
 0x19b   : > { %2193 = vmatmul.bf16.gmra.mxu1 %v3000_v15  ;;  %2282 = vmatmul.bf16.gmra.mxu2 %v3004_v20  ;;  %v4752_v31 = vadd.f32 %v2142_v62, %v2054_v24  ;;  %v3774_v62 = vld [vmem:[%s4235_s13 + $0x13c] sm:$0xf] }
 0x19c   : > { %2371 = vmatmul.bf16.gmra.mxu3 %v3008_v58  ;;  %v3044_v16 = vor.u32 %v3774_v62, %v3041_v10 }
 0x19d   : > { %2460 = vmatmul.bf16.gmra.mxu0 %v3012_v23 }
 0x19e   : > { %v1967_v27 = vpop.f32.mrf.mxu2 }
 0x19f   : > { %v1968_v36 = vadd.f32 %v1967_v27, %v1879_v26  ;;  %v2056_v47 = vpop.f32.mrf.mxu3  ;;  %v3782_v27 = vld [vmem:[%s4235_s13 + $0x17c] sm:$0xf] }
 0x1a0   : > { %v1880_v28 = vpop.f32.mrf.mxu1 }
 0x1a1   : > { %v2057_v35 = vadd.f32 %v2056_v47, %v1968_v36  ;;  %v1881_v55 = vadd.f32 %v1880_v28, %v4560_v0  ;;  %v3069_v36 = vld [vmem:[%s4235_s13 + $0x19c] sm:$0xf0] }
 0x1a2   : > { %v2147_v42 = vpop.f32.mrf.mxu0  ;;  %v3075_v28 = vld [vmem:[%s4235_s13 + $0x180] sm:$0xf]  ;;  %v3072_v10 = vor.u32 %v3782_v27, %v3069_v36  ;;  %v3113_v36 = vld [vmem:[%s4235_s13 + $0x1ec] sm:$0xf0] }
 0x1a3   : > { %v4757_v48 = vadd.f32 %v2145_v19, %v2057_v35  ;;  %v3787_v35 = vld [vmem:[%s4235_s13 + $0x1a0] sm:$0xf0] }
 0x1a4   : > { %v3076_v63 = vor.u32 %v3787_v35, %v3075_v28  ;;  %v3119_v28 = vld [vmem:[%s4235_s13 + $0x1d0] sm:$0xf]  ;;  %v3797_v35 = vld [vmem:[%s4235_s13 + $0x1f0] sm:$0xf0] }
 0x1a6   : > { %v1969_v44 = vpop.f32.mrf.mxu2 }
 0x1a7   : > { %v1970_v13 = vadd.f32 %v1969_v44, %v1881_v55  ;;  %v2058_v3 = vpop.f32.mrf.mxu3 }
 0x1a8   : > { %v1883_v11 = vpop.f32.mrf.mxu1 }
 0x1a9   : > { %v2059_v14 = vadd.f32 %v2058_v3, %v1970_v13  ;;  %v1884_v20 = vadd.f32 %v1883_v11, %v4456_v37  ;;  %v3084_v13 = vor.u32 %v3788_v52, %v3083_v49 }
 0x1aa   : > { %v2150_v15 = vpop.f32.mrf.mxu0 }
 0x1ab   : > { %2198 = vmatmul.bf16.gmra.mxu1 %v3036_v54  ;;  %2287 = vmatmul.bf16.gmra.mxu2 %v3040_v9  ;;  %v4766_v0 = vadd.f32 %v2147_v42, %v2059_v14  ;;  %v3783_v42 = vld [vmem:[%s4235_s13 + $0x184] sm:$0xf] }
 0x1ac   : > { %2376 = vmatmul.bf16.gmra.mxu3 %v3044_v16  ;;  %v3080_v44 = vor.u32 %v3783_v42, %v3077_v38 }
 0x1ad   : > { %2465 = vmatmul.bf16.gmra.mxu0 %v3048_v12 }
 0x1ae   : > { %v1972_v21 = vpop.f32.mrf.mxu2 }
 0x1af   : > { %v1973_v58 = vadd.f32 %v1972_v21, %v1884_v20  ;;  %v2061_v23 = vpop.f32.mrf.mxu3  ;;  %v3791_v21 = vld [vmem:[%s4235_s13 + $0x1c4] sm:$0xf] }
 0x1b0   : > { %v1885_v24 = vpop.f32.mrf.mxu1 }
 0x1b1   : > { %v2062_v19 = vadd.f32 %v2061_v23, %v1973_v58  ;;  %v1886_v40 = vadd.f32 %v1885_v24, %v4478_v51  ;;  %v3105_v58 = vld [vmem:[%s4235_s13 + $0x1e4] sm:$0xf0] }
 0x1b2   : > { %v2152_v26 = vpop.f32.mrf.mxu0  ;;  %v3111_v24 = vld [vmem:[%s4235_s13 + $0x1c8] sm:$0xf]  ;;  %v3108_v38 = vor.u32 %v3791_v21, %v3105_v58  ;;  %v3149_v58 = vld [vmem:[%s4235_s13 + $0x234] sm:$0xf0] }
 0x1b3   : > { %v4771_v47 = vadd.f32 %v2150_v15, %v2062_v19  ;;  %v3796_v19 = vld [vmem:[%s4235_s13 + $0x1e8] sm:$0xf0] }
 0x1b4   : > { %v3112_v49 = vor.u32 %v3796_v19, %v3111_v24  ;;  %v3155_v24 = vld [vmem:[%s4235_s13 + $0x218] sm:$0xf]  ;;  %v3806_v19 = vld [vmem:[%s4235_s13 + $0x238] sm:$0xf0] }
 0x1b6   : > { %v1974_v37 = vpop.f32.mrf.mxu2 }
 0x1b7   : > { %v1975_v62 = vadd.f32 %v1974_v37, %v1886_v40  ;;  %v2063_v55 = vpop.f32.mrf.mxu3 }
 0x1b8   : > { %v1888_v2 = vpop.f32.mrf.mxu1 }
 0x1b9   : > { %v2064_v3 = vadd.f32 %v2063_v55, %v1975_v62  ;;  %v1889_v9 = vadd.f32 %v1888_v2, %v4486_v59  ;;  %v3120_v62 = vor.u32 %v3797_v35, %v3119_v28 }
 0x1ba   : > { %v2155_v54 = vpop.f32.mrf.mxu0 }
 0x1bb   : > { %2203 = vmatmul.bf16.gmra.mxu1 %v3072_v10  ;;  %2292 = vmatmul.bf16.gmra.mxu2 %v3076_v63  ;;  %v4780_v51 = vadd.f32 %v2152_v26, %v2064_v3  ;;  %v3792_v26 = vld [vmem:[%s4235_s13 + $0x1cc] sm:$0xf] }
 0x1bc   : > { %2381 = vmatmul.bf16.gmra.mxu3 %v3080_v44  ;;  %v3116_v37 = vor.u32 %v3792_v26, %v3113_v36 }
 0x1bd   : > { %2470 = vmatmul.bf16.gmra.mxu0 %v3084_v13 }
 0x1be   : > { %v1977_v11 = vpop.f32.mrf.mxu2 }
 0x1bf   : > { %v1978_v16 = vadd.f32 %v1977_v11, %v1889_v9  ;;  %v2066_v12 = vpop.f32.mrf.mxu3  ;;  %v3800_v11 = vld [vmem:[%s4235_s13 + $0x20c] sm:$0xf] }
 0x1c0   : > { %v1890_v14 = vpop.f32.mrf.mxu1 }
 0x1c1   : > { %v2067_v15 = vadd.f32 %v2066_v12, %v1978_v16  ;;  %v1891_v27 = vadd.f32 %v1890_v14, %v4502_v7  ;;  %v3141_v16 = vld [vmem:[%s4235_s13 + $0x22c] sm:$0xf0] }
 0x1c2   : > { %v2157_v20 = vpop.f32.mrf.mxu0  ;;  %v3147_v14 = vld [vmem:[%s4235_s13 + $0x210] sm:$0xf]  ;;  %v3144_v36 = vor.u32 %v3800_v11, %v3141_v16  ;;  %v3185_v16 = vld [vmem:[%s4235_s13 + $0x27c] sm:$0xf0] }
 0x1c3   : > { %v4785_v23 = vadd.f32 %v2155_v54, %v2067_v15  ;;  %v3805_v15 = vld [vmem:[%s4235_s13 + $0x230] sm:$0xf0] }
 0x1c4   : > { %v3148_v28 = vor.u32 %v3805_v15, %v3147_v14  ;;  %v3191_v14 = vld [vmem:[%s4235_s13 + $0x260] sm:$0xf]  ;;  %v3815_v15 = vld [vmem:[%s4235_s13 + $0x280] sm:$0xf0] }
 0x1c6   : > { %v1979_v59 = vpop.f32.mrf.mxu2 }
 0x1c7   : > { %v1980_v42 = vadd.f32 %v1979_v59, %v1891_v27  ;;  %v2068_v40 = vpop.f32.mrf.mxu3 }
 0x1c8   : > { %v1893_v52 = vpop.f32.mrf.mxu1 }
 0x1c9   : > { %v2069_v55 = vadd.f32 %v2068_v40, %v1980_v42  ;;  %v1894_v63 = vadd.f32 %v1893_v52, %v4516_v17  ;;  %v3156_v42 = vor.u32 %v3806_v19, %v3155_v24 }
 0x1ca   : > { %v2160_v10 = vpop.f32.mrf.mxu0 }
 0x1cb   : > { %2208 = vmatmul.bf16.gmra.mxu1 %v3108_v38  ;;  %2297 = vmatmul.bf16.gmra.mxu2 %v3112_v49  ;;  %v4794_v7 = vadd.f32 %v2157_v20, %v2069_v55  ;;  %v3801_v20 = vld [vmem:[%s4235_s13 + $0x214] sm:$0xf] }
 0x1cc   : > { %2386 = vmatmul.bf16.gmra.mxu3 %v3116_v37  ;;  %v3152_v59 = vor.u32 %v3801_v20, %v3149_v58 }
 0x1cd   : > { %2475 = vmatmul.bf16.gmra.mxu0 %v3120_v62 }
 0x1ce   : > { %v1982_v2 = vpop.f32.mrf.mxu2 }
 0x1cf   : > { %v1983_v44 = vadd.f32 %v1982_v2, %v1894_v63  ;;  %v2071_v13 = vpop.f32.mrf.mxu3  ;;  %v3809_v2 = vld [vmem:[%s4235_s13 + $0x254] sm:$0xf] }
 0x1d0   : > { %v1895_v3 = vpop.f32.mrf.mxu1 }
 0x1d1   : > { %v2072_v54 = vadd.f32 %v2071_v13, %v1983_v44  ;;  %v1896_v21 = vadd.f32 %v1895_v3, %v4538_v32  ;;  %v3177_v44 = vld [vmem:[%s4235_s13 + $0x274] sm:$0xf0] }
 0x1d2   : > { %v2162_v9 = vpop.f32.mrf.mxu0  ;;  %v3183_v3 = vld [vmem:[%s4235_s13 + $0x258] sm:$0xf]  ;;  %v3180_v58 = vor.u32 %v3809_v2, %v3177_v44  ;;  %v3221_v44 = vld [vmem:[%s4235_s13 + $0x2c4] sm:$0xf0] }
 0x1d3   : > { %v4799_v12 = vadd.f32 %v2160_v10, %v2072_v54  ;;  %v3814_v54 = vld [vmem:[%s4235_s13 + $0x278] sm:$0xf0] }
 0x1d4   : > { %v3184_v24 = vor.u32 %v3814_v54, %v3183_v3  ;;  %v3227_v3 = vld [vmem:[%s4235_s13 + $0x2a8] sm:$0xf]  ;;  %v3824_v54 = vld [vmem:[%s4235_s13 + $0x2c8] sm:$0xf0] }
 0x1d6   : > { %v1984_v17 = vpop.f32.mrf.mxu2 }
 0x1d7   : > { %v1985_v26 = vadd.f32 %v1984_v17, %v1896_v21  ;;  %v2073_v27 = vpop.f32.mrf.mxu3 }
 0x1d8   : > { %v1898_v35 = vpop.f32.mrf.mxu1 }
 0x1d9   : > { %v2074_v40 = vadd.f32 %v2073_v27, %v1985_v26  ;;  %v1899_v49 = vadd.f32 %v1898_v35, %v4546_v45  ;;  %v3192_v26 = vor.u32 %v3815_v15, %v3191_v14 }
 0x1da   : > { %v2165_v38 = vpop.f32.mrf.mxu0 }
 0x1db   : > { %2213 = vmatmul.bf16.gmra.mxu1 %v3144_v36  ;;  %2302 = vmatmul.bf16.gmra.mxu2 %v3148_v28  ;;  %v4808_v32 = vadd.f32 %v2162_v9, %v2074_v40  ;;  %v3810_v9 = vld [vmem:[%s4235_s13 + $0x25c] sm:$0xf] }
 0x1dc   : > { %2391 = vmatmul.bf16.gmra.mxu3 %v3152_v59  ;;  %v3188_v17 = vor.u32 %v3810_v9, %v3185_v16  ;;  %v4851_v16 = vld [vmem:[%s5037_s3] ss:$0 sm:$0xff] }
 0x1dd   : > { %2480 = vmatmul.bf16.gmra.mxu0 %v3156_v42 }
 0x1de   : > { %v1987_v52 = vpop.f32.mrf.mxu2 }
 0x1df   : > { %v1988_v37 = vadd.f32 %v1987_v52, %v1899_v49  ;;  %v2076_v62 = vpop.f32.mrf.mxu3 }
 0x1e0   : > { %v1900_v55 = vpop.f32.mrf.mxu1 }
 0x1e1   : > { %v2077_v10 = vadd.f32 %v2076_v62, %v1988_v37  ;;  %v1901_v11 = vadd.f32 %v1900_v55, %v4562_v1  ;;  %v4829_v37 = vld [vmem:[%s5036_s2] ss:$0 sm:$0xff]  ;;  %v3818_v62 = vld [vmem:[%s4235_s13 + $0x29c] sm:$0xf] }
 0x1e2   : > { %v2167_v63 = vpop.f32.mrf.mxu0  ;;  %v3213_v55 = vld [vmem:[%s4235_s13 + $0x2bc] sm:$0xf0] }
 0x1e3   : > { %v4813_v13 = vadd.f32 %v2165_v38, %v2077_v10  ;;  %v3219_v10 = vld [vmem:[%s4235_s13 + $0x2a0] sm:$0xf] }
 0x1e6   : > { %v1989_v45 = vpop.f32.mrf.mxu2 }
 0x1e7   : > { %v1990_v20 = vadd.f32 %v1989_v45, %v1901_v11  ;;  %v2078_v21 = vpop.f32.mrf.mxu3  ;;  %v3216_v45 = vor.u32 %v3818_v62, %v3213_v55 }
 0x1e8   : > { %v2179_v19 = vpop.f32.mrf.mxu1 }
 0x1e9   : > { %v2079_v27 = vadd.f32 %v2078_v21, %v1990_v20  ;;  %v2180_v28 = vadd.f32 %v2179_v19, %v4580_v29  ;;  %v3823_v29 = vld [vmem:[%s4235_s13 + $0x2c0] sm:$0xf0]  ;;  %v3228_v19 = vor.u32 %v3824_v54, %v3227_v3  ;;  %v3249_v3 = vld [vmem:[%s4235_s13 + $0x304] sm:$0xf0] }
 0x1ea   : > { %v2446_v36 = vpop.f32.mrf.mxu0  ;;  %v3220_v20 = vor.u32 %v3823_v29, %v3219_v10  ;;  %v3952_v21 = vld [vmem:[%s4841_s17] sm:$0xff]   ;;  %v3255_v54 = vld [vmem:[%s4235_s13 + $0x2e8] sm:$0xf] }
 0x1eb   : > { %2218 = vmatmul.bf16.gmra.mxu1 %v3180_v58  ;;  %2307 = vmatmul.bf16.gmra.mxu2 %v3184_v24  ;;  %v4822_v1 = vadd.f32 %v2167_v63, %v2079_v27  ;;  %v3819_v63 = vld [vmem:[%s4235_s13 + $0x2a4] sm:$0xf]  ;;  %v3953_v27 = vunpack.c.l.bf16 %v3952_v21 }
 0x1ec   : > { %2396 = vmatmul.bf16.gmra.mxu3 %v3188_v17  ;;  %v3224_v24 = vor.u32 %v3819_v63, %v3221_v44 }
 0x1ed   : > { %2485 = vmatmul.bf16.gmra.mxu0 %v3192_v26 }
 0x1ee   : > { %v2268_v35 = vpop.f32.mrf.mxu2 }
 0x1ef   : > { %v2269_v59 = vadd.f32 %v2268_v35, %v2180_v28  ;;  %v2357_v42 = vpop.f32.mrf.mxu3  ;;  %v3954_v35 = vunpack.c.h.bf16 %v3952_v21  ;;  %v3833_v21 = vld [vmem:[%s4235_s13 + $0x310] sm:$0xf0] }
 0x1f0   : > { %v2181_v40 = vpop.f32.mrf.mxu1 }
 0x1f1   : > { %v2358_v38 = vadd.f32 %v2357_v42, %v2269_v59  ;;  %v2182_v2 = vadd.f32 %v2181_v40, %v4589_v8 }
 0x1f2   : > { %v2448_v49 = vpop.f32.mrf.mxu0 }
 0x1f3   : > { %v2447_v52 = vadd.f32 %v2446_v36, %v2358_v38 }
 0x1f5   : > { %v2530_v11 = vmul.f32 %v4829_v37, %v2447_v52 }
 0x1f6   : > { %v2270_v9 = vpop.f32.mrf.mxu2 }
 0x1f7   : > { %v2271_v14 = vadd.f32 %v2270_v9, %v2182_v2  ;;  %v2359_v15 = vpop.f32.mrf.mxu3  ;;  %v2566_v26 = vadd.f32 %v4851_v16, %v2530_v11  ;;  %v3832_v9 = vld [vmem:[%s4235_s13 + $0x308] sm:$0xf0] }
 0x1f8   : > { %v2184_v58 = vpop.f32.mrf.mxu1  ;;  %v3828_v11 = vld [vmem:[%s4235_s13 + $0x2ec] sm:$0xf] }
 0x1f9   : > { %v2360_v8 = vadd.f32 %v2359_v15, %v2271_v14  ;;  %v2185_v59 = vadd.f32 %v2184_v58, %v4594_v22  ;;  %v2662_v40 = vadd.f32 %v3953_v27, %v2566_v26  ;;  %v3827_v22 = vld [vmem:[%s4235_s13 + $0x2e4] sm:$0xf]  ;;  %v3256_v26 = vor.u32 %v3832_v9, %v3255_v54  ;;  %v4095_v27 = vld [vmem:[%s4841_s17 + $0x8] sm:$0xff]  }
 0x1fa   : > { %v2451_v17 = vpop.f32.mrf.mxu0 }
 0x1fb   : > { %v2449_v36 = vadd.f32 %v2448_v49, %v2360_v8  ;;  %2223 = vmatmul.bf16.gmra.mxu1 %v3216_v45  ;;  %2312 = vmatmul.bf16.gmra.mxu2 %v3220_v20  ;;  %v2694_v63 = vmax.f32 %v2662_v40, 0.0  ;;  %v3257_v45 = vld [vmem:[%s4235_s13 + $0x30c] sm:$0xf0] }
 0x1fc   : > { %2401 = vmatmul.bf16.gmra.mxu3 %v3224_v24  ;;  %v3263_v20 = vld [vmem:[%s4235_s13 + $0x2f0] sm:$0xf] }
 0x1fd   : > { %2490 = vmatmul.bf16.gmra.mxu0 %v3228_v19  ;;  %v2531_v28 = vmul.f32 %v4829_v37, %v2449_v36 }
 0x1fe   : > { %v2273_v42 = vpop.f32.mrf.mxu2 }
 0x1ff   : > { %v2567_v38 = vadd.f32 %v4851_v16, %v2531_v28  ;;  %v2274_v49 = vadd.f32 %v2273_v42, %v2185_v59  ;;  %v2362_v52 = vpop.f32.mrf.mxu3  ;;  %v3260_v28 = vor.u32 %v3828_v11, %v3257_v45  ;;  %v3291_v45 = vld [vmem:[%s4235_s13 + $0x330] sm:$0xf] }
 0x200   : > { %v2186_v62 = vpop.f32.mrf.mxu1 }
 0x201   : > { %v2663_v55 = vadd.f32 %v3954_v35, %v2567_v38  ;;  %v2363_v10 = vadd.f32 %v2362_v52, %v2274_v49  ;;  %v2187_v15 = vadd.f32 %v2186_v62, %v4603_v56  ;;  %v3264_v35 = vor.u32 %v3833_v21, %v3263_v20  ;;  %v3841_v20 = vld [vmem:[%s4235_s13 + $0x350] sm:$0xf0] }
 0x202   : > { %v2453_v29 = vpop.f32.mrf.mxu0  ;;  %v3957_v56 = vunpack.c.l.bf16 %v4095_v27  ;;  %v3958_v52 = vunpack.c.h.bf16 %v4095_v27  ;;  %v3837_v21 = vld [vmem:[%s4235_s13 + $0x334] sm:$0xf] }
 0x203   : > { %v2695_v2 = vmax.f32 %v2663_v55, 0.0  ;;  %v2452_v44 = vadd.f32 %v2451_v17, %v2363_v10  ;;  %v3252_v17 = vor.u32 %v3827_v22, %v3249_v3 }
 0x205   : > { %v4018_v14 = vpack.c.bf16 %v2695_v2, %v2694_v63  ;;  %v2532_v24 = vmul.f32 %v4829_v37, %v2452_v44 }
 0x206   : > { %v2275_v58 = vpop.f32.mrf.mxu2 }
 0x207   : > { %4019 = vst [vmem:[%s4865_s23] sm:$0xff] %v4018_v14   ;;  %v2276_v19 = vadd.f32 %v2275_v58, %v2187_v15  ;;  %v2364_v8 = vpop.f32.mrf.mxu3  ;;  %v2568_v40 = vadd.f32 %v4851_v16, %v2532_v24  ;;  %v3285_v15 = vld [vmem:[%s4235_s13 + $0x34c] sm:$0xf0] }
 0x208   : > { %v2189_v36 = vpop.f32.mrf.mxu1 }
 0x209   : > { %v2365_v59 = vadd.f32 %v2364_v8, %v2276_v19  ;;  %v2190_v62 = vadd.f32 %v2189_v36, %v4620_v33  ;;  %v2664_v10 = vadd.f32 %v3957_v56, %v2568_v40  ;;  %v3836_v33 = vld [vmem:[%s4235_s13 + $0x32c] sm:$0xf]  ;;  %v3293_v19 = vld [vmem:[%s4235_s13 + $0x354] sm:$0xf0] }
 0x20a   : > { %v2456_v42 = vpop.f32.mrf.mxu0  ;;  %v3299_v8 = vld [vmem:[%s4235_s13 + $0x338] sm:$0xf]  ;;  %v3296_v56 = vor.u32 %v3837_v21, %v3293_v19  ;;  %v3846_v19 = vld [vmem:[%s4235_s13 + $0x37c] sm:$0xf] }
 0x20b   : > { %v2454_v38 = vadd.f32 %v2453_v29, %v2365_v59  ;;  %2228 = vmatmul.bf16.gmra.mxu1 %v3252_v17  ;;  %2317 = vmatmul.bf16.gmra.mxu2 %v3256_v26  ;;  %v2696_v9 = vmax.f32 %v2664_v10, 0.0  ;;  %v3842_v17 = vld [vmem:[%s4235_s13 + $0x358] sm:$0xf0]  ;;  %v3292_v59 = vor.u32 %v3841_v20, %v3291_v45  ;;  %v3321_v21 = vld [vmem:[%s4235_s13 + $0x394] sm:$0xf0] }
 0x20c   : > { %2406 = vmatmul.bf16.gmra.mxu3 %v3260_v28 }
 0x20d   : > { %2495 = vmatmul.bf16.gmra.mxu0 %v3264_v35  ;;  %v2533_v49 = vmul.f32 %v4829_v37, %v2454_v38  ;;  %v3288_v35 = vor.u32 %v3836_v33, %v3285_v15  ;;  %v3300_v38 = vor.u32 %v3842_v17, %v3299_v8 }
 0x20e   : > { %v2278_v55 = vpop.f32.mrf.mxu2 }
 0x20f   : > { %v2569_v63 = vadd.f32 %v4851_v16, %v2533_v49  ;;  %v2279_v2 = vadd.f32 %v2278_v55, %v2190_v62  ;;  %v2367_v29 = vpop.f32.mrf.mxu3 }
 0x210   : > { %v2191_v44 = vpop.f32.mrf.mxu1 }
 0x211   : > { %v2665_v22 = vadd.f32 %v3958_v52, %v2569_v63  ;;  %v2368_v3 = vadd.f32 %v2367_v29, %v2279_v2  ;;  %v2192_v24 = vadd.f32 %v2191_v44, %v4629_v61 }
 0x212   : > { %v2458_v54 = vpop.f32.mrf.mxu0 }
 0x213   : > { %v2697_v11 = vmax.f32 %v2665_v22, 0.0  ;;  %v2457_v14 = vadd.f32 %v2456_v42, %v2368_v3  ;;  %v4096_v42 = vld [vmem:[%s4841_s17 + $0x10] sm:$0xff]  }
 0x214   : > { %v3961_v61 = vunpack.c.l.bf16 %v4096_v42  ;;  %v3962_v63 = vunpack.c.h.bf16 %v4096_v42 }
 0x215   : > { %v4023_v58 = vpack.c.bf16 %v2697_v11, %v2696_v9  ;;  %v2534_v27 = vmul.f32 %v4829_v37, %v2457_v14 }
 0x216   : > { %v2280_v26 = vpop.f32.mrf.mxu2 }
 0x217   : > { %4110 = vst [vmem:[%s4865_s23 + $0x8] sm:$0xff] %v4023_v58   ;;  %v2281_v36 = vadd.f32 %v2280_v26, %v2192_v24  ;;  %v2369_v28 = vpop.f32.mrf.mxu3  ;;  %v2570_v62 = vadd.f32 %v4851_v16, %v2534_v27  ;;  %v3327_v58 = vld [vmem:[%s4235_s13 + $0x378] sm:$0xf]  ;;  %v3850_v24 = vld [vmem:[%s4235_s13 + $0x398] sm:$0xf0] }
 0x218   : > { %v2194_v40 = vpop.f32.mrf.mxu1  ;;  %v3329_v26 = vld [vmem:[%s4235_s13 + $0x39c] sm:$0xf0] }
 0x219   : > { %v2370_v49 = vadd.f32 %v2369_v28, %v2281_v36  ;;  %v2195_v2 = vadd.f32 %v2194_v40, %v4634_v5  ;;  %v2666_v44 = vadd.f32 %v3961_v61, %v2570_v62  ;;  %v3845_v5 = vld [vmem:[%s4235_s13 + $0x374] sm:$0xf]  ;;  %v3335_v27 = vld [vmem:[%s4235_s13 + $0x380] sm:$0xf]  ;;  %v3851_v36 = vld [vmem:[%s4235_s13 + $0x3a0] sm:$0xf0] }
 0x21a   : > { %v2461_v52 = vpop.f32.mrf.mxu0  ;;  %v3324_v40 = vor.u32 %v3845_v5, %v3321_v21  ;;  %v3336_v62 = vor.u32 %v3851_v36, %v3335_v27  ;;  %v3365_v27 = vld [vmem:[%s4235_s13 + $0x3e4] sm:$0xf0] }
 0x21b   : > { %v2459_v55 = vadd.f32 %v2458_v54, %v2370_v49  ;;  %2233 = vmatmul.bf16.gmra.mxu1 %v3288_v35  ;;  %2322 = vmatmul.bf16.gmra.mxu2 %v3292_v59  ;;  %v2698_v15 = vmax.f32 %v2666_v44, 0.0  ;;  %v3371_v36 = vld [vmem:[%s4235_s13 + $0x3c8] sm:$0xf] }
 0x21c   : > { %2411 = vmatmul.bf16.gmra.mxu3 %v3296_v56  ;;  %v3328_v56 = vor.u32 %v3850_v24, %v3327_v58  ;;  %v3357_v58 = vld [vmem:[%s4235_s13 + $0x3dc] sm:$0xf0] }
 0x21d   : > { %2500 = vmatmul.bf16.gmra.mxu0 %v3300_v38  ;;  %v2535_v10 = vmul.f32 %v4829_v37, %v2459_v55  ;;  %v4097_v38 = vld [vmem:[%s4841_s17 + $0x18] sm:$0xff]   ;;  %v3363_v24 = vld [vmem:[%s4235_s13 + $0x3c0] sm:$0xf] }
 0x21e   : > { %v2283_v29 = vpop.f32.mrf.mxu2 }
 0x21f   : > { %v2571_v22 = vadd.f32 %v4851_v16, %v2535_v10  ;;  %v2284_v3 = vadd.f32 %v2283_v29, %v2195_v2  ;;  %v2372_v54 = vpop.f32.mrf.mxu3  ;;  %v3966_v29 = vunpack.c.h.bf16 %v4097_v38 }
 0x220   : > { %v2196_v9 = vpop.f32.mrf.mxu1 }
 0x221   : > { %v2667_v11 = vadd.f32 %v3962_v63, %v2571_v22  ;;  %v2373_v14 = vadd.f32 %v2372_v54, %v2284_v3  ;;  %v2197_v17 = vadd.f32 %v2196_v9, %v4642_v34  ;;  %v3965_v34 = vunpack.c.l.bf16 %v4097_v38 }
 0x222   : > { %v2463_v33 = vpop.f32.mrf.mxu0 }
 0x223   : > { %v2699_v45 = vmax.f32 %v2667_v11, 0.0  ;;  %v2462_v20 = vadd.f32 %v2461_v52, %v2373_v14  ;;  %v3332_v52 = vor.u32 %v3846_v19, %v3329_v26  ;;  %v3859_v19 = vld [vmem:[%s4235_s13 + $0x3e0] sm:$0xf0] }
 0x224   : > { %v3364_v38 = vor.u32 %v3859_v19, %v3363_v24  ;;  %v3868_v24 = vld [vmem:[%s4235_s13 + $0x428] sm:$0xf0] }
 0x225   : > { %v4028_v8 = vpack.c.bf16 %v2699_v45, %v2698_v15  ;;  %v2536_v35 = vmul.f32 %v4829_v37, %v2462_v20  ;;  %v3864_v19 = vld [vmem:[%s4235_s13 + $0x40c] sm:$0xf] }
 0x226   : > { %v2285_v28 = vpop.f32.mrf.mxu2 }
 0x227   : > { %4111 = vst [vmem:[%s4865_s23 + $0x10] sm:$0xff] %v4028_v8   ;;  %v2286_v59 = vadd.f32 %v2285_v28, %v2197_v17  ;;  %v2374_v42 = vpop.f32.mrf.mxu3  ;;  %v2572_v10 = vadd.f32 %v4851_v16, %v2536_v35  ;;  %v3855_v8 = vld [vmem:[%s4235_s13 + $0x3c4] sm:$0xf]  ;;  %v3860_v28 = vld [vmem:[%s4235_s13 + $0x3e8] sm:$0xf0] }
 0x228   : > { %v2199_v49 = vpop.f32.mrf.mxu1 }
 0x229   : > { %v2375_v61 = vadd.f32 %v2374_v42, %v2286_v59  ;;  %v2200_v44 = vadd.f32 %v2199_v49, %v4659_v43  ;;  %v2668_v3 = vadd.f32 %v3965_v34, %v2572_v10  ;;  %v3854_v43 = vld [vmem:[%s4235_s13 + $0x3bc] sm:$0xf]  ;;  %v4098_v49 = vld [vmem:[%s4841_s17 + $0x20] sm:$0xff]  }
 0x22a   : > { %v2466_v55 = vpop.f32.mrf.mxu0 }
 0x22b   : > { %v2464_v63 = vadd.f32 %v2463_v33, %v2375_v61  ;;  %2238 = vmatmul.bf16.gmra.mxu1 %v3324_v40  ;;  %2327 = vmatmul.bf16.gmra.mxu2 %v3328_v56  ;;  %v2700_v20 = vmax.f32 %v2668_v3, 0.0  ;;  %v3360_v56 = vor.u32 %v3854_v43, %v3357_v58  ;;  %v3372_v61 = vor.u32 %v3860_v28, %v3371_v36  ;;  %v3393_v43 = vld [vmem:[%s4235_s13 + $0x424] sm:$0xf0]  ;;  %v3869_v36 = vld [vmem:[%s4235_s13 + $0x430] sm:$0xf0] }
 0x22c   : > { %2416 = vmatmul.bf16.gmra.mxu3 %v3332_v52  ;;  %v3399_v58 = vld [vmem:[%s4235_s13 + $0x408] sm:$0xf] }
 0x22d   : > { %2505 = vmatmul.bf16.gmra.mxu0 %v3336_v62  ;;  %v2537_v2 = vmul.f32 %v4829_v37, %v2464_v63  ;;  %v3368_v62 = vor.u32 %v3855_v8, %v3365_v27  ;;  %v3407_v27 = vld [vmem:[%s4235_s13 + $0x410] sm:$0xf] }
 0x22e   : > { %v2288_v22 = vpop.f32.mrf.mxu2 }
 0x22f   : > { %v2573_v54 = vadd.f32 %v4851_v16, %v2537_v2  ;;  %v2289_v9 = vadd.f32 %v2288_v22, %v2200_v44  ;;  %v2377_v11 = vpop.f32.mrf.mxu3 }
 0x230   : > { %v2201_v14 = vpop.f32.mrf.mxu1 }
 0x231   : > { %v2669_v33 = vadd.f32 %v3966_v29, %v2573_v54  ;;  %v2378_v15 = vadd.f32 %v2377_v11, %v2289_v9  ;;  %v2202_v26 = vadd.f32 %v2201_v14, %v4668_v39  ;;  %v3969_v39 = vunpack.c.l.bf16 %v4098_v49 }
 0x232   : > { %v2468_v45 = vpop.f32.mrf.mxu0  ;;  %v3970_v29 = vunpack.c.h.bf16 %v4098_v49 }
 0x233   : > { %v2701_v5 = vmax.f32 %v2669_v33, 0.0  ;;  %v2467_v21 = vadd.f32 %v2466_v55, %v2378_v15 }
 0x235   : > { %v4033_v17 = vpack.c.bf16 %v2701_v5, %v2700_v20  ;;  %v2538_v59 = vmul.f32 %v4829_v37, %v2467_v21 }
 0x236   : > { %v2290_v35 = vpop.f32.mrf.mxu2 }
 0x237   : > { %4112 = vst [vmem:[%s4865_s23 + $0x18] sm:$0xff] %v4033_v17   ;;  %v2291_v42 = vadd.f32 %v2290_v35, %v2202_v26  ;;  %v2379_v40 = vpop.f32.mrf.mxu3  ;;  %v2574_v34 = vadd.f32 %v4851_v16, %v2538_v59  ;;  %v3401_v26 = vld [vmem:[%s4235_s13 + $0x42c] sm:$0xf0] }
 0x238   : > { %v2204_v52 = vpop.f32.mrf.mxu1 }
 0x239   : > { %v2380_v55 = vadd.f32 %v2379_v40, %v2291_v42  ;;  %v2205_v44 = vadd.f32 %v2204_v52, %v4673_v53  ;;  %v2670_v3 = vadd.f32 %v3969_v39, %v2574_v34  ;;  %v3863_v53 = vld [vmem:[%s4235_s13 + $0x404] sm:$0xf]  ;;  %v3404_v52 = vor.u32 %v3864_v19, %v3401_v26  ;;  %v3437_v19 = vld [vmem:[%s4235_s13 + $0x474] sm:$0xf0] }
 0x23a   : > { %v2471_v10 = vpop.f32.mrf.mxu0  ;;  %v3396_v40 = vor.u32 %v3863_v53, %v3393_v43  ;;  %v3877_v53 = vld [vmem:[%s4235_s13 + $0x470] sm:$0xf0] }
 0x23b   : > { %v2469_v63 = vadd.f32 %v2468_v45, %v2380_v55  ;;  %2243 = vmatmul.bf16.gmra.mxu1 %v3360_v56  ;;  %2332 = vmatmul.bf16.gmra.mxu2 %v3364_v38  ;;  %v2702_v20 = vmax.f32 %v2670_v3, 0.0  ;;  %v3400_v56 = vor.u32 %v3868_v24, %v3399_v58  ;;  %v4099_v38 = vld [vmem:[%s4841_s17 + $0x28] sm:$0xff]   ;;  %v3873_v43 = vld [vmem:[%s4235_s13 + $0x454] sm:$0xf] }
 0x23c   : > { %2421 = vmatmul.bf16.gmra.mxu3 %v3368_v62  ;;  %v3408_v62 = vor.u32 %v3869_v36, %v3407_v27 }
 0x23d   : > { %2510 = vmatmul.bf16.gmra.mxu0 %v3372_v61  ;;  %v2539_v2 = vmul.f32 %v4829_v37, %v2469_v63  ;;  %v3974_v63 = vunpack.c.h.bf16 %v4099_v38 }
 0x23e   : > { %v2293_v22 = vpop.f32.mrf.mxu2 }
 0x23f   : > { %v2575_v54 = vadd.f32 %v4851_v16, %v2539_v2  ;;  %v2294_v9 = vadd.f32 %v2293_v22, %v2205_v44  ;;  %v2382_v11 = vpop.f32.mrf.mxu3 }
 0x240   : > { %v2206_v14 = vpop.f32.mrf.mxu1 }
 0x241   : > { %v2671_v33 = vadd.f32 %v3970_v29, %v2575_v54  ;;  %v2383_v15 = vadd.f32 %v2382_v11, %v2294_v9  ;;  %v2207_v17 = vadd.f32 %v2206_v14, %v4682_v60  ;;  %v3973_v60 = vunpack.c.l.bf16 %v4099_v38 }
 0x242   : > { %v2473_v45 = vpop.f32.mrf.mxu0 }
 0x243   : > { %v2703_v5 = vmax.f32 %v2671_v33, 0.0  ;;  %v2472_v21 = vadd.f32 %v2471_v10, %v2383_v15 }
 0x245   : > { %v4038_v8 = vpack.c.bf16 %v2703_v5, %v2702_v20  ;;  %v2540_v35 = vmul.f32 %v4829_v37, %v2472_v21  ;;  %v3429_v5 = vld [vmem:[%s4235_s13 + $0x46c] sm:$0xf0] }
 0x246   : > { %v2295_v28 = vpop.f32.mrf.mxu2  ;;  %v3435_v21 = vld [vmem:[%s4235_s13 + $0x450] sm:$0xf] }
 0x247   : > { %4113 = vst [vmem:[%s4865_s23 + $0x20] sm:$0xff] %v4038_v8   ;;  %v2296_v59 = vadd.f32 %v2295_v28, %v2207_v17  ;;  %v2384_v42 = vpop.f32.mrf.mxu3  ;;  %v2576_v10 = vadd.f32 %v4851_v16, %v2540_v35  ;;  %v3443_v8 = vld [vmem:[%s4235_s13 + $0x458] sm:$0xf]  ;;  %v3878_v17 = vld [vmem:[%s4235_s13 + $0x478] sm:$0xf0] }
 0x248   : > { %v2209_v49 = vpop.f32.mrf.mxu1  ;;  %v3444_v38 = vor.u32 %v3878_v17, %v3443_v8 }
 0x249   : > { %v2385_v61 = vadd.f32 %v2384_v42, %v2296_v59  ;;  %v2210_v2 = vadd.f32 %v2209_v49, %v4687_v41  ;;  %v2672_v44 = vadd.f32 %v3973_v60, %v2576_v10  ;;  %v3872_v41 = vld [vmem:[%s4235_s13 + $0x44c] sm:$0xf]  ;;  %v3436_v59 = vor.u32 %v3877_v53, %v3435_v21  ;;  %v4100_v42 = vld [vmem:[%s4841_s17 + $0x30] sm:$0xff]  }
 0x24a   : > { %v2476_v55 = vpop.f32.mrf.mxu0  ;;  %v3432_v35 = vor.u32 %v3872_v41, %v3429_v5  ;;  %v3978_v10 = vunpack.c.h.bf16 %v4100_v42  ;;  %v4101_v5 = vld [vmem:[%s4841_s17 + $0x38] sm:$0xff]  }
 0x24b   : > { %v2474_v34 = vadd.f32 %v2473_v45, %v2385_v61  ;;  %2248 = vmatmul.bf16.gmra.mxu1 %v3396_v40  ;;  %2337 = vmatmul.bf16.gmra.mxu2 %v3400_v56  ;;  %v2704_v15 = vmax.f32 %v2672_v44, 0.0  ;;  %v3440_v56 = vor.u32 %v3873_v43, %v3437_v19  ;;  %v3982_v17 = vunpack.c.h.bf16 %v4101_v5 }
 0x24c   : > { %2426 = vmatmul.bf16.gmra.mxu3 %v3404_v52 }
 0x24d   : > { %2515 = vmatmul.bf16.gmra.mxu0 %v3408_v62  ;;  %v2541_v39 = vmul.f32 %v4829_v37, %v2474_v34 }
 0x24e   : > { %v2298_v29 = vpop.f32.mrf.mxu2 }
 0x24f   : > { %v2577_v22 = vadd.f32 %v4851_v16, %v2541_v39  ;;  %v2299_v3 = vadd.f32 %v2298_v29, %v2210_v2  ;;  %v2387_v54 = vpop.f32.mrf.mxu3 }
 0x250   : > { %v2211_v9 = vpop.f32.mrf.mxu1 }
 0x251   : > { %v2673_v11 = vadd.f32 %v3974_v63, %v2577_v22  ;;  %v2388_v14 = vadd.f32 %v2387_v54, %v2299_v3  ;;  %v2212_v24 = vadd.f32 %v2211_v9, %v4696_v18  ;;  %v3977_v18 = vunpack.c.l.bf16 %v4100_v42 }
 0x252   : > { %v2478_v33 = vpop.f32.mrf.mxu0 }
 0x253   : > { %v2705_v45 = vmax.f32 %v2673_v11, 0.0  ;;  %v2477_v20 = vadd.f32 %v2476_v55, %v2388_v14 }
 0x255   : > { %v4043_v58 = vpack.c.bf16 %v2705_v45, %v2704_v15  ;;  %v2542_v27 = vmul.f32 %v4829_v37, %v2477_v20 }
 0x256   : > { %v2300_v26 = vpop.f32.mrf.mxu2 }
 0x257   : > { %4114 = vst [vmem:[%s4865_s23 + $0x28] sm:$0xff] %v4043_v58   ;;  %v2301_v36 = vadd.f32 %v2300_v26, %v2212_v24  ;;  %v2389_v28 = vpop.f32.mrf.mxu3  ;;  %v2578_v62 = vadd.f32 %v4851_v16, %v2542_v27  ;;  %v3981_v24 = vunpack.c.l.bf16 %v4101_v5 }
 0x258   : > { %v2214_v40 = vpop.f32.mrf.mxu1 }
 0x259   : > { %v2390_v49 = vadd.f32 %v2389_v28, %v2301_v36  ;;  %v2215_v60 = vadd.f32 %v2214_v40, %v4701_v25  ;;  %v2674_v39 = vadd.f32 %v3977_v18, %v2578_v62 }
 0x25a   : > { %v2481_v52 = vpop.f32.mrf.mxu0 }
 0x25b   : > { %v2479_v61 = vadd.f32 %v2478_v33, %v2390_v49  ;;  %2253 = vmatmul.bf16.gmra.mxu1 %v3432_v35  ;;  %2342 = vmatmul.bf16.gmra.mxu2 %v3436_v59  ;;  %v2706_v9 = vmax.f32 %v2674_v39, 0.0 }
 0x25c   : > { %2431 = vmatmul.bf16.gmra.mxu3 %v3440_v56 }
 0x25d   : > { %2520 = vmatmul.bf16.gmra.mxu0 %v3444_v38  ;;  %v2543_v55 = vmul.f32 %v4829_v37, %v2479_v61 }
 0x25e   : > { %v2303_v34 = vpop.f32.mrf.mxu2 }
 0x25f   : > { %v2579_v63 = vadd.f32 %v4851_v16, %v2543_v55  ;;  %v2304_v2 = vadd.f32 %v2303_v34, %v2215_v60  ;;  %v2392_v29 = vpop.f32.mrf.mxu3  ;;  %v4102_v60 = vld [vmem:[%s4841_s17 + $0x40] sm:$0xff]  }
 0x260   : > { %v2216_v44 = vpop.f32.mrf.mxu1 }
 0x261   : > { %v2675_v22 = vadd.f32 %v3978_v10, %v2579_v63  ;;  %v2393_v3 = vadd.f32 %v2392_v29, %v2304_v2  ;;  %v2217_v15 = vadd.f32 %v2216_v44, %v4710_v46  ;;  %v3985_v29 = vunpack.c.l.bf16 %v4102_v60 }
 0x262   : > { %v2483_v54 = vpop.f32.mrf.mxu0 }
 0x263   : > { %v2707_v11 = vmax.f32 %v2675_v22, 0.0  ;;  %v2482_v14 = vadd.f32 %v2481_v52, %v2393_v3  ;;  %v3986_v3 = vunpack.c.h.bf16 %v4102_v60 }
 0x265   : > { %v4048_v33 = vpack.c.bf16 %v2707_v11, %v2706_v9  ;;  %v2544_v25 = vmul.f32 %v4829_v37, %v2482_v14 }
 0x266   : > { %v2305_v45 = vpop.f32.mrf.mxu2 }
 0x267   : > { %4115 = vst [vmem:[%s4865_s23 + $0x30] sm:$0xff] %v4048_v33   ;;  %v2306_v20 = vadd.f32 %v2305_v45, %v2217_v15  ;;  %v2394_v41 = vpop.f32.mrf.mxu3  ;;  %v2580_v58 = vadd.f32 %v4851_v16, %v2544_v25 }
 0x268   : > { %v2219_v21 = vpop.f32.mrf.mxu1 }
 0x269   : > { %v2395_v53 = vadd.f32 %v2394_v41, %v2306_v20  ;;  %v2220_v26 = vadd.f32 %v2219_v21, %v4715_v57  ;;  %v2676_v27 = vadd.f32 %v3981_v24, %v2580_v58 }
 0x26a   : > { %v2486_v43 = vpop.f32.mrf.mxu0 }
 0x26b   : > { %v2484_v19 = vadd.f32 %v2483_v54, %v2395_v53  ;;  %v2708_v38 = vmax.f32 %v2676_v27, 0.0 }
 0x26d   : > { %v2545_v8 = vmul.f32 %v4829_v37, %v2484_v19 }
 0x26e   : > { %v2308_v46 = vpop.f32.mrf.mxu2 }
 0x26f   : > { %v2581_v36 = vadd.f32 %v4851_v16, %v2545_v8  ;;  %v2309_v28 = vadd.f32 %v2308_v46, %v2220_v26  ;;  %v2397_v35 = vpop.f32.mrf.mxu3  ;;  %v4103_v8 = vld [vmem:[%s4841_s17 + $0x48] sm:$0xff]  }
 0x270   : > { %v2221_v59 = vpop.f32.mrf.mxu1 }
 0x271   : > { %v2677_v42 = vadd.f32 %v3982_v17, %v2581_v36  ;;  %v2398_v40 = vadd.f32 %v2397_v35, %v2309_v28  ;;  %v2222_v18 = vadd.f32 %v2221_v59, %v4724_v50  ;;  %v3989_v36 = vunpack.c.l.bf16 %v4103_v8 }
 0x272   : > { %v2488_v56 = vpop.f32.mrf.mxu0  ;;  %v3990_v59 = vunpack.c.h.bf16 %v4103_v8 }
 0x273   : > { %v2709_v49 = vmax.f32 %v2677_v42, 0.0  ;;  %v2487_v52 = vadd.f32 %v2486_v43, %v2398_v40 }
 0x275   : > { %v4053_v62 = vpack.c.bf16 %v2709_v49, %v2708_v38  ;;  %v2546_v57 = vmul.f32 %v4829_v37, %v2487_v52 }
 0x276   : > { %v2310_v61 = vpop.f32.mrf.mxu2 }
 0x277   : > { %4116 = vst [vmem:[%s4865_s23 + $0x38] sm:$0xff] %v4053_v62   ;;  %v2311_v55 = vadd.f32 %v2310_v61, %v2222_v18  ;;  %v2399_v10 = vpop.f32.mrf.mxu3  ;;  %v2582_v2 = vadd.f32 %v4851_v16, %v2546_v57 }
 0x278   : > { %v2224_v34 = vpop.f32.mrf.mxu1 }
 0x279   : > { %v2400_v39 = vadd.f32 %v2399_v10, %v2311_v55  ;;  %v2225_v54 = vadd.f32 %v2224_v34, %v4729_v4  ;;  %v2678_v9 = vadd.f32 %v3985_v29, %v2582_v2  ;;  %v4104_v29 = vld [vmem:[%s4841_s17 + $0x50] sm:$0xff]  }
 0x27a   : > { %v2491_v63 = vpop.f32.mrf.mxu0 }
 0x27b   : > { %v2489_v44 = vadd.f32 %v2488_v56, %v2400_v39  ;;  %v2710_v41 = vmax.f32 %v2678_v9, 0.0 }
 0x27d   : > { %v2547_v22 = vmul.f32 %v4829_v37, %v2489_v44 }
 0x27e   : > { %v2313_v50 = vpop.f32.mrf.mxu2 }
 0x27f   : > { %v2583_v11 = vadd.f32 %v4851_v16, %v2547_v22  ;;  %v2314_v14 = vadd.f32 %v2313_v50, %v2225_v54  ;;  %v2402_v33 = vpop.f32.mrf.mxu3  ;;  %v3993_v50 = vunpack.c.l.bf16 %v4104_v29 }
 0x280   : > { %v2226_v15 = vpop.f32.mrf.mxu1 }
 0x281   : > { %v2679_v45 = vadd.f32 %v3986_v3, %v2583_v11  ;;  %v2403_v25 = vadd.f32 %v2402_v33, %v2314_v14  ;;  %v2227_v43 = vadd.f32 %v2226_v15, %v4738_v6  ;;  %v3994_v14 = vunpack.c.h.bf16 %v4104_v29 }
 0x282   : > { %v2493_v20 = vpop.f32.mrf.mxu0 }
 0x283   : > { %v2711_v5 = vmax.f32 %v2679_v45, 0.0  ;;  %v2492_v21 = vadd.f32 %v2491_v63, %v2403_v25 }
 0x285   : > { %v4058_v53 = vpack.c.bf16 %v2711_v5, %v2710_v41  ;;  %v2548_v4 = vmul.f32 %v4829_v37, %v2492_v21 }
 0x286   : > { %v2315_v58 = vpop.f32.mrf.mxu2 }
 0x287   : > { %4117 = vst [vmem:[%s4865_s23 + $0x40] sm:$0xff] %v4058_v53   ;;  %v2316_v24 = vadd.f32 %v2315_v58, %v2227_v43  ;;  %v2404_v19 = vpop.f32.mrf.mxu3  ;;  %v2584_v27 = vadd.f32 %v4851_v16, %v2548_v4 }
 0x288   : > { %v2229_v17 = vpop.f32.mrf.mxu1 }
 0x289   : > { %v2405_v26 = vadd.f32 %v2404_v19, %v2316_v24  ;;  %v2230_v42 = vadd.f32 %v2229_v17, %v4743_v30  ;;  %v2680_v40 = vadd.f32 %v3989_v36, %v2584_v27 }
 0x28a   : > { %v2496_v46 = vpop.f32.mrf.mxu0 }
 0x28b   : > { %v2494_v28 = vadd.f32 %v2493_v20, %v2405_v26  ;;  %v2712_v57 = vmax.f32 %v2680_v40, 0.0 }
 0x28d   : > { %v2549_v35 = vmul.f32 %v4829_v37, %v2494_v28 }
 0x28e   : > { %v2318_v6 = vpop.f32.mrf.mxu2 }
 0x28f   : > { %v2585_v56 = vadd.f32 %v4851_v16, %v2549_v35  ;;  %v2319_v38 = vadd.f32 %v2318_v6, %v2230_v42  ;;  %v2407_v49 = vpop.f32.mrf.mxu3 }
 0x290   : > { %v2231_v52 = vpop.f32.mrf.mxu1 }
 0x291   : > { %v2681_v62 = vadd.f32 %v3990_v59, %v2585_v56  ;;  %v2408_v18 = vadd.f32 %v2407_v49, %v2319_v38  ;;  %v2232_v34 = vadd.f32 %v2231_v52, %v4752_v31 }
 0x292   : > { %v2498_v61 = vpop.f32.mrf.mxu0 }
 0x293   : > { %v2713_v55 = vmax.f32 %v2681_v62, 0.0  ;;  %v2497_v10 = vadd.f32 %v2496_v46, %v2408_v18  ;;  %v4105_v46 = vld [vmem:[%s4841_s17 + $0x58] sm:$0xff]  }
 0x294   : > { %v3997_v59 = vunpack.c.l.bf16 %v4105_v46  ;;  %v3998_v40 = vunpack.c.h.bf16 %v4105_v46 }
 0x295   : > { %v4063_v60 = vpack.c.bf16 %v2713_v55, %v2712_v57  ;;  %v2550_v30 = vmul.f32 %v4829_v37, %v2497_v10 }
 0x296   : > { %v2320_v39 = vpop.f32.mrf.mxu2 }
 0x297   : > { %4118 = vst [vmem:[%s4865_s23 + $0x48] sm:$0xff] %v4063_v60   ;;  %v2321_v63 = vadd.f32 %v2320_v39, %v2232_v34  ;;  %v2409_v2 = vpop.f32.mrf.mxu3  ;;  %v2586_v54 = vadd.f32 %v4851_v16, %v2550_v30 }
 0x298   : > { %v2234_v44 = vpop.f32.mrf.mxu1 }
 0x299   : > { %v2410_v22 = vadd.f32 %v2409_v2, %v2321_v63  ;;  %v2235_v33 = vadd.f32 %v2234_v44, %v4757_v48  ;;  %v2682_v15 = vadd.f32 %v3993_v50, %v2586_v54  ;;  %v4106_v44 = vld [vmem:[%s4841_s17 + $0x60] sm:$0xff]  }
 0x29a   : > { %v2501_v3 = vpop.f32.mrf.mxu0 }
 0x29b   : > { %v2499_v9 = vadd.f32 %v2498_v61, %v2410_v22  ;;  %v2714_v43 = vmax.f32 %v2682_v15, 0.0 }
 0x29d   : > { %v2551_v11 = vmul.f32 %v4829_v37, %v2499_v9  ;;  %v4001_v9 = vunpack.c.l.bf16 %v4106_v44 }
 0x29e   : > { %v2323_v31 = vpop.f32.mrf.mxu2 }
 0x29f   : > { %v2587_v45 = vadd.f32 %v4851_v16, %v2551_v11  ;;  %v2324_v25 = vadd.f32 %v2323_v31, %v2235_v33  ;;  %v2412_v20 = vpop.f32.mrf.mxu3  ;;  %v4002_v33 = vunpack.c.h.bf16 %v4106_v44 }
 0x2a0   : > { %v2236_v41 = vpop.f32.mrf.mxu1 }
 0x2a1   : > { %v2683_v5 = vadd.f32 %v3994_v14, %v2587_v45  ;;  %v2413_v21 = vadd.f32 %v2412_v20, %v2324_v25  ;;  %v2237_v19 = vadd.f32 %v2236_v41, %v4766_v0 }
 0x2a2   : > { %v2503_v53 = vpop.f32.mrf.mxu0 }
 0x2a3   : > { %v2715_v58 = vmax.f32 %v2683_v5, 0.0  ;;  %v2502_v4 = vadd.f32 %v2501_v3, %v2413_v21 }
 0x2a5   : > { %v4068_v24 = vpack.c.bf16 %v2715_v58, %v2714_v43  ;;  %v2552_v48 = vmul.f32 %v4829_v37, %v2502_v4 }
 0x2a6   : > { %v2325_v8 = vpop.f32.mrf.mxu2 }
 0x2a7   : > { %4119 = vst [vmem:[%s4865_s23 + $0x50] sm:$0xff] %v4068_v24   ;;  %v2326_v17 = vadd.f32 %v2325_v8, %v2237_v19  ;;  %v2414_v26 = vpop.f32.mrf.mxu3  ;;  %v2588_v35 = vadd.f32 %v4851_v16, %v2552_v48 }
 0x2a8   : > { %v2239_v27 = vpop.f32.mrf.mxu1 }
 0x2a9   : > { %v2415_v36 = vadd.f32 %v2414_v26, %v2326_v17  ;;  %v2240_v56 = vadd.f32 %v2239_v27, %v4771_v47  ;;  %v2684_v38 = vadd.f32 %v3997_v59, %v2588_v35  ;;  %v4107_v26 = vld [vmem:[%s4841_s17 + $0x68] sm:$0xff]  }
 0x2aa   : > { %v2506_v28 = vpop.f32.mrf.mxu0 }
 0x2ab   : > { %v2504_v42 = vadd.f32 %v2503_v53, %v2415_v36  ;;  %v2716_v10 = vmax.f32 %v2684_v38, 0.0 }
 0x2ad   : > { %v2553_v6 = vmul.f32 %v4829_v37, %v2504_v42 }
 0x2ae   : > { %v2328_v0 = vpop.f32.mrf.mxu2 }
 0x2af   : > { %v2589_v49 = vadd.f32 %v4851_v16, %v2553_v6  ;;  %v2329_v52 = vadd.f32 %v2328_v0, %v2240_v56  ;;  %v2417_v62 = vpop.f32.mrf.mxu3  ;;  %v4006_v6 = vunpack.c.h.bf16 %v4107_v26 }
 0x2b0   : > { %v2241_v18 = vpop.f32.mrf.mxu1 }
 0x2b1   : > { %v2685_v61 = vadd.f32 %v3998_v40, %v2589_v49  ;;  %v2418_v57 = vadd.f32 %v2417_v62, %v2329_v52  ;;  %v2242_v30 = vadd.f32 %v2241_v18, %v4780_v51 }
 0x2b2   : > { %v2508_v55 = vpop.f32.mrf.mxu0 }
 0x2b3   : > { %v2717_v60 = vmax.f32 %v2685_v61, 0.0  ;;  %v2507_v34 = vadd.f32 %v2506_v28, %v2418_v57  ;;  %v4005_v28 = vunpack.c.l.bf16 %v4107_v26 }
 0x2b5   : > { %v4073_v39 = vpack.c.bf16 %v2717_v60, %v2716_v10  ;;  %v2554_v47 = vmul.f32 %v4829_v37, %v2507_v34 }
 0x2b6   : > { %v2330_v63 = vpop.f32.mrf.mxu2 }
 0x2b7   : > { %4120 = vst [vmem:[%s4865_s23 + $0x58] sm:$0xff] %v4073_v39   ;;  %v2331_v2 = vadd.f32 %v2330_v63, %v2242_v30  ;;  %v2419_v29 = vpop.f32.mrf.mxu3  ;;  %v2590_v50 = vadd.f32 %v4851_v16, %v2554_v47  ;;  %v4108_v63 = vld [vmem:[%s4841_s17 + $0x70] sm:$0xff]  }
 0x2b8   : > { %v2244_v22 = vpop.f32.mrf.mxu1 }
 0x2b9   : > { %v2420_v3 = vadd.f32 %v2419_v29, %v2331_v2  ;;  %v2245_v31 = vadd.f32 %v2244_v22, %v4785_v23  ;;  %v2686_v15 = vadd.f32 %v4001_v9, %v2590_v50  ;;  %v4161_v29 = vld [vmem:[%s5037_s3] ss:$0 sm:$0xff]  ;;  %v4009_v22 = vunpack.c.l.bf16 %v4108_v63 }
 0x2ba   : > { %v2511_v54 = vpop.f32.mrf.mxu0 }
 0x2bb   : > { %v2509_v11 = vadd.f32 %v2508_v55, %v2420_v3  ;;  %v2718_v43 = vmax.f32 %v2686_v15, 0.0 }
 0x2bd   : > { %v2555_v14 = vmul.f32 %v4829_v37, %v2509_v11 }
 0x2be   : > { %v2333_v51 = vpop.f32.mrf.mxu2 }
 0x2bf   : > { %v2591_v45 = vadd.f32 %v4851_v16, %v2555_v14  ;;  %v2334_v25 = vadd.f32 %v2333_v51, %v2245_v31  ;;  %v2422_v20 = vpop.f32.mrf.mxu3 }
 0x2c0   : > { %v2246_v41 = vpop.f32.mrf.mxu1 }
 0x2c1   : > { %v2687_v5 = vadd.f32 %v4002_v33, %v2591_v45  ;;  %v2423_v21 = vadd.f32 %v2422_v20, %v2334_v25  ;;  %v2247_v19 = vadd.f32 %v2246_v41, %v4794_v7 }
 0x2c2   : > { %v2513_v53 = vpop.f32.mrf.mxu0 }
 0x2c3   : > { %v2719_v58 = vmax.f32 %v2687_v5, 0.0  ;;  %v2512_v4 = vadd.f32 %v2511_v54, %v2423_v21  ;;  %v4010_v54 = vunpack.c.h.bf16 %v4108_v63 }
 0x2c5   : > { %v4078_v24 = vpack.c.bf16 %v2719_v58, %v2718_v43  ;;  %v2556_v23 = vmul.f32 %v4829_v37, %v2512_v4  ;;  %v4109_v4 = vld [vmem:[%s4841_s17 + $0x78] sm:$0xff]  }
 0x2c6   : > { %v2335_v8 = vpop.f32.mrf.mxu2 }
 0x2c7   : > { %4121 = vst [vmem:[%s4865_s23 + $0x60] sm:$0xff] %v4078_v24   ;;  %v2336_v48 = vadd.f32 %v2335_v8, %v2247_v19  ;;  %v2424_v17 = vpop.f32.mrf.mxu3  ;;  %v2592_v36 = vadd.f32 %v4851_v16, %v2556_v23 }
 0x2c8   : > { %v2249_v46 = vpop.f32.mrf.mxu1 }
 0x2c9   : > { %v2425_v27 = vadd.f32 %v2424_v17, %v2336_v48  ;;  %v2250_v40 = vadd.f32 %v2249_v46, %v4799_v12  ;;  %v2688_v56 = vadd.f32 %v4005_v28, %v2592_v36  ;;  %v4160_v12 = vld [vmem:[%s5036_s2] ss:$0 sm:$0xff]  ;;  %v4013_v48 = vunpack.c.l.bf16 %v4109_v4 }
 0x2ca   : > { %v2516_v59 = vpop.f32.mrf.mxu0  ;;  %v4014_v46 = vunpack.c.h.bf16 %v4109_v4 }
 0x2cb   : > { %v2514_v35 = vadd.f32 %v2513_v53, %v2425_v27  ;;  %v2720_v61 = vmax.f32 %v2688_v56, 0.0 }
 0x2cd   : > { %v2557_v42 = vmul.f32 %v4829_v37, %v2514_v35 }
 0x2ce   : > { %v2338_v7 = vpop.f32.mrf.mxu2 }
 0x2cf   : > { %v2593_v0 = vadd.f32 %v4851_v16, %v2557_v42  ;;  %v2339_v38 = vadd.f32 %v2338_v7, %v2250_v40  ;;  %v2427_v49 = vpop.f32.mrf.mxu3 }
 0x2d0   : > { %v2251_v52 = vpop.f32.mrf.mxu1 }
 0x2d1   : > { %v2689_v62 = vadd.f32 %v4006_v6, %v2593_v0  ;;  %v2428_v18 = vadd.f32 %v2427_v49, %v2339_v38  ;;  %v2252_v37 = vadd.f32 %v2251_v52, %v4808_v32 }
 0x2d2   : > { %v2518_v60 = vpop.f32.mrf.mxu0 }
 0x2d3   : > { %v2721_v57 = vmax.f32 %v2689_v62, 0.0  ;;  %v2517_v55 = vadd.f32 %v2516_v59, %v2428_v18 }
 0x2d5   : > { %v4083_v10 = vpack.c.bf16 %v2721_v57, %v2720_v61  ;;  %v2558_v16 = vmul.f32 %v4160_v12, %v2517_v55 }
 0x2d6   : > { %v2340_v34 = vpop.f32.mrf.mxu2 }
 0x2d7   : > { %4122 = vst [vmem:[%s4865_s23 + $0x68] sm:$0xff] %v4083_v10   ;;  %v2341_v39 = vadd.f32 %v2340_v34, %v2252_v37  ;;  %v2429_v30 = vpop.f32.mrf.mxu3  ;;  %v2594_v44 = vadd.f32 %v4161_v29, %v2558_v16 }
 0x2d8   : > { %v2254_v47 = vpop.f32.mrf.mxu1 }
 0x2d9   : > { %v2430_v2 = vadd.f32 %v2429_v30, %v2341_v39  ;;  %v2255_v50 = vadd.f32 %v2254_v47, %v4813_v13  ;;  %v2690_v11 = vadd.f32 %v4009_v22, %v2594_v44 }
 0x2da   : > { %v2521_v51 = vpop.f32.mrf.mxu0 }
 0x2db   : > { %v2519_v32 = vadd.f32 %v2518_v60, %v2430_v2  ;;  %v2722_v20 = vmax.f32 %v2690_v11, 0.0 }
 0x2dd   : > { %v2559_v3 = vmul.f32 %v4160_v12, %v2519_v32 }
 0x2de   : > { %v2343_v9 = vpop.f32.mrf.mxu2 }
 0x2df   : > { %v2595_v14 = vadd.f32 %v4161_v29, %v2559_v3  ;;  %v2344_v33 = vadd.f32 %v2343_v9, %v2255_v50  ;;  %v2432_v31 = vpop.f32.mrf.mxu3 }
 0x2e0   : > { %v2256_v25 = vpop.f32.mrf.mxu1 }
 0x2e1   : > { %v2691_v15 = vadd.f32 %v4010_v54, %v2595_v14  ;;  %v2433_v45 = vadd.f32 %v2432_v31, %v2344_v33  ;;  %v2257_v53 = vadd.f32 %v2256_v25, %v4822_v1 }
 0x2e2   : > { %v2523_v8 = vpop.f32.mrf.mxu0 }
 0x2e3   : > { %v2723_v41 = vmax.f32 %v2691_v15, 0.0  ;;  %v2522_v5 = vadd.f32 %v2521_v51, %v2433_v45 }
 0x2e5   : > { %v4088_v21 = vpack.c.bf16 %v2723_v41, %v2722_v20  ;;  %v2560_v13 = vmul.f32 %v4160_v12, %v2522_v5 }
 0x2e6   : > { %v2345_v43 = vpop.f32.mrf.mxu2 }
 0x2e7   : > { %4123 = vst [vmem:[%s4865_s23 + $0x70] sm:$0xff] %v4088_v21   ;;  %v2346_v58 = vadd.f32 %v2345_v43, %v2257_v53  ;;  %v2434_v24 = vpop.f32.mrf.mxu3  ;;  %v2596_v23 = vadd.f32 %v4161_v29, %v2560_v13 }
 0x2e9   : > { %v2435_v19 = vadd.f32 %v2434_v24, %v2346_v58  ;;  %v2692_v27 = vadd.f32 %v4013_v48, %v2596_v23 }
 0x2eb   : > { %v2524_v17 = vadd.f32 %v2523_v8, %v2435_v19  ;;  %v2724_v35 = vmax.f32 %v2692_v27, 0.0 }
 0x2ed   : > { %v2561_v26 = vmul.f32 %v4160_v12, %v2524_v17 }
 0x2ef   : > { %v2597_v36 = vadd.f32 %v4161_v29, %v2561_v26 }
 0x2f1   : > { %v2693_v28 = vadd.f32 %v4014_v46, %v2597_v36 }
 0x2f3   : > { %v2725_v59 = vmax.f32 %v2693_v28, 0.0 }
 0x2f5   : > { %v4093_v1 = vpack.c.bf16 %v2725_v59, %v2724_v35 }
 0x2f7   : > { %4124 = vst [vmem:[%s4865_s23 + $0x78] sm:$0xff] %v4093_v1  }
 0x2f8 PF: > { %s15_s18 = sadd.s32 1, %s4168_s18  }
 0x2f9   : > { %p12_p4 = scmp.ge.s32.totalorder %s15_s18, 4  }
 0x2fb   :  { %14 = sbr.rel (!%p12_p4) target bundleno = 1 (0x1), region = 73 }

// kernel: _lambda_.14
= control target key start
LH: loop header
LB: loop body
LE: loop exit
PB: predicated region body
PF: predicated region fallthrough
CT: control target
= control target key end

     0   :  { %s3190_s1 = inlined_call_operand.vmem [shape: bf16[1152,128], index: 1, kind: input, shape index: {}]   ;;  %s3191_s0 = inlined_call_operand.vmem [shape: bf16[128,1152], index: 0, kind: input, shape index: {}]   ;;  %s3192_s2 = inlined_call_operand.vmem [shape: f32[1,128], index: 2, kind: input, shape index: {}]   ;;  %s3193_s3 = inlined_call_operand.vmem [shape: f32[1,128], index: 3, kind: input, shape index: {}]   ;;  %s3194_s4 = inlined_call_operand.vmem [shape: bf16[128,128], index: 4, kind: output, shape index: {}]  }
   0x1   :  { %v2229_v0 = vld [vmem:[%s3190_s1 + $0x38] sm:$0xff]  ;;  %v2228_v1 = vld [vmem:[%s3190_s1 + $0x30] sm:$0xff]  ;;  %v2227_v2 = vld [vmem:[%s3190_s1 + $0x28] sm:$0xff] }
   0x2   :  { %2341 = vmatpush.bf16.msra.mxu1 %v2229_v0  ;;  %2342 = vmatpush.bf16.msra.mxu2 %v2229_v0  ;;  %v2226_v3 = vld [vmem:[%s3190_s1 + $0x20] sm:$0xff]  ;;  %v2225_v4 = vld [vmem:[%s3190_s1 + $0x18] sm:$0xff]  ;;  %v2224_v5 = vld [vmem:[%s3190_s1 + $0x10] sm:$0xff] }
   0x3   :  { %2343 = vmatpush.bf16.msra.mxu3 %v2229_v0  ;;  %1041 = vmatpush.bf16.msra.mxu0 %v2229_v0  ;;  %v2223_v6 = vld [vmem:[%s3190_s1 + $0x8] sm:$0xff]  ;;  %v2222_v7 = vld [vmem:[%s3190_s1] sm:$0xff]  ;;  %v1648_v8 = vld [vmem:[%s3191_s0 + $0x90] sm:$0xf] }
   0x4   :  { %v2172_v9 = vld [vmem:[%s3191_s0 + $0xb0] sm:$0xf0]  ;;  %v1720_v10 = vld [vmem:[%s3191_s0 + $0x120] sm:$0xf]  ;;  %v2190_v11 = vld [vmem:[%s3191_s0 + $0x140] sm:$0xf0] }
   0x5   :  { %v1792_v12 = vld [vmem:[%s3191_s0 + $0x1b0] sm:$0xf]  ;;  %v2208_v13 = vld [vmem:[%s3191_s0 + $0x1d0] sm:$0xf0]  ;;  %v1576_v14 = vld [vmem:[%s3191_s0] sm:$0xf]  ;;  %v1649_v18 = vor.u32 %v2172_v9, %v1648_v8  ;;  %v1721_v19 = vor.u32 %v2190_v11, %v1720_v10 }
   0x6   :  { %2344 = vmatpush.bf16.msra.mxu1 %v2228_v1  ;;  %2345 = vmatpush.bf16.msra.mxu2 %v2228_v1  ;;  %v2154_v15 = vld [vmem:[%s3191_s0 + $0x20] sm:$0xf0]  ;;  %v2245_v16 = vld [vmem:[%s3190_s1 + $0xb8] sm:$0xff]  ;;  %v1793_v20 = vor.u32 %v2208_v13, %v1792_v12  ;;  %v2244_v24 = vld [vmem:[%s3190_s1 + $0xb0] sm:$0xff] }
   0x7   :  { %2346 = vmatpush.bf16.msra.mxu3 %v2228_v1  ;;  %1042 = vmatpush.bf16.msra.mxu0 %v2228_v1  ;;  %v2237_v17 = vld [vmem:[%s3190_s1 + $0x78] sm:$0xff]  ;;  %v1577_v21 = vor.u32 %v2154_v15, %v1576_v14  ;;  %v2236_v25 = vld [vmem:[%s3190_s1 + $0x70] sm:$0xff]  ;;  %v2243_v28 = vld [vmem:[%s3190_s1 + $0xa8] sm:$0xff] }
   0x8   :  { %v2253_v22 = vld [vmem:[%s3190_s1 + $0xf8] sm:$0xff]  ;;  %v2252_v26 = vld [vmem:[%s3190_s1 + $0xf0] sm:$0xff]  ;;  %v2235_v29 = vld [vmem:[%s3190_s1 + $0x68] sm:$0xff] }
   0x9   :  { %v2261_v23 = vld [vmem:[%s3190_s1 + $0x138] sm:$0xff]  ;;  %v2260_v27 = vld [vmem:[%s3190_s1 + $0x130] sm:$0xff]  ;;  %v2251_v30 = vld [vmem:[%s3190_s1 + $0xe8] sm:$0xff] }
   0xa   :  { %2347 = vmatpush.bf16.msra.mxu1 %v2227_v2  ;;  %2348 = vmatpush.bf16.msra.mxu2 %v2227_v2  ;;  %v2259_v31 = vld [vmem:[%s3190_s1 + $0x128] sm:$0xff]  ;;  %v2242_v32 = vld [vmem:[%s3190_s1 + $0xa0] sm:$0xff]  ;;  %v1684_v36 = vld [vmem:[%s3191_s0 + $0xd8] sm:$0xf] }
   0xb   :  { %2349 = vmatpush.bf16.msra.mxu3 %v2227_v2  ;;  %1043 = vmatpush.bf16.msra.mxu0 %v2227_v2  ;;  %v2234_v33 = vld [vmem:[%s3190_s1 + $0x60] sm:$0xff]  ;;  %v2181_v37 = vld [vmem:[%s3191_s0 + $0xf8] sm:$0xf0]  ;;  %v1756_v38 = vld [vmem:[%s3191_s0 + $0x168] sm:$0xf] }
   0xc   :  { %v2250_v34 = vld [vmem:[%s3190_s1 + $0xe0] sm:$0xff]  ;;  %v2199_v39 = vld [vmem:[%s3191_s0 + $0x188] sm:$0xf0]  ;;  %v1828_v40 = vld [vmem:[%s3191_s0 + $0x1f8] sm:$0xf]  ;;  %v1685_v46 = vor.u32 %v2181_v37, %v1684_v36 }
   0xd   :  { %v2258_v35 = vld [vmem:[%s3190_s1 + $0x120] sm:$0xff]  ;;  %v2217_v41 = vld [vmem:[%s3191_s0 + $0x218] sm:$0xf0]  ;;  %v1612_v42 = vld [vmem:[%s3191_s0 + $0x48] sm:$0xf]  ;;  %v1757_v47 = vor.u32 %v2199_v39, %v1756_v38 }
   0xe   :  { %2350 = vmatpush.bf16.msra.mxu1 %v2226_v3  ;;  %2351 = vmatpush.bf16.msra.mxu2 %v2226_v3  ;;  %v2163_v43 = vld [vmem:[%s3191_s0 + $0x68] sm:$0xf0]  ;;  %v2241_v44 = vld [vmem:[%s3190_s1 + $0x98] sm:$0xff]  ;;  %v1829_v48 = vor.u32 %v2217_v41, %v1828_v40  ;;  %v2240_v52 = vld [vmem:[%s3190_s1 + $0x90] sm:$0xff] }
   0xf   :  { %2352 = vmatpush.bf16.msra.mxu3 %v2226_v3  ;;  %1044 = vmatpush.bf16.msra.mxu0 %v2226_v3  ;;  %v2233_v45 = vld [vmem:[%s3190_s1 + $0x58] sm:$0xff]  ;;  %v1613_v49 = vor.u32 %v2163_v43, %v1612_v42  ;;  %v2232_v53 = vld [vmem:[%s3190_s1 + $0x50] sm:$0xff]  ;;  %v2239_v56 = vld [vmem:[%s3190_s1 + $0x88] sm:$0xff] }
  0x10   :  { %v2249_v50 = vld [vmem:[%s3190_s1 + $0xd8] sm:$0xff]  ;;  %v2248_v54 = vld [vmem:[%s3190_s1 + $0xd0] sm:$0xff]  ;;  %v2231_v57 = vld [vmem:[%s3190_s1 + $0x48] sm:$0xff] }
  0x11   :  { %v2257_v51 = vld [vmem:[%s3190_s1 + $0x118] sm:$0xff]  ;;  %v2256_v55 = vld [vmem:[%s3190_s1 + $0x110] sm:$0xff]  ;;  %v2247_v58 = vld [vmem:[%s3190_s1 + $0xc8] sm:$0xff] }
  0x12   :  { %2353 = vmatpush.bf16.msra.mxu1 %v2225_v4  ;;  %2354 = vmatpush.bf16.msra.mxu2 %v2225_v4  ;;  %v2255_v59 = vld [vmem:[%s3190_s1 + $0x108] sm:$0xff]  ;;  %v2238_v60 = vld [vmem:[%s3190_s1 + $0x80] sm:$0xff]  ;;  %v2277_v2 = vld [vmem:[%s3190_s1 + $0x1b8] sm:$0xff] }
  0x13   :  { %2355 = vmatpush.bf16.msra.mxu3 %v2225_v4  ;;  %1045 = vmatpush.bf16.msra.mxu0 %v2225_v4  ;;  %v2230_v61 = vld [vmem:[%s3190_s1 + $0x40] sm:$0xff]  ;;  %v1578_v1 = vld [vmem:[%s3191_s0 + $0x24] sm:$0xf0]  ;;  %v2269_v3 = vld [vmem:[%s3190_s1 + $0x178] sm:$0xff] }
  0x14   :  { %v2150_v62 = vld [vmem:[%s3191_s0 + $0x4] sm:$0xf]  ;;  %v1584_v4 = vld [vmem:[%s3191_s0 + $0x8] sm:$0xf]  ;;  %v1592_v8 = vld [vmem:[%s3191_s0 + $0x10] sm:$0xf] }
  0x15   :  { %v2246_v63 = vld [vmem:[%s3190_s1 + $0xc0] sm:$0xff]  ;;  %v2156_v9 = vld [vmem:[%s3191_s0 + $0x30] sm:$0xf0]  ;;  %v2285_v10 = vld [vmem:[%s3190_s1 + $0x1f8] sm:$0xff]  ;;  %v1581_v12 = vor.u32 %v2150_v62, %v1578_v1 }
  0x16   :  { %2356 = vmatpush.bf16.msra.mxu1 %v2224_v5  ;;  %2357 = vmatpush.bf16.msra.mxu2 %v2224_v5  ;;  %v2254_v0 = vld [vmem:[%s3190_s1 + $0x100] sm:$0xff]  ;;  %v2293_v11 = vld [vmem:[%s3190_s1 + $0x238] sm:$0xff]  ;;  %v1593_v15 = vor.u32 %v2156_v9, %v1592_v8  ;;  %v2168_v40 = vld [vmem:[%s3191_s0 + $0x94] sm:$0xf] }
  0x17   :  { %2358 = vmatpush.bf16.msra.mxu3 %v2224_v5  ;;  %1046 = vmatpush.bf16.msra.mxu0 %v2224_v5  ;;  %v2155_v5 = vld [vmem:[%s3191_s0 + $0x28] sm:$0xf0]  ;;  %v2274_v36 = vld [vmem:[%s3190_s1 + $0x1a0] sm:$0xff]  ;;  %v1650_v41 = vld [vmem:[%s3191_s0 + $0xb4] sm:$0xf0] }
  0x18   :  { %v1585_v13 = vor.u32 %v2155_v5, %v1584_v4  ;;  %v2282_v37 = vld [vmem:[%s3190_s1 + $0x1e0] sm:$0xff]  ;;  %v1656_v42 = vld [vmem:[%s3191_s0 + $0x98] sm:$0xf]  ;;  %v2173_v43 = vld [vmem:[%s3191_s0 + $0xb8] sm:$0xf0] }
  0x19   :  { %v2266_v38 = vld [vmem:[%s3190_s1 + $0x160] sm:$0xff]  ;;  %v1700_v62 = vld [vmem:[%s3191_s0 + $0xe8] sm:$0xf]  ;;  %v2272_v4 = vld [vmem:[%s3190_s1 + $0x190] sm:$0xff] }
  0x1a   :  { %2359 = vmatpush.bf16.msra.mxu1 %v2223_v6  ;;  %2360 = vmatpush.bf16.msra.mxu2 %v2223_v6  ;;  %v2290_v39 = vld [vmem:[%s3190_s1 + $0x220] sm:$0xff]  ;;  %v2280_v5 = vld [vmem:[%s3190_s1 + $0x1d0] sm:$0xff]  ;;  %v1722_v9 = vld [vmem:[%s3191_s0 + $0x144] sm:$0xf0] }
  0x1b   :  { %2361 = vmatpush.bf16.msra.mxu3 %v2223_v6  ;;  %1047 = vmatpush.bf16.msra.mxu0 %v2223_v6  ;;  %v2151_v6 = vld [vmem:[%s3191_s0 + $0xc] sm:$0xf]  ;;  %v2186_v8 = vld [vmem:[%s3191_s0 + $0x124] sm:$0xf] }
  0x1e   :  { %2362 = vmatpush.bf16.msra.mxu1 %v2222_v7  ;;  %2363 = vmatpush.bf16.msra.mxu2 %v2222_v7 }
  0x1f   :  { %2364 = vmatpush.bf16.msra.mxu3 %v2222_v7  ;;  %1048 = vmatpush.bf16.msra.mxu0 %v2222_v7  ;;  %v1586_v7 = vld [vmem:[%s3191_s0 + $0x2c] sm:$0xf0] }
  0x20   :  { %v1589_v14 = vor.u32 %v2151_v6, %v1586_v7  ;;  %v2264_v6 = vld [vmem:[%s3190_s1 + $0x150] sm:$0xff] }
  0x21   :  { %1059 = vmatmul.bf16.vlgmr.msra.gmra.mxu1 %v1649_v18  ;;  %1069 = vmatmul.bf16.vlgmr.msra.gmra.mxu2 %v1721_v19  ;;  %v2284_v18 = vld [vmem:[%s3190_s1 + $0x1f0] sm:$0xff] }
  0x22   :  { %1139 = vmatpush.bf16.msrb.mxu2 %v2245_v16  ;;  %1090 = vmatpush.bf16.msrb.mxu1 %v2237_v17  ;;  %v2276_v16 = vld [vmem:[%s3190_s1 + $0x1b0] sm:$0xff] }
  0x23   :  { %1079 = vmatmul.bf16.vlgmr.msra.gmra.mxu3 %v1793_v20  ;;  %1049 = vmatmul.bf16.vlgmr.msra.gmra.mxu0 %v1577_v21  ;;  %v2268_v17 = vld [vmem:[%s3190_s1 + $0x170] sm:$0xff]  ;;  %v2275_v20 = vld [vmem:[%s3190_s1 + $0x1a8] sm:$0xff] }
  0x24   :  { %1188 = vmatpush.bf16.msrb.mxu3 %v2253_v22  ;;  %1237 = vmatpush.bf16.msrb.mxu0 %v2261_v23  ;;  %v2292_v19 = vld [vmem:[%s3190_s1 + $0x230] sm:$0xff]  ;;  %v2267_v21 = vld [vmem:[%s3190_s1 + $0x168] sm:$0xff] }
  0x25   :  { %v2283_v22 = vld [vmem:[%s3190_s1 + $0x1e8] sm:$0xff]  ;;  %v2288_v7 = vld [vmem:[%s3190_s1 + $0x210] sm:$0xff] }
  0x26   :  { %1140 = vmatpush.bf16.msrb.mxu2 %v2244_v24  ;;  %1091 = vmatpush.bf16.msrb.mxu1 %v2236_v25  ;;  %v2291_v23 = vld [vmem:[%s3190_s1 + $0x228] sm:$0xff]  ;;  %v1614_v25 = vld [vmem:[%s3191_s0 + $0x6c] sm:$0xf0] }
  0x27   :  { %v2159_v24 = vld [vmem:[%s3191_s0 + $0x4c] sm:$0xf] }
  0x28   :  { %1189 = vmatpush.bf16.msrb.mxu3 %v2252_v26  ;;  %1238 = vmatpush.bf16.msrb.mxu0 %v2260_v27  ;;  %v1620_v26 = vld [vmem:[%s3191_s0 + $0x50] sm:$0xf]  ;;  %v2164_v27 = vld [vmem:[%s3191_s0 + $0x70] sm:$0xf0] }
  0x2a   :  { %1141 = vmatpush.bf16.msrb.mxu2 %v2243_v28  ;;  %1092 = vmatpush.bf16.msrb.mxu1 %v2235_v29  ;;  %v2160_v28 = vld [vmem:[%s3191_s0 + $0x54] sm:$0xf]  ;;  %v1622_v29 = vld [vmem:[%s3191_s0 + $0x74] sm:$0xf0] }
  0x2c   :  { %1190 = vmatpush.bf16.msrb.mxu3 %v2251_v30  ;;  %1239 = vmatpush.bf16.msrb.mxu0 %v2259_v31  ;;  %v1628_v30 = vld [vmem:[%s3191_s0 + $0x58] sm:$0xf]  ;;  %v2165_v31 = vld [vmem:[%s3191_s0 + $0x78] sm:$0xf0] }
  0x2e   :  { %1142 = vmatpush.bf16.msrb.mxu2 %v2242_v32  ;;  %1093 = vmatpush.bf16.msrb.mxu1 %v2234_v33  ;;  %v1617_v32 = vor.u32 %v2159_v24, %v1614_v25  ;;  %v1621_v33 = vor.u32 %v2164_v27, %v1620_v26  ;;  %v2195_v24 = vld [vmem:[%s3191_s0 + $0x16c] sm:$0xf]  ;;  %v1758_v25 = vld [vmem:[%s3191_s0 + $0x18c] sm:$0xf0]  ;;  %v2200_v27 = vld [vmem:[%s3191_s0 + $0x190] sm:$0xf0] }
  0x2f   :  { %v1764_v26 = vld [vmem:[%s3191_s0 + $0x170] sm:$0xf] }
  0x30   :  { %1191 = vmatpush.bf16.msrb.mxu3 %v2250_v34  ;;  %1240 = vmatpush.bf16.msrb.mxu0 %v2258_v35  ;;  %v1625_v34 = vor.u32 %v2160_v28, %v1622_v29  ;;  %v1629_v35 = vor.u32 %v2165_v31, %v1628_v30  ;;  %v2196_v28 = vld [vmem:[%s3191_s0 + $0x174] sm:$0xf]  ;;  %v1766_v29 = vld [vmem:[%s3191_s0 + $0x194] sm:$0xf0]  ;;  %v2201_v31 = vld [vmem:[%s3191_s0 + $0x198] sm:$0xf0] }
  0x31   :  { %1064 = vmatmul.bf16.gmra.mxu1 %v1685_v46  ;;  %1074 = vmatmul.bf16.gmra.mxu2 %v1757_v47  ;;  %v1664_v46 = vld [vmem:[%s3191_s0 + $0xa0] sm:$0xf]  ;;  %v2174_v47 = vld [vmem:[%s3191_s0 + $0xc0] sm:$0xf0]  ;;  %v1772_v30 = vld [vmem:[%s3191_s0 + $0x178] sm:$0xf] }
  0x32   :  { %1143 = vmatpush.bf16.msrb.mxu2 %v2241_v44  ;;  %1094 = vmatpush.bf16.msrb.mxu1 %v2233_v45  ;;  %v2169_v44 = vld [vmem:[%s3191_s0 + $0x9c] sm:$0xf]  ;;  %v1658_v45 = vld [vmem:[%s3191_s0 + $0xbc] sm:$0xf0] }
  0x33   :  { %1084 = vmatmul.bf16.gmra.mxu3 %v1829_v48  ;;  %1054 = vmatmul.bf16.gmra.mxu0 %v1613_v49  ;;  %v1653_v48 = vor.u32 %v2168_v40, %v1650_v41  ;;  %v1657_v49 = vor.u32 %v2173_v43, %v1656_v42  ;;  %v2204_v40 = vld [vmem:[%s3191_s0 + $0x1b4] sm:$0xf]  ;;  %v1794_v41 = vld [vmem:[%s3191_s0 + $0x1d4] sm:$0xf0]  ;;  %v2209_v43 = vld [vmem:[%s3191_s0 + $0x1d8] sm:$0xf0] }
  0x34   :  { %1192 = vmatpush.bf16.msrb.mxu3 %v2249_v50  ;;  %1241 = vmatpush.bf16.msrb.mxu0 %v2257_v51  ;;  %v1661_v50 = vor.u32 %v2169_v44, %v1658_v45  ;;  %v1665_v51 = vor.u32 %v2174_v47, %v1664_v46  ;;  %v1800_v42 = vld [vmem:[%s3191_s0 + $0x1b8] sm:$0xf]  ;;  %v2205_v44 = vld [vmem:[%s3191_s0 + $0x1bc] sm:$0xf]  ;;  %v1802_v45 = vld [vmem:[%s3191_s0 + $0x1dc] sm:$0xf0] }
  0x35   :  { %v1808_v46 = vld [vmem:[%s3191_s0 + $0x1c0] sm:$0xf]  ;;  %v2210_v47 = vld [vmem:[%s3191_s0 + $0x1e0] sm:$0xf0] }
  0x36   :  { %1144 = vmatpush.bf16.msrb.mxu2 %v2240_v52  ;;  %1095 = vmatpush.bf16.msrb.mxu1 %v2232_v53  ;;  %v2273_v52 = vld [vmem:[%s3190_s1 + $0x198] sm:$0xff] }
  0x37   :  { %v2281_v53 = vld [vmem:[%s3190_s1 + $0x1d8] sm:$0xff] }
  0x38   :  { %1193 = vmatpush.bf16.msrb.mxu3 %v2248_v54  ;;  %1242 = vmatpush.bf16.msrb.mxu0 %v2256_v55  ;;  %v2265_v54 = vld [vmem:[%s3190_s1 + $0x158] sm:$0xff] }
  0x39   :  { %v2289_v55 = vld [vmem:[%s3190_s1 + $0x218] sm:$0xff] }
  0x3a   :  { %1145 = vmatpush.bf16.msrb.mxu2 %v2239_v56  ;;  %1096 = vmatpush.bf16.msrb.mxu1 %v2231_v57  ;;  %v2177_v56 = vld [vmem:[%s3191_s0 + $0xdc] sm:$0xf]  ;;  %v1686_v57 = vld [vmem:[%s3191_s0 + $0xfc] sm:$0xf0] }
  0x3c   :  { %1194 = vmatpush.bf16.msrb.mxu3 %v2247_v58  ;;  %1243 = vmatpush.bf16.msrb.mxu0 %v2255_v59  ;;  %v1692_v58 = vld [vmem:[%s3191_s0 + $0xe0] sm:$0xf]  ;;  %v2182_v59 = vld [vmem:[%s3191_s0 + $0x100] sm:$0xf0] }
  0x3d   :  { %v1693_v1 = vor.u32 %v2182_v59, %v1692_v58  ;;  %v2213_v58 = vld [vmem:[%s3191_s0 + $0x1fc] sm:$0xf]  ;;  %v1830_v59 = vld [vmem:[%s3191_s0 + $0x21c] sm:$0xf0] }
  0x3e   :  { %1146 = vmatpush.bf16.msrb.mxu2 %v2238_v60  ;;  %1097 = vmatpush.bf16.msrb.mxu1 %v2230_v61  ;;  %v2178_v60 = vld [vmem:[%s3191_s0 + $0xe4] sm:$0xf]  ;;  %v1694_v61 = vld [vmem:[%s3191_s0 + $0x104] sm:$0xf0] }
  0x40   :  { %1195 = vmatpush.bf16.msrb.mxu3 %v2246_v63  ;;  %1244 = vmatpush.bf16.msrb.mxu0 %v2254_v0  ;;  %v2183_v63 = vld [vmem:[%s3191_s0 + $0x108] sm:$0xf0]  ;;  %v1689_v0 = vor.u32 %v2177_v56, %v1686_v57 }
  0x41   :  { %1098 = vmatmul.bf16.vlgmr.msrb.gmra.mxu1 %v1581_v12  ;;  %1147 = vmatmul.bf16.vlgmr.msrb.gmra.mxu2 %v1585_v13  ;;  %v2187_v12 = vld [vmem:[%s3191_s0 + $0x12c] sm:$0xf]  ;;  %v1730_v13 = vld [vmem:[%s3191_s0 + $0x14c] sm:$0xf0] }
  0x42   :  { %1335 = vmatpush.bf16.msra.mxu2 %v2277_v2  ;;  %1286 = vmatpush.bf16.msra.mxu1 %v2269_v3  ;;  %v1697_v2 = vor.u32 %v2178_v60, %v1694_v61  ;;  %v1701_v3 = vor.u32 %v2183_v63, %v1700_v62  ;;  %v1836_v60 = vld [vmem:[%s3191_s0 + $0x200] sm:$0xf]  ;;  %v2218_v61 = vld [vmem:[%s3191_s0 + $0x220] sm:$0xf0]  ;;  %v1838_v63 = vld [vmem:[%s3191_s0 + $0x224] sm:$0xf0] }
  0x43   :  { %1196 = vmatmul.bf16.vlgmr.msrb.gmra.mxu3 %v1589_v14  ;;  %1245 = vmatmul.bf16.vlgmr.msrb.gmra.mxu0 %v1593_v15  ;;  %v1736_v14 = vld [vmem:[%s3191_s0 + $0x130] sm:$0xf]  ;;  %v2192_v15 = vld [vmem:[%s3191_s0 + $0x150] sm:$0xf0]  ;;  %v2214_v62 = vld [vmem:[%s3191_s0 + $0x204] sm:$0xf] }
  0x44   :  { %1384 = vmatpush.bf16.msra.mxu3 %v2285_v10  ;;  %1433 = vmatpush.bf16.msra.mxu0 %v2293_v11  ;;  %v1728_v10 = vld [vmem:[%s3191_s0 + $0x128] sm:$0xf]  ;;  %v2191_v11 = vld [vmem:[%s3191_s0 + $0x148] sm:$0xf0] }
  0x46   :  { %1336 = vmatpush.bf16.msra.mxu2 %v2276_v16  ;;  %1287 = vmatpush.bf16.msra.mxu1 %v2268_v17  ;;  %v1725_v16 = vor.u32 %v2186_v8, %v1722_v9  ;;  %v1729_v17 = vor.u32 %v2191_v11, %v1728_v10 }
  0x48   :  { %1385 = vmatpush.bf16.msra.mxu3 %v2284_v18  ;;  %1434 = vmatpush.bf16.msra.mxu0 %v2292_v19  ;;  %v1733_v18 = vor.u32 %v2187_v12, %v1730_v13  ;;  %v1737_v19 = vor.u32 %v2192_v15, %v1736_v14  ;;  %v2152_v14 = vld [vmem:[%s3191_s0 + $0x14] sm:$0xf]  ;;  %v1594_v15 = vld [vmem:[%s3191_s0 + $0x34] sm:$0xf0] }
  0x4a   :  { %1337 = vmatpush.bf16.msra.mxu2 %v2275_v20  ;;  %1288 = vmatpush.bf16.msra.mxu1 %v2267_v21  ;;  %v2271_v20 = vld [vmem:[%s3190_s1 + $0x188] sm:$0xff] }
  0x4b   :  { %v2279_v21 = vld [vmem:[%s3190_s1 + $0x1c8] sm:$0xff] }
  0x4c   :  { %1386 = vmatpush.bf16.msra.mxu3 %v2283_v22  ;;  %1435 = vmatpush.bf16.msra.mxu0 %v2291_v23  ;;  %v2263_v22 = vld [vmem:[%s3190_s1 + $0x148] sm:$0xff] }
  0x4d   :  { %v2287_v23 = vld [vmem:[%s3190_s1 + $0x208] sm:$0xff] }
  0x4e   :  { %1338 = vmatpush.bf16.msra.mxu2 %v2274_v36  ;;  %1289 = vmatpush.bf16.msra.mxu1 %v2266_v38  ;;  %v2270_v36 = vld [vmem:[%s3190_s1 + $0x180] sm:$0xff] }
  0x4f   :  { %v2262_v38 = vld [vmem:[%s3190_s1 + $0x140] sm:$0xff] }
  0x50   :  { %1387 = vmatpush.bf16.msra.mxu3 %v2282_v37  ;;  %1436 = vmatpush.bf16.msra.mxu0 %v2290_v39  ;;  %v2278_v37 = vld [vmem:[%s3190_s1 + $0x1c0] sm:$0xff] }
  0x51   :  { %1103 = vmatmul.bf16.gmra.mxu1 %v1617_v32  ;;  %1152 = vmatmul.bf16.gmra.mxu2 %v1621_v33  ;;  %v1761_v32 = vor.u32 %v2195_v24, %v1758_v25  ;;  %v1765_v33 = vor.u32 %v2200_v27, %v1764_v26  ;;  %v2286_v39 = vld [vmem:[%s3190_s1 + $0x200] sm:$0xff]  ;;  %v1597_v24 = vor.u32 %v2152_v14, %v1594_v15 }
  0x52   :  { %1339 = vmatpush.bf16.msra.mxu2 %v2273_v52  ;;  %1290 = vmatpush.bf16.msra.mxu1 %v2265_v54  ;;  %v1809_v52 = vor.u32 %v2210_v47, %v1808_v46  ;;  %v2167_v46 = vld [vmem:[%s3191_s0 + $0x88] sm:$0xf0]  ;;  %v2170_v14 = vld [vmem:[%s3191_s0 + $0xa4] sm:$0xf] }
  0x53   :  { %1201 = vmatmul.bf16.gmra.mxu3 %v1625_v34  ;;  %1250 = vmatmul.bf16.gmra.mxu0 %v1629_v35  ;;  %v1769_v34 = vor.u32 %v2196_v28, %v1766_v29  ;;  %v1773_v35 = vor.u32 %v2201_v31, %v1772_v30 }
  0x54   :  { %1388 = vmatpush.bf16.msra.mxu3 %v2281_v53  ;;  %1437 = vmatpush.bf16.msra.mxu0 %v2289_v55 }
  0x56   :  { %1340 = vmatpush.bf16.msra.mxu2 %v2272_v4  ;;  %1291 = vmatpush.bf16.msra.mxu1 %v2264_v6  ;;  %v1833_v4 = vor.u32 %v2213_v58, %v1830_v59 }
  0x58   :  { %1389 = vmatpush.bf16.msra.mxu3 %v2280_v5  ;;  %1438 = vmatpush.bf16.msra.mxu0 %v2288_v7  ;;  %v1837_v5 = vor.u32 %v2218_v61, %v1836_v60  ;;  %v1841_v7 = vor.u32 %v2214_v62, %v1838_v63 }
  0x5a   :  { %1341 = vmatpush.bf16.msra.mxu2 %v2271_v20  ;;  %1292 = vmatpush.bf16.msra.mxu1 %v2263_v22  ;;  %v1608_v20 = vld [vmem:[%s3191_s0 + $0x20] sm:$0xf] }
  0x5c   :  { %1390 = vmatpush.bf16.msra.mxu3 %v2279_v21  ;;  %1439 = vmatpush.bf16.msra.mxu0 %v2287_v23  ;;  %v2158_v21 = vld [vmem:[%s3191_s0 + $0x40] sm:$0xf0] }
  0x5d   :  { %v1609_v28 = vor.u32 %v2158_v21, %v1608_v20  ;;  %v2176_v20 = vld [vmem:[%s3191_s0 + $0xd0] sm:$0xf0] }
  0x5e   :  { %1342 = vmatpush.bf16.msra.mxu2 %v2270_v36  ;;  %1293 = vmatpush.bf16.msra.mxu1 %v2262_v38  ;;  %v2161_v38 = vld [vmem:[%s3191_s0 + $0x5c] sm:$0xf] }
  0x60   :  { %1391 = vmatpush.bf16.msra.mxu3 %v2278_v37  ;;  %1440 = vmatpush.bf16.msra.mxu0 %v2286_v39  ;;  %v1630_v39 = vld [vmem:[%s3191_s0 + $0x7c] sm:$0xf0] }
  0x61   :  { %1108 = vmatmul.bf16.gmra.mxu1 %v1653_v48  ;;  %1157 = vmatmul.bf16.gmra.mxu2 %v1657_v49  ;;  %v1797_v48 = vor.u32 %v2204_v40, %v1794_v41  ;;  %v1801_v49 = vor.u32 %v2209_v43, %v1800_v42  ;;  %v1636_v41 = vld [vmem:[%s3191_s0 + $0x60] sm:$0xf]  ;;  %v2166_v42 = vld [vmem:[%s3191_s0 + $0x80] sm:$0xf0] }
  0x62   :  { %v2162_v43 = vld [vmem:[%s3191_s0 + $0x64] sm:$0xf] }
  0x63   :  { %1206 = vmatmul.bf16.gmra.mxu3 %v1661_v50  ;;  %1255 = vmatmul.bf16.gmra.mxu0 %v1665_v51  ;;  %v1805_v51 = vor.u32 %v2205_v44, %v1802_v45  ;;  %v1638_v44 = vld [vmem:[%s3191_s0 + $0x84] sm:$0xf0] }
  0x64   :  { %v1644_v45 = vld [vmem:[%s3191_s0 + $0x68] sm:$0xf] }
  0x65   :  { %v1645_v58 = vor.u32 %v2167_v46, %v1644_v45  ;;  %v1708_v45 = vld [vmem:[%s3191_s0 + $0xf0] sm:$0xf]  ;;  %v2184_v46 = vld [vmem:[%s3191_s0 + $0x110] sm:$0xf0] }
  0x71   :  { %1113 = vmatmul.bf16.gmra.mxu1 %v1689_v0  ;;  %1162 = vmatmul.bf16.gmra.mxu2 %v1693_v1  ;;  %v1844_v0 = vld [vmem:[%s3191_s0 + $0x208] sm:$0xf]  ;;  %v2219_v1 = vld [vmem:[%s3191_s0 + $0x228] sm:$0xf0] }
  0x72   :  { %v1845_v8 = vor.u32 %v2219_v1, %v1844_v0 }
  0x73   :  { %1211 = vmatmul.bf16.gmra.mxu3 %v1697_v2  ;;  %1260 = vmatmul.bf16.gmra.mxu0 %v1701_v3 }
  0x81   :  { %1118 = vmatmul.bf16.gmra.mxu1 %v1725_v16  ;;  %1167 = vmatmul.bf16.gmra.mxu2 %v1729_v17  ;;  %v1600_v16 = vld [vmem:[%s3191_s0 + $0x18] sm:$0xf]  ;;  %v2157_v17 = vld [vmem:[%s3191_s0 + $0x38] sm:$0xf0] }
  0x82   :  { %v1601_v25 = vor.u32 %v2157_v17, %v1600_v16  ;;  %v1672_v16 = vld [vmem:[%s3191_s0 + $0xa8] sm:$0xf]  ;;  %v2175_v17 = vld [vmem:[%s3191_s0 + $0xc8] sm:$0xf0] }
  0x83   :  { %1216 = vmatmul.bf16.gmra.mxu3 %v1733_v18  ;;  %1265 = vmatmul.bf16.gmra.mxu0 %v1737_v19  ;;  %v2153_v18 = vld [vmem:[%s3191_s0 + $0x1c] sm:$0xf]  ;;  %v1602_v19 = vld [vmem:[%s3191_s0 + $0x3c] sm:$0xf0] }
  0x84   :  { %v1605_v27 = vor.u32 %v2153_v18, %v1602_v19  ;;  %v1674_v18 = vld [vmem:[%s3191_s0 + $0xcc] sm:$0xf0] }
  0x85   :  { %v1680_v19 = vld [vmem:[%s3191_s0 + $0xb0] sm:$0xf] }
  0x91   :  { %1123 = vmatmul.bf16.gmra.mxu1 %v1761_v32  ;;  %1172 = vmatmul.bf16.gmra.mxu2 %v1765_v33 }
  0x93   :  { %1221 = vmatmul.bf16.gmra.mxu3 %v1769_v34  ;;  %1270 = vmatmul.bf16.gmra.mxu0 %v1773_v35 }
  0x9e   :  { %v2824_v50 = vpop.f32.mrf.mxu1 }
  0xa0   :  { %v1050_v53 = vpop.f32.mrf.mxu0 }
  0xa1   :  { %1128 = vmatmul.bf16.gmra.mxu1 %v1797_v48  ;;  %1177 = vmatmul.bf16.gmra.mxu2 %v1801_v49 }
  0xa3   :  { %1226 = vmatmul.bf16.gmra.mxu3 %v1805_v51  ;;  %1275 = vmatmul.bf16.gmra.mxu0 %v1809_v52  ;;  %v1633_v51 = vor.u32 %v2161_v38, %v1630_v39  ;;  %v1637_v52 = vor.u32 %v2166_v42, %v1636_v41 }
  0xa4   :  { %v2826_v54 = vpop.f32.mrf.mxu2 }
  0xa6   :  { %v2828_v55 = vpop.f32.mrf.mxu3  ;;  %v2830_v56 = vpop.f32.mrf.mxu1 }
  0xa8   :  { %v1052_v57 = vpop.f32.mrf.mxu0 }
  0xac   :  { %v2856_v2 = vpop.f32.mrf.mxu2 }
  0xae   :  { %v2858_v3 = vpop.f32.mrf.mxu3  ;;  %v2860_v6 = vpop.f32.mrf.mxu1 }
  0xb0   :  { %v1055_v9 = vpop.f32.mrf.mxu0 }
  0xb1   :  { %1133 = vmatmul.bf16.gmra.mxu1 %v1833_v4  ;;  %1182 = vmatmul.bf16.gmra.mxu2 %v1837_v5 }
  0xb3   :  { %1231 = vmatmul.bf16.gmra.mxu3 %v1841_v7  ;;  %1280 = vmatmul.bf16.gmra.mxu0 %v1845_v8 }
  0xb4   :  { %v2862_v10 = vpop.f32.mrf.mxu2 }
  0xb6   :  { %v2864_v11 = vpop.f32.mrf.mxu3  ;;  %v2866_v12 = vpop.f32.mrf.mxu1 }
  0xb8   :  { %v1057_v13 = vpop.f32.mrf.mxu0 }
  0xbc   :  { %v2892_v22 = vpop.f32.mrf.mxu2 }
  0xbe   :  { %v2894_v23 = vpop.f32.mrf.mxu3  ;;  %v1099_v26 = vpop.f32.mrf.mxu1 }
  0xbf   :  { %v1100_v29 = vadd.f32 %v1099_v26, %v1050_v53 }
  0xc0   :  { %v1246_v30 = vpop.f32.mrf.mxu0 }
  0xc1   :  { %1294 = vmatmul.bf16.vlgmr.msra.gmra.mxu1 %v1597_v24  ;;  %1343 = vmatmul.bf16.vlgmr.msra.gmra.mxu2 %v1601_v25 }
  0xc3   :  { %1392 = vmatmul.bf16.vlgmr.msra.gmra.mxu3 %v1605_v27  ;;  %1441 = vmatmul.bf16.vlgmr.msra.gmra.mxu0 %v1609_v28  ;;  %v1673_v27 = vor.u32 %v2175_v17, %v1672_v16 }
  0xc4   :  { %v1148_v31 = vpop.f32.mrf.mxu2 }
  0xc5   :  { %v1149_v32 = vadd.f32 %v1148_v31, %v1100_v29 }
  0xc6   :  { %v1197_v33 = vpop.f32.mrf.mxu3  ;;  %v1101_v34 = vpop.f32.mrf.mxu1 }
  0xc7   :  { %v1198_v35 = vadd.f32 %v1197_v33, %v1149_v32  ;;  %v1102_v36 = vadd.f32 %v1101_v34, %v1052_v57  ;;  %v1641_v57 = vor.u32 %v2162_v43, %v1638_v44  ;;  %v2179_v43 = vld [vmem:[%s3191_s0 + $0xec] sm:$0xf] }
  0xc8   :  { %v1248_v37 = vpop.f32.mrf.mxu0 }
  0xc9   :  { %v2902_v40 = vadd.f32 %v1246_v30, %v1198_v35  ;;  %v1681_v30 = vor.u32 %v2176_v20, %v1680_v19  ;;  %v1744_v19 = vld [vmem:[%s3191_s0 + $0x138] sm:$0xf]  ;;  %v2193_v20 = vld [vmem:[%s3191_s0 + $0x158] sm:$0xf0] }
  0xcc   :  { %v1150_v47 = vpop.f32.mrf.mxu2 }
  0xcd   :  { %v1151_v48 = vadd.f32 %v1150_v47, %v1102_v36  ;;  %v1710_v47 = vld [vmem:[%s3191_s0 + $0x114] sm:$0xf0] }
  0xce   :  { %v1199_v49 = vpop.f32.mrf.mxu3  ;;  %v1104_v53 = vpop.f32.mrf.mxu1 }
  0xcf   :  { %v1200_v59 = vadd.f32 %v1199_v49, %v1151_v48  ;;  %v1105_v60 = vadd.f32 %v1104_v53, %v1055_v9  ;;  %v1666_v9 = vld [vmem:[%s3191_s0 + $0xc4] sm:$0xf0]  ;;  %v1716_v48 = vld [vmem:[%s3191_s0 + $0xf8] sm:$0xf]  ;;  %v2185_v49 = vld [vmem:[%s3191_s0 + $0x118] sm:$0xf0] }
  0xd0   :  { %v1251_v61 = vpop.f32.mrf.mxu0  ;;  %v1669_v26 = vor.u32 %v2170_v14, %v1666_v9 }
  0xd1   :  { %1299 = vmatmul.bf16.gmra.mxu1 %v1633_v51  ;;  %1348 = vmatmul.bf16.gmra.mxu2 %v1637_v52  ;;  %v2922_v62 = vadd.f32 %v1248_v37, %v1200_v59 }
  0xd3   :  { %1397 = vmatmul.bf16.gmra.mxu3 %v1641_v57  ;;  %1446 = vmatmul.bf16.gmra.mxu0 %v1645_v58  ;;  %v1709_v58 = vor.u32 %v2184_v46, %v1708_v45  ;;  %v2197_v46 = vld [vmem:[%s3191_s0 + $0x17c] sm:$0xf] }
  0xd4   :  { %v1153_v63 = vpop.f32.mrf.mxu2 }
  0xd5   :  { %v1154_v0 = vadd.f32 %v1153_v63, %v1105_v60 }
  0xd6   :  { %v1202_v1 = vpop.f32.mrf.mxu3  ;;  %v1106_v4 = vpop.f32.mrf.mxu1 }
  0xd7   :  { %v1203_v5 = vadd.f32 %v1202_v1, %v1154_v0  ;;  %v1107_v7 = vadd.f32 %v1106_v4, %v1057_v13  ;;  %v2171_v13 = vld [vmem:[%s3191_s0 + $0xac] sm:$0xf] }
  0xd8   :  { %v1253_v8 = vpop.f32.mrf.mxu0  ;;  %v1677_v29 = vor.u32 %v2171_v13, %v1674_v18  ;;  %v2188_v13 = vld [vmem:[%s3191_s0 + $0x134] sm:$0xf] }
  0xd9   :  { %v2930_v15 = vadd.f32 %v1251_v61, %v1203_v5  ;;  %v1717_v61 = vor.u32 %v2185_v49, %v1716_v48  ;;  %v2202_v48 = vld [vmem:[%s3191_s0 + $0x1a0] sm:$0xf0] }
  0xda   :  { %v2198_v49 = vld [vmem:[%s3191_s0 + $0x184] sm:$0xf] }
  0xdc   :  { %v1155_v21 = vpop.f32.mrf.mxu2 }
  0xdd   :  { %v1156_v24 = vadd.f32 %v1155_v21, %v1107_v7  ;;  %v1746_v21 = vld [vmem:[%s3191_s0 + $0x15c] sm:$0xf0] }
  0xde   :  { %v1204_v25 = vpop.f32.mrf.mxu3  ;;  %v1109_v28 = vpop.f32.mrf.mxu1 }
  0xdf   :  { %v1205_v31 = vadd.f32 %v1204_v25, %v1156_v24  ;;  %v1110_v32 = vadd.f32 %v1109_v28, %v2824_v50  ;;  %v1702_v50 = vld [vmem:[%s3191_s0 + $0x10c] sm:$0xf0]  ;;  %v1752_v24 = vld [vmem:[%s3191_s0 + $0x140] sm:$0xf]  ;;  %v2194_v25 = vld [vmem:[%s3191_s0 + $0x160] sm:$0xf0] }
  0xe0   :  { %v1256_v33 = vpop.f32.mrf.mxu0  ;;  %v1705_v57 = vor.u32 %v2179_v43, %v1702_v50 }
  0xe1   :  { %1304 = vmatmul.bf16.gmra.mxu1 %v1669_v26  ;;  %1353 = vmatmul.bf16.gmra.mxu2 %v1673_v27  ;;  %v2951_v34 = vadd.f32 %v1253_v8, %v1205_v31 }
  0xe3   :  { %1402 = vmatmul.bf16.gmra.mxu3 %v1677_v29  ;;  %1451 = vmatmul.bf16.gmra.mxu0 %v1681_v30  ;;  %v1745_v30 = vor.u32 %v2193_v20, %v1744_v19  ;;  %v2206_v20 = vld [vmem:[%s3191_s0 + $0x1c4] sm:$0xf] }
  0xe4   :  { %v1158_v35 = vpop.f32.mrf.mxu2 }
  0xe5   :  { %v1159_v36 = vadd.f32 %v1158_v35, %v1110_v32 }
  0xe6   :  { %v1207_v37 = vpop.f32.mrf.mxu3  ;;  %v1111_v38 = vpop.f32.mrf.mxu1 }
  0xe7   :  { %v1208_v39 = vadd.f32 %v1207_v37, %v1159_v36  ;;  %v1112_v41 = vadd.f32 %v1111_v38, %v2830_v56  ;;  %v2180_v56 = vld [vmem:[%s3191_s0 + $0xf4] sm:$0xf] }
  0xe8   :  { %v1258_v42 = vpop.f32.mrf.mxu0  ;;  %v1713_v60 = vor.u32 %v2180_v56, %v1710_v47  ;;  %v1774_v56 = vld [vmem:[%s3191_s0 + $0x19c] sm:$0xf0] }
  0xe9   :  { %v2960_v44 = vadd.f32 %v1256_v33, %v1208_v39  ;;  %v1753_v33 = vor.u32 %v2194_v25, %v1752_v24  ;;  %v2211_v24 = vld [vmem:[%s3191_s0 + $0x1e8] sm:$0xf0] }
  0xea   :  { %v2207_v25 = vld [vmem:[%s3191_s0 + $0x1cc] sm:$0xf] }
  0xec   :  { %v1160_v51 = vpop.f32.mrf.mxu2 }
  0xed   :  { %v1161_v52 = vadd.f32 %v1160_v51, %v1112_v41 }
  0xee   :  { %v1209_v53 = vpop.f32.mrf.mxu3  ;;  %v1114_v59 = vpop.f32.mrf.mxu1 }
  0xef   :  { %v1210_v63 = vadd.f32 %v1209_v53, %v1161_v52  ;;  %v1115_v0 = vadd.f32 %v1114_v59, %v2860_v6  ;;  %v1738_v6 = vld [vmem:[%s3191_s0 + $0x154] sm:$0xf0]  ;;  %v1782_v52 = vld [vmem:[%s3191_s0 + $0x1a4] sm:$0xf0] }
  0xf0   :  { %v1261_v1 = vpop.f32.mrf.mxu0  ;;  %v1741_v29 = vor.u32 %v2188_v13, %v1738_v6  ;;  %v1788_v53 = vld [vmem:[%s3191_s0 + $0x188] sm:$0xf] }
  0xf1   :  { %1309 = vmatmul.bf16.gmra.mxu1 %v1705_v57  ;;  %1358 = vmatmul.bf16.gmra.mxu2 %v1709_v58  ;;  %v2981_v4 = vadd.f32 %v1258_v42, %v1210_v63  ;;  %v2203_v57 = vld [vmem:[%s3191_s0 + $0x1a8] sm:$0xf0] }
  0xf3   :  { %1407 = vmatmul.bf16.gmra.mxu3 %v1713_v60  ;;  %1456 = vmatmul.bf16.gmra.mxu0 %v1717_v61  ;;  %v1777_v61 = vor.u32 %v2197_v46, %v1774_v56 }
  0xf4   :  { %v1163_v5 = vpop.f32.mrf.mxu2 }
  0xf5   :  { %v1164_v7 = vadd.f32 %v1163_v5, %v1115_v0 }
  0xf6   :  { %v1212_v8 = vpop.f32.mrf.mxu3  ;;  %v1116_v14 = vpop.f32.mrf.mxu1 }
  0xf7   :  { %v1213_v9 = vadd.f32 %v1212_v8, %v1164_v7  ;;  %v1117_v16 = vadd.f32 %v1116_v14, %v2866_v12  ;;  %v2189_v12 = vld [vmem:[%s3191_s0 + $0x13c] sm:$0xf] }
  0xf8   :  { %v1263_v17 = vpop.f32.mrf.mxu0  ;;  %v1749_v32 = vor.u32 %v2189_v12, %v1746_v21  ;;  %v1810_v12 = vld [vmem:[%s3191_s0 + $0x1e4] sm:$0xf0] }
  0xf9   :  { %v2990_v18 = vadd.f32 %v1261_v1, %v1213_v9  ;;  %v1785_v1 = vor.u32 %v2198_v49, %v1782_v52  ;;  %v2215_v49 = vld [vmem:[%s3191_s0 + $0x20c] sm:$0xf] }
  0xfc   :  { %v1165_v26 = vpop.f32.mrf.mxu2 }
  0xfd   :  { %v1166_v27 = vadd.f32 %v1165_v26, %v1117_v16 }
  0xfe   :  { %v1214_v28 = vpop.f32.mrf.mxu3  ;;  %v1119_v31 = vpop.f32.mrf.mxu1 }
  0xff   :  { %v1215_v35 = vadd.f32 %v1214_v28, %v1166_v27  ;;  %v1120_v38 = vadd.f32 %v1119_v31, %v2826_v54  ;;  %v1780_v54 = vld [vmem:[%s3191_s0 + $0x180] sm:$0xf]  ;;  %v1818_v27 = vld [vmem:[%s3191_s0 + $0x1ec] sm:$0xf0] }
 0x100   :  { %v1266_v36 = vpop.f32.mrf.mxu0  ;;  %v1781_v63 = vor.u32 %v2202_v48, %v1780_v54  ;;  %v1824_v28 = vld [vmem:[%s3191_s0 + $0x1d0] sm:$0xf] }
 0x101   :  { %1314 = vmatmul.bf16.gmra.mxu1 %v1741_v29  ;;  %1363 = vmatmul.bf16.gmra.mxu2 %v1745_v30  ;;  %v3010_v37 = vadd.f32 %v1263_v17, %v1215_v35  ;;  %v2212_v29 = vld [vmem:[%s3191_s0 + $0x1f0] sm:$0xf0] }
 0x103   :  { %1412 = vmatmul.bf16.gmra.mxu3 %v1749_v32  ;;  %1461 = vmatmul.bf16.gmra.mxu0 %v1753_v33  ;;  %v1813_v33 = vor.u32 %v2206_v20, %v1810_v12 }
 0x104   :  { %v1168_v39 = vpop.f32.mrf.mxu2 }
 0x105   :  { %v1169_v41 = vadd.f32 %v1168_v39, %v1120_v38  ;;  %v1821_v38 = vor.u32 %v2207_v25, %v1818_v27 }
 0x106   :  { %v1217_v42 = vpop.f32.mrf.mxu3  ;;  %v1121_v43 = vpop.f32.mrf.mxu1 }
 0x107   :  { %v1218_v50 = vadd.f32 %v1217_v42, %v1169_v41  ;;  %v1122_v51 = vadd.f32 %v1121_v43, %v2856_v2  ;;  %v1789_v2 = vor.u32 %v2203_v57, %v1788_v53  ;;  %v2220_v53 = vld [vmem:[%s3191_s0 + $0x230] sm:$0xf0] }
 0x108   :  { %v1268_v45 = vpop.f32.mrf.mxu0  ;;  %v2216_v57 = vld [vmem:[%s3191_s0 + $0x214] sm:$0xf] }
 0x109   :  { %v3019_v47 = vadd.f32 %v1266_v36, %v1218_v50 }
 0x10c   :  { %v1170_v58 = vpop.f32.mrf.mxu2 }
 0x10d   :  { %v1171_v59 = vadd.f32 %v1170_v58, %v1122_v51  ;;  %v1846_v51 = vld [vmem:[%s3191_s0 + $0x22c] sm:$0xf0] }
 0x10e   :  { %v1219_v60 = vpop.f32.mrf.mxu3  ;;  %v1124_v0 = vpop.f32.mrf.mxu1 }
 0x10f   :  { %v1220_v5 = vadd.f32 %v1219_v60, %v1171_v59  ;;  %v1125_v14 = vadd.f32 %v1124_v0, %v2862_v10  ;;  %v1816_v10 = vld [vmem:[%s3191_s0 + $0x1c8] sm:$0xf]  ;;  %v1854_v59 = vld [vmem:[%s3191_s0 + $0x234] sm:$0xf0] }
 0x110   :  { %v1271_v7 = vpop.f32.mrf.mxu0  ;;  %v1817_v35 = vor.u32 %v2211_v24, %v1816_v10  ;;  %v1860_v60 = vld [vmem:[%s3191_s0 + $0x218] sm:$0xf] }
 0x111   :  { %1319 = vmatmul.bf16.gmra.mxu1 %v1777_v61  ;;  %1368 = vmatmul.bf16.gmra.mxu2 %v1781_v63  ;;  %v3040_v8 = vadd.f32 %v1268_v45, %v1220_v5  ;;  %v2221_v61 = vld [vmem:[%s3191_s0 + $0x238] sm:$0xf0] }
 0x113   :  { %1417 = vmatmul.bf16.gmra.mxu3 %v1785_v1  ;;  %1466 = vmatmul.bf16.gmra.mxu0 %v1789_v2  ;;  %v1849_v2 = vor.u32 %v2215_v49, %v1846_v51 }
 0x114   :  { %v1173_v9 = vpop.f32.mrf.mxu2 }
 0x115   :  { %v1174_v16 = vadd.f32 %v1173_v9, %v1125_v14  ;;  %v1857_v14 = vor.u32 %v2216_v57, %v1854_v59 }
 0x116   :  { %v1222_v17 = vpop.f32.mrf.mxu3  ;;  %v1126_v13 = vpop.f32.mrf.mxu1 }
 0x117   :  { %v1223_v6 = vadd.f32 %v1222_v17, %v1174_v16  ;;  %v1127_v26 = vadd.f32 %v1126_v13, %v2892_v22  ;;  %v1825_v22 = vor.u32 %v2212_v29, %v1824_v28 }
 0x118   :  { %v1273_v19 = vpop.f32.mrf.mxu0 }
 0x119   :  { %v3049_v21 = vadd.f32 %v1271_v7, %v1223_v6 }
 0x11c   :  { %v1175_v30 = vpop.f32.mrf.mxu2 }
 0x11d   :  { %v1176_v31 = vadd.f32 %v1175_v30, %v1127_v26 }
 0x11e   :  { %v1224_v32 = vpop.f32.mrf.mxu3  ;;  %v1129_v36 = vpop.f32.mrf.mxu1 }
 0x11f   :  { %v1225_v39 = vadd.f32 %v1224_v32, %v1176_v31  ;;  %v1130_v43 = vadd.f32 %v1129_v36, %v2828_v55  ;;  %v1852_v55 = vld [vmem:[%s3191_s0 + $0x210] sm:$0xf] }
 0x120   :  { %v1276_v41 = vpop.f32.mrf.mxu0  ;;  %v1853_v5 = vor.u32 %v2220_v53, %v1852_v55 }
 0x121   :  { %1324 = vmatmul.bf16.gmra.mxu1 %v1813_v33  ;;  %1373 = vmatmul.bf16.gmra.mxu2 %v1817_v35  ;;  %v3070_v42 = vadd.f32 %v1273_v19, %v1225_v39 }
 0x123   :  { %1422 = vmatmul.bf16.gmra.mxu3 %v1821_v38  ;;  %1471 = vmatmul.bf16.gmra.mxu0 %v1825_v22 }
 0x124   :  { %v1178_v50 = vpop.f32.mrf.mxu2 }
 0x125   :  { %v1179_v45 = vadd.f32 %v1178_v50, %v1130_v43 }
 0x126   :  { %v1227_v46 = vpop.f32.mrf.mxu3  ;;  %v1131_v56 = vpop.f32.mrf.mxu1 }
 0x127   :  { %v1228_v54 = vadd.f32 %v1227_v46, %v1179_v45  ;;  %v1132_v58 = vadd.f32 %v1131_v56, %v2858_v3  ;;  %v1861_v3 = vor.u32 %v2221_v61, %v1860_v60 }
 0x128   :  { %v1278_v48 = vpop.f32.mrf.mxu0 }
 0x129   :  { %v3079_v52 = vadd.f32 %v1276_v41, %v1228_v54 }
 0x12c   :  { %v1180_v63 = vpop.f32.mrf.mxu2 }
 0x12d   :  { %v1181_v0 = vadd.f32 %v1180_v63, %v1132_v58 }
 0x12e   :  { %v1229_v1 = vpop.f32.mrf.mxu3  ;;  %v1134_v7 = vpop.f32.mrf.mxu1 }
 0x12f   :  { %v1230_v9 = vadd.f32 %v1229_v1, %v1181_v0  ;;  %v1135_v13 = vadd.f32 %v1134_v7, %v2864_v11 }
 0x130   :  { %v1281_v16 = vpop.f32.mrf.mxu0 }
 0x131   :  { %1329 = vmatmul.bf16.gmra.mxu1 %v1849_v2  ;;  %1378 = vmatmul.bf16.gmra.mxu2 %v1853_v5  ;;  %v3100_v17 = vadd.f32 %v1278_v48, %v1230_v9  ;;  %v3119_v48 = vld [vmem:[%s3193_s3] ss:$0 sm:$0xff] }
 0x133   :  { %1427 = vmatmul.bf16.gmra.mxu3 %v1857_v14  ;;  %1476 = vmatmul.bf16.gmra.mxu0 %v1861_v3 }
 0x134   :  { %v1183_v6 = vpop.f32.mrf.mxu2 }
 0x135   :  { %v1184_v19 = vadd.f32 %v1183_v6, %v1135_v13 }
 0x136   :  { %v1232_v20 = vpop.f32.mrf.mxu3  ;;  %v1136_v12 = vpop.f32.mrf.mxu1 }
 0x137   :  { %v1233_v10 = vadd.f32 %v1232_v20, %v1184_v19  ;;  %v1137_v26 = vadd.f32 %v1136_v12, %v2894_v23  ;;  %v3112_v23 = vld [vmem:[%s3192_s2] ss:$0 sm:$0xff] }
 0x138   :  { %v1283_v24 = vpop.f32.mrf.mxu0 }
 0x139   :  { %v3103_v25 = vadd.f32 %v1281_v16, %v1233_v10 }
 0x13c   :  { %v1185_v27 = vpop.f32.mrf.mxu2 }
 0x13d   :  { %v1186_v28 = vadd.f32 %v1185_v27, %v1137_v26 }
 0x13e   :  { %v1234_v29 = vpop.f32.mrf.mxu3  ;;  %v1295_v30 = vpop.f32.mrf.mxu1 }
 0x13f   :  { %v1235_v31 = vadd.f32 %v1234_v29, %v1186_v28  ;;  %v1296_v11 = vadd.f32 %v1295_v30, %v2902_v40 }
 0x140   :  { %v1442_v32 = vpop.f32.mrf.mxu0 }
 0x141   :  { %v3106_v33 = vadd.f32 %v1283_v24, %v1235_v31 }
 0x144   :  { %v1344_v35 = vpop.f32.mrf.mxu2 }
 0x145   :  { %v1345_v36 = vadd.f32 %v1344_v35, %v1296_v11 }
 0x146   :  { %v1393_v38 = vpop.f32.mrf.mxu3  ;;  %v1297_v22 = vpop.f32.mrf.mxu1 }
 0x147   :  { %v1394_v39 = vadd.f32 %v1393_v38, %v1345_v36  ;;  %v1298_v50 = vadd.f32 %v1297_v22, %v2922_v62 }
 0x148   :  { %v1444_v41 = vpop.f32.mrf.mxu0 }
 0x149   :  { %v1443_v43 = vadd.f32 %v1442_v32, %v1394_v39 }
 0x14b   :  { %v1486_v40 = vmul.f32 %v3112_v23, %v1443_v43 }
 0x14c   :  { %v1346_v45 = vpop.f32.mrf.mxu2 }
 0x14d   :  { %v1347_v46 = vadd.f32 %v1346_v45, %v1298_v50  ;;  %v1506_v53 = vadd.f32 %v3119_v48, %v1486_v40 }
 0x14e   :  { %v1395_v56 = vpop.f32.mrf.mxu3  ;;  %v1300_v54 = vpop.f32.mrf.mxu1 }
 0x14f   :  { %v1396_v49 = vadd.f32 %v1395_v56, %v1347_v46  ;;  %v1301_v62 = vadd.f32 %v1300_v54, %v2930_v15  ;;  %v1522_v0 = vmax.f32 %v1506_v53, 0.0 }
 0x150   :  { %v1447_v51 = vpop.f32.mrf.mxu0 }
 0x151   :  { %v1445_v55 = vadd.f32 %v1444_v41, %v1396_v49 }
 0x153   :  { %v1487_v57 = vmul.f32 %v3112_v23, %v1445_v55 }
 0x154   :  { %v1349_v58 = vpop.f32.mrf.mxu2 }
 0x155   :  { %v1507_v59 = vadd.f32 %v3119_v48, %v1487_v57  ;;  %v1350_v60 = vadd.f32 %v1349_v58, %v1301_v62 }
 0x156   :  { %v1398_v61 = vpop.f32.mrf.mxu3  ;;  %v1302_v63 = vpop.f32.mrf.mxu1 }
 0x157   :  { %v1523_v1 = vmax.f32 %v1507_v59, 0.0  ;;  %v1399_v2 = vadd.f32 %v1398_v61, %v1350_v60  ;;  %v1303_v3 = vadd.f32 %v1302_v63, %v2951_v34 }
 0x158   :  { %v1449_v5 = vpop.f32.mrf.mxu0 }
 0x159   :  { %v2297_v7 = vpack.c.bf16 %v1523_v1, %v1522_v0  ;;  %v1448_v14 = vadd.f32 %v1447_v51, %v1399_v2 }
 0x15b   :  { %2298 = vst [vmem:[%s3194_s4] sm:$0xff] %v2297_v7   ;;  %v1488_v6 = vmul.f32 %v3112_v23, %v1448_v14 }
 0x15c   :  { %v1351_v9 = vpop.f32.mrf.mxu2 }
 0x15d   :  { %v1352_v15 = vadd.f32 %v1351_v9, %v1303_v3  ;;  %v1508_v10 = vadd.f32 %v3119_v48, %v1488_v6 }
 0x15e   :  { %v1400_v16 = vpop.f32.mrf.mxu3  ;;  %v1305_v13 = vpop.f32.mrf.mxu1 }
 0x15f   :  { %v1401_v19 = vadd.f32 %v1400_v16, %v1352_v15  ;;  %v1306_v26 = vadd.f32 %v1305_v13, %v2960_v44  ;;  %v1524_v31 = vmax.f32 %v1508_v10, 0.0 }
 0x160   :  { %v1452_v20 = vpop.f32.mrf.mxu0 }
 0x161   :  { %v1450_v12 = vadd.f32 %v1449_v5, %v1401_v19 }
 0x163   :  { %v1489_v24 = vmul.f32 %v3112_v23, %v1450_v12 }
 0x164   :  { %v1354_v27 = vpop.f32.mrf.mxu2 }
 0x165   :  { %v1509_v28 = vadd.f32 %v3119_v48, %v1489_v24  ;;  %v1355_v29 = vadd.f32 %v1354_v27, %v1306_v26 }
 0x166   :  { %v1403_v34 = vpop.f32.mrf.mxu3  ;;  %v1307_v30 = vpop.f32.mrf.mxu1 }
 0x167   :  { %v1525_v32 = vmax.f32 %v1509_v28, 0.0  ;;  %v1404_v11 = vadd.f32 %v1403_v34, %v1355_v29  ;;  %v1308_v22 = vadd.f32 %v1307_v30, %v2981_v4 }
 0x168   :  { %v1454_v35 = vpop.f32.mrf.mxu0 }
 0x169   :  { %v2302_v36 = vpack.c.bf16 %v1525_v32, %v1524_v31  ;;  %v1453_v38 = vadd.f32 %v1452_v20, %v1404_v11 }
 0x16b   :  { %2334 = vst [vmem:[%s3194_s4 + $0x8] sm:$0xff] %v2302_v36   ;;  %v1490_v50 = vmul.f32 %v3112_v23, %v1453_v38 }
 0x16c   :  { %v1356_v39 = vpop.f32.mrf.mxu2 }
 0x16d   :  { %v1357_v44 = vadd.f32 %v1356_v39, %v1308_v22  ;;  %v1510_v54 = vadd.f32 %v3119_v48, %v1490_v50 }
 0x16e   :  { %v1405_v41 = vpop.f32.mrf.mxu3  ;;  %v1310_v43 = vpop.f32.mrf.mxu1 }
 0x16f   :  { %v1406_v45 = vadd.f32 %v1405_v41, %v1357_v44  ;;  %v1311_v49 = vadd.f32 %v1310_v43, %v2990_v18  ;;  %v1526_v62 = vmax.f32 %v1510_v54, 0.0 }
 0x170   :  { %v1457_v46 = vpop.f32.mrf.mxu0 }
 0x171   :  { %v1455_v56 = vadd.f32 %v1454_v35, %v1406_v45 }
 0x173   :  { %v1491_v40 = vmul.f32 %v3112_v23, %v1455_v56 }
 0x174   :  { %v1359_v51 = vpop.f32.mrf.mxu2 }
 0x175   :  { %v1511_v55 = vadd.f32 %v3119_v48, %v1491_v40  ;;  %v1360_v53 = vadd.f32 %v1359_v51, %v1311_v49 }
 0x176   :  { %v1408_v4 = vpop.f32.mrf.mxu3  ;;  %v1312_v57 = vpop.f32.mrf.mxu1 }
 0x177   :  { %v1527_v58 = vmax.f32 %v1511_v55, 0.0  ;;  %v1409_v59 = vadd.f32 %v1408_v4, %v1360_v53  ;;  %v1313_v0 = vadd.f32 %v1312_v57, %v3010_v37 }
 0x178   :  { %v1459_v60 = vpop.f32.mrf.mxu0 }
 0x179   :  { %v2307_v61 = vpack.c.bf16 %v1527_v58, %v1526_v62  ;;  %v1458_v63 = vadd.f32 %v1457_v46, %v1409_v59 }
 0x17b   :  { %2335 = vst [vmem:[%s3194_s4 + $0x10] sm:$0xff] %v2307_v61   ;;  %v1492_v7 = vmul.f32 %v3112_v23, %v1458_v63 }
 0x17c   :  { %v1361_v1 = vpop.f32.mrf.mxu2 }
 0x17d   :  { %v1362_v18 = vadd.f32 %v1361_v1, %v1313_v0  ;;  %v1512_v15 = vadd.f32 %v3119_v48, %v1492_v7 }
 0x17e   :  { %v1410_v2 = vpop.f32.mrf.mxu3  ;;  %v1315_v5 = vpop.f32.mrf.mxu1 }
 0x17f   :  { %v1411_v14 = vadd.f32 %v1410_v2, %v1362_v18  ;;  %v1316_v13 = vadd.f32 %v1315_v5, %v3019_v47  ;;  %v1528_v10 = vmax.f32 %v1512_v15, 0.0 }
 0x180   :  { %v1462_v3 = vpop.f32.mrf.mxu0 }
 0x181   :  { %v1460_v9 = vadd.f32 %v1459_v60, %v1411_v14 }
 0x183   :  { %v1493_v16 = vmul.f32 %v3112_v23, %v1460_v9 }
 0x184   :  { %v1364_v6 = vpop.f32.mrf.mxu2 }
 0x185   :  { %v1513_v19 = vadd.f32 %v3119_v48, %v1493_v16  ;;  %v1365_v20 = vadd.f32 %v1364_v6, %v1316_v13 }
 0x186   :  { %v1413_v37 = vpop.f32.mrf.mxu3  ;;  %v1317_v12 = vpop.f32.mrf.mxu1 }
 0x187   :  { %v1529_v24 = vmax.f32 %v1513_v19, 0.0  ;;  %v1414_v26 = vadd.f32 %v1413_v37, %v1365_v20  ;;  %v1318_v34 = vadd.f32 %v1317_v12, %v3040_v8 }
 0x188   :  { %v1464_v27 = vpop.f32.mrf.mxu0 }
 0x189   :  { %v2312_v28 = vpack.c.bf16 %v1529_v24, %v1528_v10  ;;  %v1463_v29 = vadd.f32 %v1462_v3, %v1414_v26 }
 0x18b   :  { %2336 = vst [vmem:[%s3194_s4 + $0x18] sm:$0xff] %v2312_v28   ;;  %v1494_v11 = vmul.f32 %v3112_v23, %v1463_v29 }
 0x18c   :  { %v1366_v30 = vpop.f32.mrf.mxu2 }
 0x18d   :  { %v1367_v47 = vadd.f32 %v1366_v30, %v1318_v34  ;;  %v1514_v22 = vadd.f32 %v3119_v48, %v1494_v11 }
 0x18e   :  { %v1415_v31 = vpop.f32.mrf.mxu3  ;;  %v1320_v32 = vpop.f32.mrf.mxu1 }
 0x18f   :  { %v1416_v35 = vadd.f32 %v1415_v31, %v1367_v47  ;;  %v1321_v44 = vadd.f32 %v1320_v32, %v3049_v21  ;;  %v1530_v46 = vmax.f32 %v1514_v22, 0.0 }
 0x190   :  { %v1467_v36 = vpop.f32.mrf.mxu0 }
 0x191   :  { %v1465_v38 = vadd.f32 %v1464_v27, %v1416_v35 }
 0x193   :  { %v1495_v39 = vmul.f32 %v3112_v23, %v1465_v38 }
 0x194   :  { %v1369_v41 = vpop.f32.mrf.mxu2 }
 0x195   :  { %v1515_v43 = vadd.f32 %v3119_v48, %v1495_v39  ;;  %v1370_v50 = vadd.f32 %v1369_v41, %v1321_v44 }
 0x196   :  { %v1418_v8 = vpop.f32.mrf.mxu3  ;;  %v1322_v45 = vpop.f32.mrf.mxu1 }
 0x197   :  { %v1531_v56 = vmax.f32 %v1515_v43, 0.0  ;;  %v1419_v54 = vadd.f32 %v1418_v8, %v1370_v50  ;;  %v1323_v55 = vadd.f32 %v1322_v45, %v3070_v42 }
 0x198   :  { %v1469_v40 = vpop.f32.mrf.mxu0 }
 0x199   :  { %v2317_v49 = vpack.c.bf16 %v1531_v56, %v1530_v46  ;;  %v1468_v51 = vadd.f32 %v1467_v36, %v1419_v54 }
 0x19b   :  { %2337 = vst [vmem:[%s3194_s4 + $0x20] sm:$0xff] %v2317_v49   ;;  %v1496_v62 = vmul.f32 %v3112_v23, %v1468_v51 }
 0x19c   :  { %v1371_v53 = vpop.f32.mrf.mxu2 }
 0x19d   :  { %v1372_v21 = vadd.f32 %v1371_v53, %v1323_v55  ;;  %v1516_v61 = vadd.f32 %v3119_v48, %v1496_v62 }
 0x19e   :  { %v1420_v4 = vpop.f32.mrf.mxu3  ;;  %v1325_v57 = vpop.f32.mrf.mxu1 }
 0x19f   :  { %v1421_v58 = vadd.f32 %v1420_v4, %v1372_v21  ;;  %v1326_v0 = vadd.f32 %v1325_v57, %v3079_v52  ;;  %v1532_v7 = vmax.f32 %v1516_v61, 0.0 }
 0x1a0   :  { %v1472_v60 = vpop.f32.mrf.mxu0 }
 0x1a1   :  { %v1470_v59 = vadd.f32 %v1469_v40, %v1421_v58 }
 0x1a3   :  { %v1497_v63 = vmul.f32 %v3112_v23, %v1470_v59 }
 0x1a4   :  { %v1374_v1 = vpop.f32.mrf.mxu2 }
 0x1a5   :  { %v1517_v18 = vadd.f32 %v3119_v48, %v1497_v63  ;;  %v1375_v2 = vadd.f32 %v1374_v1, %v1326_v0 }
 0x1a6   :  { %v1423_v42 = vpop.f32.mrf.mxu3  ;;  %v1327_v5 = vpop.f32.mrf.mxu1 }
 0x1a7   :  { %v1533_v14 = vmax.f32 %v1517_v18, 0.0  ;;  %v1424_v3 = vadd.f32 %v1423_v42, %v1375_v2  ;;  %v1328_v16 = vadd.f32 %v1327_v5, %v3100_v17 }
 0x1a8   :  { %v1474_v13 = vpop.f32.mrf.mxu0 }
 0x1a9   :  { %v2322_v9 = vpack.c.bf16 %v1533_v14, %v1532_v7  ;;  %v1473_v15 = vadd.f32 %v1472_v60, %v1424_v3 }
 0x1ab   :  { %2338 = vst [vmem:[%s3194_s4 + $0x28] sm:$0xff] %v2322_v9   ;;  %v1498_v37 = vmul.f32 %v3112_v23, %v1473_v15 }
 0x1ac   :  { %v1376_v6 = vpop.f32.mrf.mxu2 }
 0x1ad   :  { %v1377_v52 = vadd.f32 %v1376_v6, %v1328_v16  ;;  %v1518_v24 = vadd.f32 %v3119_v48, %v1498_v37 }
 0x1ae   :  { %v1425_v19 = vpop.f32.mrf.mxu3  ;;  %v1330_v20 = vpop.f32.mrf.mxu1 }
 0x1af   :  { %v1426_v12 = vadd.f32 %v1425_v19, %v1377_v52  ;;  %v1331_v27 = vadd.f32 %v1330_v20, %v3103_v25  ;;  %v1534_v47 = vmax.f32 %v1518_v24, 0.0 }
 0x1b0   :  { %v1477_v30 = vpop.f32.mrf.mxu0 }
 0x1b1   :  { %v1475_v10 = vadd.f32 %v1474_v13, %v1426_v12 }
 0x1b3   :  { %v1499_v26 = vmul.f32 %v3112_v23, %v1475_v10 }
 0x1b4   :  { %v1379_v28 = vpop.f32.mrf.mxu2 }
 0x1b5   :  { %v1519_v29 = vadd.f32 %v3119_v48, %v1499_v26  ;;  %v1380_v34 = vadd.f32 %v1379_v28, %v1331_v27 }
 0x1b6   :  { %v1428_v17 = vpop.f32.mrf.mxu3  ;;  %v1332_v11 = vpop.f32.mrf.mxu1 }
 0x1b7   :  { %v1535_v31 = vmax.f32 %v1519_v29, 0.0  ;;  %v1429_v32 = vadd.f32 %v1428_v17, %v1380_v34  ;;  %v1333_v38 = vadd.f32 %v1332_v11, %v3106_v33 }
 0x1b8   :  { %v1479_v43 = vpop.f32.mrf.mxu0 }
 0x1b9   :  { %v2327_v35 = vpack.c.bf16 %v1535_v31, %v1534_v47  ;;  %v1478_v36 = vadd.f32 %v1477_v30, %v1429_v32 }
 0x1bb   :  { %2339 = vst [vmem:[%s3194_s4 + $0x30] sm:$0xff] %v2327_v35   ;;  %v1500_v44 = vmul.f32 %v3112_v23, %v1478_v36 }
 0x1bc   :  { %v1381_v22 = vpop.f32.mrf.mxu2 }
 0x1bd   :  { %v1382_v25 = vadd.f32 %v1381_v22, %v1333_v38  ;;  %v1520_v8 = vadd.f32 %v3119_v48, %v1500_v44 }
 0x1be   :  { %v1430_v39 = vpop.f32.mrf.mxu3 }
 0x1bf   :  { %v1431_v41 = vadd.f32 %v1430_v39, %v1382_v25  ;;  %v1536_v56 = vmax.f32 %v1520_v8, 0.0 }
 0x1c1   :  { %v1480_v50 = vadd.f32 %v1479_v43, %v1431_v41 }
 0x1c3   :  { %v1501_v45 = vmul.f32 %v3112_v23, %v1480_v50 }
 0x1c5   :  { %v1521_v46 = vadd.f32 %v3119_v48, %v1501_v45 }
 0x1c7   :  { %v1537_v54 = vmax.f32 %v1521_v46, 0.0 }
 0x1c9   :  { %v2332_v40 = vpack.c.bf16 %v1537_v54, %v1536_v56 }
 0x1cb   :  { %2340 = vst [vmem:[%s3194_s4 + $0x38] sm:$0xff] %v2332_v40  }

// kernel: _lambda_.16
= control target key start
LH: loop header
LB: loop body
LE: loop exit
PB: predicated region body
PF: predicated region fallthrough
CT: control target
= control target key end

     0   :  { %s282_s1 = inlined_call_operand.vmem [shape: bf16[128,128], index: 1, kind: input, shape index: {}]   ;;  %s283_s2 = inlined_call_operand.vmem [shape: f32[1,128], index: 2, kind: input, shape index: {}]   ;;  %s284_s3 = inlined_call_operand.vmem [shape: f32[1,128], index: 3, kind: input, shape index: {}]   ;;  %s285_s0 = inlined_call_operand.vmem [shape: bf16[32,128], index: 0, kind: input, shape index: {}]   ;;  %s286_s4 = inlined_call_operand.vmem [shape: bf16[32,128], index: 4, kind: output, shape index: {}]  }
   0x1   :  { %v193_v0 = vld [vmem:[%s282_s1 + $0x38] sm:$0xff]  ;;  %v192_v1 = vld [vmem:[%s282_s1 + $0x30] sm:$0xff]  ;;  %v191_v2 = vld [vmem:[%s282_s1 + $0x28] sm:$0xff] }
   0x2   :  { %97 = vmatpush.bf16.msra.mxu0 %v193_v0  ;;  %205 = vmatpush.bf16.msra.mxu1 %v193_v0  ;;  %v190_v3 = vld [vmem:[%s282_s1 + $0x20] sm:$0xff]  ;;  %v189_v4 = vld [vmem:[%s282_s1 + $0x18] sm:$0xff]  ;;  %v188_v5 = vld [vmem:[%s282_s1 + $0x10] sm:$0xff] }
   0x3   :  { %v187_v6 = vld [vmem:[%s282_s1 + $0x8] sm:$0xff]  ;;  %v186_v7 = vld [vmem:[%s282_s1] sm:$0xff] }
   0x4   :  { %v184_v8 = vld [vmem:[%s285_s0] sm:$0xff]  ;;  %v185_v9 = vld [vmem:[%s285_s0 + $0x8] sm:$0xff] }
   0x5   :  { %v213_v12 = vld [vmem:[%s283_s2] ss:$0 sm:$0xff] }
   0x6   :  { %98 = vmatpush.bf16.msra.mxu0 %v192_v1  ;;  %206 = vmatpush.bf16.msra.mxu1 %v192_v1  ;;  %v214_v14 = vld [vmem:[%s284_s3] ss:$0 sm:$0xff] }
   0xa   :  { %99 = vmatpush.bf16.msra.mxu0 %v191_v2  ;;  %207 = vmatpush.bf16.msra.mxu1 %v191_v2 }
   0xe   :  { %100 = vmatpush.bf16.msra.mxu0 %v190_v3  ;;  %208 = vmatpush.bf16.msra.mxu1 %v190_v3 }
  0x12   :  { %101 = vmatpush.bf16.msra.mxu0 %v189_v4  ;;  %209 = vmatpush.bf16.msra.mxu1 %v189_v4 }
  0x16   :  { %102 = vmatpush.bf16.msra.mxu0 %v188_v5  ;;  %210 = vmatpush.bf16.msra.mxu1 %v188_v5 }
  0x1a   :  { %103 = vmatpush.bf16.msra.mxu0 %v187_v6  ;;  %211 = vmatpush.bf16.msra.mxu1 %v187_v6 }
  0x1e   :  { %104 = vmatpush.bf16.msra.mxu0 %v186_v7  ;;  %212 = vmatpush.bf16.msra.mxu1 %v186_v7 }
  0x21   :  { %105 = vmatmul.bf16.vlgmr.msra.gmra.mxu0 %v184_v8  ;;  %110 = vmatmul.bf16.vlgmr.msra.gmra.mxu1 %v185_v9 }
  0x9e   :  { %v106_v10 = vpop.f32.mrf.mxu0  ;;  %v111_v11 = vpop.f32.mrf.mxu1 }
  0x9f   :  { %v120_v13 = vmul.f32 %v213_v12, %v106_v10  ;;  %v122_v15 = vmul.f32 %v213_v12, %v111_v11 }
  0xa1   :  { %v128_v20 = vadd.f32 %v214_v14, %v120_v13  ;;  %v130_v21 = vadd.f32 %v214_v14, %v122_v15 }
  0xa6   :  { %v108_v16 = vpop.f32.mrf.mxu0  ;;  %v113_v17 = vpop.f32.mrf.mxu1 }
  0xa7   :  { %v121_v18 = vmul.f32 %v213_v12, %v108_v16  ;;  %v123_v19 = vmul.f32 %v213_v12, %v113_v17 }
  0xa9   :  { %v129_v22 = vadd.f32 %v214_v14, %v121_v18  ;;  %v131_v23 = vadd.f32 %v214_v14, %v123_v19 }
  0xab   :  { %v197_v24 = vpack.c.bf16 %v129_v22, %v128_v20  ;;  %v202_v25 = vpack.c.bf16 %v131_v23, %v130_v21 }
  0xad   :  { %198 = vst [vmem:[%s286_s4] sm:$0xff] %v197_v24  }
  0xae   :  { %204 = vst [vmem:[%s286_s4 + $0x8] sm:$0xff] %v202_v25  }

// kernel: _lambda_.15
= control target key start
LH: loop header
LB: loop body
LE: loop exit
PB: predicated region body
PF: predicated region fallthrough
CT: control target
= control target key end

     0   :  { %s3309_s1 = inlined_call_operand.vmem [shape: bf16[1152,128], index: 1, kind: input, shape index: {}]   ;;  %s3310_s0 = inlined_call_operand.vmem [shape: bf16[128,1152], index: 0, kind: input, shape index: {}]   ;;  %s3311_s2 = inlined_call_operand.vmem [shape: f32[1,128], index: 2, kind: input, shape index: {}]   ;;  %s3312_s3 = inlined_call_operand.vmem [shape: f32[1,128], index: 3, kind: input, shape index: {}]   ;;  %s3313_s4 = inlined_call_operand.vmem [shape: bf16[128,128], index: 4, kind: input, shape index: {}]   ;;  %s3314_s5 = inlined_call_operand.vmem [shape: bf16[128,128], index: 5, kind: output, shape index: {}]  }
   0x1   :  { %v2280_v0 = vld [vmem:[%s3309_s1 + $0x38] sm:$0xff]  ;;  %v2279_v1 = vld [vmem:[%s3309_s1 + $0x30] sm:$0xff]  ;;  %v2278_v2 = vld [vmem:[%s3309_s1 + $0x28] sm:$0xff] }
   0x2   :  { %2431 = vmatpush.bf16.msra.mxu1 %v2280_v0  ;;  %2432 = vmatpush.bf16.msra.mxu2 %v2280_v0  ;;  %v2277_v3 = vld [vmem:[%s3309_s1 + $0x20] sm:$0xff]  ;;  %v2276_v4 = vld [vmem:[%s3309_s1 + $0x18] sm:$0xff]  ;;  %v2275_v5 = vld [vmem:[%s3309_s1 + $0x10] sm:$0xff] }
   0x3   :  { %2433 = vmatpush.bf16.msra.mxu3 %v2280_v0  ;;  %1044 = vmatpush.bf16.msra.mxu0 %v2280_v0  ;;  %v2274_v6 = vld [vmem:[%s3309_s1 + $0x8] sm:$0xff]  ;;  %v2273_v7 = vld [vmem:[%s3309_s1] sm:$0xff]  ;;  %v1699_v8 = vld [vmem:[%s3310_s0 + $0x90] sm:$0xf] }
   0x4   :  { %v2223_v9 = vld [vmem:[%s3310_s0 + $0xb0] sm:$0xf0]  ;;  %v1771_v10 = vld [vmem:[%s3310_s0 + $0x120] sm:$0xf]  ;;  %v2241_v11 = vld [vmem:[%s3310_s0 + $0x140] sm:$0xf0] }
   0x5   :  { %v1843_v12 = vld [vmem:[%s3310_s0 + $0x1b0] sm:$0xf]  ;;  %v2259_v13 = vld [vmem:[%s3310_s0 + $0x1d0] sm:$0xf0]  ;;  %v1627_v14 = vld [vmem:[%s3310_s0] sm:$0xf]  ;;  %v1700_v18 = vor.u32 %v2223_v9, %v1699_v8  ;;  %v1772_v19 = vor.u32 %v2241_v11, %v1771_v10 }
   0x6   :  { %2434 = vmatpush.bf16.msra.mxu1 %v2279_v1  ;;  %2435 = vmatpush.bf16.msra.mxu2 %v2279_v1  ;;  %v2205_v15 = vld [vmem:[%s3310_s0 + $0x20] sm:$0xf0]  ;;  %v2296_v16 = vld [vmem:[%s3309_s1 + $0xb8] sm:$0xff]  ;;  %v1844_v20 = vor.u32 %v2259_v13, %v1843_v12  ;;  %v2295_v24 = vld [vmem:[%s3309_s1 + $0xb0] sm:$0xff] }
   0x7   :  { %2436 = vmatpush.bf16.msra.mxu3 %v2279_v1  ;;  %1045 = vmatpush.bf16.msra.mxu0 %v2279_v1  ;;  %v2288_v17 = vld [vmem:[%s3309_s1 + $0x78] sm:$0xff]  ;;  %v1628_v21 = vor.u32 %v2205_v15, %v1627_v14  ;;  %v2287_v25 = vld [vmem:[%s3309_s1 + $0x70] sm:$0xff]  ;;  %v2294_v28 = vld [vmem:[%s3309_s1 + $0xa8] sm:$0xff] }
   0x8   :  { %v2304_v22 = vld [vmem:[%s3309_s1 + $0xf8] sm:$0xff]  ;;  %v2303_v26 = vld [vmem:[%s3309_s1 + $0xf0] sm:$0xff]  ;;  %v2286_v29 = vld [vmem:[%s3309_s1 + $0x68] sm:$0xff] }
   0x9   :  { %v2312_v23 = vld [vmem:[%s3309_s1 + $0x138] sm:$0xff]  ;;  %v2311_v27 = vld [vmem:[%s3309_s1 + $0x130] sm:$0xff]  ;;  %v2302_v30 = vld [vmem:[%s3309_s1 + $0xe8] sm:$0xff] }
   0xa   :  { %2437 = vmatpush.bf16.msra.mxu1 %v2278_v2  ;;  %2438 = vmatpush.bf16.msra.mxu2 %v2278_v2  ;;  %v2310_v31 = vld [vmem:[%s3309_s1 + $0x128] sm:$0xff]  ;;  %v2293_v32 = vld [vmem:[%s3309_s1 + $0xa0] sm:$0xff]  ;;  %v1735_v36 = vld [vmem:[%s3310_s0 + $0xd8] sm:$0xf] }
   0xb   :  { %2439 = vmatpush.bf16.msra.mxu3 %v2278_v2  ;;  %1046 = vmatpush.bf16.msra.mxu0 %v2278_v2  ;;  %v2285_v33 = vld [vmem:[%s3309_s1 + $0x60] sm:$0xff]  ;;  %v2232_v37 = vld [vmem:[%s3310_s0 + $0xf8] sm:$0xf0]  ;;  %v1807_v38 = vld [vmem:[%s3310_s0 + $0x168] sm:$0xf] }
   0xc   :  { %v2301_v34 = vld [vmem:[%s3309_s1 + $0xe0] sm:$0xff]  ;;  %v2250_v39 = vld [vmem:[%s3310_s0 + $0x188] sm:$0xf0]  ;;  %v1879_v40 = vld [vmem:[%s3310_s0 + $0x1f8] sm:$0xf]  ;;  %v1736_v46 = vor.u32 %v2232_v37, %v1735_v36 }
   0xd   :  { %v2309_v35 = vld [vmem:[%s3309_s1 + $0x120] sm:$0xff]  ;;  %v2268_v41 = vld [vmem:[%s3310_s0 + $0x218] sm:$0xf0]  ;;  %v1663_v42 = vld [vmem:[%s3310_s0 + $0x48] sm:$0xf]  ;;  %v1808_v47 = vor.u32 %v2250_v39, %v1807_v38 }
   0xe   :  { %2440 = vmatpush.bf16.msra.mxu1 %v2277_v3  ;;  %2441 = vmatpush.bf16.msra.mxu2 %v2277_v3  ;;  %v2214_v43 = vld [vmem:[%s3310_s0 + $0x68] sm:$0xf0]  ;;  %v2292_v44 = vld [vmem:[%s3309_s1 + $0x98] sm:$0xff]  ;;  %v1880_v48 = vor.u32 %v2268_v41, %v1879_v40  ;;  %v2291_v52 = vld [vmem:[%s3309_s1 + $0x90] sm:$0xff] }
   0xf   :  { %2442 = vmatpush.bf16.msra.mxu3 %v2277_v3  ;;  %1047 = vmatpush.bf16.msra.mxu0 %v2277_v3  ;;  %v2284_v45 = vld [vmem:[%s3309_s1 + $0x58] sm:$0xff]  ;;  %v1664_v49 = vor.u32 %v2214_v43, %v1663_v42  ;;  %v2283_v53 = vld [vmem:[%s3309_s1 + $0x50] sm:$0xff]  ;;  %v2290_v56 = vld [vmem:[%s3309_s1 + $0x88] sm:$0xff] }
  0x10   :  { %v2300_v50 = vld [vmem:[%s3309_s1 + $0xd8] sm:$0xff]  ;;  %v2299_v54 = vld [vmem:[%s3309_s1 + $0xd0] sm:$0xff]  ;;  %v2282_v57 = vld [vmem:[%s3309_s1 + $0x48] sm:$0xff] }
  0x11   :  { %v2308_v51 = vld [vmem:[%s3309_s1 + $0x118] sm:$0xff]  ;;  %v2307_v55 = vld [vmem:[%s3309_s1 + $0x110] sm:$0xff]  ;;  %v2298_v58 = vld [vmem:[%s3309_s1 + $0xc8] sm:$0xff] }
  0x12   :  { %2443 = vmatpush.bf16.msra.mxu1 %v2276_v4  ;;  %2444 = vmatpush.bf16.msra.mxu2 %v2276_v4  ;;  %v2306_v59 = vld [vmem:[%s3309_s1 + $0x108] sm:$0xff]  ;;  %v2289_v60 = vld [vmem:[%s3309_s1 + $0x80] sm:$0xff]  ;;  %v2328_v2 = vld [vmem:[%s3309_s1 + $0x1b8] sm:$0xff] }
  0x13   :  { %2445 = vmatpush.bf16.msra.mxu3 %v2276_v4  ;;  %1048 = vmatpush.bf16.msra.mxu0 %v2276_v4  ;;  %v2281_v61 = vld [vmem:[%s3309_s1 + $0x40] sm:$0xff]  ;;  %v1629_v1 = vld [vmem:[%s3310_s0 + $0x24] sm:$0xf0]  ;;  %v2320_v3 = vld [vmem:[%s3309_s1 + $0x178] sm:$0xff] }
  0x14   :  { %v2201_v62 = vld [vmem:[%s3310_s0 + $0x4] sm:$0xf]  ;;  %v1635_v4 = vld [vmem:[%s3310_s0 + $0x8] sm:$0xf]  ;;  %v1643_v8 = vld [vmem:[%s3310_s0 + $0x10] sm:$0xf] }
  0x15   :  { %v2297_v63 = vld [vmem:[%s3309_s1 + $0xc0] sm:$0xff]  ;;  %v2207_v9 = vld [vmem:[%s3310_s0 + $0x30] sm:$0xf0]  ;;  %v2336_v10 = vld [vmem:[%s3309_s1 + $0x1f8] sm:$0xff]  ;;  %v1632_v12 = vor.u32 %v2201_v62, %v1629_v1 }
  0x16   :  { %2446 = vmatpush.bf16.msra.mxu1 %v2275_v5  ;;  %2447 = vmatpush.bf16.msra.mxu2 %v2275_v5  ;;  %v2305_v0 = vld [vmem:[%s3309_s1 + $0x100] sm:$0xff]  ;;  %v2344_v11 = vld [vmem:[%s3309_s1 + $0x238] sm:$0xff]  ;;  %v1644_v15 = vor.u32 %v2207_v9, %v1643_v8  ;;  %v2219_v40 = vld [vmem:[%s3310_s0 + $0x94] sm:$0xf] }
  0x17   :  { %2448 = vmatpush.bf16.msra.mxu3 %v2275_v5  ;;  %1049 = vmatpush.bf16.msra.mxu0 %v2275_v5  ;;  %v2206_v5 = vld [vmem:[%s3310_s0 + $0x28] sm:$0xf0]  ;;  %v2325_v36 = vld [vmem:[%s3309_s1 + $0x1a0] sm:$0xff]  ;;  %v1701_v41 = vld [vmem:[%s3310_s0 + $0xb4] sm:$0xf0] }
  0x18   :  { %v1636_v13 = vor.u32 %v2206_v5, %v1635_v4  ;;  %v2333_v37 = vld [vmem:[%s3309_s1 + $0x1e0] sm:$0xff]  ;;  %v1707_v42 = vld [vmem:[%s3310_s0 + $0x98] sm:$0xf]  ;;  %v2224_v43 = vld [vmem:[%s3310_s0 + $0xb8] sm:$0xf0] }
  0x19   :  { %v2317_v38 = vld [vmem:[%s3309_s1 + $0x160] sm:$0xff]  ;;  %v1751_v62 = vld [vmem:[%s3310_s0 + $0xe8] sm:$0xf]  ;;  %v2323_v4 = vld [vmem:[%s3309_s1 + $0x190] sm:$0xff] }
  0x1a   :  { %2449 = vmatpush.bf16.msra.mxu1 %v2274_v6  ;;  %2450 = vmatpush.bf16.msra.mxu2 %v2274_v6  ;;  %v2341_v39 = vld [vmem:[%s3309_s1 + $0x220] sm:$0xff]  ;;  %v2331_v5 = vld [vmem:[%s3309_s1 + $0x1d0] sm:$0xff]  ;;  %v1773_v9 = vld [vmem:[%s3310_s0 + $0x144] sm:$0xf0] }
  0x1b   :  { %2451 = vmatpush.bf16.msra.mxu3 %v2274_v6  ;;  %1050 = vmatpush.bf16.msra.mxu0 %v2274_v6  ;;  %v2202_v6 = vld [vmem:[%s3310_s0 + $0xc] sm:$0xf]  ;;  %v2237_v8 = vld [vmem:[%s3310_s0 + $0x124] sm:$0xf] }
  0x1e   :  { %2452 = vmatpush.bf16.msra.mxu1 %v2273_v7  ;;  %2453 = vmatpush.bf16.msra.mxu2 %v2273_v7 }
  0x1f   :  { %2454 = vmatpush.bf16.msra.mxu3 %v2273_v7  ;;  %1051 = vmatpush.bf16.msra.mxu0 %v2273_v7  ;;  %v1637_v7 = vld [vmem:[%s3310_s0 + $0x2c] sm:$0xf0] }
  0x20   :  { %v1640_v14 = vor.u32 %v2202_v6, %v1637_v7  ;;  %v2315_v6 = vld [vmem:[%s3309_s1 + $0x150] sm:$0xff] }
  0x21   :  { %1062 = vmatmul.bf16.vlgmr.msra.gmra.mxu1 %v1700_v18  ;;  %1072 = vmatmul.bf16.vlgmr.msra.gmra.mxu2 %v1772_v19  ;;  %v2335_v18 = vld [vmem:[%s3309_s1 + $0x1f0] sm:$0xff] }
  0x22   :  { %1142 = vmatpush.bf16.msrb.mxu2 %v2296_v16  ;;  %1093 = vmatpush.bf16.msrb.mxu1 %v2288_v17  ;;  %v2327_v16 = vld [vmem:[%s3309_s1 + $0x1b0] sm:$0xff] }
  0x23   :  { %1082 = vmatmul.bf16.vlgmr.msra.gmra.mxu3 %v1844_v20  ;;  %1052 = vmatmul.bf16.vlgmr.msra.gmra.mxu0 %v1628_v21  ;;  %v2319_v17 = vld [vmem:[%s3309_s1 + $0x170] sm:$0xff]  ;;  %v2326_v20 = vld [vmem:[%s3309_s1 + $0x1a8] sm:$0xff] }
  0x24   :  { %1191 = vmatpush.bf16.msrb.mxu3 %v2304_v22  ;;  %1240 = vmatpush.bf16.msrb.mxu0 %v2312_v23  ;;  %v2343_v19 = vld [vmem:[%s3309_s1 + $0x230] sm:$0xff]  ;;  %v2318_v21 = vld [vmem:[%s3309_s1 + $0x168] sm:$0xff] }
  0x25   :  { %v2334_v22 = vld [vmem:[%s3309_s1 + $0x1e8] sm:$0xff]  ;;  %v2339_v7 = vld [vmem:[%s3309_s1 + $0x210] sm:$0xff] }
  0x26   :  { %1143 = vmatpush.bf16.msrb.mxu2 %v2295_v24  ;;  %1094 = vmatpush.bf16.msrb.mxu1 %v2287_v25  ;;  %v2342_v23 = vld [vmem:[%s3309_s1 + $0x228] sm:$0xff]  ;;  %v1665_v25 = vld [vmem:[%s3310_s0 + $0x6c] sm:$0xf0] }
  0x27   :  { %v2210_v24 = vld [vmem:[%s3310_s0 + $0x4c] sm:$0xf] }
  0x28   :  { %1192 = vmatpush.bf16.msrb.mxu3 %v2303_v26  ;;  %1241 = vmatpush.bf16.msrb.mxu0 %v2311_v27  ;;  %v1671_v26 = vld [vmem:[%s3310_s0 + $0x50] sm:$0xf]  ;;  %v2215_v27 = vld [vmem:[%s3310_s0 + $0x70] sm:$0xf0] }
  0x2a   :  { %1144 = vmatpush.bf16.msrb.mxu2 %v2294_v28  ;;  %1095 = vmatpush.bf16.msrb.mxu1 %v2286_v29  ;;  %v2211_v28 = vld [vmem:[%s3310_s0 + $0x54] sm:$0xf]  ;;  %v1673_v29 = vld [vmem:[%s3310_s0 + $0x74] sm:$0xf0] }
  0x2c   :  { %1193 = vmatpush.bf16.msrb.mxu3 %v2302_v30  ;;  %1242 = vmatpush.bf16.msrb.mxu0 %v2310_v31  ;;  %v1679_v30 = vld [vmem:[%s3310_s0 + $0x58] sm:$0xf]  ;;  %v2216_v31 = vld [vmem:[%s3310_s0 + $0x78] sm:$0xf0] }
  0x2e   :  { %1145 = vmatpush.bf16.msrb.mxu2 %v2293_v32  ;;  %1096 = vmatpush.bf16.msrb.mxu1 %v2285_v33  ;;  %v1668_v32 = vor.u32 %v2210_v24, %v1665_v25  ;;  %v1672_v33 = vor.u32 %v2215_v27, %v1671_v26  ;;  %v2246_v24 = vld [vmem:[%s3310_s0 + $0x16c] sm:$0xf]  ;;  %v1809_v25 = vld [vmem:[%s3310_s0 + $0x18c] sm:$0xf0]  ;;  %v2251_v27 = vld [vmem:[%s3310_s0 + $0x190] sm:$0xf0] }
  0x2f   :  { %v1815_v26 = vld [vmem:[%s3310_s0 + $0x170] sm:$0xf] }
  0x30   :  { %1194 = vmatpush.bf16.msrb.mxu3 %v2301_v34  ;;  %1243 = vmatpush.bf16.msrb.mxu0 %v2309_v35  ;;  %v1676_v34 = vor.u32 %v2211_v28, %v1673_v29  ;;  %v1680_v35 = vor.u32 %v2216_v31, %v1679_v30  ;;  %v2247_v28 = vld [vmem:[%s3310_s0 + $0x174] sm:$0xf]  ;;  %v1817_v29 = vld [vmem:[%s3310_s0 + $0x194] sm:$0xf0]  ;;  %v2252_v31 = vld [vmem:[%s3310_s0 + $0x198] sm:$0xf0] }
  0x31   :  { %1067 = vmatmul.bf16.gmra.mxu1 %v1736_v46  ;;  %1077 = vmatmul.bf16.gmra.mxu2 %v1808_v47  ;;  %v1715_v46 = vld [vmem:[%s3310_s0 + $0xa0] sm:$0xf]  ;;  %v2225_v47 = vld [vmem:[%s3310_s0 + $0xc0] sm:$0xf0]  ;;  %v1823_v30 = vld [vmem:[%s3310_s0 + $0x178] sm:$0xf] }
  0x32   :  { %1146 = vmatpush.bf16.msrb.mxu2 %v2292_v44  ;;  %1097 = vmatpush.bf16.msrb.mxu1 %v2284_v45  ;;  %v2220_v44 = vld [vmem:[%s3310_s0 + $0x9c] sm:$0xf]  ;;  %v1709_v45 = vld [vmem:[%s3310_s0 + $0xbc] sm:$0xf0] }
  0x33   :  { %1087 = vmatmul.bf16.gmra.mxu3 %v1880_v48  ;;  %1057 = vmatmul.bf16.gmra.mxu0 %v1664_v49  ;;  %v1704_v48 = vor.u32 %v2219_v40, %v1701_v41  ;;  %v1708_v49 = vor.u32 %v2224_v43, %v1707_v42  ;;  %v2255_v40 = vld [vmem:[%s3310_s0 + $0x1b4] sm:$0xf]  ;;  %v1845_v41 = vld [vmem:[%s3310_s0 + $0x1d4] sm:$0xf0]  ;;  %v2260_v43 = vld [vmem:[%s3310_s0 + $0x1d8] sm:$0xf0] }
  0x34   :  { %1195 = vmatpush.bf16.msrb.mxu3 %v2300_v50  ;;  %1244 = vmatpush.bf16.msrb.mxu0 %v2308_v51  ;;  %v1712_v50 = vor.u32 %v2220_v44, %v1709_v45  ;;  %v1716_v51 = vor.u32 %v2225_v47, %v1715_v46  ;;  %v1851_v42 = vld [vmem:[%s3310_s0 + $0x1b8] sm:$0xf]  ;;  %v2256_v44 = vld [vmem:[%s3310_s0 + $0x1bc] sm:$0xf]  ;;  %v1853_v45 = vld [vmem:[%s3310_s0 + $0x1dc] sm:$0xf0] }
  0x35   :  { %v1859_v46 = vld [vmem:[%s3310_s0 + $0x1c0] sm:$0xf]  ;;  %v2261_v47 = vld [vmem:[%s3310_s0 + $0x1e0] sm:$0xf0] }
  0x36   :  { %1147 = vmatpush.bf16.msrb.mxu2 %v2291_v52  ;;  %1098 = vmatpush.bf16.msrb.mxu1 %v2283_v53  ;;  %v2324_v52 = vld [vmem:[%s3309_s1 + $0x198] sm:$0xff] }
  0x37   :  { %v2332_v53 = vld [vmem:[%s3309_s1 + $0x1d8] sm:$0xff] }
  0x38   :  { %1196 = vmatpush.bf16.msrb.mxu3 %v2299_v54  ;;  %1245 = vmatpush.bf16.msrb.mxu0 %v2307_v55  ;;  %v2316_v54 = vld [vmem:[%s3309_s1 + $0x158] sm:$0xff] }
  0x39   :  { %v2340_v55 = vld [vmem:[%s3309_s1 + $0x218] sm:$0xff] }
  0x3a   :  { %1148 = vmatpush.bf16.msrb.mxu2 %v2290_v56  ;;  %1099 = vmatpush.bf16.msrb.mxu1 %v2282_v57  ;;  %v2228_v56 = vld [vmem:[%s3310_s0 + $0xdc] sm:$0xf]  ;;  %v1737_v57 = vld [vmem:[%s3310_s0 + $0xfc] sm:$0xf0] }
  0x3c   :  { %1197 = vmatpush.bf16.msrb.mxu3 %v2298_v58  ;;  %1246 = vmatpush.bf16.msrb.mxu0 %v2306_v59  ;;  %v1743_v58 = vld [vmem:[%s3310_s0 + $0xe0] sm:$0xf]  ;;  %v2233_v59 = vld [vmem:[%s3310_s0 + $0x100] sm:$0xf0] }
  0x3d   :  { %v1744_v1 = vor.u32 %v2233_v59, %v1743_v58  ;;  %v2264_v58 = vld [vmem:[%s3310_s0 + $0x1fc] sm:$0xf]  ;;  %v1881_v59 = vld [vmem:[%s3310_s0 + $0x21c] sm:$0xf0] }
  0x3e   :  { %1149 = vmatpush.bf16.msrb.mxu2 %v2289_v60  ;;  %1100 = vmatpush.bf16.msrb.mxu1 %v2281_v61  ;;  %v2229_v60 = vld [vmem:[%s3310_s0 + $0xe4] sm:$0xf]  ;;  %v1745_v61 = vld [vmem:[%s3310_s0 + $0x104] sm:$0xf0] }
  0x40   :  { %1198 = vmatpush.bf16.msrb.mxu3 %v2297_v63  ;;  %1247 = vmatpush.bf16.msrb.mxu0 %v2305_v0  ;;  %v2234_v63 = vld [vmem:[%s3310_s0 + $0x108] sm:$0xf0]  ;;  %v1740_v0 = vor.u32 %v2228_v56, %v1737_v57 }
  0x41   :  { %1101 = vmatmul.bf16.vlgmr.msrb.gmra.mxu1 %v1632_v12  ;;  %1150 = vmatmul.bf16.vlgmr.msrb.gmra.mxu2 %v1636_v13  ;;  %v2238_v12 = vld [vmem:[%s3310_s0 + $0x12c] sm:$0xf]  ;;  %v1781_v13 = vld [vmem:[%s3310_s0 + $0x14c] sm:$0xf0] }
  0x42   :  { %1338 = vmatpush.bf16.msra.mxu2 %v2328_v2  ;;  %1289 = vmatpush.bf16.msra.mxu1 %v2320_v3  ;;  %v1748_v2 = vor.u32 %v2229_v60, %v1745_v61  ;;  %v1752_v3 = vor.u32 %v2234_v63, %v1751_v62  ;;  %v1887_v60 = vld [vmem:[%s3310_s0 + $0x200] sm:$0xf]  ;;  %v2269_v61 = vld [vmem:[%s3310_s0 + $0x220] sm:$0xf0]  ;;  %v1889_v63 = vld [vmem:[%s3310_s0 + $0x224] sm:$0xf0] }
  0x43   :  { %1199 = vmatmul.bf16.vlgmr.msrb.gmra.mxu3 %v1640_v14  ;;  %1248 = vmatmul.bf16.vlgmr.msrb.gmra.mxu0 %v1644_v15  ;;  %v1787_v14 = vld [vmem:[%s3310_s0 + $0x130] sm:$0xf]  ;;  %v2243_v15 = vld [vmem:[%s3310_s0 + $0x150] sm:$0xf0]  ;;  %v2265_v62 = vld [vmem:[%s3310_s0 + $0x204] sm:$0xf] }
  0x44   :  { %1387 = vmatpush.bf16.msra.mxu3 %v2336_v10  ;;  %1436 = vmatpush.bf16.msra.mxu0 %v2344_v11  ;;  %v1779_v10 = vld [vmem:[%s3310_s0 + $0x128] sm:$0xf]  ;;  %v2242_v11 = vld [vmem:[%s3310_s0 + $0x148] sm:$0xf0] }
  0x46   :  { %1339 = vmatpush.bf16.msra.mxu2 %v2327_v16  ;;  %1290 = vmatpush.bf16.msra.mxu1 %v2319_v17  ;;  %v1776_v16 = vor.u32 %v2237_v8, %v1773_v9  ;;  %v1780_v17 = vor.u32 %v2242_v11, %v1779_v10 }
  0x48   :  { %1388 = vmatpush.bf16.msra.mxu3 %v2335_v18  ;;  %1437 = vmatpush.bf16.msra.mxu0 %v2343_v19  ;;  %v1784_v18 = vor.u32 %v2238_v12, %v1781_v13  ;;  %v1788_v19 = vor.u32 %v2243_v15, %v1787_v14  ;;  %v2203_v14 = vld [vmem:[%s3310_s0 + $0x14] sm:$0xf]  ;;  %v1645_v15 = vld [vmem:[%s3310_s0 + $0x34] sm:$0xf0] }
  0x4a   :  { %1340 = vmatpush.bf16.msra.mxu2 %v2326_v20  ;;  %1291 = vmatpush.bf16.msra.mxu1 %v2318_v21  ;;  %v2322_v20 = vld [vmem:[%s3309_s1 + $0x188] sm:$0xff] }
  0x4b   :  { %v2330_v21 = vld [vmem:[%s3309_s1 + $0x1c8] sm:$0xff] }
  0x4c   :  { %1389 = vmatpush.bf16.msra.mxu3 %v2334_v22  ;;  %1438 = vmatpush.bf16.msra.mxu0 %v2342_v23  ;;  %v2314_v22 = vld [vmem:[%s3309_s1 + $0x148] sm:$0xff] }
  0x4d   :  { %v2338_v23 = vld [vmem:[%s3309_s1 + $0x208] sm:$0xff] }
  0x4e   :  { %1341 = vmatpush.bf16.msra.mxu2 %v2325_v36  ;;  %1292 = vmatpush.bf16.msra.mxu1 %v2317_v38  ;;  %v2321_v36 = vld [vmem:[%s3309_s1 + $0x180] sm:$0xff] }
  0x4f   :  { %v2313_v38 = vld [vmem:[%s3309_s1 + $0x140] sm:$0xff] }
  0x50   :  { %1390 = vmatpush.bf16.msra.mxu3 %v2333_v37  ;;  %1439 = vmatpush.bf16.msra.mxu0 %v2341_v39  ;;  %v2329_v37 = vld [vmem:[%s3309_s1 + $0x1c0] sm:$0xff] }
  0x51   :  { %1106 = vmatmul.bf16.gmra.mxu1 %v1668_v32  ;;  %1155 = vmatmul.bf16.gmra.mxu2 %v1672_v33  ;;  %v1812_v32 = vor.u32 %v2246_v24, %v1809_v25  ;;  %v1816_v33 = vor.u32 %v2251_v27, %v1815_v26  ;;  %v2337_v39 = vld [vmem:[%s3309_s1 + $0x200] sm:$0xff]  ;;  %v1648_v24 = vor.u32 %v2203_v14, %v1645_v15 }
  0x52   :  { %1342 = vmatpush.bf16.msra.mxu2 %v2324_v52  ;;  %1293 = vmatpush.bf16.msra.mxu1 %v2316_v54  ;;  %v1860_v52 = vor.u32 %v2261_v47, %v1859_v46  ;;  %v2218_v46 = vld [vmem:[%s3310_s0 + $0x88] sm:$0xf0]  ;;  %v2221_v14 = vld [vmem:[%s3310_s0 + $0xa4] sm:$0xf] }
  0x53   :  { %1204 = vmatmul.bf16.gmra.mxu3 %v1676_v34  ;;  %1253 = vmatmul.bf16.gmra.mxu0 %v1680_v35  ;;  %v1820_v34 = vor.u32 %v2247_v28, %v1817_v29  ;;  %v1824_v35 = vor.u32 %v2252_v31, %v1823_v30 }
  0x54   :  { %1391 = vmatpush.bf16.msra.mxu3 %v2332_v53  ;;  %1440 = vmatpush.bf16.msra.mxu0 %v2340_v55 }
  0x56   :  { %1343 = vmatpush.bf16.msra.mxu2 %v2323_v4  ;;  %1294 = vmatpush.bf16.msra.mxu1 %v2315_v6  ;;  %v1884_v4 = vor.u32 %v2264_v58, %v1881_v59 }
  0x58   :  { %1392 = vmatpush.bf16.msra.mxu3 %v2331_v5  ;;  %1441 = vmatpush.bf16.msra.mxu0 %v2339_v7  ;;  %v1888_v5 = vor.u32 %v2269_v61, %v1887_v60  ;;  %v1892_v7 = vor.u32 %v2265_v62, %v1889_v63 }
  0x5a   :  { %1344 = vmatpush.bf16.msra.mxu2 %v2322_v20  ;;  %1295 = vmatpush.bf16.msra.mxu1 %v2314_v22  ;;  %v1659_v20 = vld [vmem:[%s3310_s0 + $0x20] sm:$0xf] }
  0x5c   :  { %1393 = vmatpush.bf16.msra.mxu3 %v2330_v21  ;;  %1442 = vmatpush.bf16.msra.mxu0 %v2338_v23  ;;  %v2209_v21 = vld [vmem:[%s3310_s0 + $0x40] sm:$0xf0] }
  0x5d   :  { %v1660_v28 = vor.u32 %v2209_v21, %v1659_v20  ;;  %v2227_v20 = vld [vmem:[%s3310_s0 + $0xd0] sm:$0xf0] }
  0x5e   :  { %1345 = vmatpush.bf16.msra.mxu2 %v2321_v36  ;;  %1296 = vmatpush.bf16.msra.mxu1 %v2313_v38  ;;  %v2212_v38 = vld [vmem:[%s3310_s0 + $0x5c] sm:$0xf] }
  0x60   :  { %1394 = vmatpush.bf16.msra.mxu3 %v2329_v37  ;;  %1443 = vmatpush.bf16.msra.mxu0 %v2337_v39  ;;  %v1681_v39 = vld [vmem:[%s3310_s0 + $0x7c] sm:$0xf0] }
  0x61   :  { %1111 = vmatmul.bf16.gmra.mxu1 %v1704_v48  ;;  %1160 = vmatmul.bf16.gmra.mxu2 %v1708_v49  ;;  %v1848_v48 = vor.u32 %v2255_v40, %v1845_v41  ;;  %v1852_v49 = vor.u32 %v2260_v43, %v1851_v42  ;;  %v1687_v41 = vld [vmem:[%s3310_s0 + $0x60] sm:$0xf]  ;;  %v2217_v42 = vld [vmem:[%s3310_s0 + $0x80] sm:$0xf0] }
  0x62   :  { %v2213_v43 = vld [vmem:[%s3310_s0 + $0x64] sm:$0xf] }
  0x63   :  { %1209 = vmatmul.bf16.gmra.mxu3 %v1712_v50  ;;  %1258 = vmatmul.bf16.gmra.mxu0 %v1716_v51  ;;  %v1856_v51 = vor.u32 %v2256_v44, %v1853_v45  ;;  %v1689_v44 = vld [vmem:[%s3310_s0 + $0x84] sm:$0xf0] }
  0x64   :  { %v1695_v45 = vld [vmem:[%s3310_s0 + $0x68] sm:$0xf] }
  0x65   :  { %v1696_v58 = vor.u32 %v2218_v46, %v1695_v45  ;;  %v1759_v45 = vld [vmem:[%s3310_s0 + $0xf0] sm:$0xf]  ;;  %v2235_v46 = vld [vmem:[%s3310_s0 + $0x110] sm:$0xf0] }
  0x71   :  { %1116 = vmatmul.bf16.gmra.mxu1 %v1740_v0  ;;  %1165 = vmatmul.bf16.gmra.mxu2 %v1744_v1  ;;  %v1895_v0 = vld [vmem:[%s3310_s0 + $0x208] sm:$0xf]  ;;  %v2270_v1 = vld [vmem:[%s3310_s0 + $0x228] sm:$0xf0] }
  0x72   :  { %v1896_v8 = vor.u32 %v2270_v1, %v1895_v0 }
  0x73   :  { %1214 = vmatmul.bf16.gmra.mxu3 %v1748_v2  ;;  %1263 = vmatmul.bf16.gmra.mxu0 %v1752_v3 }
  0x81   :  { %1121 = vmatmul.bf16.gmra.mxu1 %v1776_v16  ;;  %1170 = vmatmul.bf16.gmra.mxu2 %v1780_v17  ;;  %v1651_v16 = vld [vmem:[%s3310_s0 + $0x18] sm:$0xf]  ;;  %v2208_v17 = vld [vmem:[%s3310_s0 + $0x38] sm:$0xf0] }
  0x82   :  { %v1652_v25 = vor.u32 %v2208_v17, %v1651_v16  ;;  %v1723_v16 = vld [vmem:[%s3310_s0 + $0xa8] sm:$0xf]  ;;  %v2226_v17 = vld [vmem:[%s3310_s0 + $0xc8] sm:$0xf0] }
  0x83   :  { %1219 = vmatmul.bf16.gmra.mxu3 %v1784_v18  ;;  %1268 = vmatmul.bf16.gmra.mxu0 %v1788_v19  ;;  %v2204_v18 = vld [vmem:[%s3310_s0 + $0x1c] sm:$0xf]  ;;  %v1653_v19 = vld [vmem:[%s3310_s0 + $0x3c] sm:$0xf0] }
  0x84   :  { %v1656_v27 = vor.u32 %v2204_v18, %v1653_v19  ;;  %v1725_v18 = vld [vmem:[%s3310_s0 + $0xcc] sm:$0xf0] }
  0x85   :  { %v1731_v19 = vld [vmem:[%s3310_s0 + $0xb0] sm:$0xf] }
  0x91   :  { %1126 = vmatmul.bf16.gmra.mxu1 %v1812_v32  ;;  %1175 = vmatmul.bf16.gmra.mxu2 %v1816_v33 }
  0x93   :  { %1224 = vmatmul.bf16.gmra.mxu3 %v1820_v34  ;;  %1273 = vmatmul.bf16.gmra.mxu0 %v1824_v35 }
  0x9e   :  { %v2919_v50 = vpop.f32.mrf.mxu1 }
  0xa0   :  { %v1053_v53 = vpop.f32.mrf.mxu0 }
  0xa1   :  { %1131 = vmatmul.bf16.gmra.mxu1 %v1848_v48  ;;  %1180 = vmatmul.bf16.gmra.mxu2 %v1852_v49 }
  0xa3   :  { %1229 = vmatmul.bf16.gmra.mxu3 %v1856_v51  ;;  %1278 = vmatmul.bf16.gmra.mxu0 %v1860_v52  ;;  %v1684_v51 = vor.u32 %v2212_v38, %v1681_v39  ;;  %v1688_v52 = vor.u32 %v2217_v42, %v1687_v41 }
  0xa4   :  { %v2921_v54 = vpop.f32.mrf.mxu2 }
  0xa6   :  { %v2923_v55 = vpop.f32.mrf.mxu3  ;;  %v2925_v56 = vpop.f32.mrf.mxu1 }
  0xa8   :  { %v1055_v57 = vpop.f32.mrf.mxu0 }
  0xac   :  { %v2951_v2 = vpop.f32.mrf.mxu2 }
  0xae   :  { %v2953_v3 = vpop.f32.mrf.mxu3  ;;  %v2955_v6 = vpop.f32.mrf.mxu1 }
  0xb0   :  { %v1058_v9 = vpop.f32.mrf.mxu0 }
  0xb1   :  { %1136 = vmatmul.bf16.gmra.mxu1 %v1884_v4  ;;  %1185 = vmatmul.bf16.gmra.mxu2 %v1888_v5 }
  0xb3   :  { %1234 = vmatmul.bf16.gmra.mxu3 %v1892_v7  ;;  %1283 = vmatmul.bf16.gmra.mxu0 %v1896_v8 }
  0xb4   :  { %v2957_v10 = vpop.f32.mrf.mxu2 }
  0xb6   :  { %v2959_v11 = vpop.f32.mrf.mxu3  ;;  %v2961_v12 = vpop.f32.mrf.mxu1 }
  0xb8   :  { %v1060_v13 = vpop.f32.mrf.mxu0 }
  0xbc   :  { %v2987_v22 = vpop.f32.mrf.mxu2 }
  0xbe   :  { %v2989_v23 = vpop.f32.mrf.mxu3  ;;  %v1102_v26 = vpop.f32.mrf.mxu1 }
  0xbf   :  { %v1103_v29 = vadd.f32 %v1102_v26, %v1053_v53 }
  0xc0   :  { %v1249_v30 = vpop.f32.mrf.mxu0 }
  0xc1   :  { %1297 = vmatmul.bf16.vlgmr.msra.gmra.mxu1 %v1648_v24  ;;  %1346 = vmatmul.bf16.vlgmr.msra.gmra.mxu2 %v1652_v25 }
  0xc3   :  { %1395 = vmatmul.bf16.vlgmr.msra.gmra.mxu3 %v1656_v27  ;;  %1444 = vmatmul.bf16.vlgmr.msra.gmra.mxu0 %v1660_v28  ;;  %v1724_v27 = vor.u32 %v2226_v17, %v1723_v16 }
  0xc4   :  { %v1151_v31 = vpop.f32.mrf.mxu2 }
  0xc5   :  { %v1152_v32 = vadd.f32 %v1151_v31, %v1103_v29 }
  0xc6   :  { %v1200_v33 = vpop.f32.mrf.mxu3  ;;  %v1104_v34 = vpop.f32.mrf.mxu1 }
  0xc7   :  { %v1201_v35 = vadd.f32 %v1200_v33, %v1152_v32  ;;  %v1105_v36 = vadd.f32 %v1104_v34, %v1055_v57  ;;  %v1692_v57 = vor.u32 %v2213_v43, %v1689_v44  ;;  %v2230_v43 = vld [vmem:[%s3310_s0 + $0xec] sm:$0xf] }
  0xc8   :  { %v1251_v37 = vpop.f32.mrf.mxu0 }
  0xc9   :  { %v2997_v40 = vadd.f32 %v1249_v30, %v1201_v35  ;;  %v1732_v30 = vor.u32 %v2227_v20, %v1731_v19  ;;  %v1795_v19 = vld [vmem:[%s3310_s0 + $0x138] sm:$0xf]  ;;  %v2244_v20 = vld [vmem:[%s3310_s0 + $0x158] sm:$0xf0] }
  0xcc   :  { %v1153_v47 = vpop.f32.mrf.mxu2 }
  0xcd   :  { %v1154_v48 = vadd.f32 %v1153_v47, %v1105_v36  ;;  %v1761_v47 = vld [vmem:[%s3310_s0 + $0x114] sm:$0xf0] }
  0xce   :  { %v1202_v49 = vpop.f32.mrf.mxu3  ;;  %v1107_v53 = vpop.f32.mrf.mxu1 }
  0xcf   :  { %v1203_v59 = vadd.f32 %v1202_v49, %v1154_v48  ;;  %v1108_v60 = vadd.f32 %v1107_v53, %v1058_v9  ;;  %v1717_v9 = vld [vmem:[%s3310_s0 + $0xc4] sm:$0xf0]  ;;  %v1767_v48 = vld [vmem:[%s3310_s0 + $0xf8] sm:$0xf]  ;;  %v2236_v49 = vld [vmem:[%s3310_s0 + $0x118] sm:$0xf0] }
  0xd0   :  { %v1254_v61 = vpop.f32.mrf.mxu0  ;;  %v1720_v26 = vor.u32 %v2221_v14, %v1717_v9 }
  0xd1   :  { %1302 = vmatmul.bf16.gmra.mxu1 %v1684_v51  ;;  %1351 = vmatmul.bf16.gmra.mxu2 %v1688_v52  ;;  %v3017_v62 = vadd.f32 %v1251_v37, %v1203_v59 }
  0xd3   :  { %1400 = vmatmul.bf16.gmra.mxu3 %v1692_v57  ;;  %1449 = vmatmul.bf16.gmra.mxu0 %v1696_v58  ;;  %v1760_v58 = vor.u32 %v2235_v46, %v1759_v45  ;;  %v2248_v46 = vld [vmem:[%s3310_s0 + $0x17c] sm:$0xf] }
  0xd4   :  { %v1156_v63 = vpop.f32.mrf.mxu2 }
  0xd5   :  { %v1157_v0 = vadd.f32 %v1156_v63, %v1108_v60 }
  0xd6   :  { %v1205_v1 = vpop.f32.mrf.mxu3  ;;  %v1109_v4 = vpop.f32.mrf.mxu1 }
  0xd7   :  { %v1206_v5 = vadd.f32 %v1205_v1, %v1157_v0  ;;  %v1110_v7 = vadd.f32 %v1109_v4, %v1060_v13  ;;  %v2222_v13 = vld [vmem:[%s3310_s0 + $0xac] sm:$0xf] }
  0xd8   :  { %v1256_v8 = vpop.f32.mrf.mxu0  ;;  %v1728_v29 = vor.u32 %v2222_v13, %v1725_v18  ;;  %v2239_v13 = vld [vmem:[%s3310_s0 + $0x134] sm:$0xf] }
  0xd9   :  { %v3025_v15 = vadd.f32 %v1254_v61, %v1206_v5  ;;  %v1768_v61 = vor.u32 %v2236_v49, %v1767_v48  ;;  %v2253_v48 = vld [vmem:[%s3310_s0 + $0x1a0] sm:$0xf0] }
  0xda   :  { %v2249_v49 = vld [vmem:[%s3310_s0 + $0x184] sm:$0xf] }
  0xdc   :  { %v1158_v21 = vpop.f32.mrf.mxu2 }
  0xdd   :  { %v1159_v24 = vadd.f32 %v1158_v21, %v1110_v7  ;;  %v1797_v21 = vld [vmem:[%s3310_s0 + $0x15c] sm:$0xf0] }
  0xde   :  { %v1207_v25 = vpop.f32.mrf.mxu3  ;;  %v1112_v28 = vpop.f32.mrf.mxu1 }
  0xdf   :  { %v1208_v31 = vadd.f32 %v1207_v25, %v1159_v24  ;;  %v1113_v32 = vadd.f32 %v1112_v28, %v2919_v50  ;;  %v1753_v50 = vld [vmem:[%s3310_s0 + $0x10c] sm:$0xf0]  ;;  %v1803_v24 = vld [vmem:[%s3310_s0 + $0x140] sm:$0xf]  ;;  %v2245_v25 = vld [vmem:[%s3310_s0 + $0x160] sm:$0xf0] }
  0xe0   :  { %v1259_v33 = vpop.f32.mrf.mxu0  ;;  %v1756_v57 = vor.u32 %v2230_v43, %v1753_v50 }
  0xe1   :  { %1307 = vmatmul.bf16.gmra.mxu1 %v1720_v26  ;;  %1356 = vmatmul.bf16.gmra.mxu2 %v1724_v27  ;;  %v3046_v34 = vadd.f32 %v1256_v8, %v1208_v31 }
  0xe3   :  { %1405 = vmatmul.bf16.gmra.mxu3 %v1728_v29  ;;  %1454 = vmatmul.bf16.gmra.mxu0 %v1732_v30  ;;  %v1796_v30 = vor.u32 %v2244_v20, %v1795_v19  ;;  %v2257_v20 = vld [vmem:[%s3310_s0 + $0x1c4] sm:$0xf] }
  0xe4   :  { %v1161_v35 = vpop.f32.mrf.mxu2 }
  0xe5   :  { %v1162_v36 = vadd.f32 %v1161_v35, %v1113_v32 }
  0xe6   :  { %v1210_v37 = vpop.f32.mrf.mxu3  ;;  %v1114_v38 = vpop.f32.mrf.mxu1 }
  0xe7   :  { %v1211_v39 = vadd.f32 %v1210_v37, %v1162_v36  ;;  %v1115_v41 = vadd.f32 %v1114_v38, %v2925_v56  ;;  %v2231_v56 = vld [vmem:[%s3310_s0 + $0xf4] sm:$0xf] }
  0xe8   :  { %v1261_v42 = vpop.f32.mrf.mxu0  ;;  %v1764_v60 = vor.u32 %v2231_v56, %v1761_v47  ;;  %v1825_v56 = vld [vmem:[%s3310_s0 + $0x19c] sm:$0xf0] }
  0xe9   :  { %v3055_v44 = vadd.f32 %v1259_v33, %v1211_v39  ;;  %v1804_v33 = vor.u32 %v2245_v25, %v1803_v24  ;;  %v2262_v24 = vld [vmem:[%s3310_s0 + $0x1e8] sm:$0xf0] }
  0xea   :  { %v2258_v25 = vld [vmem:[%s3310_s0 + $0x1cc] sm:$0xf] }
  0xec   :  { %v1163_v51 = vpop.f32.mrf.mxu2 }
  0xed   :  { %v1164_v52 = vadd.f32 %v1163_v51, %v1115_v41 }
  0xee   :  { %v1212_v53 = vpop.f32.mrf.mxu3  ;;  %v1117_v59 = vpop.f32.mrf.mxu1 }
  0xef   :  { %v1213_v63 = vadd.f32 %v1212_v53, %v1164_v52  ;;  %v1118_v0 = vadd.f32 %v1117_v59, %v2955_v6  ;;  %v1789_v6 = vld [vmem:[%s3310_s0 + $0x154] sm:$0xf0]  ;;  %v1833_v52 = vld [vmem:[%s3310_s0 + $0x1a4] sm:$0xf0] }
  0xf0   :  { %v1264_v1 = vpop.f32.mrf.mxu0  ;;  %v1792_v29 = vor.u32 %v2239_v13, %v1789_v6  ;;  %v1839_v53 = vld [vmem:[%s3310_s0 + $0x188] sm:$0xf] }
  0xf1   :  { %1312 = vmatmul.bf16.gmra.mxu1 %v1756_v57  ;;  %1361 = vmatmul.bf16.gmra.mxu2 %v1760_v58  ;;  %v3076_v4 = vadd.f32 %v1261_v42, %v1213_v63  ;;  %v2254_v57 = vld [vmem:[%s3310_s0 + $0x1a8] sm:$0xf0] }
  0xf3   :  { %1410 = vmatmul.bf16.gmra.mxu3 %v1764_v60  ;;  %1459 = vmatmul.bf16.gmra.mxu0 %v1768_v61  ;;  %v1828_v61 = vor.u32 %v2248_v46, %v1825_v56 }
  0xf4   :  { %v1166_v5 = vpop.f32.mrf.mxu2 }
  0xf5   :  { %v1167_v7 = vadd.f32 %v1166_v5, %v1118_v0 }
  0xf6   :  { %v1215_v8 = vpop.f32.mrf.mxu3  ;;  %v1119_v14 = vpop.f32.mrf.mxu1 }
  0xf7   :  { %v1216_v9 = vadd.f32 %v1215_v8, %v1167_v7  ;;  %v1120_v16 = vadd.f32 %v1119_v14, %v2961_v12  ;;  %v2240_v12 = vld [vmem:[%s3310_s0 + $0x13c] sm:$0xf] }
  0xf8   :  { %v1266_v17 = vpop.f32.mrf.mxu0  ;;  %v1800_v32 = vor.u32 %v2240_v12, %v1797_v21  ;;  %v1861_v12 = vld [vmem:[%s3310_s0 + $0x1e4] sm:$0xf0] }
  0xf9   :  { %v3085_v18 = vadd.f32 %v1264_v1, %v1216_v9  ;;  %v1836_v1 = vor.u32 %v2249_v49, %v1833_v52  ;;  %v2266_v49 = vld [vmem:[%s3310_s0 + $0x20c] sm:$0xf] }
  0xfc   :  { %v1168_v26 = vpop.f32.mrf.mxu2 }
  0xfd   :  { %v1169_v27 = vadd.f32 %v1168_v26, %v1120_v16 }
  0xfe   :  { %v1217_v28 = vpop.f32.mrf.mxu3  ;;  %v1122_v31 = vpop.f32.mrf.mxu1 }
  0xff   :  { %v1218_v35 = vadd.f32 %v1217_v28, %v1169_v27  ;;  %v1123_v38 = vadd.f32 %v1122_v31, %v2921_v54  ;;  %v1831_v54 = vld [vmem:[%s3310_s0 + $0x180] sm:$0xf]  ;;  %v1869_v27 = vld [vmem:[%s3310_s0 + $0x1ec] sm:$0xf0] }
 0x100   :  { %v1269_v36 = vpop.f32.mrf.mxu0  ;;  %v1832_v63 = vor.u32 %v2253_v48, %v1831_v54  ;;  %v1875_v28 = vld [vmem:[%s3310_s0 + $0x1d0] sm:$0xf] }
 0x101   :  { %1317 = vmatmul.bf16.gmra.mxu1 %v1792_v29  ;;  %1366 = vmatmul.bf16.gmra.mxu2 %v1796_v30  ;;  %v3105_v37 = vadd.f32 %v1266_v17, %v1218_v35  ;;  %v2263_v29 = vld [vmem:[%s3310_s0 + $0x1f0] sm:$0xf0] }
 0x103   :  { %1415 = vmatmul.bf16.gmra.mxu3 %v1800_v32  ;;  %1464 = vmatmul.bf16.gmra.mxu0 %v1804_v33  ;;  %v1864_v33 = vor.u32 %v2257_v20, %v1861_v12 }
 0x104   :  { %v1171_v39 = vpop.f32.mrf.mxu2 }
 0x105   :  { %v1172_v41 = vadd.f32 %v1171_v39, %v1123_v38  ;;  %v1872_v38 = vor.u32 %v2258_v25, %v1869_v27 }
 0x106   :  { %v1220_v42 = vpop.f32.mrf.mxu3  ;;  %v1124_v43 = vpop.f32.mrf.mxu1 }
 0x107   :  { %v1221_v50 = vadd.f32 %v1220_v42, %v1172_v41  ;;  %v1125_v51 = vadd.f32 %v1124_v43, %v2951_v2  ;;  %v1840_v2 = vor.u32 %v2254_v57, %v1839_v53  ;;  %v2271_v53 = vld [vmem:[%s3310_s0 + $0x230] sm:$0xf0] }
 0x108   :  { %v1271_v45 = vpop.f32.mrf.mxu0  ;;  %v2267_v57 = vld [vmem:[%s3310_s0 + $0x214] sm:$0xf] }
 0x109   :  { %v3114_v47 = vadd.f32 %v1269_v36, %v1221_v50 }
 0x10c   :  { %v1173_v58 = vpop.f32.mrf.mxu2 }
 0x10d   :  { %v1174_v59 = vadd.f32 %v1173_v58, %v1125_v51  ;;  %v1897_v51 = vld [vmem:[%s3310_s0 + $0x22c] sm:$0xf0] }
 0x10e   :  { %v1222_v60 = vpop.f32.mrf.mxu3  ;;  %v1127_v0 = vpop.f32.mrf.mxu1 }
 0x10f   :  { %v1223_v5 = vadd.f32 %v1222_v60, %v1174_v59  ;;  %v1128_v14 = vadd.f32 %v1127_v0, %v2957_v10  ;;  %v1867_v10 = vld [vmem:[%s3310_s0 + $0x1c8] sm:$0xf]  ;;  %v1905_v59 = vld [vmem:[%s3310_s0 + $0x234] sm:$0xf0] }
 0x110   :  { %v1274_v7 = vpop.f32.mrf.mxu0  ;;  %v1868_v35 = vor.u32 %v2262_v24, %v1867_v10  ;;  %v1911_v60 = vld [vmem:[%s3310_s0 + $0x218] sm:$0xf] }
 0x111   :  { %1322 = vmatmul.bf16.gmra.mxu1 %v1828_v61  ;;  %1371 = vmatmul.bf16.gmra.mxu2 %v1832_v63  ;;  %v3135_v8 = vadd.f32 %v1271_v45, %v1223_v5  ;;  %v2272_v61 = vld [vmem:[%s3310_s0 + $0x238] sm:$0xf0] }
 0x113   :  { %1420 = vmatmul.bf16.gmra.mxu3 %v1836_v1  ;;  %1469 = vmatmul.bf16.gmra.mxu0 %v1840_v2  ;;  %v1900_v2 = vor.u32 %v2266_v49, %v1897_v51 }
 0x114   :  { %v1176_v9 = vpop.f32.mrf.mxu2 }
 0x115   :  { %v1177_v16 = vadd.f32 %v1176_v9, %v1128_v14  ;;  %v1908_v14 = vor.u32 %v2267_v57, %v1905_v59 }
 0x116   :  { %v1225_v17 = vpop.f32.mrf.mxu3  ;;  %v1129_v13 = vpop.f32.mrf.mxu1 }
 0x117   :  { %v1226_v6 = vadd.f32 %v1225_v17, %v1177_v16  ;;  %v1130_v26 = vadd.f32 %v1129_v13, %v2987_v22  ;;  %v1876_v22 = vor.u32 %v2263_v29, %v1875_v28 }
 0x118   :  { %v1276_v19 = vpop.f32.mrf.mxu0 }
 0x119   :  { %v3144_v21 = vadd.f32 %v1274_v7, %v1226_v6 }
 0x11c   :  { %v1178_v30 = vpop.f32.mrf.mxu2 }
 0x11d   :  { %v1179_v31 = vadd.f32 %v1178_v30, %v1130_v26 }
 0x11e   :  { %v1227_v32 = vpop.f32.mrf.mxu3  ;;  %v1132_v36 = vpop.f32.mrf.mxu1 }
 0x11f   :  { %v1228_v39 = vadd.f32 %v1227_v32, %v1179_v31  ;;  %v1133_v43 = vadd.f32 %v1132_v36, %v2923_v55  ;;  %v1903_v55 = vld [vmem:[%s3310_s0 + $0x210] sm:$0xf] }
 0x120   :  { %v1279_v41 = vpop.f32.mrf.mxu0  ;;  %v1904_v5 = vor.u32 %v2271_v53, %v1903_v55 }
 0x121   :  { %1327 = vmatmul.bf16.gmra.mxu1 %v1864_v33  ;;  %1376 = vmatmul.bf16.gmra.mxu2 %v1868_v35  ;;  %v3165_v42 = vadd.f32 %v1276_v19, %v1228_v39 }
 0x123   :  { %1425 = vmatmul.bf16.gmra.mxu3 %v1872_v38  ;;  %1474 = vmatmul.bf16.gmra.mxu0 %v1876_v22 }
 0x124   :  { %v1181_v50 = vpop.f32.mrf.mxu2 }
 0x125   :  { %v1182_v45 = vadd.f32 %v1181_v50, %v1133_v43 }
 0x126   :  { %v1230_v46 = vpop.f32.mrf.mxu3  ;;  %v1134_v56 = vpop.f32.mrf.mxu1 }
 0x127   :  { %v1231_v54 = vadd.f32 %v1230_v46, %v1182_v45  ;;  %v1135_v58 = vadd.f32 %v1134_v56, %v2953_v3  ;;  %v1912_v3 = vor.u32 %v2272_v61, %v1911_v60 }
 0x128   :  { %v1281_v48 = vpop.f32.mrf.mxu0 }
 0x129   :  { %v3174_v52 = vadd.f32 %v1279_v41, %v1231_v54 }
 0x12c   :  { %v1183_v63 = vpop.f32.mrf.mxu2 }
 0x12d   :  { %v1184_v0 = vadd.f32 %v1183_v63, %v1135_v58 }
 0x12e   :  { %v1232_v1 = vpop.f32.mrf.mxu3  ;;  %v1137_v7 = vpop.f32.mrf.mxu1 }
 0x12f   :  { %v1233_v9 = vadd.f32 %v1232_v1, %v1184_v0  ;;  %v1138_v13 = vadd.f32 %v1137_v7, %v2959_v11 }
 0x130   :  { %v1284_v16 = vpop.f32.mrf.mxu0 }
 0x131   :  { %1332 = vmatmul.bf16.gmra.mxu1 %v1900_v2  ;;  %1381 = vmatmul.bf16.gmra.mxu2 %v1904_v5  ;;  %v3195_v17 = vadd.f32 %v1281_v48, %v1233_v9  ;;  %v2346_v48 = vld [vmem:[%s3313_s4] sm:$0xff]  }
 0x132   :  { %v2348_v59 = vunpack.c.h.bf16 %v2346_v48 }
 0x133   :  { %1430 = vmatmul.bf16.gmra.mxu3 %v1908_v14  ;;  %1479 = vmatmul.bf16.gmra.mxu0 %v1912_v3 }
 0x134   :  { %v1186_v6 = vpop.f32.mrf.mxu2 }
 0x135   :  { %v1187_v19 = vadd.f32 %v1186_v6, %v1138_v13 }
 0x136   :  { %v1235_v20 = vpop.f32.mrf.mxu3  ;;  %v1139_v12 = vpop.f32.mrf.mxu1 }
 0x137   :  { %v1236_v10 = vadd.f32 %v1235_v20, %v1187_v19  ;;  %v1140_v26 = vadd.f32 %v1139_v12, %v2989_v23  ;;  %v3207_v23 = vld [vmem:[%s3311_s2] ss:$0 sm:$0xff] }
 0x138   :  { %v1286_v24 = vpop.f32.mrf.mxu0 }
 0x139   :  { %v3198_v25 = vadd.f32 %v1284_v16, %v1236_v10 }
 0x13c   :  { %v1188_v27 = vpop.f32.mrf.mxu2 }
 0x13d   :  { %v1189_v28 = vadd.f32 %v1188_v27, %v1140_v26 }
 0x13e   :  { %v1237_v29 = vpop.f32.mrf.mxu3  ;;  %v1298_v30 = vpop.f32.mrf.mxu1 }
 0x13f   :  { %v1238_v31 = vadd.f32 %v1237_v29, %v1189_v28  ;;  %v1299_v11 = vadd.f32 %v1298_v30, %v2997_v40  ;;  %v3214_v40 = vld [vmem:[%s3312_s3] ss:$0 sm:$0xff] }
 0x140   :  { %v1445_v32 = vpop.f32.mrf.mxu0 }
 0x141   :  { %v3201_v33 = vadd.f32 %v1286_v24, %v1238_v31  ;;  %v2417_v24 = vld [vmem:[%s3313_s4 + $0x8] sm:$0xff]  }
 0x142   :  { %v2351_v30 = vunpack.c.l.bf16 %v2417_v24 }
 0x144   :  { %v1347_v35 = vpop.f32.mrf.mxu2 }
 0x145   :  { %v1348_v36 = vadd.f32 %v1347_v35, %v1299_v11 }
 0x146   :  { %v1396_v38 = vpop.f32.mrf.mxu3  ;;  %v1300_v22 = vpop.f32.mrf.mxu1 }
 0x147   :  { %v1397_v39 = vadd.f32 %v1396_v38, %v1348_v36  ;;  %v1301_v50 = vadd.f32 %v1300_v22, %v3017_v62  ;;  %v2347_v62 = vunpack.c.l.bf16 %v2346_v48 }
 0x148   :  { %v1447_v41 = vpop.f32.mrf.mxu0 }
 0x149   :  { %v1446_v43 = vadd.f32 %v1445_v32, %v1397_v39  ;;  %v2352_v32 = vunpack.c.h.bf16 %v2417_v24 }
 0x14b   :  { %v1489_v46 = vmul.f32 %v3207_v23, %v1446_v43 }
 0x14c   :  { %v1349_v45 = vpop.f32.mrf.mxu2 }
 0x14d   :  { %v1350_v56 = vadd.f32 %v1349_v45, %v1301_v50  ;;  %v1509_v53 = vadd.f32 %v3214_v40, %v1489_v46 }
 0x14e   :  { %v1398_v54 = vpop.f32.mrf.mxu3  ;;  %v1303_v49 = vpop.f32.mrf.mxu1 }
 0x14f   :  { %v1399_v51 = vadd.f32 %v1398_v54, %v1350_v56  ;;  %v1304_v60 = vadd.f32 %v1303_v49, %v3025_v15  ;;  %v1557_v63 = vadd.f32 %v2347_v62, %v1509_v53  ;;  %v2418_v62 = vld [vmem:[%s3313_s4 + $0x10] sm:$0xff]  }
 0x150   :  { %v1450_v55 = vpop.f32.mrf.mxu0 }
 0x151   :  { %v1448_v57 = vadd.f32 %v1447_v41, %v1399_v51  ;;  %v1573_v9 = vmax.f32 %v1557_v63, 0.0 }
 0x153   :  { %v1490_v58 = vmul.f32 %v3207_v23, %v1448_v57 }
 0x154   :  { %v1352_v61 = vpop.f32.mrf.mxu2 }
 0x155   :  { %v1510_v0 = vadd.f32 %v3214_v40, %v1490_v58  ;;  %v1353_v1 = vadd.f32 %v1352_v61, %v1304_v60  ;;  %v2355_v61 = vunpack.c.l.bf16 %v2418_v62 }
 0x156   :  { %v1401_v2 = vpop.f32.mrf.mxu3  ;;  %v1305_v5 = vpop.f32.mrf.mxu1 }
 0x157   :  { %v1558_v7 = vadd.f32 %v2348_v59, %v1510_v0  ;;  %v1402_v14 = vadd.f32 %v1401_v2, %v1353_v1  ;;  %v1306_v19 = vadd.f32 %v1305_v5, %v3046_v34  ;;  %v2356_v0 = vunpack.c.h.bf16 %v2418_v62 }
 0x158   :  { %v1452_v3 = vpop.f32.mrf.mxu0 }
 0x159   :  { %v1574_v16 = vmax.f32 %v1558_v7, 0.0  ;;  %v1451_v13 = vadd.f32 %v1450_v55, %v1402_v14 }
 0x15b   :  { %v2380_v6 = vpack.c.bf16 %v1574_v16, %v1573_v9  ;;  %v1491_v15 = vmul.f32 %v3207_v23, %v1451_v13 }
 0x15c   :  { %v1354_v20 = vpop.f32.mrf.mxu2 }
 0x15d   :  { %2381 = vst [vmem:[%s3314_s5] sm:$0xff] %v2380_v6   ;;  %v1355_v12 = vadd.f32 %v1354_v20, %v1306_v19  ;;  %v1511_v29 = vadd.f32 %v3214_v40, %v1491_v15 }
 0x15e   :  { %v1403_v10 = vpop.f32.mrf.mxu3  ;;  %v1308_v26 = vpop.f32.mrf.mxu1 }
 0x15f   :  { %v1404_v27 = vadd.f32 %v1403_v10, %v1355_v12  ;;  %v1309_v11 = vadd.f32 %v1308_v26, %v3055_v44  ;;  %v1559_v36 = vadd.f32 %v2351_v30, %v1511_v29 }
 0x160   :  { %v1455_v28 = vpop.f32.mrf.mxu0 }
 0x161   :  { %v1453_v34 = vadd.f32 %v1452_v3, %v1404_v27  ;;  %v1575_v46 = vmax.f32 %v1559_v36, 0.0 }
 0x163   :  { %v1492_v31 = vmul.f32 %v3207_v23, %v1453_v34 }
 0x164   :  { %v1357_v35 = vpop.f32.mrf.mxu2 }
 0x165   :  { %v1512_v38 = vadd.f32 %v3214_v40, %v1492_v31  ;;  %v1358_v22 = vadd.f32 %v1357_v35, %v1309_v11 }
 0x166   :  { %v1406_v39 = vpop.f32.mrf.mxu3  ;;  %v1310_v41 = vpop.f32.mrf.mxu1 }
 0x167   :  { %v1560_v43 = vadd.f32 %v2352_v32, %v1512_v38  ;;  %v1407_v50 = vadd.f32 %v1406_v39, %v1358_v22  ;;  %v1311_v49 = vadd.f32 %v1310_v41, %v3076_v4 }
 0x168   :  { %v1457_v45 = vpop.f32.mrf.mxu0 }
 0x169   :  { %v1576_v56 = vmax.f32 %v1560_v43, 0.0  ;;  %v1456_v54 = vadd.f32 %v1455_v28, %v1407_v50  ;;  %v2419_v28 = vld [vmem:[%s3313_s4 + $0x18] sm:$0xff]  }
 0x16a   :  { %v2359_v32 = vunpack.c.l.bf16 %v2419_v28  ;;  %v2360_v35 = vunpack.c.h.bf16 %v2419_v28 }
 0x16b   :  { %v2385_v48 = vpack.c.bf16 %v1576_v56, %v1575_v46  ;;  %v1493_v44 = vmul.f32 %v3207_v23, %v1456_v54 }
 0x16c   :  { %v1359_v51 = vpop.f32.mrf.mxu2 }
 0x16d   :  { %2424 = vst [vmem:[%s3314_s5 + $0x8] sm:$0xff] %v2385_v48   ;;  %v1360_v55 = vadd.f32 %v1359_v51, %v1311_v49  ;;  %v1513_v60 = vadd.f32 %v3214_v40, %v1493_v44 }
 0x16e   :  { %v1408_v53 = vpop.f32.mrf.mxu3  ;;  %v1313_v57 = vpop.f32.mrf.mxu1 }
 0x16f   :  { %v1409_v58 = vadd.f32 %v1408_v53, %v1360_v55  ;;  %v1314_v1 = vadd.f32 %v1313_v57, %v3085_v18  ;;  %v1561_v5 = vadd.f32 %v2355_v61, %v1513_v60  ;;  %v2420_v57 = vld [vmem:[%s3313_s4 + $0x20] sm:$0xff]  }
 0x170   :  { %v1460_v59 = vpop.f32.mrf.mxu0 }
 0x171   :  { %v1458_v4 = vadd.f32 %v1457_v45, %v1409_v58  ;;  %v1577_v19 = vmax.f32 %v1561_v5, 0.0 }
 0x173   :  { %v1494_v63 = vmul.f32 %v3207_v23, %v1458_v4  ;;  %v2363_v4 = vunpack.c.l.bf16 %v2420_v57 }
 0x174   :  { %v1362_v2 = vpop.f32.mrf.mxu2 }
 0x175   :  { %v1514_v7 = vadd.f32 %v3214_v40, %v1494_v63  ;;  %v1363_v14 = vadd.f32 %v1362_v2, %v1314_v1 }
 0x176   :  { %v1411_v3 = vpop.f32.mrf.mxu3  ;;  %v1315_v9 = vpop.f32.mrf.mxu1 }
 0x177   :  { %v1562_v16 = vadd.f32 %v2356_v0, %v1514_v7  ;;  %v1412_v13 = vadd.f32 %v1411_v3, %v1363_v14  ;;  %v1316_v10 = vadd.f32 %v1315_v9, %v3105_v37  ;;  %v2364_v0 = vunpack.c.h.bf16 %v2420_v57 }
 0x178   :  { %v1462_v6 = vpop.f32.mrf.mxu0 }
 0x179   :  { %v1578_v20 = vmax.f32 %v1562_v16, 0.0  ;;  %v1461_v15 = vadd.f32 %v1460_v59, %v1412_v13 }
 0x17b   :  { %v2390_v12 = vpack.c.bf16 %v1578_v20, %v1577_v19  ;;  %v1495_v18 = vmul.f32 %v3207_v23, %v1461_v15 }
 0x17c   :  { %v1364_v24 = vpop.f32.mrf.mxu2 }
 0x17d   :  { %2425 = vst [vmem:[%s3314_s5 + $0x10] sm:$0xff] %v2390_v12   ;;  %v1365_v26 = vadd.f32 %v1364_v24, %v1316_v10  ;;  %v1515_v31 = vadd.f32 %v3214_v40, %v1495_v18 }
 0x17e   :  { %v1413_v27 = vpop.f32.mrf.mxu3  ;;  %v1318_v29 = vpop.f32.mrf.mxu1 }
 0x17f   :  { %v1414_v30 = vadd.f32 %v1413_v27, %v1365_v26  ;;  %v1319_v36 = vadd.f32 %v1318_v29, %v3114_v47  ;;  %v1563_v22 = vadd.f32 %v2359_v32, %v1515_v31  ;;  %v2421_v27 = vld [vmem:[%s3313_s4 + $0x28] sm:$0xff]  }
 0x180   :  { %v1465_v34 = vpop.f32.mrf.mxu0 }
 0x181   :  { %v1463_v37 = vadd.f32 %v1462_v6, %v1414_v30  ;;  %v1579_v54 = vmax.f32 %v1563_v22, 0.0 }
 0x183   :  { %v1496_v11 = vmul.f32 %v3207_v23, %v1463_v37  ;;  %v2368_v37 = vunpack.c.h.bf16 %v2421_v27 }
 0x184   :  { %v1367_v38 = vpop.f32.mrf.mxu2 }
 0x185   :  { %v1516_v39 = vadd.f32 %v3214_v40, %v1496_v11  ;;  %v1368_v41 = vadd.f32 %v1367_v38, %v1319_v36 }
 0x186   :  { %v1416_v43 = vpop.f32.mrf.mxu3  ;;  %v1320_v50 = vpop.f32.mrf.mxu1 }
 0x187   :  { %v1564_v45 = vadd.f32 %v2360_v35, %v1516_v39  ;;  %v1417_v46 = vadd.f32 %v1416_v43, %v1368_v41  ;;  %v1321_v44 = vadd.f32 %v1320_v50, %v3135_v8 }
 0x188   :  { %v1467_v56 = vpop.f32.mrf.mxu0 }
 0x189   :  { %v1580_v48 = vmax.f32 %v1564_v45, 0.0  ;;  %v1466_v49 = vadd.f32 %v1465_v34, %v1417_v46  ;;  %v2367_v34 = vunpack.c.l.bf16 %v2421_v27 }
 0x18b   :  { %v2395_v51 = vpack.c.bf16 %v1580_v48, %v1579_v54  ;;  %v1497_v47 = vmul.f32 %v3207_v23, %v1466_v49 }
 0x18c   :  { %v1369_v55 = vpop.f32.mrf.mxu2 }
 0x18d   :  { %2426 = vst [vmem:[%s3314_s5 + $0x18] sm:$0xff] %v2395_v51   ;;  %v1370_v53 = vadd.f32 %v1369_v55, %v1321_v44  ;;  %v1517_v61 = vadd.f32 %v3214_v40, %v1497_v47  ;;  %v2422_v47 = vld [vmem:[%s3313_s4 + $0x30] sm:$0xff]  }
 0x18e   :  { %v1418_v62 = vpop.f32.mrf.mxu3  ;;  %v1323_v58 = vpop.f32.mrf.mxu1 }
 0x18f   :  { %v1419_v59 = vadd.f32 %v1418_v62, %v1370_v53  ;;  %v1324_v1 = vadd.f32 %v1323_v58, %v3144_v21  ;;  %v1565_v5 = vadd.f32 %v2363_v4, %v1517_v61  ;;  %v2371_v58 = vunpack.c.l.bf16 %v2422_v47 }
 0x190   :  { %v1470_v60 = vpop.f32.mrf.mxu0 }
 0x191   :  { %v1468_v8 = vadd.f32 %v1467_v56, %v1419_v59  ;;  %v1581_v19 = vmax.f32 %v1565_v5, 0.0 }
 0x193   :  { %v1498_v63 = vmul.f32 %v3207_v23, %v1468_v8 }
 0x194   :  { %v1372_v2 = vpop.f32.mrf.mxu2 }
 0x195   :  { %v1518_v7 = vadd.f32 %v3214_v40, %v1498_v63  ;;  %v1373_v14 = vadd.f32 %v1372_v2, %v1324_v1 }
 0x196   :  { %v1421_v3 = vpop.f32.mrf.mxu3  ;;  %v1325_v9 = vpop.f32.mrf.mxu1 }
 0x197   :  { %v1566_v16 = vadd.f32 %v2364_v0, %v1518_v7  ;;  %v1422_v13 = vadd.f32 %v1421_v3, %v1373_v14  ;;  %v1326_v10 = vadd.f32 %v1325_v9, %v3165_v42 }
 0x198   :  { %v1472_v6 = vpop.f32.mrf.mxu0 }
 0x199   :  { %v1582_v20 = vmax.f32 %v1566_v16, 0.0  ;;  %v1471_v15 = vadd.f32 %v1470_v60, %v1422_v13  ;;  %v2372_v60 = vunpack.c.h.bf16 %v2422_v47 }
 0x19b   :  { %v2400_v12 = vpack.c.bf16 %v1582_v20, %v1581_v19  ;;  %v1499_v21 = vmul.f32 %v3207_v23, %v1471_v15  ;;  %v2423_v15 = vld [vmem:[%s3313_s4 + $0x38] sm:$0xff]  }
 0x19c   :  { %v1374_v24 = vpop.f32.mrf.mxu2  ;;  %v2376_v27 = vunpack.c.h.bf16 %v2423_v15 }
 0x19d   :  { %2427 = vst [vmem:[%s3314_s5 + $0x20] sm:$0xff] %v2400_v12   ;;  %v1375_v18 = vadd.f32 %v1374_v24, %v1326_v10  ;;  %v1519_v30 = vadd.f32 %v3214_v40, %v1499_v21 }
 0x19e   :  { %v1423_v26 = vpop.f32.mrf.mxu3  ;;  %v1328_v28 = vpop.f32.mrf.mxu1 }
 0x19f   :  { %v1424_v29 = vadd.f32 %v1423_v26, %v1375_v18  ;;  %v1329_v11 = vadd.f32 %v1328_v28, %v3174_v52  ;;  %v1567_v36 = vadd.f32 %v2367_v34, %v1519_v30  ;;  %v2375_v18 = vunpack.c.l.bf16 %v2423_v15 }
 0x1a0   :  { %v1475_v42 = vpop.f32.mrf.mxu0 }
 0x1a1   :  { %v1473_v31 = vadd.f32 %v1472_v6, %v1424_v29  ;;  %v1583_v45 = vmax.f32 %v1567_v36, 0.0 }
 0x1a3   :  { %v1500_v32 = vmul.f32 %v3207_v23, %v1473_v31 }
 0x1a4   :  { %v1377_v35 = vpop.f32.mrf.mxu2 }
 0x1a5   :  { %v1520_v38 = vadd.f32 %v3214_v40, %v1500_v32  ;;  %v1378_v22 = vadd.f32 %v1377_v35, %v1329_v11 }
 0x1a6   :  { %v1426_v39 = vpop.f32.mrf.mxu3  ;;  %v1330_v41 = vpop.f32.mrf.mxu1 }
 0x1a7   :  { %v1568_v43 = vadd.f32 %v2368_v37, %v1520_v38  ;;  %v1427_v50 = vadd.f32 %v1426_v39, %v1378_v22  ;;  %v1331_v48 = vadd.f32 %v1330_v41, %v3195_v17 }
 0x1a8   :  { %v1477_v49 = vpop.f32.mrf.mxu0 }
 0x1a9   :  { %v1584_v46 = vmax.f32 %v1568_v43, 0.0  ;;  %v1476_v56 = vadd.f32 %v1475_v42, %v1427_v50 }
 0x1ab   :  { %v2405_v54 = vpack.c.bf16 %v1584_v46, %v1583_v45  ;;  %v1501_v52 = vmul.f32 %v3207_v23, %v1476_v56 }
 0x1ac   :  { %v1379_v51 = vpop.f32.mrf.mxu2 }
 0x1ad   :  { %2428 = vst [vmem:[%s3314_s5 + $0x28] sm:$0xff] %v2405_v54   ;;  %v1380_v44 = vadd.f32 %v1379_v51, %v1331_v48  ;;  %v1521_v57 = vadd.f32 %v3214_v40, %v1501_v52 }
 0x1ae   :  { %v1428_v55 = vpop.f32.mrf.mxu3  ;;  %v1333_v53 = vpop.f32.mrf.mxu1 }
 0x1af   :  { %v1429_v62 = vadd.f32 %v1428_v55, %v1380_v44  ;;  %v1334_v61 = vadd.f32 %v1333_v53, %v3198_v25  ;;  %v1569_v8 = vadd.f32 %v2371_v58, %v1521_v57 }
 0x1b0   :  { %v1480_v2 = vpop.f32.mrf.mxu0 }
 0x1b1   :  { %v1478_v17 = vadd.f32 %v1477_v49, %v1429_v62  ;;  %v1585_v3 = vmax.f32 %v1569_v8, 0.0 }
 0x1b3   :  { %v1502_v59 = vmul.f32 %v3207_v23, %v1478_v17 }
 0x1b4   :  { %v1382_v4 = vpop.f32.mrf.mxu2 }
 0x1b5   :  { %v1522_v63 = vadd.f32 %v3214_v40, %v1502_v59  ;;  %v1383_v0 = vadd.f32 %v1382_v4, %v1334_v61 }
 0x1b6   :  { %v1431_v1 = vpop.f32.mrf.mxu3  ;;  %v1335_v14 = vpop.f32.mrf.mxu1 }
 0x1b7   :  { %v1570_v5 = vadd.f32 %v2372_v60, %v1522_v63  ;;  %v1432_v7 = vadd.f32 %v1431_v1, %v1383_v0  ;;  %v1336_v6 = vadd.f32 %v1335_v14, %v3201_v33 }
 0x1b8   :  { %v1482_v24 = vpop.f32.mrf.mxu0 }
 0x1b9   :  { %v1586_v9 = vmax.f32 %v1570_v5, 0.0  ;;  %v1481_v16 = vadd.f32 %v1480_v2, %v1432_v7 }
 0x1bb   :  { %v2410_v13 = vpack.c.bf16 %v1586_v9, %v1585_v3  ;;  %v1503_v25 = vmul.f32 %v3207_v23, %v1481_v16 }
 0x1bc   :  { %v1384_v19 = vpop.f32.mrf.mxu2 }
 0x1bd   :  { %2429 = vst [vmem:[%s3314_s5 + $0x30] sm:$0xff] %v2410_v13   ;;  %v1385_v20 = vadd.f32 %v1384_v19, %v1336_v6  ;;  %v1523_v21 = vadd.f32 %v3214_v40, %v1503_v25 }
 0x1be   :  { %v1433_v12 = vpop.f32.mrf.mxu3 }
 0x1bf   :  { %v1434_v10 = vadd.f32 %v1433_v12, %v1385_v20  ;;  %v1571_v28 = vadd.f32 %v2375_v18, %v1523_v21 }
 0x1c1   :  { %v1483_v26 = vadd.f32 %v1482_v24, %v1434_v10  ;;  %v1587_v34 = vmax.f32 %v1571_v28, 0.0 }
 0x1c3   :  { %v1504_v33 = vmul.f32 %v3207_v23, %v1483_v26 }
 0x1c5   :  { %v1524_v29 = vadd.f32 %v3214_v40, %v1504_v33 }
 0x1c7   :  { %v1572_v30 = vadd.f32 %v2376_v27, %v1524_v29 }
 0x1c9   :  { %v1588_v31 = vmax.f32 %v1572_v30, 0.0 }
 0x1cb   :  { %v2415_v42 = vpack.c.bf16 %v1588_v31, %v1587_v34 }
 0x1cd   :  { %2430 = vst [vmem:[%s3314_s5 + $0x38] sm:$0xff] %v2415_v42  }

// kernel: _lambda_.17
= control target key start
LH: loop header
LB: loop body
LE: loop exit
PB: predicated region body
PF: predicated region fallthrough
CT: control target
= control target key end

     0   :  { %s1740_s1 = inlined_call_operand.vmem [shape: bf16[1152,128], index: 1, kind: input, shape index: {}]   ;;  %s1741_s0 = inlined_call_operand.vmem [shape: bf16[32,1152], index: 0, kind: input, shape index: {}]   ;;  %s1742_s2 = inlined_call_operand.vmem [shape: f32[1,128], index: 2, kind: input, shape index: {}]   ;;  %s1743_s3 = inlined_call_operand.vmem [shape: f32[1,128], index: 3, kind: input, shape index: {}]   ;;  %s1744_s4 = inlined_call_operand.vmem [shape: bf16[32,128], index: 4, kind: output, shape index: {}]  }
   0x1   :  { %v1293_v0 = vld [vmem:[%s1740_s1 + $0x38] sm:$0xff]  ;;  %v1292_v4 = vld [vmem:[%s1740_s1 + $0x30] sm:$0xff]  ;;  %v1291_v8 = vld [vmem:[%s1740_s1 + $0x28] sm:$0xff] }
   0x2   :  { %v1301_v1 = vld [vmem:[%s1740_s1 + $0x78] sm:$0xff]  ;;  %705 = vmatpush.bf16.msra.mxu0 %v1293_v0  ;;  %v1300_v5 = vld [vmem:[%s1740_s1 + $0x70] sm:$0xff]  ;;  %v1299_v9 = vld [vmem:[%s1740_s1 + $0x68] sm:$0xff] }
   0x3   :  { %v1309_v2 = vld [vmem:[%s1740_s1 + $0xb8] sm:$0xff]  ;;  %724 = vmatpush.bf16.msra.mxu1 %v1301_v1  ;;  %v1308_v6 = vld [vmem:[%s1740_s1 + $0xb0] sm:$0xff]  ;;  %v1307_v10 = vld [vmem:[%s1740_s1 + $0xa8] sm:$0xff] }
   0x4   :  { %v1317_v3 = vld [vmem:[%s1740_s1 + $0xf8] sm:$0xff]  ;;  %743 = vmatpush.bf16.msra.mxu2 %v1309_v2  ;;  %v1316_v7 = vld [vmem:[%s1740_s1 + $0xf0] sm:$0xff]  ;;  %v1315_v11 = vld [vmem:[%s1740_s1 + $0xe8] sm:$0xff] }
   0x5   :  { %762 = vmatpush.bf16.msra.mxu3 %v1317_v3  ;;  %v1290_v12 = vld [vmem:[%s1740_s1 + $0x20] sm:$0xff]  ;;  %v1289_v16 = vld [vmem:[%s1740_s1 + $0x18] sm:$0xff]  ;;  %v1288_v20 = vld [vmem:[%s1740_s1 + $0x10] sm:$0xff] }
   0x6   :  { %706 = vmatpush.bf16.msra.mxu0 %v1292_v4  ;;  %v1298_v13 = vld [vmem:[%s1740_s1 + $0x60] sm:$0xff]  ;;  %v1297_v17 = vld [vmem:[%s1740_s1 + $0x58] sm:$0xff]  ;;  %v1296_v21 = vld [vmem:[%s1740_s1 + $0x50] sm:$0xff] }
   0x7   :  { %725 = vmatpush.bf16.msra.mxu1 %v1300_v5  ;;  %v1306_v14 = vld [vmem:[%s1740_s1 + $0xa0] sm:$0xff]  ;;  %v1305_v18 = vld [vmem:[%s1740_s1 + $0x98] sm:$0xff]  ;;  %v1304_v22 = vld [vmem:[%s1740_s1 + $0x90] sm:$0xff] }
   0x8   :  { %744 = vmatpush.bf16.msra.mxu2 %v1308_v6  ;;  %v1314_v15 = vld [vmem:[%s1740_s1 + $0xe0] sm:$0xff]  ;;  %v1313_v19 = vld [vmem:[%s1740_s1 + $0xd8] sm:$0xff]  ;;  %v1312_v23 = vld [vmem:[%s1740_s1 + $0xd0] sm:$0xff] }
   0x9   :  { %763 = vmatpush.bf16.msra.mxu3 %v1316_v7  ;;  %v1287_v24 = vld [vmem:[%s1740_s1 + $0x8] sm:$0xff]  ;;  %v1286_v28 = vld [vmem:[%s1740_s1] sm:$0xff]  ;;  %v920_v39 = vld [vmem:[%s1741_s0 + $0x2c] sm:$0xf0] }
   0xa   :  { %707 = vmatpush.bf16.msra.mxu0 %v1291_v8  ;;  %v1295_v25 = vld [vmem:[%s1740_s1 + $0x48] sm:$0xff]  ;;  %v1294_v29 = vld [vmem:[%s1740_s1 + $0x40] sm:$0xff]  ;;  %v1325_v40 = vld [vmem:[%s1740_s1 + $0x138] sm:$0xff] }
   0xb   :  { %726 = vmatpush.bf16.msra.mxu1 %v1299_v9  ;;  %v1303_v26 = vld [vmem:[%s1740_s1 + $0x88] sm:$0xff]  ;;  %v1302_v30 = vld [vmem:[%s1740_s1 + $0x80] sm:$0xff]  ;;  %v1333_v41 = vld [vmem:[%s1740_s1 + $0x178] sm:$0xff] }
   0xc   :  { %745 = vmatpush.bf16.msra.mxu2 %v1307_v10  ;;  %v1311_v27 = vld [vmem:[%s1740_s1 + $0xc8] sm:$0xff]  ;;  %v1310_v31 = vld [vmem:[%s1740_s1 + $0xc0] sm:$0xff]  ;;  %v1341_v46 = vld [vmem:[%s1740_s1 + $0x1b8] sm:$0xff] }
   0xd   :  { %764 = vmatpush.bf16.msra.mxu3 %v1315_v11  ;;  %v910_v32 = vld [vmem:[%s1741_s0] sm:$0xf]  ;;  %v1272_v33 = vld [vmem:[%s1741_s0 + $0x20] sm:$0xf0]  ;;  %v912_v35 = vld [vmem:[%s1741_s0 + $0x24] sm:$0xf0] }
   0xe   :  { %708 = vmatpush.bf16.msra.mxu0 %v1290_v12  ;;  %v1268_v34 = vld [vmem:[%s1741_s0 + $0x4] sm:$0xf]  ;;  %v918_v36 = vld [vmem:[%s1741_s0 + $0x8] sm:$0xf]  ;;  %v1273_v37 = vld [vmem:[%s1741_s0 + $0x28] sm:$0xf0]  ;;  %v911_v42 = vor.u32 %v1272_v33, %v910_v32 }
   0xf   :  { %727 = vmatpush.bf16.msra.mxu1 %v1298_v13  ;;  %v1269_v38 = vld [vmem:[%s1741_s0 + $0xc] sm:$0xf]  ;;  %v915_v43 = vor.u32 %v1268_v34, %v912_v35  ;;  %v919_v44 = vor.u32 %v1273_v37, %v918_v36  ;;  %v1349_v47 = vld [vmem:[%s1740_s1 + $0x1f8] sm:$0xff]  ;;  %v1324_v48 = vld [vmem:[%s1740_s1 + $0x130] sm:$0xff] }
  0x10   :  { %746 = vmatpush.bf16.msra.mxu2 %v1306_v14  ;;  %v923_v45 = vor.u32 %v1269_v38, %v920_v39  ;;  %v1332_v49 = vld [vmem:[%s1740_s1 + $0x170] sm:$0xff]  ;;  %v1323_v52 = vld [vmem:[%s1740_s1 + $0x128] sm:$0xff]  ;;  %v1322_v56 = vld [vmem:[%s1740_s1 + $0x120] sm:$0xff] }
  0x11   :  { %765 = vmatpush.bf16.msra.mxu3 %v1314_v15  ;;  %v1340_v50 = vld [vmem:[%s1740_s1 + $0x1b0] sm:$0xff]  ;;  %v1331_v53 = vld [vmem:[%s1740_s1 + $0x168] sm:$0xff]  ;;  %v1330_v57 = vld [vmem:[%s1740_s1 + $0x160] sm:$0xff] }
  0x12   :  { %709 = vmatpush.bf16.msra.mxu0 %v1289_v16  ;;  %v1348_v51 = vld [vmem:[%s1740_s1 + $0x1f0] sm:$0xff]  ;;  %v1339_v54 = vld [vmem:[%s1740_s1 + $0x1a8] sm:$0xff]  ;;  %v1338_v58 = vld [vmem:[%s1740_s1 + $0x1a0] sm:$0xff] }
  0x13   :  { %728 = vmatpush.bf16.msra.mxu1 %v1297_v17  ;;  %v1347_v55 = vld [vmem:[%s1740_s1 + $0x1e8] sm:$0xff]  ;;  %v1346_v59 = vld [vmem:[%s1740_s1 + $0x1e0] sm:$0xff]  ;;  %v948_v63 = vld [vmem:[%s1741_s0 + $0x6c] sm:$0xf0] }
  0x14   :  { %747 = vmatpush.bf16.msra.mxu2 %v1305_v18  ;;  %v946_v60 = vld [vmem:[%s1741_s0 + $0x48] sm:$0xf]  ;;  %v1281_v61 = vld [vmem:[%s1741_s0 + $0x68] sm:$0xf0]  ;;  %v954_v0 = vld [vmem:[%s1741_s0 + $0x50] sm:$0xf] }
  0x15   :  { %766 = vmatpush.bf16.msra.mxu3 %v1313_v19  ;;  %v1277_v62 = vld [vmem:[%s1741_s0 + $0x4c] sm:$0xf]  ;;  %v1282_v1 = vld [vmem:[%s1741_s0 + $0x70] sm:$0xf0]  ;;  %v956_v3 = vld [vmem:[%s1741_s0 + $0x74] sm:$0xf0]  ;;  %v947_v6 = vor.u32 %v1281_v61, %v946_v60 }
  0x16   :  { %710 = vmatpush.bf16.msra.mxu0 %v1288_v20  ;;  %v1278_v2 = vld [vmem:[%s1741_s0 + $0x54] sm:$0xf]  ;;  %v1321_v4 = vld [vmem:[%s1740_s1 + $0x118] sm:$0xff]  ;;  %v951_v7 = vor.u32 %v1277_v62, %v948_v63  ;;  %v955_v8 = vor.u32 %v1282_v1, %v954_v0  ;;  %v1319_v16 = vld [vmem:[%s1740_s1 + $0x108] sm:$0xff] }
  0x17   :  { %729 = vmatpush.bf16.msra.mxu1 %v1296_v21  ;;  %v1329_v5 = vld [vmem:[%s1740_s1 + $0x158] sm:$0xff]  ;;  %v959_v9 = vor.u32 %v1278_v2, %v956_v3  ;;  %v1320_v12 = vld [vmem:[%s1740_s1 + $0x110] sm:$0xff]  ;;  %v1327_v17 = vld [vmem:[%s1740_s1 + $0x148] sm:$0xff] }
  0x18   :  { %748 = vmatpush.bf16.msra.mxu2 %v1304_v22  ;;  %v1337_v10 = vld [vmem:[%s1740_s1 + $0x198] sm:$0xff]  ;;  %v1328_v13 = vld [vmem:[%s1740_s1 + $0x150] sm:$0xff]  ;;  %v1335_v18 = vld [vmem:[%s1740_s1 + $0x188] sm:$0xff] }
  0x19   :  { %767 = vmatpush.bf16.msra.mxu3 %v1312_v23  ;;  %v1345_v11 = vld [vmem:[%s1740_s1 + $0x1d8] sm:$0xff]  ;;  %v1336_v14 = vld [vmem:[%s1740_s1 + $0x190] sm:$0xff]  ;;  %v1343_v19 = vld [vmem:[%s1740_s1 + $0x1c8] sm:$0xff] }
  0x1a   :  { %711 = vmatpush.bf16.msra.mxu0 %v1287_v24  ;;  %v1344_v15 = vld [vmem:[%s1740_s1 + $0x1d0] sm:$0xff]  ;;  %v1318_v20 = vld [vmem:[%s1740_s1 + $0x100] sm:$0xff]  ;;  %v1355_v38 = vld [vmem:[%s1740_s1 + $0x228] sm:$0xff] }
  0x1b   :  { %730 = vmatpush.bf16.msra.mxu1 %v1295_v25  ;;  %v1326_v21 = vld [vmem:[%s1740_s1 + $0x140] sm:$0xff]  ;;  %v926_v24 = vld [vmem:[%s1741_s0 + $0x10] sm:$0xf]  ;;  %v1274_v25 = vld [vmem:[%s1741_s0 + $0x30] sm:$0xf0] }
  0x1c   :  { %749 = vmatpush.bf16.msra.mxu2 %v1303_v26  ;;  %v1334_v22 = vld [vmem:[%s1740_s1 + $0x180] sm:$0xff]  ;;  %v1357_v26 = vld [vmem:[%s1740_s1 + $0x238] sm:$0xff]  ;;  %v927_v33 = vor.u32 %v1274_v25, %v926_v24  ;;  %v1356_v37 = vld [vmem:[%s1740_s1 + $0x230] sm:$0xff] }
  0x1d   :  { %768 = vmatpush.bf16.msra.mxu3 %v1311_v27  ;;  %v1342_v23 = vld [vmem:[%s1740_s1 + $0x1c0] sm:$0xff]  ;;  %v1270_v27 = vld [vmem:[%s1741_s0 + $0x14] sm:$0xf] }
  0x1e   :  { %712 = vmatpush.bf16.msra.mxu0 %v1286_v28  ;;  %v928_v28 = vld [vmem:[%s1741_s0 + $0x34] sm:$0xf0]  ;;  %v936_v32 = vld [vmem:[%s1741_s0 + $0x3c] sm:$0xf0] }
  0x1f   :  { %731 = vmatpush.bf16.msra.mxu1 %v1294_v29  ;;  %v934_v29 = vld [vmem:[%s1741_s0 + $0x18] sm:$0xf]  ;;  %v931_v34 = vor.u32 %v1270_v27, %v928_v28  ;;  %v1354_v39 = vld [vmem:[%s1740_s1 + $0x220] sm:$0xff] }
  0x20   :  { %750 = vmatpush.bf16.msra.mxu2 %v1302_v30  ;;  %v1275_v30 = vld [vmem:[%s1741_s0 + $0x38] sm:$0xf0] }
  0x21   :  { %769 = vmatpush.bf16.msra.mxu3 %v1310_v31  ;;  %713 = vmatmul.bf16.vlgmr.msra.gmra.mxu0 %v911_v42  ;;  %v1271_v31 = vld [vmem:[%s1741_s0 + $0x1c] sm:$0xf]  ;;  %v935_v35 = vor.u32 %v1275_v30, %v934_v29 }
  0x22   :  { %781 = vmatpush.bf16.msrb.mxu0 %v1325_v40  ;;  %732 = vmatmul.bf16.vlgmr.msra.gmra.mxu1 %v915_v43  ;;  %v939_v36 = vor.u32 %v1271_v31, %v936_v32  ;;  %v962_v40 = vld [vmem:[%s1741_s0 + $0x58] sm:$0xf]  ;;  %v1279_v42 = vld [vmem:[%s1741_s0 + $0x5c] sm:$0xf]  ;;  %v964_v43 = vld [vmem:[%s1741_s0 + $0x7c] sm:$0xf0] }
  0x23   :  { %800 = vmatpush.bf16.msrb.mxu1 %v1333_v41  ;;  %751 = vmatmul.bf16.vlgmr.msra.gmra.mxu2 %v919_v44  ;;  %v1283_v41 = vld [vmem:[%s1741_s0 + $0x78] sm:$0xf0]  ;;  %v970_v44 = vld [vmem:[%s1741_s0 + $0x60] sm:$0xf] }
  0x24   :  { %770 = vmatmul.bf16.vlgmr.msra.gmra.mxu3 %v923_v45  ;;  %819 = vmatpush.bf16.msrb.mxu2 %v1341_v46  ;;  %v1284_v45 = vld [vmem:[%s1741_s0 + $0x80] sm:$0xf0] }
  0x25   :  { %838 = vmatpush.bf16.msrb.mxu3 %v1349_v47  ;;  %v1280_v46 = vld [vmem:[%s1741_s0 + $0x64] sm:$0xf]  ;;  %v972_v47 = vld [vmem:[%s1741_s0 + $0x84] sm:$0xf0] }
  0x26   :  { %782 = vmatpush.bf16.msrb.mxu0 %v1324_v48  ;;  %v1353_v48 = vld [vmem:[%s1740_s1 + $0x218] sm:$0xff] }
  0x27   :  { %801 = vmatpush.bf16.msrb.mxu1 %v1332_v49  ;;  %v963_v49 = vor.u32 %v1283_v41, %v962_v40 }
  0x28   :  { %820 = vmatpush.bf16.msrb.mxu2 %v1340_v50  ;;  %v967_v50 = vor.u32 %v1279_v42, %v964_v43 }
  0x29   :  { %839 = vmatpush.bf16.msrb.mxu3 %v1348_v51  ;;  %v971_v51 = vor.u32 %v1284_v45, %v970_v44 }
  0x2a   :  { %783 = vmatpush.bf16.msrb.mxu0 %v1323_v52  ;;  %v975_v52 = vor.u32 %v1280_v46, %v972_v47 }
  0x2b   :  { %802 = vmatpush.bf16.msrb.mxu1 %v1331_v53  ;;  %v1352_v53 = vld [vmem:[%s1740_s1 + $0x210] sm:$0xff] }
  0x2c   :  { %821 = vmatpush.bf16.msrb.mxu2 %v1339_v54  ;;  %v1351_v54 = vld [vmem:[%s1740_s1 + $0x208] sm:$0xff] }
  0x2d   :  { %840 = vmatpush.bf16.msrb.mxu3 %v1347_v55  ;;  %v1350_v55 = vld [vmem:[%s1740_s1 + $0x200] sm:$0xff] }
  0x2e   :  { %784 = vmatpush.bf16.msrb.mxu0 %v1322_v56  ;;  %v942_v56 = vld [vmem:[%s1741_s0 + $0x20] sm:$0xf] }
  0x2f   :  { %803 = vmatpush.bf16.msrb.mxu1 %v1330_v57  ;;  %v1276_v57 = vld [vmem:[%s1741_s0 + $0x40] sm:$0xf0] }
  0x30   :  { %822 = vmatpush.bf16.msrb.mxu2 %v1338_v58  ;;  %v978_v58 = vld [vmem:[%s1741_s0 + $0x68] sm:$0xf]  ;;  %v943_v60 = vor.u32 %v1276_v57, %v942_v56 }
  0x31   :  { %841 = vmatpush.bf16.msrb.mxu3 %v1346_v59  ;;  %718 = vmatmul.bf16.gmra.mxu0 %v947_v6  ;;  %v1285_v59 = vld [vmem:[%s1741_s0 + $0x88] sm:$0xf0] }
  0x32   :  { %785 = vmatpush.bf16.msrb.mxu0 %v1321_v4  ;;  %737 = vmatmul.bf16.gmra.mxu1 %v951_v7  ;;  %v979_v61 = vor.u32 %v1285_v59, %v978_v58  ;;  %v1377_v58 = vld [vmem:[%s1742_s2] ss:$0 sm:$0xff] }
  0x33   :  { %804 = vmatpush.bf16.msrb.mxu1 %v1329_v5  ;;  %756 = vmatmul.bf16.gmra.mxu2 %v955_v8 }
  0x34   :  { %775 = vmatmul.bf16.gmra.mxu3 %v959_v9  ;;  %823 = vmatpush.bf16.msrb.mxu2 %v1337_v10 }
  0x35   :  { %842 = vmatpush.bf16.msrb.mxu3 %v1345_v11 }
  0x36   :  { %786 = vmatpush.bf16.msrb.mxu0 %v1320_v12 }
  0x37   :  { %805 = vmatpush.bf16.msrb.mxu1 %v1328_v13 }
  0x38   :  { %824 = vmatpush.bf16.msrb.mxu2 %v1336_v14 }
  0x39   :  { %843 = vmatpush.bf16.msrb.mxu3 %v1344_v15 }
  0x3a   :  { %787 = vmatpush.bf16.msrb.mxu0 %v1319_v16 }
  0x3b   :  { %806 = vmatpush.bf16.msrb.mxu1 %v1327_v17 }
  0x3c   :  { %825 = vmatpush.bf16.msrb.mxu2 %v1335_v18 }
  0x3d   :  { %844 = vmatpush.bf16.msrb.mxu3 %v1343_v19 }
  0x3e   :  { %788 = vmatpush.bf16.msrb.mxu0 %v1318_v20 }
  0x3f   :  { %807 = vmatpush.bf16.msrb.mxu1 %v1326_v21 }
  0x40   :  { %826 = vmatpush.bf16.msrb.mxu2 %v1334_v22 }
  0x41   :  { %845 = vmatpush.bf16.msrb.mxu3 %v1342_v23  ;;  %789 = vmatmul.bf16.vlgmr.msrb.gmra.mxu0 %v927_v33 }
  0x42   :  { %857 = vmatpush.bf16.msra.mxu0 %v1357_v26  ;;  %808 = vmatmul.bf16.vlgmr.msrb.gmra.mxu1 %v931_v34 }
  0x43   :  { %1369 = vmatpush.bf16.msra.mxu1 %v1357_v26  ;;  %827 = vmatmul.bf16.vlgmr.msrb.gmra.mxu2 %v935_v35 }
  0x44   :  { %846 = vmatmul.bf16.vlgmr.msrb.gmra.mxu3 %v939_v36 }
  0x46   :  { %858 = vmatpush.bf16.msra.mxu0 %v1356_v37 }
  0x47   :  { %1370 = vmatpush.bf16.msra.mxu1 %v1356_v37 }
  0x4a   :  { %859 = vmatpush.bf16.msra.mxu0 %v1355_v38 }
  0x4b   :  { %1371 = vmatpush.bf16.msra.mxu1 %v1355_v38 }
  0x4e   :  { %860 = vmatpush.bf16.msra.mxu0 %v1354_v39 }
  0x4f   :  { %1372 = vmatpush.bf16.msra.mxu1 %v1354_v39 }
  0x51   :  { %794 = vmatmul.bf16.gmra.mxu0 %v963_v49 }
  0x52   :  { %861 = vmatpush.bf16.msra.mxu0 %v1353_v48  ;;  %813 = vmatmul.bf16.gmra.mxu1 %v967_v50 }
  0x53   :  { %1373 = vmatpush.bf16.msra.mxu1 %v1353_v48  ;;  %832 = vmatmul.bf16.gmra.mxu2 %v971_v51 }
  0x54   :  { %851 = vmatmul.bf16.gmra.mxu3 %v975_v52 }
  0x56   :  { %862 = vmatpush.bf16.msra.mxu0 %v1352_v53 }
  0x57   :  { %1374 = vmatpush.bf16.msra.mxu1 %v1352_v53 }
  0x5a   :  { %863 = vmatpush.bf16.msra.mxu0 %v1351_v54 }
  0x5b   :  { %1375 = vmatpush.bf16.msra.mxu1 %v1351_v54 }
  0x5e   :  { %864 = vmatpush.bf16.msra.mxu0 %v1350_v55 }
  0x5f   :  { %1376 = vmatpush.bf16.msra.mxu1 %v1350_v55 }
  0x61   :  { %865 = vmatmul.bf16.vlgmr.msra.gmra.mxu0 %v943_v60 }
  0x62   :  { %870 = vmatmul.bf16.vlgmr.msra.gmra.mxu1 %v979_v61 }
  0x9e   :  { %v714_v62 = vpop.f32.mrf.mxu0 }
  0x9f   :  { %v733_v63 = vpop.f32.mrf.mxu1 }
  0xa0   :  { %v734_v20 = vadd.f32 %v733_v63, %v714_v62 }
  0xa6   :  { %v752_v0 = vpop.f32.mrf.mxu2  ;;  %v716_v2 = vpop.f32.mrf.mxu0 }
  0xa7   :  { %v771_v1 = vpop.f32.mrf.mxu3  ;;  %v735_v3 = vpop.f32.mrf.mxu1  ;;  %v753_v25 = vadd.f32 %v752_v0, %v734_v20  ;;  %v1378_v0 = vld [vmem:[%s1743_s3] ss:$0 sm:$0xff] }
  0xa8   :  { %v736_v29 = vadd.f32 %v735_v3, %v716_v2 }
  0xa9   :  { %v772_v28 = vadd.f32 %v771_v1, %v753_v25 }
  0xae   :  { %v754_v4 = vpop.f32.mrf.mxu2  ;;  %v719_v6 = vpop.f32.mrf.mxu0 }
  0xaf   :  { %v773_v5 = vpop.f32.mrf.mxu3  ;;  %v738_v7 = vpop.f32.mrf.mxu1  ;;  %v755_v32 = vadd.f32 %v754_v4, %v736_v29 }
  0xb0   :  { %v739_v21 = vadd.f32 %v738_v7, %v719_v6 }
  0xb1   :  { %v774_v39 = vadd.f32 %v773_v5, %v755_v32 }
  0xb6   :  { %v757_v8 = vpop.f32.mrf.mxu2  ;;  %v721_v10 = vpop.f32.mrf.mxu0 }
  0xb7   :  { %v776_v9 = vpop.f32.mrf.mxu3  ;;  %v740_v11 = vpop.f32.mrf.mxu1  ;;  %v758_v26 = vadd.f32 %v757_v8, %v739_v21 }
  0xb8   :  { %v741_v31 = vadd.f32 %v740_v11, %v721_v10 }
  0xb9   :  { %v777_v30 = vadd.f32 %v776_v9, %v758_v26 }
  0xbe   :  { %v759_v12 = vpop.f32.mrf.mxu2  ;;  %v790_v14 = vpop.f32.mrf.mxu0 }
  0xbf   :  { %v778_v13 = vpop.f32.mrf.mxu3  ;;  %v809_v15 = vpop.f32.mrf.mxu1  ;;  %v760_v33 = vadd.f32 %v759_v12, %v741_v31  ;;  %v791_v34 = vadd.f32 %v790_v14, %v772_v28 }
  0xc1   :  { %v779_v40 = vadd.f32 %v778_v13, %v760_v33  ;;  %v810_v41 = vadd.f32 %v809_v15, %v791_v34 }
  0xc6   :  { %v828_v16 = vpop.f32.mrf.mxu2  ;;  %v792_v18 = vpop.f32.mrf.mxu0 }
  0xc7   :  { %v847_v17 = vpop.f32.mrf.mxu3  ;;  %v811_v19 = vpop.f32.mrf.mxu1  ;;  %v829_v44 = vadd.f32 %v828_v16, %v810_v41  ;;  %v793_v45 = vadd.f32 %v792_v18, %v774_v39 }
  0xc9   :  { %v848_v51 = vadd.f32 %v847_v17, %v829_v44  ;;  %v812_v52 = vadd.f32 %v811_v19, %v793_v45 }
  0xce   :  { %v830_v22 = vpop.f32.mrf.mxu2  ;;  %v795_v23 = vpop.f32.mrf.mxu0 }
  0xcf   :  { %v814_v24 = vpop.f32.mrf.mxu1  ;;  %v849_v27 = vpop.f32.mrf.mxu3  ;;  %v796_v35 = vadd.f32 %v795_v23, %v777_v30  ;;  %v831_v55 = vadd.f32 %v830_v22, %v812_v52 }
  0xd1   :  { %v815_v42 = vadd.f32 %v814_v24, %v796_v35  ;;  %v850_v61 = vadd.f32 %v849_v27, %v831_v55 }
  0xd6   :  { %v833_v36 = vpop.f32.mrf.mxu2  ;;  %v797_v37 = vpop.f32.mrf.mxu0 }
  0xd7   :  { %v816_v38 = vpop.f32.mrf.mxu1  ;;  %v852_v43 = vpop.f32.mrf.mxu3  ;;  %v834_v46 = vadd.f32 %v833_v36, %v815_v42  ;;  %v798_v47 = vadd.f32 %v797_v37, %v779_v40 }
  0xd9   :  { %v853_v53 = vadd.f32 %v852_v43, %v834_v46  ;;  %v817_v54 = vadd.f32 %v816_v38, %v798_v47 }
  0xde   :  { %v835_v48 = vpop.f32.mrf.mxu2  ;;  %v866_v49 = vpop.f32.mrf.mxu0 }
  0xdf   :  { %v871_v50 = vpop.f32.mrf.mxu1  ;;  %v836_v56 = vadd.f32 %v835_v48, %v817_v54  ;;  %v867_v57 = vadd.f32 %v866_v49, %v848_v51  ;;  %v854_v60 = vpop.f32.mrf.mxu3 }
  0xe0   :  { %v872_v59 = vadd.f32 %v871_v50, %v853_v53 }
  0xe1   :  { %v855_v62 = vadd.f32 %v854_v60, %v836_v56  ;;  %v880_v63 = vmul.f32 %v1377_v58, %v867_v57 }
  0xe2   :  { %v882_v1 = vmul.f32 %v1377_v58, %v872_v59 }
  0xe3   :  { %v888_v6 = vadd.f32 %v1378_v0, %v880_v63 }
  0xe4   :  { %v890_v7 = vadd.f32 %v1378_v0, %v882_v1 }
  0xe5   :  { %v892_v12 = vmax.f32 %v888_v6, 0.0 }
  0xe6   :  { %v868_v2 = vpop.f32.mrf.mxu0  ;;  %v894_v13 = vmax.f32 %v890_v7, 0.0 }
  0xe7   :  { %v873_v3 = vpop.f32.mrf.mxu1  ;;  %v869_v4 = vadd.f32 %v868_v2, %v850_v61 }
  0xe8   :  { %v874_v5 = vadd.f32 %v873_v3, %v855_v62 }
  0xe9   :  { %v881_v8 = vmul.f32 %v1377_v58, %v869_v4 }
  0xea   :  { %v883_v9 = vmul.f32 %v1377_v58, %v874_v5 }
  0xeb   :  { %v889_v10 = vadd.f32 %v1378_v0, %v881_v8 }
  0xec   :  { %v891_v11 = vadd.f32 %v1378_v0, %v883_v9 }
  0xed   :  { %v893_v14 = vmax.f32 %v889_v10, 0.0 }
  0xee   :  { %v895_v15 = vmax.f32 %v891_v11, 0.0 }
  0xef   :  { %v1361_v16 = vpack.c.bf16 %v893_v14, %v892_v12 }
  0xf0   :  { %v1366_v17 = vpack.c.bf16 %v895_v15, %v894_v13 }
  0xf1   :  { %1362 = vst [vmem:[%s1744_s4] sm:$0xff] %v1361_v16  }
  0xf2   :  { %1368 = vst [vmem:[%s1744_s4 + $0x8] sm:$0xff] %v1366_v17  }

// kernel: _lambda_.19
= control target key start
LH: loop header
LB: loop body
LE: loop exit
PB: predicated region body
PF: predicated region fallthrough
CT: control target
= control target key end

     0   :  { %v148_v2 = vmov 16.0   ;;  %s230_s0 = inlined_call_operand.vmem [shape: bf16[2,16,128], index: 0, kind: input, shape index: {}]   ;;  %s231_s1 = inlined_call_operand.vmem [shape: f32[128,128], index: 1, kind: input, shape index: {}]   ;;  %s232_s2 = inlined_call_operand.vmem [shape: f32[1,128], index: 2, kind: input, shape index: {}]   ;;  %s233_s3 = inlined_call_operand.hbm [shape: f32[2,128], index: 3, kind: output, shape index: {}]  }
   0x1   :  { %v61_v0 = vld [vmem:[%s231_s1 + $0x78] sm:$0xff]  ;;  %v60_v1 = vld [vmem:[%s231_s1 + $0x70] sm:$0xff]  ;;  %120 = vrcp.f32 %v148_v2  ;;  %v59_v3 = vld [vmem:[%s231_s1 + $0x68] sm:$0xff] }
   0x2   :  { %71 = vmatpush.msra.mxu0 %v61_v0  ;;  %v58_v4 = vld [vmem:[%s231_s1 + $0x60] sm:$0xff]  ;;  %v116_v6 = vld [vmem:[%s230_s0 + $0x8] sm:$0xff]   ;;  %v57_v7 = vld [vmem:[%s231_s1 + $0x58] sm:$0xff] }
   0x3   :  { %v109_v5 = vld [vmem:[%s230_s0] sm:$0xff]   ;;  %v114_v10 = vunpack.c.l.bf16 %v116_v6  ;;  %v115_v11 = vunpack.c.h.bf16 %v116_v6 }
   0x4   :  { %72 = vmatpush.msra.mxu0 %v60_v1  ;;  %v110_v8 = vunpack.c.l.bf16 %v109_v5  ;;  %v111_v9 = vunpack.c.h.bf16 %v109_v5 }
   0x6   :  { %73 = vmatpush.msra.mxu0 %v59_v3 }
   0x7   :  { %8 = vsyncpa [#allocation3], 0  ;;  %v121_v12 = vpop.eup %120  ;;  %v56_v13 = vld [vmem:[%s231_s1 + $0x50] sm:$0xff]  ;;  %v23_v14 = vadd.f32 %v111_v9, %v110_v8  ;;  %v30_v15 = vadd.f32 %v115_v11, %v114_v10  ;;  %v55_v17 = vld [vmem:[%s231_s1 + $0x48] sm:$0xff]  ;;  %vm68_vm1 = vcmask 1041409   ;;  %s149_s22 = smov [#allocation2]  }
   0x8   :  { %74 = vmatpush.msra.mxu0 %v58_v4  ;;  %v38_v16 = vmul.f32 16.0, %v121_v12  ;;  %v54_v21 = vld [vmem:[%s231_s1 + $0x40] sm:$0xff]  ;;  %v53_v24 = vld [vmem:[%s231_s1 + $0x38] sm:$0xff]  ;;  %v52_v28 = vld [vmem:[%s231_s1 + $0x30] sm:$0xff]  ;;  %vm42_vm0 = vweird.f32 %v121_v12  ;;  %s97_s23 = sshll.u32 %s149_s22, 4  ;;  %s99_s26 = sshll.u32 %s233_s3, 4  ;;  %s98_s23 = int_to_ptr.vmem [resolvable:$true] %s97_s23  ;;  %s100_s26 = int_to_ptr.hbm [resolvable:$true] %s99_s26 }
   0x9   :  { %v24_v18 = vrot.slane %v23_v14, 4  ;;  %v31_v19 = vrot.slane %v30_v15, 4  ;;  %v51_v31 = vld [vmem:[%s231_s1 + $0x28] sm:$0xff]  ;;  %v50_v35 = vld [vmem:[%s231_s1 + $0x20] sm:$0xff]  ;;  %v49_v38 = vld [vmem:[%s231_s1 + $0x18] sm:$0xff] }
   0xa   :  { %75 = vmatpush.msra.mxu0 %v57_v7  ;;  %v39_v20 = vsub.f32 1.0, %v38_v16  ;;  %v48_v40 = vld [vmem:[%s231_s1 + $0x10] sm:$0xff]  ;;  %v47_v43 = vld [vmem:[%s231_s1 + $0x8] sm:$0xff]  ;;  %v46_v44 = vld [vmem:[%s231_s1] sm:$0xff] }
   0xb   :  { %v25_v22 = vadd.f32 %v24_v18, %v23_v14  ;;  %v32_v23 = vadd.f32 %v31_v19, %v30_v15  ;;  %v119_v46 = vld [vmem:[%s232_s2] ss:$0 sm:$0xff] }
   0xc   :  { %76 = vmatpush.msra.mxu0 %v56_v13  ;;  %v40_v27 = vmul.f32 %v121_v12, %v39_v20 }
   0xd   :  { %v26_v25 = vrot.slane %v25_v22, 2  ;;  %v33_v26 = vrot.slane %v32_v23, 2 }
   0xe   :  { %77 = vmatpush.msra.mxu0 %v55_v17  ;;  %v41_v34 = vadd.f32 %v121_v12, %v40_v27 }
   0xf   :  { %v27_v29 = vadd.f32 %v26_v25, %v25_v22  ;;  %v34_v30 = vadd.f32 %v33_v26, %v32_v23 }
  0x10   :  { %78 = vmatpush.msra.mxu0 %v54_v21  ;;  %v43_v39 = vsel %vm42_vm0, %v121_v12, %v41_v34 }
  0x11   :  { %v28_v32 = vrot.slane %v27_v29, 1  ;;  %v35_v33 = vrot.slane %v34_v30, 1 }
  0x12   :  { %79 = vmatpush.msra.mxu0 %v53_v24 }
  0x13   :  { %v29_v36 = vadd.f32 %v28_v32, %v27_v29  ;;  %v36_v37 = vadd.f32 %v35_v33, %v34_v30 }
  0x14   :  { %80 = vmatpush.msra.mxu0 %v52_v28 }
  0x15   :  { %v44_v41 = vmul.f32 %v43_v39, %v29_v36  ;;  %v45_v42 = vmul.f32 %v43_v39, %v36_v37 }
  0x16   :  { %81 = vmatpush.msra.mxu0 %v51_v31 }
  0x17   :  { %v69_v45 = vsel %vm68_vm1, %v45_v42, %v44_v41 }
  0x18   :  { %82 = vmatpush.msra.mxu0 %v50_v35 }
  0x1a   :  { %83 = vmatpush.msra.mxu0 %v49_v38 }
  0x1c   :  { %84 = vmatpush.msra.mxu0 %v48_v40 }
  0x1e   :  { %85 = vmatpush.msra.mxu0 %v47_v43 }
  0x20   :  { %86 = vmatpush.msra.mxu0 %v46_v44 }
  0x21   :  { %87 = vmatmul.f32.vlgmr.msra.gmra.mxu0 %v69_v45 }
  0x9e   :  { %v88_v47 = vpop.f32.mrf.mxu0 }
  0x9f   :  { %v89_v48 = vadd.f32 %v119_v46, %v88_v47 }
  0xa1   :  { %91 = vst [vmem:[#allocation2] sm:$0x3] %v89_v48 }
  0xa2   :  { %102 = dma.vmem_to_hbm [thread:$0]  %s98_s23, 32, %s100_s26, [#allocation3]  }
  0xa3   :  { %146 = dma.done.wait [#allocation3], 32  }
  0xa4   :  { %147 = vsyncadd [#allocation3], 4294967264 }
  0xa5   :  { %107 = vsyncpa [#allocation3], 1 }

// kernel: _lambda_.18
= control target key start
LH: loop header
LB: loop body
LE: loop exit
PB: predicated region body
PF: predicated region fallthrough
CT: control target
= control target key end

     0   :  { %s1775_s1 = inlined_call_operand.vmem [shape: bf16[1152,128], index: 1, kind: input, shape index: {}]   ;;  %s1776_s0 = inlined_call_operand.vmem [shape: bf16[32,1152], index: 0, kind: input, shape index: {}]   ;;  %s1777_s2 = inlined_call_operand.vmem [shape: f32[1,128], index: 2, kind: input, shape index: {}]   ;;  %s1778_s3 = inlined_call_operand.vmem [shape: f32[1,128], index: 3, kind: input, shape index: {}]   ;;  %s1779_s4 = inlined_call_operand.vmem [shape: bf16[32,128], index: 4, kind: input, shape index: {}]   ;;  %s1780_s5 = inlined_call_operand.vmem [shape: bf16[32,128], index: 5, kind: output, shape index: {}]  }
   0x1   :  { %v1308_v0 = vld [vmem:[%s1775_s1 + $0x38] sm:$0xff]  ;;  %v1307_v4 = vld [vmem:[%s1775_s1 + $0x30] sm:$0xff]  ;;  %v1306_v8 = vld [vmem:[%s1775_s1 + $0x28] sm:$0xff] }
   0x2   :  { %v1316_v1 = vld [vmem:[%s1775_s1 + $0x78] sm:$0xff]  ;;  %708 = vmatpush.bf16.msra.mxu0 %v1308_v0  ;;  %v1315_v5 = vld [vmem:[%s1775_s1 + $0x70] sm:$0xff]  ;;  %v1314_v9 = vld [vmem:[%s1775_s1 + $0x68] sm:$0xff] }
   0x3   :  { %v1324_v2 = vld [vmem:[%s1775_s1 + $0xb8] sm:$0xff]  ;;  %727 = vmatpush.bf16.msra.mxu1 %v1316_v1  ;;  %v1323_v6 = vld [vmem:[%s1775_s1 + $0xb0] sm:$0xff]  ;;  %v1322_v10 = vld [vmem:[%s1775_s1 + $0xa8] sm:$0xff] }
   0x4   :  { %v1332_v3 = vld [vmem:[%s1775_s1 + $0xf8] sm:$0xff]  ;;  %746 = vmatpush.bf16.msra.mxu2 %v1324_v2  ;;  %v1331_v7 = vld [vmem:[%s1775_s1 + $0xf0] sm:$0xff]  ;;  %v1330_v11 = vld [vmem:[%s1775_s1 + $0xe8] sm:$0xff] }
   0x5   :  { %765 = vmatpush.bf16.msra.mxu3 %v1332_v3  ;;  %v1305_v12 = vld [vmem:[%s1775_s1 + $0x20] sm:$0xff]  ;;  %v1304_v16 = vld [vmem:[%s1775_s1 + $0x18] sm:$0xff]  ;;  %v1303_v20 = vld [vmem:[%s1775_s1 + $0x10] sm:$0xff] }
   0x6   :  { %709 = vmatpush.bf16.msra.mxu0 %v1307_v4  ;;  %v1313_v13 = vld [vmem:[%s1775_s1 + $0x60] sm:$0xff]  ;;  %v1312_v17 = vld [vmem:[%s1775_s1 + $0x58] sm:$0xff]  ;;  %v1311_v21 = vld [vmem:[%s1775_s1 + $0x50] sm:$0xff] }
   0x7   :  { %728 = vmatpush.bf16.msra.mxu1 %v1315_v5  ;;  %v1321_v14 = vld [vmem:[%s1775_s1 + $0xa0] sm:$0xff]  ;;  %v1320_v18 = vld [vmem:[%s1775_s1 + $0x98] sm:$0xff]  ;;  %v1319_v22 = vld [vmem:[%s1775_s1 + $0x90] sm:$0xff] }
   0x8   :  { %747 = vmatpush.bf16.msra.mxu2 %v1323_v6  ;;  %v1329_v15 = vld [vmem:[%s1775_s1 + $0xe0] sm:$0xff]  ;;  %v1328_v19 = vld [vmem:[%s1775_s1 + $0xd8] sm:$0xff]  ;;  %v1327_v23 = vld [vmem:[%s1775_s1 + $0xd0] sm:$0xff] }
   0x9   :  { %766 = vmatpush.bf16.msra.mxu3 %v1331_v7  ;;  %v1302_v24 = vld [vmem:[%s1775_s1 + $0x8] sm:$0xff]  ;;  %v1301_v28 = vld [vmem:[%s1775_s1] sm:$0xff]  ;;  %v935_v39 = vld [vmem:[%s1776_s0 + $0x2c] sm:$0xf0] }
   0xa   :  { %710 = vmatpush.bf16.msra.mxu0 %v1306_v8  ;;  %v1310_v25 = vld [vmem:[%s1775_s1 + $0x48] sm:$0xff]  ;;  %v1309_v29 = vld [vmem:[%s1775_s1 + $0x40] sm:$0xff]  ;;  %v1340_v40 = vld [vmem:[%s1775_s1 + $0x138] sm:$0xff] }
   0xb   :  { %729 = vmatpush.bf16.msra.mxu1 %v1314_v9  ;;  %v1318_v26 = vld [vmem:[%s1775_s1 + $0x88] sm:$0xff]  ;;  %v1317_v30 = vld [vmem:[%s1775_s1 + $0x80] sm:$0xff]  ;;  %v1348_v41 = vld [vmem:[%s1775_s1 + $0x178] sm:$0xff] }
   0xc   :  { %748 = vmatpush.bf16.msra.mxu2 %v1322_v10  ;;  %v1326_v27 = vld [vmem:[%s1775_s1 + $0xc8] sm:$0xff]  ;;  %v1325_v31 = vld [vmem:[%s1775_s1 + $0xc0] sm:$0xff]  ;;  %v1356_v46 = vld [vmem:[%s1775_s1 + $0x1b8] sm:$0xff] }
   0xd   :  { %767 = vmatpush.bf16.msra.mxu3 %v1330_v11  ;;  %v925_v32 = vld [vmem:[%s1776_s0] sm:$0xf]  ;;  %v1287_v33 = vld [vmem:[%s1776_s0 + $0x20] sm:$0xf0]  ;;  %v927_v35 = vld [vmem:[%s1776_s0 + $0x24] sm:$0xf0] }
   0xe   :  { %711 = vmatpush.bf16.msra.mxu0 %v1305_v12  ;;  %v1283_v34 = vld [vmem:[%s1776_s0 + $0x4] sm:$0xf]  ;;  %v933_v36 = vld [vmem:[%s1776_s0 + $0x8] sm:$0xf]  ;;  %v1288_v37 = vld [vmem:[%s1776_s0 + $0x28] sm:$0xf0]  ;;  %v926_v42 = vor.u32 %v1287_v33, %v925_v32 }
   0xf   :  { %730 = vmatpush.bf16.msra.mxu1 %v1313_v13  ;;  %v1284_v38 = vld [vmem:[%s1776_s0 + $0xc] sm:$0xf]  ;;  %v930_v43 = vor.u32 %v1283_v34, %v927_v35  ;;  %v934_v44 = vor.u32 %v1288_v37, %v933_v36  ;;  %v1364_v47 = vld [vmem:[%s1775_s1 + $0x1f8] sm:$0xff]  ;;  %v1339_v48 = vld [vmem:[%s1775_s1 + $0x130] sm:$0xff] }
  0x10   :  { %749 = vmatpush.bf16.msra.mxu2 %v1321_v14  ;;  %v938_v45 = vor.u32 %v1284_v38, %v935_v39  ;;  %v1347_v49 = vld [vmem:[%s1775_s1 + $0x170] sm:$0xff]  ;;  %v1338_v52 = vld [vmem:[%s1775_s1 + $0x128] sm:$0xff]  ;;  %v1337_v56 = vld [vmem:[%s1775_s1 + $0x120] sm:$0xff] }
  0x11   :  { %768 = vmatpush.bf16.msra.mxu3 %v1329_v15  ;;  %v1355_v50 = vld [vmem:[%s1775_s1 + $0x1b0] sm:$0xff]  ;;  %v1346_v53 = vld [vmem:[%s1775_s1 + $0x168] sm:$0xff]  ;;  %v1345_v57 = vld [vmem:[%s1775_s1 + $0x160] sm:$0xff] }
  0x12   :  { %712 = vmatpush.bf16.msra.mxu0 %v1304_v16  ;;  %v1363_v51 = vld [vmem:[%s1775_s1 + $0x1f0] sm:$0xff]  ;;  %v1354_v54 = vld [vmem:[%s1775_s1 + $0x1a8] sm:$0xff]  ;;  %v1353_v58 = vld [vmem:[%s1775_s1 + $0x1a0] sm:$0xff] }
  0x13   :  { %731 = vmatpush.bf16.msra.mxu1 %v1312_v17  ;;  %v1362_v55 = vld [vmem:[%s1775_s1 + $0x1e8] sm:$0xff]  ;;  %v1361_v59 = vld [vmem:[%s1775_s1 + $0x1e0] sm:$0xff]  ;;  %v963_v63 = vld [vmem:[%s1776_s0 + $0x6c] sm:$0xf0] }
  0x14   :  { %750 = vmatpush.bf16.msra.mxu2 %v1320_v18  ;;  %v961_v60 = vld [vmem:[%s1776_s0 + $0x48] sm:$0xf]  ;;  %v1296_v61 = vld [vmem:[%s1776_s0 + $0x68] sm:$0xf0]  ;;  %v969_v0 = vld [vmem:[%s1776_s0 + $0x50] sm:$0xf] }
  0x15   :  { %769 = vmatpush.bf16.msra.mxu3 %v1328_v19  ;;  %v1292_v62 = vld [vmem:[%s1776_s0 + $0x4c] sm:$0xf]  ;;  %v1297_v1 = vld [vmem:[%s1776_s0 + $0x70] sm:$0xf0]  ;;  %v971_v3 = vld [vmem:[%s1776_s0 + $0x74] sm:$0xf0]  ;;  %v962_v6 = vor.u32 %v1296_v61, %v961_v60 }
  0x16   :  { %713 = vmatpush.bf16.msra.mxu0 %v1303_v20  ;;  %v1293_v2 = vld [vmem:[%s1776_s0 + $0x54] sm:$0xf]  ;;  %v1336_v4 = vld [vmem:[%s1775_s1 + $0x118] sm:$0xff]  ;;  %v966_v7 = vor.u32 %v1292_v62, %v963_v63  ;;  %v970_v8 = vor.u32 %v1297_v1, %v969_v0  ;;  %v1334_v16 = vld [vmem:[%s1775_s1 + $0x108] sm:$0xff] }
  0x17   :  { %732 = vmatpush.bf16.msra.mxu1 %v1311_v21  ;;  %v1344_v5 = vld [vmem:[%s1775_s1 + $0x158] sm:$0xff]  ;;  %v974_v9 = vor.u32 %v1293_v2, %v971_v3  ;;  %v1335_v12 = vld [vmem:[%s1775_s1 + $0x110] sm:$0xff]  ;;  %v1342_v17 = vld [vmem:[%s1775_s1 + $0x148] sm:$0xff] }
  0x18   :  { %751 = vmatpush.bf16.msra.mxu2 %v1319_v22  ;;  %v1352_v10 = vld [vmem:[%s1775_s1 + $0x198] sm:$0xff]  ;;  %v1343_v13 = vld [vmem:[%s1775_s1 + $0x150] sm:$0xff]  ;;  %v1350_v18 = vld [vmem:[%s1775_s1 + $0x188] sm:$0xff] }
  0x19   :  { %770 = vmatpush.bf16.msra.mxu3 %v1327_v23  ;;  %v1360_v11 = vld [vmem:[%s1775_s1 + $0x1d8] sm:$0xff]  ;;  %v1351_v14 = vld [vmem:[%s1775_s1 + $0x190] sm:$0xff]  ;;  %v1358_v19 = vld [vmem:[%s1775_s1 + $0x1c8] sm:$0xff] }
  0x1a   :  { %714 = vmatpush.bf16.msra.mxu0 %v1302_v24  ;;  %v1359_v15 = vld [vmem:[%s1775_s1 + $0x1d0] sm:$0xff]  ;;  %v1333_v20 = vld [vmem:[%s1775_s1 + $0x100] sm:$0xff]  ;;  %v1370_v38 = vld [vmem:[%s1775_s1 + $0x228] sm:$0xff] }
  0x1b   :  { %733 = vmatpush.bf16.msra.mxu1 %v1310_v25  ;;  %v1341_v21 = vld [vmem:[%s1775_s1 + $0x140] sm:$0xff]  ;;  %v941_v24 = vld [vmem:[%s1776_s0 + $0x10] sm:$0xf]  ;;  %v1289_v25 = vld [vmem:[%s1776_s0 + $0x30] sm:$0xf0] }
  0x1c   :  { %752 = vmatpush.bf16.msra.mxu2 %v1318_v26  ;;  %v1349_v22 = vld [vmem:[%s1775_s1 + $0x180] sm:$0xff]  ;;  %v1372_v26 = vld [vmem:[%s1775_s1 + $0x238] sm:$0xff]  ;;  %v942_v33 = vor.u32 %v1289_v25, %v941_v24  ;;  %v1371_v37 = vld [vmem:[%s1775_s1 + $0x230] sm:$0xff] }
  0x1d   :  { %771 = vmatpush.bf16.msra.mxu3 %v1326_v27  ;;  %v1357_v23 = vld [vmem:[%s1775_s1 + $0x1c0] sm:$0xff]  ;;  %v1285_v27 = vld [vmem:[%s1776_s0 + $0x14] sm:$0xf] }
  0x1e   :  { %715 = vmatpush.bf16.msra.mxu0 %v1301_v28  ;;  %v943_v28 = vld [vmem:[%s1776_s0 + $0x34] sm:$0xf0]  ;;  %v951_v32 = vld [vmem:[%s1776_s0 + $0x3c] sm:$0xf0] }
  0x1f   :  { %734 = vmatpush.bf16.msra.mxu1 %v1309_v29  ;;  %v949_v29 = vld [vmem:[%s1776_s0 + $0x18] sm:$0xf]  ;;  %v946_v34 = vor.u32 %v1285_v27, %v943_v28  ;;  %v1369_v39 = vld [vmem:[%s1775_s1 + $0x220] sm:$0xff] }
  0x20   :  { %753 = vmatpush.bf16.msra.mxu2 %v1317_v30  ;;  %v1290_v30 = vld [vmem:[%s1776_s0 + $0x38] sm:$0xf0] }
  0x21   :  { %772 = vmatpush.bf16.msra.mxu3 %v1325_v31  ;;  %716 = vmatmul.bf16.vlgmr.msra.gmra.mxu0 %v926_v42  ;;  %v1286_v31 = vld [vmem:[%s1776_s0 + $0x1c] sm:$0xf]  ;;  %v950_v35 = vor.u32 %v1290_v30, %v949_v29 }
  0x22   :  { %784 = vmatpush.bf16.msrb.mxu0 %v1340_v40  ;;  %735 = vmatmul.bf16.vlgmr.msra.gmra.mxu1 %v930_v43  ;;  %v954_v36 = vor.u32 %v1286_v31, %v951_v32  ;;  %v977_v40 = vld [vmem:[%s1776_s0 + $0x58] sm:$0xf]  ;;  %v1294_v42 = vld [vmem:[%s1776_s0 + $0x5c] sm:$0xf]  ;;  %v979_v43 = vld [vmem:[%s1776_s0 + $0x7c] sm:$0xf0] }
  0x23   :  { %803 = vmatpush.bf16.msrb.mxu1 %v1348_v41  ;;  %754 = vmatmul.bf16.vlgmr.msra.gmra.mxu2 %v934_v44  ;;  %v1298_v41 = vld [vmem:[%s1776_s0 + $0x78] sm:$0xf0]  ;;  %v985_v44 = vld [vmem:[%s1776_s0 + $0x60] sm:$0xf] }
  0x24   :  { %773 = vmatmul.bf16.vlgmr.msra.gmra.mxu3 %v938_v45  ;;  %822 = vmatpush.bf16.msrb.mxu2 %v1356_v46  ;;  %v1299_v45 = vld [vmem:[%s1776_s0 + $0x80] sm:$0xf0] }
  0x25   :  { %841 = vmatpush.bf16.msrb.mxu3 %v1364_v47  ;;  %v1295_v46 = vld [vmem:[%s1776_s0 + $0x64] sm:$0xf]  ;;  %v987_v47 = vld [vmem:[%s1776_s0 + $0x84] sm:$0xf0] }
  0x26   :  { %785 = vmatpush.bf16.msrb.mxu0 %v1339_v48  ;;  %v1368_v48 = vld [vmem:[%s1775_s1 + $0x218] sm:$0xff] }
  0x27   :  { %804 = vmatpush.bf16.msrb.mxu1 %v1347_v49  ;;  %v978_v49 = vor.u32 %v1298_v41, %v977_v40 }
  0x28   :  { %823 = vmatpush.bf16.msrb.mxu2 %v1355_v50  ;;  %v982_v50 = vor.u32 %v1294_v42, %v979_v43 }
  0x29   :  { %842 = vmatpush.bf16.msrb.mxu3 %v1363_v51  ;;  %v986_v51 = vor.u32 %v1299_v45, %v985_v44 }
  0x2a   :  { %786 = vmatpush.bf16.msrb.mxu0 %v1338_v52  ;;  %v990_v52 = vor.u32 %v1295_v46, %v987_v47 }
  0x2b   :  { %805 = vmatpush.bf16.msrb.mxu1 %v1346_v53  ;;  %v1367_v53 = vld [vmem:[%s1775_s1 + $0x210] sm:$0xff] }
  0x2c   :  { %824 = vmatpush.bf16.msrb.mxu2 %v1354_v54  ;;  %v1366_v54 = vld [vmem:[%s1775_s1 + $0x208] sm:$0xff] }
  0x2d   :  { %843 = vmatpush.bf16.msrb.mxu3 %v1362_v55  ;;  %v1365_v55 = vld [vmem:[%s1775_s1 + $0x200] sm:$0xff] }
  0x2e   :  { %787 = vmatpush.bf16.msrb.mxu0 %v1337_v56  ;;  %v957_v56 = vld [vmem:[%s1776_s0 + $0x20] sm:$0xf] }
  0x2f   :  { %806 = vmatpush.bf16.msrb.mxu1 %v1345_v57  ;;  %v1291_v57 = vld [vmem:[%s1776_s0 + $0x40] sm:$0xf0] }
  0x30   :  { %825 = vmatpush.bf16.msrb.mxu2 %v1353_v58  ;;  %v993_v58 = vld [vmem:[%s1776_s0 + $0x68] sm:$0xf]  ;;  %v958_v60 = vor.u32 %v1291_v57, %v957_v56  ;;  %v1401_v56 = vld [vmem:[%s1777_s2] ss:$0 sm:$0xff] }
  0x31   :  { %844 = vmatpush.bf16.msrb.mxu3 %v1361_v59  ;;  %721 = vmatmul.bf16.gmra.mxu0 %v962_v6  ;;  %v1300_v59 = vld [vmem:[%s1776_s0 + $0x88] sm:$0xf0] }
  0x32   :  { %788 = vmatpush.bf16.msrb.mxu0 %v1336_v4  ;;  %740 = vmatmul.bf16.gmra.mxu1 %v966_v7  ;;  %v994_v61 = vor.u32 %v1300_v59, %v993_v58 }
  0x33   :  { %807 = vmatpush.bf16.msrb.mxu1 %v1344_v5  ;;  %759 = vmatmul.bf16.gmra.mxu2 %v970_v8 }
  0x34   :  { %778 = vmatmul.bf16.gmra.mxu3 %v974_v9  ;;  %826 = vmatpush.bf16.msrb.mxu2 %v1352_v10 }
  0x35   :  { %845 = vmatpush.bf16.msrb.mxu3 %v1360_v11 }
  0x36   :  { %789 = vmatpush.bf16.msrb.mxu0 %v1335_v12 }
  0x37   :  { %808 = vmatpush.bf16.msrb.mxu1 %v1343_v13 }
  0x38   :  { %827 = vmatpush.bf16.msrb.mxu2 %v1351_v14 }
  0x39   :  { %846 = vmatpush.bf16.msrb.mxu3 %v1359_v15 }
  0x3a   :  { %790 = vmatpush.bf16.msrb.mxu0 %v1334_v16 }
  0x3b   :  { %809 = vmatpush.bf16.msrb.mxu1 %v1342_v17 }
  0x3c   :  { %828 = vmatpush.bf16.msrb.mxu2 %v1350_v18 }
  0x3d   :  { %847 = vmatpush.bf16.msrb.mxu3 %v1358_v19 }
  0x3e   :  { %791 = vmatpush.bf16.msrb.mxu0 %v1333_v20 }
  0x3f   :  { %810 = vmatpush.bf16.msrb.mxu1 %v1341_v21 }
  0x40   :  { %829 = vmatpush.bf16.msrb.mxu2 %v1349_v22 }
  0x41   :  { %848 = vmatpush.bf16.msrb.mxu3 %v1357_v23  ;;  %792 = vmatmul.bf16.vlgmr.msrb.gmra.mxu0 %v942_v33 }
  0x42   :  { %860 = vmatpush.bf16.msra.mxu0 %v1372_v26  ;;  %811 = vmatmul.bf16.vlgmr.msrb.gmra.mxu1 %v946_v34 }
  0x43   :  { %1393 = vmatpush.bf16.msra.mxu1 %v1372_v26  ;;  %830 = vmatmul.bf16.vlgmr.msrb.gmra.mxu2 %v950_v35 }
  0x44   :  { %849 = vmatmul.bf16.vlgmr.msrb.gmra.mxu3 %v954_v36 }
  0x46   :  { %861 = vmatpush.bf16.msra.mxu0 %v1371_v37 }
  0x47   :  { %1394 = vmatpush.bf16.msra.mxu1 %v1371_v37 }
  0x4a   :  { %862 = vmatpush.bf16.msra.mxu0 %v1370_v38 }
  0x4b   :  { %1395 = vmatpush.bf16.msra.mxu1 %v1370_v38 }
  0x4e   :  { %863 = vmatpush.bf16.msra.mxu0 %v1369_v39 }
  0x4f   :  { %1396 = vmatpush.bf16.msra.mxu1 %v1369_v39 }
  0x51   :  { %797 = vmatmul.bf16.gmra.mxu0 %v978_v49 }
  0x52   :  { %864 = vmatpush.bf16.msra.mxu0 %v1368_v48  ;;  %816 = vmatmul.bf16.gmra.mxu1 %v982_v50 }
  0x53   :  { %1397 = vmatpush.bf16.msra.mxu1 %v1368_v48  ;;  %835 = vmatmul.bf16.gmra.mxu2 %v986_v51 }
  0x54   :  { %854 = vmatmul.bf16.gmra.mxu3 %v990_v52 }
  0x56   :  { %865 = vmatpush.bf16.msra.mxu0 %v1367_v53 }
  0x57   :  { %1398 = vmatpush.bf16.msra.mxu1 %v1367_v53 }
  0x5a   :  { %866 = vmatpush.bf16.msra.mxu0 %v1366_v54 }
  0x5b   :  { %1399 = vmatpush.bf16.msra.mxu1 %v1366_v54 }
  0x5e   :  { %867 = vmatpush.bf16.msra.mxu0 %v1365_v55 }
  0x5f   :  { %1400 = vmatpush.bf16.msra.mxu1 %v1365_v55 }
  0x61   :  { %868 = vmatmul.bf16.vlgmr.msra.gmra.mxu0 %v958_v60 }
  0x62   :  { %873 = vmatmul.bf16.vlgmr.msra.gmra.mxu1 %v994_v61  ;;  %v1402_v61 = vld [vmem:[%s1778_s3] ss:$0 sm:$0xff] }
  0x9e   :  { %v717_v62 = vpop.f32.mrf.mxu0 }
  0x9f   :  { %v736_v63 = vpop.f32.mrf.mxu1 }
  0xa0   :  { %v737_v20 = vadd.f32 %v736_v63, %v717_v62  ;;  %v1374_v62 = vld [vmem:[%s1779_s4] sm:$0xff]  }
  0xa6   :  { %v755_v0 = vpop.f32.mrf.mxu2  ;;  %v719_v2 = vpop.f32.mrf.mxu0 }
  0xa7   :  { %v774_v1 = vpop.f32.mrf.mxu3  ;;  %v738_v3 = vpop.f32.mrf.mxu1  ;;  %v756_v22 = vadd.f32 %v755_v0, %v737_v20  ;;  %v1391_v0 = vld [vmem:[%s1779_s4 + $0x8] sm:$0xff]  }
  0xa8   :  { %v739_v30 = vadd.f32 %v738_v3, %v719_v2 }
  0xa9   :  { %v775_v28 = vadd.f32 %v774_v1, %v756_v22 }
  0xae   :  { %v757_v4 = vpop.f32.mrf.mxu2  ;;  %v722_v6 = vpop.f32.mrf.mxu0 }
  0xaf   :  { %v776_v5 = vpop.f32.mrf.mxu3  ;;  %v741_v7 = vpop.f32.mrf.mxu1  ;;  %v758_v34 = vadd.f32 %v757_v4, %v739_v30  ;;  %v1375_v4 = vunpack.c.l.bf16 %v1374_v62 }
  0xb0   :  { %v742_v21 = vadd.f32 %v741_v7, %v722_v6 }
  0xb1   :  { %v777_v41 = vadd.f32 %v776_v5, %v758_v34  ;;  %v1379_v5 = vunpack.c.l.bf16 %v1391_v0 }
  0xb6   :  { %v760_v8 = vpop.f32.mrf.mxu2  ;;  %v724_v10 = vpop.f32.mrf.mxu0 }
  0xb7   :  { %v779_v9 = vpop.f32.mrf.mxu3  ;;  %v743_v11 = vpop.f32.mrf.mxu1  ;;  %v761_v23 = vadd.f32 %v760_v8, %v742_v21 }
  0xb8   :  { %v744_v31 = vadd.f32 %v743_v11, %v724_v10 }
  0xb9   :  { %v780_v29 = vadd.f32 %v779_v9, %v761_v23 }
  0xbe   :  { %v762_v12 = vpop.f32.mrf.mxu2  ;;  %v793_v14 = vpop.f32.mrf.mxu0 }
  0xbf   :  { %v781_v13 = vpop.f32.mrf.mxu3  ;;  %v812_v15 = vpop.f32.mrf.mxu1  ;;  %v794_v32 = vadd.f32 %v793_v14, %v775_v28  ;;  %v763_v35 = vadd.f32 %v762_v12, %v744_v31 }
  0xc1   :  { %v813_v39 = vadd.f32 %v812_v15, %v794_v32  ;;  %v782_v42 = vadd.f32 %v781_v13, %v763_v35  ;;  %v1376_v13 = vunpack.c.h.bf16 %v1374_v62  ;;  %v1380_v15 = vunpack.c.h.bf16 %v1391_v0 }
  0xc6   :  { %v831_v16 = vpop.f32.mrf.mxu2  ;;  %v795_v18 = vpop.f32.mrf.mxu0 }
  0xc7   :  { %v850_v17 = vpop.f32.mrf.mxu3  ;;  %v814_v19 = vpop.f32.mrf.mxu1  ;;  %v832_v43 = vadd.f32 %v831_v16, %v813_v39  ;;  %v796_v46 = vadd.f32 %v795_v18, %v777_v41 }
  0xc9   :  { %v851_v48 = vadd.f32 %v850_v17, %v832_v43  ;;  %v815_v53 = vadd.f32 %v814_v19, %v796_v46 }
  0xce   :  { %v833_v24 = vpop.f32.mrf.mxu2  ;;  %v798_v25 = vpop.f32.mrf.mxu0 }
  0xcf   :  { %v817_v26 = vpop.f32.mrf.mxu1  ;;  %v852_v27 = vpop.f32.mrf.mxu3  ;;  %v799_v33 = vadd.f32 %v798_v25, %v780_v29  ;;  %v834_v58 = vadd.f32 %v833_v24, %v815_v53 }
  0xd1   :  { %v818_v40 = vadd.f32 %v817_v26, %v799_v33  ;;  %v853_v2 = vadd.f32 %v852_v27, %v834_v58 }
  0xd6   :  { %v836_v36 = vpop.f32.mrf.mxu2  ;;  %v800_v37 = vpop.f32.mrf.mxu0 }
  0xd7   :  { %v819_v38 = vpop.f32.mrf.mxu1  ;;  %v837_v44 = vadd.f32 %v836_v36, %v818_v40  ;;  %v855_v45 = vpop.f32.mrf.mxu3  ;;  %v801_v47 = vadd.f32 %v800_v37, %v782_v42 }
  0xd9   :  { %v856_v49 = vadd.f32 %v855_v45, %v837_v44  ;;  %v820_v54 = vadd.f32 %v819_v38, %v801_v47 }
  0xde   :  { %v838_v50 = vpop.f32.mrf.mxu2  ;;  %v869_v51 = vpop.f32.mrf.mxu0 }
  0xdf   :  { %v874_v52 = vpop.f32.mrf.mxu1  ;;  %v870_v55 = vadd.f32 %v869_v51, %v851_v48  ;;  %v839_v59 = vadd.f32 %v838_v50, %v820_v54  ;;  %v857_v1 = vpop.f32.mrf.mxu3 }
  0xe0   :  { %v875_v57 = vadd.f32 %v874_v52, %v856_v49 }
  0xe1   :  { %v883_v60 = vmul.f32 %v1401_v56, %v870_v55  ;;  %v858_v3 = vadd.f32 %v857_v1, %v839_v59 }
  0xe2   :  { %v885_v63 = vmul.f32 %v1401_v56, %v875_v57 }
  0xe3   :  { %v891_v8 = vadd.f32 %v1402_v61, %v883_v60 }
  0xe4   :  { %v893_v9 = vadd.f32 %v1402_v61, %v885_v63 }
  0xe5   :  { %v903_v16 = vadd.f32 %v1375_v4, %v891_v8 }
  0xe6   :  { %v871_v6 = vpop.f32.mrf.mxu0  ;;  %v905_v17 = vadd.f32 %v1379_v5, %v893_v9 }
  0xe7   :  { %v876_v7 = vpop.f32.mrf.mxu1  ;;  %v872_v10 = vadd.f32 %v871_v6, %v853_v2  ;;  %v907_v22 = vmax.f32 %v903_v16, 0.0 }
  0xe8   :  { %v877_v11 = vadd.f32 %v876_v7, %v858_v3  ;;  %v909_v23 = vmax.f32 %v905_v17, 0.0 }
  0xe9   :  { %v884_v12 = vmul.f32 %v1401_v56, %v872_v10 }
  0xea   :  { %v886_v14 = vmul.f32 %v1401_v56, %v877_v11 }
  0xeb   :  { %v892_v18 = vadd.f32 %v1402_v61, %v884_v12 }
  0xec   :  { %v894_v19 = vadd.f32 %v1402_v61, %v886_v14 }
  0xed   :  { %v904_v20 = vadd.f32 %v1376_v13, %v892_v18 }
  0xee   :  { %v906_v21 = vadd.f32 %v1380_v15, %v894_v19 }
  0xef   :  { %v908_v24 = vmax.f32 %v904_v20, 0.0 }
  0xf0   :  { %v910_v25 = vmax.f32 %v906_v21, 0.0 }
  0xf1   :  { %v1384_v26 = vpack.c.bf16 %v908_v24, %v907_v22 }
  0xf2   :  { %v1389_v27 = vpack.c.bf16 %v910_v25, %v909_v23 }
  0xf3   :  { %1385 = vst [vmem:[%s1780_s5] sm:$0xff] %v1384_v26  }
  0xf4   :  { %1392 = vst [vmem:[%s1780_s5 + $0x8] sm:$0xff] %v1389_v27  }

</bundles_post_ra>
